<compile_context>
chip_gen: v5e
topology: v5e:2x2
jax: 0.10.0
libtpu: 0.0.40
codegen_flags: <defaults>
</compile_context>

<pallas_src>
import functools

import jax
import jax.numpy as jnp
from jax.experimental import pallas as pl
from jax.experimental.pallas import tpu as pltpu


# ---------------------------------------------------------------------------
# In-kernel math helpers (VPU/EUP-only ops: mul/add/select/exp).
# ---------------------------------------------------------------------------
def _erf(x):
    # Abramowitz & Stegun 7.1.26 rational approximation, |err| <= 1.5e-7.
    # Uses only exp (EUP) + VPU ops, so it lowers cleanly in Mosaic while
    # matching PyTorch's exact (erf-based) nn.GELU to float32 precision.
    p = 0.3275911
    a1, a2, a3, a4, a5 = (0.254829592, -0.284496736, 1.421413741,
                          -1.453152027, 1.061405429)
    sgn = jnp.where(x >= 0.0, 1.0, -1.0)
    ax = jnp.abs(x)
    t = 1.0 / (1.0 + p * ax)
    poly = ((((a5 * t + a4) * t + a3) * t + a2) * t + a1) * t
    return sgn * (1.0 - poly * jnp.exp(-ax * ax))


def _gelu(x):
    return 0.5 * x * (1.0 + _erf(x * 0.7071067811865476))


def _sigmoid(x):
    return 1.0 / (1.0 + jnp.exp(-x))


# ---------------------------------------------------------------------------
# Fused RCAB kernel: one grid step == one image.
# ---------------------------------------------------------------------------
def _rcab_kernel(x_ref, w1_ref, b1_ref, w2_ref, b2_ref,
                 se_w1_ref, se_b1_ref, se_w2t_ref, se_b2_ref,
                 o_ref, xp_ref, *, H, W, sigmoid_act):
    HW = H * W
    C = x_ref.shape[2]
    P = W + 1  # zero-pad rows so every 3x3 tap is an in-bounds row shift

    x = x_ref[0].astype(jnp.float32)                       # (HW, C)

    # Column index of each flattened pixel -> masks for horizontal taps.
    col = jax.lax.broadcasted_iota(jnp.int32, (HW, 1), 0) % W
    mask_not_first = (col != 0).astype(jnp.float32)        # valid when dx=-1
    mask_not_last = (col != (W - 1)).astype(jnp.float32)   # valid when dx=+1

    def conv3x3(w_taps_ref, bias_ref, src):
        # Stage `src` into the zero-padded VMEM scratch.
        xp_ref[...] = jnp.zeros(xp_ref.shape, jnp.float32)
        xp_ref[P:P + HW, :] = src
        acc = jnp.zeros((HW, C), jnp.float32)
        t = 0
        for dy in (-1, 0, 1):
            for dx in (-1, 0, 1):
                shift = dy * W + dx
                sh = xp_ref[pl.ds(P + shift, HW), :]        # (HW, C), static
                if dx == -1:
                    sh = sh * mask_not_first
                elif dx == 1:
                    sh = sh * mask_not_last
                acc = acc + jnp.dot(
                    sh, w_taps_ref[t].astype(jnp.float32),
                    preferred_element_type=jnp.float32)
                t += 1
        return acc + bias_ref[...].astype(jnp.float32)      # (HW, C)

    # conv1 -> GELU -> conv2
    h1 = _gelu(conv3x3(w1_ref, b1_ref, x))
    h2 = conv3x3(w2_ref, b2_ref, h1)                         # (HW, C)

    # Channel attention (squeeze & excite on a single (1, C) vector).
    pooled = jnp.sum(h2, axis=0, keepdims=True) * (1.0 / HW)  # (1, C)
    # z1[j] = sum_c pooled[c] * se_w1[j, c]   -> lane reduce, shape (Cr, 1)
    z1 = jnp.sum(se_w1_ref[...].astype(jnp.float32) * pooled,
                 axis=1, keepdims=True) + se_b1_ref[...].astype(jnp.float32)
    z1 = _gelu(z1)                                            # (Cr, 1)
    # z2[c] = sum_j se_w2[c, j] * z1[j]  (se_w2 passed transposed: (Cr, C))
    z2 = jnp.sum(se_w2t_ref[...].astype(jnp.float32) * z1,
                 axis=0, keepdims=True) + se_b2_ref[...].astype(jnp.float32)
    att = _sigmoid(z2) if sigmoid_act else _gelu(z2)          # (1, C)

    # Gate + residual.
    y = x + h2 * att
    o_ref[0] = y.astype(o_ref.dtype)


# ---------------------------------------------------------------------------
# Wrapper: PyTorch-style NCHW in / NCHW out.
# ---------------------------------------------------------------------------
def rcab_block(x, w1, b1, w2, b2, se_w1, se_b1, se_w2, se_b2, act="sigmoid"):
    """Forward pass of RCAB_Block.

    x:              (B, C, H, W)
    w1, w2:         (C, C, 3, 3)   conv weights (OIHW), biases b1, b2: (C,)
    se_w1:          (C//r, C)      1x1 squeeze conv weight, se_b1: (C//r,)
    se_w2:          (C, C//r)      1x1 excite  conv weight, se_b2: (C,)
    """
    B, C, H, W = x.shape
    Cr = se_w1.shape[0]
    HW = H * W

    # Single layout transpose in (and one out) for the whole fused block.
    x_t = jnp.transpose(x, (0, 2, 3, 1)).reshape(B, HW, C)

    # Per-tap (Cin, Cout) matrices, tap index t = ky*3 + kx.
    w1_taps = jnp.transpose(w1, (2, 3, 1, 0)).reshape(9, C, C)
    w2_taps = jnp.transpose(w2, (2, 3, 1, 0)).reshape(9, C, C)

    kernel = functools.partial(_rcab_kernel, H=H, W=W,
                               sigmoid_act=(act != "gelu"))

    out = pl.pallas_call(
        kernel,
        out_shape=jax.ShapeDtypeStruct((B, HW, C), x.dtype),
        grid=(B,),
        in_specs=[
            pl.BlockSpec((1, HW, C), lambda b: (b, 0, 0)),    # x (per image)
            pl.BlockSpec((9, C, C), lambda b: (0, 0, 0)),     # conv1 taps
            pl.BlockSpec((1, C), lambda b: (0, 0)),           # conv1 bias
            pl.BlockSpec((9, C, C), lambda b: (0, 0, 0)),     # conv2 taps
            pl.BlockSpec((1, C), lambda b: (0, 0)),           # conv2 bias
            pl.BlockSpec((Cr, C), lambda b: (0, 0)),          # se conv1 w
            pl.BlockSpec((Cr, 1), lambda b: (0, 0)),          # se conv1 b
            pl.BlockSpec((Cr, C), lambda b: (0, 0)),          # se conv2 w^T
            pl.BlockSpec((1, C), lambda b: (0, 0)),           # se conv2 b
        ],
        out_specs=pl.BlockSpec((1, HW, C), lambda b: (b, 0, 0)),
        scratch_shapes=[pltpu.VMEM((HW + 2 * (W + 1), C), jnp.float32)],
        compiler_params=pltpu.CompilerParams(
            dimension_semantics=("parallel",),
        ),
    )(x_t, w1_taps, b1.reshape(1, C), w2_taps, b2.reshape(1, C),
      se_w1, se_b1.reshape(Cr, 1), se_w2.T, se_b2.reshape(1, C))

    return out.reshape(B, H, W, C).transpose(0, 3, 1, 2)


# ---------------------------------------------------------------------------
# Pure-JAX reference (exact erf GELU, lax conv) for verification.
# ---------------------------------------------------------------------------
def rcab_reference(x, w1, b1, w2, b2, se_w1, se_b1, se_w2, se_b2,
                   act="sigmoid"):
    dn = ("NCHW", "OIHW", "NCHW")
    h = jax.lax.conv_general_dilated(x, w1, (1, 1), ((1, 1), (1, 1)),
                                     dimension_numbers=dn)
    h = h + b1.reshape(1, -1, 1, 1)
    h = jax.nn.gelu(h, approximate=False)
    h = jax.lax.conv_general_dilated(h, w2, (1, 1), ((1, 1), (1, 1)),
                                     dimension_numbers=dn)
    h = h + b2.reshape(1, -1, 1, 1)
    pooled = jnp.mean(h, axis=(2, 3))                     # (B, C)
    z = pooled @ se_w1.T + se_b1                          # (B, Cr)
    z = jax.nn.gelu(z, approximate=False)
    z = z @ se_w2.T + se_b2                               # (B, C)
    att = jax.nn.sigmoid(z) if act != "gelu" else jax.nn.gelu(
        z, approximate=False)
    return x + h * att[:, :, None, None]


if __name__ == "__main__":
    B, C, H, W = 2, 4, 16, 16
    reduction = 4
    Cr = C // reduction

    key = jax.random.PRNGKey(0)
    ks = jax.random.split(key, 9)
    x = jax.random.normal(ks[0], (B, C, H, W), dtype=jnp.float32)

    k_conv = 1.0 / (C * 9) ** 0.5
    w1 = jax.random.uniform(ks[1], (C, C, 3, 3), jnp.float32, -k_conv, k_conv)
    b1 = jax.random.uniform(ks[2], (C,), jnp.float32, -k_conv, k_conv)
    w2 = jax.random.uniform(ks[3], (C, C, 3, 3), jnp.float32, -k_conv, k_conv)
    b2 = jax.random.uniform(ks[4], (C,), jnp.float32, -k_conv, k_conv)

    k_se1 = 1.0 / C ** 0.5
    se_w1 = jax.random.uniform(ks[5], (Cr, C), jnp.float32, -k_se1, k_se1)
    se_b1 = jax.random.uniform(ks[6], (Cr,), jnp.float32, -k_se1, k_se1)
    k_se2 = 1.0 / max(Cr, 1) ** 0.5
    se_w2 = jax.random.uniform(ks[7], (C, Cr), jnp.float32, -k_se2, k_se2)
    se_b2 = jax.random.uniform(ks[8], (C,), jnp.float32, -k_se2, k_se2)

    # Default RCAB_Block (act='sigmoid') and the 'gelu' variant of CA_Block.
    for act in ("sigmoid", "gelu"):
        y = rcab_block(x, w1, b1, w2, b2, se_w1, se_b1, se_w2, se_b2, act=act)
        y = jax.block_until_ready(y)
        y_ref = rcab_reference(x, w1, b1, w2, b2, se_w1, se_b1, se_w2, se_b2,
                               act=act)
        assert y.shape == (B, C, H, W)
        assert jnp.allclose(y, y_ref, atol=1e-4, rtol=1e-4), (
            f"mismatch for act={act}: "
            f"max abs err {float(jnp.max(jnp.abs(y - y_ref)))}")

    print("KERNEL_OK")
</pallas_src>

<mosaic_0001>
module attributes {stable_mosaic.version = 11 : i64} {
  func.func @_rcab_kernel(%arg0: i32, %arg1: memref<1x256x4xf32, #tpu.memory_space<vmem>>, %arg2: memref<9x4x4xf32, #tpu.memory_space<vmem>>, %arg3: memref<1x4xf32, #tpu.memory_space<vmem>>, %arg4: memref<9x4x4xf32, #tpu.memory_space<vmem>>, %arg5: memref<1x4xf32, #tpu.memory_space<vmem>>, %arg6: memref<1x4xf32, #tpu.memory_space<vmem>>, %arg7: memref<1x1xf32, #tpu.memory_space<vmem>>, %arg8: memref<1x4xf32, #tpu.memory_space<vmem>>, %arg9: memref<1x4xf32, #tpu.memory_space<vmem>>, %arg10: memref<1x256x4xf32, #tpu.memory_space<vmem>>, %arg11: memref<290x4xf32, #tpu.memory_space<vmem>>) attributes {dimension_semantics = [#tpu.dimension_semantics<parallel>], iteration_bounds = array<i64: 2>, scalar_prefetch = 0 : i64, scratch_operands = 1 : i64, tpu.core_type = #tpu.core_type<tc>, window_params = [{transform_indices = @transform_0, window_bounds = array<i64: 1, 256, 4>}, {pipeline_mode = #tpu.pipeline_mode<synchronous>, transform_indices = @transform_1, window_bounds = array<i64: 9, 4, 4>}, {pipeline_mode = #tpu.pipeline_mode<synchronous>, transform_indices = @transform_2, window_bounds = array<i64: 1, 4>}, {pipeline_mode = #tpu.pipeline_mode<synchronous>, transform_indices = @transform_3, window_bounds = array<i64: 9, 4, 4>}, {pipeline_mode = #tpu.pipeline_mode<synchronous>, transform_indices = @transform_4, window_bounds = array<i64: 1, 4>}, {pipeline_mode = #tpu.pipeline_mode<synchronous>, transform_indices = @transform_5, window_bounds = array<i64: 1, 4>}, {pipeline_mode = #tpu.pipeline_mode<synchronous>, transform_indices = @transform_6, window_bounds = array<i64: 1, 1>}, {pipeline_mode = #tpu.pipeline_mode<synchronous>, transform_indices = @transform_7, window_bounds = array<i64: 1, 4>}, {pipeline_mode = #tpu.pipeline_mode<synchronous>, transform_indices = @transform_8, window_bounds = array<i64: 1, 4>}, {transform_indices = @transform_9, window_bounds = array<i64: 1, 256, 4>}]} {
    %c0 = arith.constant 0 : index
    %c0_0 = arith.constant 0 : index
    %c0_1 = arith.constant 0 : index
    %0 = vector.load %arg1[%c0, %c0_0, %c0_1] : memref<1x256x4xf32, #tpu.memory_space<vmem>>, vector<1x256x4xf32>
    %1 = vector.shape_cast %0 : vector<1x256x4xf32> to vector<256x4xf32>
    %2 = tpu.iota {dimensions = array<i32: 0>} : vector<256x1xi32>
    %c16_i32 = arith.constant 16 : i32
    %c0_i32 = arith.constant 0 : i32
    %3 = arith.cmpi eq, %c16_i32, %c0_i32 : i32
    %c1_i32 = arith.constant 1 : i32
    %4 = arith.select %3, %c1_i32, %c16_i32 : i32
    %5 = vector.broadcast %4 : i32 to vector<256x1xi32>
    %6 = arith.remsi %2, %5 : vector<256x1xi32>
    %c0_i32_2 = arith.constant 0 : i32
    %7 = vector.broadcast %c0_i32_2 : i32 to vector<256x1xi32>
    %8 = arith.cmpi ne, %6, %7 : vector<256x1xi32>
    %c0_i32_3 = arith.constant 0 : i32
    %9 = vector.broadcast %c0_i32_3 : i32 to vector<256x1xi32>
    %10 = arith.cmpi slt, %6, %9 : vector<256x1xi32>
    %c0_i32_4 = arith.constant 0 : i32
    %11 = arith.cmpi slt, %4, %c0_i32_4 : i32
    %12 = vector.broadcast %11 : i1 to vector<256x1xi1>
    %13 = vector.broadcast %12 : vector<256x1xi1> to vector<256x1xi1>
    %14 = arith.xori %10, %13 : vector<256x1xi1>
    %15 = arith.andi %14, %8 : vector<256x1xi1>
    %16 = vector.broadcast %4 : i32 to vector<256x1xi32>
    %17 = arith.addi %6, %16 : vector<256x1xi32>
    %18 = arith.select %15, %17, %6 : vector<256x1xi1>, vector<256x1xi32>
    %c0_i32_5 = arith.constant 0 : i32
    %19 = vector.broadcast %c0_i32_5 : i32 to vector<256x1xi32>
    %20 = arith.cmpi ne, %18, %19 : vector<256x1xi32>
    %21 = arith.extui %20 : vector<256x1xi1> to vector<256x1xi32>
    %22 = arith.sitofp %21 : vector<256x1xi32> to vector<256x1xf32>
    %c15_i32 = arith.constant 15 : i32
    %23 = vector.broadcast %c15_i32 : i32 to vector<256x1xi32>
    %24 = arith.cmpi ne, %18, %23 : vector<256x1xi32>
    %25 = arith.extui %24 : vector<256x1xi1> to vector<256x1xi32>
    %26 = arith.sitofp %25 : vector<256x1xi32> to vector<256x1xf32>
    %cst = arith.constant 0.000000e+00 : f32
    %27 = vector.broadcast %cst : f32 to vector<290x4xf32>
    %c0_6 = arith.constant 0 : index
    %c0_7 = arith.constant 0 : index
    %28 = vector.load %arg11[%c0_6, %c0_7] : memref<290x4xf32, #tpu.memory_space<vmem>>, vector<290x4xf32>
    tpu.vector_store %arg11[%c0_6, %c0_7], %27 {strides = array<i32>} : memref<290x4xf32, #tpu.memory_space<vmem>>, vector<290x4xf32>,
    %c17 = arith.constant 17 : index
    %c0_8 = arith.constant 0 : index
    %29 = vector.load %arg11[%c17, %c0_8] : memref<290x4xf32, #tpu.memory_space<vmem>>, vector<256x4xf32>
    tpu.vector_store %arg11[%c17, %c0_8], %1 {strides = array<i32>} : memref<290x4xf32, #tpu.memory_space<vmem>>, vector<256x4xf32>,
    %cst_9 = arith.constant 0.000000e+00 : f32
    %30 = vector.broadcast %cst_9 : f32 to vector<256x4xf32>
    %c0_10 = arith.constant 0 : index
    %c0_11 = arith.constant 0 : index
    %31 = vector.load %arg11[%c0_10, %c0_11] : memref<290x4xf32, #tpu.memory_space<vmem>>, vector<256x4xf32>
    %32 = vector.broadcast %22 : vector<256x1xf32> to vector<256x4xf32>
    %33 = arith.mulf %31, %32 : vector<256x4xf32>
    %c0_12 = arith.constant 0 : index
    %c0_13 = arith.constant 0 : index
    %c0_14 = arith.constant 0 : index
    %34 = vector.load %arg2[%c0_12, %c0_13, %c0_14] : memref<9x4x4xf32, #tpu.memory_space<vmem>>, vector<1x4x4xf32>
    %35 = vector.shape_cast %34 : vector<1x4x4xf32> to vector<4x4xf32>
    %cst_15 = arith.constant dense<0.000000e+00> : vector<256x4xf32>
    %36 = tpu.matmul %33, %35, %cst_15 {dimension_numbers = #tpu.dot_dimension_numbers<[1], [0], [0], [1], [0, 0, 1, 1], [], []>} : vector<256x4xf32>, vector<4x4xf32>, vector<256x4xf32> -> vector<256x4xf32>
    %37 = arith.addf %30, %36 : vector<256x4xf32>
    %c1 = arith.constant 1 : index
    %c0_16 = arith.constant 0 : index
    %38 = vector.load %arg11[%c1, %c0_16] : memref<290x4xf32, #tpu.memory_space<vmem>>, vector<256x4xf32>
    %c1_17 = arith.constant 1 : index
    %c0_18 = arith.constant 0 : index
    %c0_19 = arith.constant 0 : index
    %39 = vector.load %arg2[%c1_17, %c0_18, %c0_19] : memref<9x4x4xf32, #tpu.memory_space<vmem>>, vector<1x4x4xf32>
    %40 = vector.shape_cast %39 : vector<1x4x4xf32> to vector<4x4xf32>
    %cst_20 = arith.constant dense<0.000000e+00> : vector<256x4xf32>
    %41 = tpu.matmul %38, %40, %cst_20 {dimension_numbers = #tpu.dot_dimension_numbers<[1], [0], [0], [1], [0, 0, 1, 1], [], []>} : vector<256x4xf32>, vector<4x4xf32>, vector<256x4xf32> -> vector<256x4xf32>
    %42 = arith.addf %37, %41 : vector<256x4xf32>
    %c2 = arith.constant 2 : index
    %c0_21 = arith.constant 0 : index
    %43 = vector.load %arg11[%c2, %c0_21] : memref<290x4xf32, #tpu.memory_space<vmem>>, vector<256x4xf32>
    %44 = vector.broadcast %26 : vector<256x1xf32> to vector<256x4xf32>
    %45 = arith.mulf %43, %44 : vector<256x4xf32>
    %c2_22 = arith.constant 2 : index
    %c0_23 = arith.constant 0 : index
    %c0_24 = arith.constant 0 : index
    %46 = vector.load %arg2[%c2_22, %c0_23, %c0_24] : memref<9x4x4xf32, #tpu.memory_space<vmem>>, vector<1x4x4xf32>
    %47 = vector.shape_cast %46 : vector<1x4x4xf32> to vector<4x4xf32>
    %cst_25 = arith.constant dense<0.000000e+00> : vector<256x4xf32>
    %48 = tpu.matmul %45, %47, %cst_25 {dimension_numbers = #tpu.dot_dimension_numbers<[1], [0], [0], [1], [0, 0, 1, 1], [], []>} : vector<256x4xf32>, vector<4x4xf32>, vector<256x4xf32> -> vector<256x4xf32>
    %49 = arith.addf %42, %48 : vector<256x4xf32>
    %c16 = arith.constant 16 : index
    %c0_26 = arith.constant 0 : index
    %50 = vector.load %arg11[%c16, %c0_26] : memref<290x4xf32, #tpu.memory_space<vmem>>, vector<256x4xf32>
    %51 = vector.broadcast %22 : vector<256x1xf32> to vector<256x4xf32>
    %52 = arith.mulf %50, %51 : vector<256x4xf32>
    %c3 = arith.constant 3 : index
    %c0_27 = arith.constant 0 : index
    %c0_28 = arith.constant 0 : index
    %53 = vector.load %arg2[%c3, %c0_27, %c0_28] : memref<9x4x4xf32, #tpu.memory_space<vmem>>, vector<1x4x4xf32>
    %54 = vector.shape_cast %53 : vector<1x4x4xf32> to vector<4x4xf32>
    %cst_29 = arith.constant dense<0.000000e+00> : vector<256x4xf32>
    %55 = tpu.matmul %52, %54, %cst_29 {dimension_numbers = #tpu.dot_dimension_numbers<[1], [0], [0], [1], [0, 0, 1, 1], [], []>} : vector<256x4xf32>, vector<4x4xf32>, vector<256x4xf32> -> vector<256x4xf32>
    %56 = arith.addf %49, %55 : vector<256x4xf32>
    %c17_30 = arith.constant 17 : index
    %c0_31 = arith.constant 0 : index
    %57 = vector.load %arg11[%c17_30, %c0_31] : memref<290x4xf32, #tpu.memory_space<vmem>>, vector<256x4xf32>
    %c4 = arith.constant 4 : index
    %c0_32 = arith.constant 0 : index
    %c0_33 = arith.constant 0 : index
    %58 = vector.load %arg2[%c4, %c0_32, %c0_33] : memref<9x4x4xf32, #tpu.memory_space<vmem>>, vector<1x4x4xf32>
    %59 = vector.shape_cast %58 : vector<1x4x4xf32> to vector<4x4xf32>
    %cst_34 = arith.constant dense<0.000000e+00> : vector<256x4xf32>
    %60 = tpu.matmul %57, %59, %cst_34 {dimension_numbers = #tpu.dot_dimension_numbers<[1], [0], [0], [1], [0, 0, 1, 1], [], []>} : vector<256x4xf32>, vector<4x4xf32>, vector<256x4xf32> -> vector<256x4xf32>
    %61 = arith.addf %56, %60 : vector<256x4xf32>
    %c18 = arith.constant 18 : index
    %c0_35 = arith.constant 0 : index
    %62 = vector.load %arg11[%c18, %c0_35] : memref<290x4xf32, #tpu.memory_space<vmem>>, vector<256x4xf32>
    %63 = vector.broadcast %26 : vector<256x1xf32> to vector<256x4xf32>
    %64 = arith.mulf %62, %63 : vector<256x4xf32>
    %c5 = arith.constant 5 : index
    %c0_36 = arith.constant 0 : index
    %c0_37 = arith.constant 0 : index
    %65 = vector.load %arg2[%c5, %c0_36, %c0_37] : memref<9x4x4xf32, #tpu.memory_space<vmem>>, vector<1x4x4xf32>
    %66 = vector.shape_cast %65 : vector<1x4x4xf32> to vector<4x4xf32>
    %cst_38 = arith.constant dense<0.000000e+00> : vector<256x4xf32>
    %67 = tpu.matmul %64, %66, %cst_38 {dimension_numbers = #tpu.dot_dimension_numbers<[1], [0], [0], [1], [0, 0, 1, 1], [], []>} : vector<256x4xf32>, vector<4x4xf32>, vector<256x4xf32> -> vector<256x4xf32>
    %68 = arith.addf %61, %67 : vector<256x4xf32>
    %c32 = arith.constant 32 : index
    %c0_39 = arith.constant 0 : index
    %69 = vector.load %arg11[%c32, %c0_39] : memref<290x4xf32, #tpu.memory_space<vmem>>, vector<256x4xf32>
    %70 = vector.broadcast %22 : vector<256x1xf32> to vector<256x4xf32>
    %71 = arith.mulf %69, %70 : vector<256x4xf32>
    %c6 = arith.constant 6 : index
    %c0_40 = arith.constant 0 : index
    %c0_41 = arith.constant 0 : index
    %72 = vector.load %arg2[%c6, %c0_40, %c0_41] : memref<9x4x4xf32, #tpu.memory_space<vmem>>, vector<1x4x4xf32>
    %73 = vector.shape_cast %72 : vector<1x4x4xf32> to vector<4x4xf32>
    %cst_42 = arith.constant dense<0.000000e+00> : vector<256x4xf32>
    %74 = tpu.matmul %71, %73, %cst_42 {dimension_numbers = #tpu.dot_dimension_numbers<[1], [0], [0], [1], [0, 0, 1, 1], [], []>} : vector<256x4xf32>, vector<4x4xf32>, vector<256x4xf32> -> vector<256x4xf32>
    %75 = arith.addf %68, %74 : vector<256x4xf32>
    %c33 = arith.constant 33 : index
    %c0_43 = arith.constant 0 : index
    %76 = vector.load %arg11[%c33, %c0_43] : memref<290x4xf32, #tpu.memory_space<vmem>>, vector<256x4xf32>
    %c7 = arith.constant 7 : index
    %c0_44 = arith.constant 0 : index
    %c0_45 = arith.constant 0 : index
    %77 = vector.load %arg2[%c7, %c0_44, %c0_45] : memref<9x4x4xf32, #tpu.memory_space<vmem>>, vector<1x4x4xf32>
    %78 = vector.shape_cast %77 : vector<1x4x4xf32> to vector<4x4xf32>
    %cst_46 = arith.constant dense<0.000000e+00> : vector<256x4xf32>
    %79 = tpu.matmul %76, %78, %cst_46 {dimension_numbers = #tpu.dot_dimension_numbers<[1], [0], [0], [1], [0, 0, 1, 1], [], []>} : vector<256x4xf32>, vector<4x4xf32>, vector<256x4xf32> -> vector<256x4xf32>
    %80 = arith.addf %75, %79 : vector<256x4xf32>
    %c34 = arith.constant 34 : index
    %c0_47 = arith.constant 0 : index
    %81 = vector.load %arg11[%c34, %c0_47] : memref<290x4xf32, #tpu.memory_space<vmem>>, vector<256x4xf32>
    %82 = vector.broadcast %26 : vector<256x1xf32> to vector<256x4xf32>
    %83 = arith.mulf %81, %82 : vector<256x4xf32>
    %c8 = arith.constant 8 : index
    %c0_48 = arith.constant 0 : index
    %c0_49 = arith.constant 0 : index
    %84 = vector.load %arg2[%c8, %c0_48, %c0_49] : memref<9x4x4xf32, #tpu.memory_space<vmem>>, vector<1x4x4xf32>
    %85 = vector.shape_cast %84 : vector<1x4x4xf32> to vector<4x4xf32>
    %cst_50 = arith.constant dense<0.000000e+00> : vector<256x4xf32>
    %86 = tpu.matmul %83, %85, %cst_50 {dimension_numbers = #tpu.dot_dimension_numbers<[1], [0], [0], [1], [0, 0, 1, 1], [], []>} : vector<256x4xf32>, vector<4x4xf32>, vector<256x4xf32> -> vector<256x4xf32>
    %87 = arith.addf %80, %86 : vector<256x4xf32>
    %c0_51 = arith.constant 0 : index
    %c0_52 = arith.constant 0 : index
    %88 = vector.load %arg3[%c0_51, %c0_52] : memref<1x4xf32, #tpu.memory_space<vmem>>, vector<1x4xf32>
    %89 = vector.broadcast %88 : vector<1x4xf32> to vector<256x4xf32>
    %90 = arith.addf %87, %89 : vector<256x4xf32>
    %cst_53 = arith.constant 5.000000e-01 : f32
    %91 = vector.broadcast %cst_53 : f32 to vector<256x4xf32>
    %92 = arith.mulf %91, %90 : vector<256x4xf32>
    %cst_54 = arith.constant 0.707106769 : f32
    %93 = vector.broadcast %cst_54 : f32 to vector<256x4xf32>
    %94 = arith.mulf %90, %93 : vector<256x4xf32>
    %cst_55 = arith.constant 0.000000e+00 : f32
    %95 = vector.broadcast %cst_55 : f32 to vector<256x4xf32>
    %96 = arith.cmpf oge, %94, %95 : vector<256x4xf32>
    %cst_56 = arith.constant 1.000000e+00 : f32
    %cst_57 = arith.constant -1.000000e+00 : f32
    %97 = vector.broadcast %cst_56 : f32 to vector<256x4xf32>
    %98 = vector.broadcast %cst_57 : f32 to vector<256x4xf32>
    %99 = arith.select %96, %97, %98 : vector<256x4xi1>, vector<256x4xf32>
    %100 = math.absf %94 : vector<256x4xf32>
    %cst_58 = arith.constant 0.327591091 : f32
    %101 = vector.broadcast %cst_58 : f32 to vector<256x4xf32>
    %102 = arith.mulf %101, %100 : vector<256x4xf32>
    %cst_59 = arith.constant 1.000000e+00 : f32
    %103 = vector.broadcast %cst_59 : f32 to vector<256x4xf32>
    %104 = arith.addf %103, %102 : vector<256x4xf32>
    %cst_60 = arith.constant 1.000000e+00 : f32
    %105 = vector.broadcast %cst_60 : f32 to vector<256x4xf32>
    %106 = arith.divf %105, %104 : vector<256x4xf32>
    %cst_61 = arith.constant 1.06140542 : f32
    %107 = vector.broadcast %cst_61 : f32 to vector<256x4xf32>
    %108 = arith.mulf %107, %106 : vector<256x4xf32>
    %cst_62 = arith.constant -1.45315206 : f32
    %109 = vector.broadcast %cst_62 : f32 to vector<256x4xf32>
    %110 = arith.addf %108, %109 : vector<256x4xf32>
    %111 = arith.mulf %110, %106 : vector<256x4xf32>
    %cst_63 = arith.constant 1.42141378 : f32
    %112 = vector.broadcast %cst_63 : f32 to vector<256x4xf32>
    %113 = arith.addf %111, %112 : vector<256x4xf32>
    %114 = arith.mulf %113, %106 : vector<256x4xf32>
    %cst_64 = arith.constant -0.284496725 : f32
    %115 = vector.broadcast %cst_64 : f32 to vector<256x4xf32>
    %116 = arith.addf %114, %115 : vector<256x4xf32>
    %117 = arith.mulf %116, %106 : vector<256x4xf32>
    %cst_65 = arith.constant 0.254829586 : f32
    %118 = vector.broadcast %cst_65 : f32 to vector<256x4xf32>
    %119 = arith.addf %117, %118 : vector<256x4xf32>
    %120 = arith.mulf %119, %106 : vector<256x4xf32>
    %cst_66 = arith.constant 0.000000e+00 : f32
    %121 = vector.broadcast %cst_66 : f32 to vector<256x4xf32>
    %122 = arith.subf %121, %100 : vector<256x4xf32>
    %123 = arith.mulf %122, %100 : vector<256x4xf32>
    %124 = math.exp %123 : vector<256x4xf32>
    %125 = arith.mulf %120, %124 : vector<256x4xf32>
    %cst_67 = arith.constant 1.000000e+00 : f32
    %126 = vector.broadcast %cst_67 : f32 to vector<256x4xf32>
    %127 = arith.subf %126, %125 : vector<256x4xf32>
    %128 = arith.mulf %99, %127 : vector<256x4xf32>
    %cst_68 = arith.constant 1.000000e+00 : f32
    %129 = vector.broadcast %cst_68 : f32 to vector<256x4xf32>
    %130 = arith.addf %129, %128 : vector<256x4xf32>
    %131 = arith.mulf %92, %130 : vector<256x4xf32>
    %cst_69 = arith.constant 0.000000e+00 : f32
    %132 = vector.broadcast %cst_69 : f32 to vector<290x4xf32>
    %c0_70 = arith.constant 0 : index
    %c0_71 = arith.constant 0 : index
    %133 = vector.load %arg11[%c0_70, %c0_71] : memref<290x4xf32, #tpu.memory_space<vmem>>, vector<290x4xf32>
    tpu.vector_store %arg11[%c0_70, %c0_71], %132 {strides = array<i32>} : memref<290x4xf32, #tpu.memory_space<vmem>>, vector<290x4xf32>,
    %c17_72 = arith.constant 17 : index
    %c0_73 = arith.constant 0 : index
    %134 = vector.load %arg11[%c17_72, %c0_73] : memref<290x4xf32, #tpu.memory_space<vmem>>, vector<256x4xf32>
    tpu.vector_store %arg11[%c17_72, %c0_73], %131 {strides = array<i32>} : memref<290x4xf32, #tpu.memory_space<vmem>>, vector<256x4xf32>,
    %cst_74 = arith.constant 0.000000e+00 : f32
    %135 = vector.broadcast %cst_74 : f32 to vector<256x4xf32>
    %c0_75 = arith.constant 0 : index
    %c0_76 = arith.constant 0 : index
    %136 = vector.load %arg11[%c0_75, %c0_76] : memref<290x4xf32, #tpu.memory_space<vmem>>, vector<256x4xf32>
    %137 = vector.broadcast %22 : vector<256x1xf32> to vector<256x4xf32>
    %138 = arith.mulf %136, %137 : vector<256x4xf32>
    %c0_77 = arith.constant 0 : index
    %c0_78 = arith.constant 0 : index
    %c0_79 = arith.constant 0 : index
    %139 = vector.load %arg4[%c0_77, %c0_78, %c0_79] : memref<9x4x4xf32, #tpu.memory_space<vmem>>, vector<1x4x4xf32>
    %140 = vector.shape_cast %139 : vector<1x4x4xf32> to vector<4x4xf32>
    %cst_80 = arith.constant dense<0.000000e+00> : vector<256x4xf32>
    %141 = tpu.matmul %138, %140, %cst_80 {dimension_numbers = #tpu.dot_dimension_numbers<[1], [0], [0], [1], [0, 0, 1, 1], [], []>} : vector<256x4xf32>, vector<4x4xf32>, vector<256x4xf32> -> vector<256x4xf32>
    %142 = arith.addf %135, %141 : vector<256x4xf32>
    %c1_81 = arith.constant 1 : index
    %c0_82 = arith.constant 0 : index
    %143 = vector.load %arg11[%c1_81, %c0_82] : memref<290x4xf32, #tpu.memory_space<vmem>>, vector<256x4xf32>
    %c1_83 = arith.constant 1 : index
    %c0_84 = arith.constant 0 : index
    %c0_85 = arith.constant 0 : index
    %144 = vector.load %arg4[%c1_83, %c0_84, %c0_85] : memref<9x4x4xf32, #tpu.memory_space<vmem>>, vector<1x4x4xf32>
    %145 = vector.shape_cast %144 : vector<1x4x4xf32> to vector<4x4xf32>
    %cst_86 = arith.constant dense<0.000000e+00> : vector<256x4xf32>
    %146 = tpu.matmul %143, %145, %cst_86 {dimension_numbers = #tpu.dot_dimension_numbers<[1], [0], [0], [1], [0, 0, 1, 1], [], []>} : vector<256x4xf32>, vector<4x4xf32>, vector<256x4xf32> -> vector<256x4xf32>
    %147 = arith.addf %142, %146 : vector<256x4xf32>
    %c2_87 = arith.constant 2 : index
    %c0_88 = arith.constant 0 : index
    %148 = vector.load %arg11[%c2_87, %c0_88] : memref<290x4xf32, #tpu.memory_space<vmem>>, vector<256x4xf32>
    %149 = vector.broadcast %26 : vector<256x1xf32> to vector<256x4xf32>
    %150 = arith.mulf %148, %149 : vector<256x4xf32>
    %c2_89 = arith.constant 2 : index
    %c0_90 = arith.constant 0 : index
    %c0_91 = arith.constant 0 : index
    %151 = vector.load %arg4[%c2_89, %c0_90, %c0_91] : memref<9x4x4xf32, #tpu.memory_space<vmem>>, vector<1x4x4xf32>
    %152 = vector.shape_cast %151 : vector<1x4x4xf32> to vector<4x4xf32>
    %cst_92 = arith.constant dense<0.000000e+00> : vector<256x4xf32>
    %153 = tpu.matmul %150, %152, %cst_92 {dimension_numbers = #tpu.dot_dimension_numbers<[1], [0], [0], [1], [0, 0, 1, 1], [], []>} : vector<256x4xf32>, vector<4x4xf32>, vector<256x4xf32> -> vector<256x4xf32>
    %154 = arith.addf %147, %153 : vector<256x4xf32>
    %c16_93 = arith.constant 16 : index
    %c0_94 = arith.constant 0 : index
    %155 = vector.load %arg11[%c16_93, %c0_94] : memref<290x4xf32, #tpu.memory_space<vmem>>, vector<256x4xf32>
    %156 = vector.broadcast %22 : vector<256x1xf32> to vector<256x4xf32>
    %157 = arith.mulf %155, %156 : vector<256x4xf32>
    %c3_95 = arith.constant 3 : index
    %c0_96 = arith.constant 0 : index
    %c0_97 = arith.constant 0 : index
    %158 = vector.load %arg4[%c3_95, %c0_96, %c0_97] : memref<9x4x4xf32, #tpu.memory_space<vmem>>, vector<1x4x4xf32>
    %159 = vector.shape_cast %158 : vector<1x4x4xf32> to vector<4x4xf32>
    %cst_98 = arith.constant dense<0.000000e+00> : vector<256x4xf32>
    %160 = tpu.matmul %157, %159, %cst_98 {dimension_numbers = #tpu.dot_dimension_numbers<[1], [0], [0], [1], [0, 0, 1, 1], [], []>} : vector<256x4xf32>, vector<4x4xf32>, vector<256x4xf32> -> vector<256x4xf32>
    %161 = arith.addf %154, %160 : vector<256x4xf32>
    %c17_99 = arith.constant 17 : index
    %c0_100 = arith.constant 0 : index
    %162 = vector.load %arg11[%c17_99, %c0_100] : memref<290x4xf32, #tpu.memory_space<vmem>>, vector<256x4xf32>
    %c4_101 = arith.constant 4 : index
    %c0_102 = arith.constant 0 : index
    %c0_103 = arith.constant 0 : index
    %163 = vector.load %arg4[%c4_101, %c0_102, %c0_103] : memref<9x4x4xf32, #tpu.memory_space<vmem>>, vector<1x4x4xf32>
    %164 = vector.shape_cast %163 : vector<1x4x4xf32> to vector<4x4xf32>
    %cst_104 = arith.constant dense<0.000000e+00> : vector<256x4xf32>
    %165 = tpu.matmul %162, %164, %cst_104 {dimension_numbers = #tpu.dot_dimension_numbers<[1], [0], [0], [1], [0, 0, 1, 1], [], []>} : vector<256x4xf32>, vector<4x4xf32>, vector<256x4xf32> -> vector<256x4xf32>
    %166 = arith.addf %161, %165 : vector<256x4xf32>
    %c18_105 = arith.constant 18 : index
    %c0_106 = arith.constant 0 : index
    %167 = vector.load %arg11[%c18_105, %c0_106] : memref<290x4xf32, #tpu.memory_space<vmem>>, vector<256x4xf32>
    %168 = vector.broadcast %26 : vector<256x1xf32> to vector<256x4xf32>
    %169 = arith.mulf %167, %168 : vector<256x4xf32>
    %c5_107 = arith.constant 5 : index
    %c0_108 = arith.constant 0 : index
    %c0_109 = arith.constant 0 : index
    %170 = vector.load %arg4[%c5_107, %c0_108, %c0_109] : memref<9x4x4xf32, #tpu.memory_space<vmem>>, vector<1x4x4xf32>
    %171 = vector.shape_cast %170 : vector<1x4x4xf32> to vector<4x4xf32>
    %cst_110 = arith.constant dense<0.000000e+00> : vector<256x4xf32>
    %172 = tpu.matmul %169, %171, %cst_110 {dimension_numbers = #tpu.dot_dimension_numbers<[1], [0], [0], [1], [0, 0, 1, 1], [], []>} : vector<256x4xf32>, vector<4x4xf32>, vector<256x4xf32> -> vector<256x4xf32>
    %173 = arith.addf %166, %172 : vector<256x4xf32>
    %c32_111 = arith.constant 32 : index
    %c0_112 = arith.constant 0 : index
    %174 = vector.load %arg11[%c32_111, %c0_112] : memref<290x4xf32, #tpu.memory_space<vmem>>, vector<256x4xf32>
    %175 = vector.broadcast %22 : vector<256x1xf32> to vector<256x4xf32>
    %176 = arith.mulf %174, %175 : vector<256x4xf32>
    %c6_113 = arith.constant 6 : index
    %c0_114 = arith.constant 0 : index
    %c0_115 = arith.constant 0 : index
    %177 = vector.load %arg4[%c6_113, %c0_114, %c0_115] : memref<9x4x4xf32, #tpu.memory_space<vmem>>, vector<1x4x4xf32>
    %178 = vector.shape_cast %177 : vector<1x4x4xf32> to vector<4x4xf32>
    %cst_116 = arith.constant dense<0.000000e+00> : vector<256x4xf32>
    %179 = tpu.matmul %176, %178, %cst_116 {dimension_numbers = #tpu.dot_dimension_numbers<[1], [0], [0], [1], [0, 0, 1, 1], [], []>} : vector<256x4xf32>, vector<4x4xf32>, vector<256x4xf32> -> vector<256x4xf32>
    %180 = arith.addf %173, %179 : vector<256x4xf32>
    %c33_117 = arith.constant 33 : index
    %c0_118 = arith.constant 0 : index
    %181 = vector.load %arg11[%c33_117, %c0_118] : memref<290x4xf32, #tpu.memory_space<vmem>>, vector<256x4xf32>
    %c7_119 = arith.constant 7 : index
    %c0_120 = arith.constant 0 : index
    %c0_121 = arith.constant 0 : index
    %182 = vector.load %arg4[%c7_119, %c0_120, %c0_121] : memref<9x4x4xf32, #tpu.memory_space<vmem>>, vector<1x4x4xf32>
    %183 = vector.shape_cast %182 : vector<1x4x4xf32> to vector<4x4xf32>
    %cst_122 = arith.constant dense<0.000000e+00> : vector<256x4xf32>
    %184 = tpu.matmul %181, %183, %cst_122 {dimension_numbers = #tpu.dot_dimension_numbers<[1], [0], [0], [1], [0, 0, 1, 1], [], []>} : vector<256x4xf32>, vector<4x4xf32>, vector<256x4xf32> -> vector<256x4xf32>
    %185 = arith.addf %180, %184 : vector<256x4xf32>
    %c34_123 = arith.constant 34 : index
    %c0_124 = arith.constant 0 : index
    %186 = vector.load %arg11[%c34_123, %c0_124] : memref<290x4xf32, #tpu.memory_space<vmem>>, vector<256x4xf32>
    %187 = vector.broadcast %26 : vector<256x1xf32> to vector<256x4xf32>
    %188 = arith.mulf %186, %187 : vector<256x4xf32>
    %c8_125 = arith.constant 8 : index
    %c0_126 = arith.constant 0 : index
    %c0_127 = arith.constant 0 : index
    %189 = vector.load %arg4[%c8_125, %c0_126, %c0_127] : memref<9x4x4xf32, #tpu.memory_space<vmem>>, vector<1x4x4xf32>
    %190 = vector.shape_cast %189 : vector<1x4x4xf32> to vector<4x4xf32>
    %cst_128 = arith.constant dense<0.000000e+00> : vector<256x4xf32>
    %191 = tpu.matmul %188, %190, %cst_128 {dimension_numbers = #tpu.dot_dimension_numbers<[1], [0], [0], [1], [0, 0, 1, 1], [], []>} : vector<256x4xf32>, vector<4x4xf32>, vector<256x4xf32> -> vector<256x4xf32>
    %192 = arith.addf %185, %191 : vector<256x4xf32>
    %c0_129 = arith.constant 0 : index
    %c0_130 = arith.constant 0 : index
    %193 = vector.load %arg5[%c0_129, %c0_130] : memref<1x4xf32, #tpu.memory_space<vmem>>, vector<1x4xf32>
    %194 = vector.broadcast %193 : vector<1x4xf32> to vector<256x4xf32>
    %195 = arith.addf %192, %194 : vector<256x4xf32>
    %cst_131 = arith.constant dense<0.000000e+00> : vector<4xf32>
    %196 = vector.multi_reduction <add>, %195, %cst_131 [0] : vector<256x4xf32> to vector<4xf32>
    %197 = vector.shape_cast %196 : vector<4xf32> to vector<1x4xf32>
    %cst_132 = arith.constant 3.906250e-03 : f32
    %198 = vector.broadcast %cst_132 : f32 to vector<1x4xf32>
    %199 = arith.mulf %197, %198 : vector<1x4xf32>
    %c0_133 = arith.constant 0 : index
    %c0_134 = arith.constant 0 : index
    %200 = vector.load %arg6[%c0_133, %c0_134] : memref<1x4xf32, #tpu.memory_space<vmem>>, vector<1x4xf32>
    %201 = arith.mulf %200, %199 : vector<1x4xf32>
    %cst_135 = arith.constant dense<0.000000e+00> : vector<1xf32>
    %202 = vector.multi_reduction <add>, %201, %cst_135 [1] : vector<1x4xf32> to vector<1xf32>
    %203 = vector.shape_cast %202 : vector<1xf32> to vector<1x1xf32>
    %c0_136 = arith.constant 0 : index
    %c0_137 = arith.constant 0 : index
    %204 = vector.load %arg7[%c0_136, %c0_137] : memref<1x1xf32, #tpu.memory_space<vmem>>, vector<1x1xf32>
    %205 = arith.addf %203, %204 : vector<1x1xf32>
    %cst_138 = arith.constant 5.000000e-01 : f32
    %206 = vector.broadcast %cst_138 : f32 to vector<1x1xf32>
    %207 = arith.mulf %206, %205 : vector<1x1xf32>
    %cst_139 = arith.constant 0.707106769 : f32
    %208 = vector.broadcast %cst_139 : f32 to vector<1x1xf32>
    %209 = arith.mulf %205, %208 : vector<1x1xf32>
    %cst_140 = arith.constant 0.000000e+00 : f32
    %210 = vector.broadcast %cst_140 : f32 to vector<1x1xf32>
    %211 = arith.cmpf oge, %209, %210 : vector<1x1xf32>
    %cst_141 = arith.constant 1.000000e+00 : f32
    %cst_142 = arith.constant -1.000000e+00 : f32
    %212 = vector.broadcast %cst_141 : f32 to vector<1x1xf32>
    %213 = vector.broadcast %cst_142 : f32 to vector<1x1xf32>
    %214 = arith.select %211, %212, %213 : vector<1x1xi1>, vector<1x1xf32>
    %215 = math.absf %209 : vector<1x1xf32>
    %cst_143 = arith.constant 0.327591091 : f32
    %216 = vector.broadcast %cst_143 : f32 to vector<1x1xf32>
    %217 = arith.mulf %216, %215 : vector<1x1xf32>
    %cst_144 = arith.constant 1.000000e+00 : f32
    %218 = vector.broadcast %cst_144 : f32 to vector<1x1xf32>
    %219 = arith.addf %218, %217 : vector<1x1xf32>
    %cst_145 = arith.constant 1.000000e+00 : f32
    %220 = vector.broadcast %cst_145 : f32 to vector<1x1xf32>
    %221 = arith.divf %220, %219 : vector<1x1xf32>
    %cst_146 = arith.constant 1.06140542 : f32
    %222 = vector.broadcast %cst_146 : f32 to vector<1x1xf32>
    %223 = arith.mulf %222, %221 : vector<1x1xf32>
    %cst_147 = arith.constant -1.45315206 : f32
    %224 = vector.broadcast %cst_147 : f32 to vector<1x1xf32>
    %225 = arith.addf %223, %224 : vector<1x1xf32>
    %226 = arith.mulf %225, %221 : vector<1x1xf32>
    %cst_148 = arith.constant 1.42141378 : f32
    %227 = vector.broadcast %cst_148 : f32 to vector<1x1xf32>
    %228 = arith.addf %226, %227 : vector<1x1xf32>
    %229 = arith.mulf %228, %221 : vector<1x1xf32>
    %cst_149 = arith.constant -0.284496725 : f32
    %230 = vector.broadcast %cst_149 : f32 to vector<1x1xf32>
    %231 = arith.addf %229, %230 : vector<1x1xf32>
    %232 = arith.mulf %231, %221 : vector<1x1xf32>
    %cst_150 = arith.constant 0.254829586 : f32
    %233 = vector.broadcast %cst_150 : f32 to vector<1x1xf32>
    %234 = arith.addf %232, %233 : vector<1x1xf32>
    %235 = arith.mulf %234, %221 : vector<1x1xf32>
    %cst_151 = arith.constant 0.000000e+00 : f32
    %236 = vector.broadcast %cst_151 : f32 to vector<1x1xf32>
    %237 = arith.subf %236, %215 : vector<1x1xf32>
    %238 = arith.mulf %237, %215 : vector<1x1xf32>
    %239 = math.exp %238 : vector<1x1xf32>
    %240 = arith.mulf %235, %239 : vector<1x1xf32>
    %cst_152 = arith.constant 1.000000e+00 : f32
    %241 = vector.broadcast %cst_152 : f32 to vector<1x1xf32>
    %242 = arith.subf %241, %240 : vector<1x1xf32>
    %243 = arith.mulf %214, %242 : vector<1x1xf32>
    %cst_153 = arith.constant 1.000000e+00 : f32
    %244 = vector.broadcast %cst_153 : f32 to vector<1x1xf32>
    %245 = arith.addf %244, %243 : vector<1x1xf32>
    %246 = arith.mulf %207, %245 : vector<1x1xf32>
    %c0_154 = arith.constant 0 : index
    %c0_155 = arith.constant 0 : index
    %247 = vector.load %arg8[%c0_154, %c0_155] : memref<1x4xf32, #tpu.memory_space<vmem>>, vector<1x4xf32>
    %248 = vector.broadcast %246 : vector<1x1xf32> to vector<1x4xf32>
    %249 = arith.mulf %247, %248 : vector<1x4xf32>
    %cst_156 = arith.constant dense<0.000000e+00> : vector<4xf32>
    %250 = vector.multi_reduction <add>, %249, %cst_156 [0] : vector<1x4xf32> to vector<4xf32>
    %251 = vector.shape_cast %250 : vector<4xf32> to vector<1x4xf32>
    %c0_157 = arith.constant 0 : index
    %c0_158 = arith.constant 0 : index
    %252 = vector.load %arg9[%c0_157, %c0_158] : memref<1x4xf32, #tpu.memory_space<vmem>>, vector<1x4xf32>
    %253 = arith.addf %251, %252 : vector<1x4xf32>
    %cst_159 = arith.constant 0.000000e+00 : f32
    %254 = vector.broadcast %cst_159 : f32 to vector<1x4xf32>
    %255 = arith.subf %254, %253 : vector<1x4xf32>
    %256 = math.exp %255 : vector<1x4xf32>
    %cst_160 = arith.constant 1.000000e+00 : f32
    %257 = vector.broadcast %cst_160 : f32 to vector<1x4xf32>
    %258 = arith.addf %257, %256 : vector<1x4xf32>
    %cst_161 = arith.constant 1.000000e+00 : f32
    %259 = vector.broadcast %cst_161 : f32 to vector<1x4xf32>
    %260 = arith.divf %259, %258 : vector<1x4xf32>
    %261 = vector.broadcast %260 : vector<1x4xf32> to vector<256x4xf32>
    %262 = arith.mulf %195, %261 : vector<256x4xf32>
    %263 = arith.addf %1, %262 : vector<256x4xf32>
    %c0_162 = arith.constant 0 : index
    %c0_163 = arith.constant 0 : index
    %c0_164 = arith.constant 0 : index
    %264 = vector.load %arg10[%c0_162, %c0_163, %c0_164] : memref<1x256x4xf32, #tpu.memory_space<vmem>>, vector<1x256x4xf32>
    %265 = vector.shape_cast %264 : vector<1x256x4xf32> to vector<256x4xf32>
    %266 = vector.shape_cast %263 : vector<256x4xf32> to vector<1x256x4xf32>
    tpu.vector_store %arg10[%c0_162, %c0_163, %c0_164], %266 {strides = array<i32>} : memref<1x256x4xf32, #tpu.memory_space<vmem>>, vector<1x256x4xf32>,
    return
  }
  func.func @transform_0(%arg0: i32) -> (i32, i32, i32) {
    %c0_i32 = arith.constant 0 : i32
    %c0_i32_0 = arith.constant 0 : i32
    %c0_i32_1 = arith.constant 0 : i32
    return %arg0, %c0_i32, %c0_i32_0 : i32, i32, i32
  }
  func.func @transform_1(%arg0: i32) -> (i32, i32, i32) {
    %c0_i32 = arith.constant 0 : i32
    %c0_i32_0 = arith.constant 0 : i32
    %c0_i32_1 = arith.constant 0 : i32
    %c0_i32_2 = arith.constant 0 : i32
    return %c0_i32, %c0_i32_0, %c0_i32_1 : i32, i32, i32
  }
  func.func @transform_2(%arg0: i32) -> (i32, i32) {
    %c0_i32 = arith.constant 0 : i32
    %c0_i32_0 = arith.constant 0 : i32
    %c0_i32_1 = arith.constant 0 : i32
    return %c0_i32, %c0_i32_0 : i32, i32
  }
  func.func @transform_3(%arg0: i32) -> (i32, i32, i32) {
    %c0_i32 = arith.constant 0 : i32
    %c0_i32_0 = arith.constant 0 : i32
    %c0_i32_1 = arith.constant 0 : i32
    %c0_i32_2 = arith.constant 0 : i32
    return %c0_i32, %c0_i32_0, %c0_i32_1 : i32, i32, i32
  }
  func.func @transform_4(%arg0: i32) -> (i32, i32) {
    %c0_i32 = arith.constant 0 : i32
    %c0_i32_0 = arith.constant 0 : i32
    %c0_i32_1 = arith.constant 0 : i32
    return %c0_i32, %c0_i32_0 : i32, i32
  }
  func.func @transform_5(%arg0: i32) -> (i32, i32) {
    %c0_i32 = arith.constant 0 : i32
    %c0_i32_0 = arith.constant 0 : i32
    %c0_i32_1 = arith.constant 0 : i32
    return %c0_i32, %c0_i32_0 : i32, i32
  }
  func.func @transform_6(%arg0: i32) -> (i32, i32) {
    %c0_i32 = arith.constant 0 : i32
    %c0_i32_0 = arith.constant 0 : i32
    %c0_i32_1 = arith.constant 0 : i32
    return %c0_i32, %c0_i32_0 : i32, i32
  }
  func.func @transform_7(%arg0: i32) -> (i32, i32) {
    %c0_i32 = arith.constant 0 : i32
    %c0_i32_0 = arith.constant 0 : i32
    %c0_i32_1 = arith.constant 0 : i32
    return %c0_i32, %c0_i32_0 : i32, i32
  }
  func.func @transform_8(%arg0: i32) -> (i32, i32) {
    %c0_i32 = arith.constant 0 : i32
    %c0_i32_0 = arith.constant 0 : i32
    %c0_i32_1 = arith.constant 0 : i32
    return %c0_i32, %c0_i32_0 : i32, i32
  }
  func.func @transform_9(%arg0: i32) -> (i32, i32, i32) {
    %c0_i32 = arith.constant 0 : i32
    %c0_i32_0 = arith.constant 0 : i32
    %c0_i32_1 = arith.constant 0 : i32
    return %arg0, %c0_i32, %c0_i32_0 : i32, i32, i32
  }
}

</mosaic_0001>

<bundles_post_ra>
// kernel: tpu_custom_call.1
= control target key start
LH: loop header
LB: loop body
LE: loop exit
PB: predicated region body
PF: predicated region fallthrough
CT: control target
= control target key end

     0   :  { %s8919_s11 = smov 0   ;;  %s13222_s0 = inlined_call_operand.vmem [shape: f32[2,256,4], index: 0, kind: input, shape index: {}]   ;;  %s13223_s1 = inlined_call_operand.vmem [shape: f32[9,4,4], index: 1, kind: input, shape index: {}]   ;;  %s13224_s2 = inlined_call_operand.vmem [shape: f32[1,4], index: 2, kind: input, shape index: {}]   ;;  %s13225_s3 = inlined_call_operand.vmem [shape: f32[9,4,4], index: 3, kind: input, shape index: {}]   ;;  %s13226_s4 = inlined_call_operand.vmem [shape: f32[1,4], index: 4, kind: input, shape index: {}]   ;;  %s13227_s5 = inlined_call_operand.vmem [shape: f32[1,4], index: 5, kind: input, shape index: {}]   ;;  %s13228_s6 = inlined_call_operand.<no memory space> [shape: f32[1,1], index: 6, kind: input, shape index: {}]   ;;  %s13229_s7 = inlined_call_operand.vmem [shape: f32[1,4], index: 7, kind: input, shape index: {}]   ;;  %s13230_s8 = inlined_call_operand.vmem [shape: f32[1,4], index: 8, kind: input, shape index: {}]   ;;  %s13231_s9 = inlined_call_operand.vmem [shape: f32[2,256,4], index: 9, kind: output, shape index: {}]  }
   0x1   :  { %v14_v0 = vstv %s13228_s6 }
   0x2   :  { %15 = vst [vmem:[#allocation3] sm:$0x1] %v14_v0 }
   0x3 LB: > { %s8028_s12 = sadd.s32 4294967295, %s8861_s11   ;;  %p8032_p0 = scmp.ge.s32.totalorder %s8861_s11, 1  ;;  %s8861_s11 = sphi %s8919_s11, %s21_s11  }
   0x4   : > { %p289_p1 = scmp.lt.s32.totalorder %s8861_s11, 3 }
   0x6   : > { %p290_p2 = pnand %p8032_p0, %p289_p1 }
   0x8   : > { %293 = sbr.rel (%p290_p2) target bundleno = 2009 (0x7d9), region = 56 }
   0xd   : > { %v8069_v1 = vld [vmem:[%s13223_s1 + $0x4] sm:$0xf]  ;;  %vm1242_vm0 = vcmask 1043456   ;;  %vm976_vm1 = vcmask 31744   ;;  %v13232_v2 = vmov 0.0   ;;  %v367_v4 = vlaneseq  ;;  %p325_p3 = scmp.lt.s32.totalorder %s8028_s12, 1 }
   0xe   : > { %8070 = vmatpush.msk.msra.mxu0 %vm1242_vm0, %v8069_v1  ;;  %977 = vst.msk [vmem:[#allocation2] sm:$0xff] %vm976_vm1, %v13232_v2  ;;  %8683 = vmatpush.msk.msra.mxu2 %vm1242_vm0, %v8069_v1  ;;  %v8136_v5 = vld [vmem:[%s13223_s1 + $0x8] sm:$0xf]  ;;  %v1111_v6 = vld [vmem:[%s13223_s1] sm:$0xf] }
   0xf   : > { %978 = vst.msk [vmem:[#allocation2 + $0x8] sm:$0xff] %vm976_vm1, %v13232_v2  ;;  %8684 = vmatpush.msk.msra.mxu3 %vm1242_vm0, %v1111_v6  ;;  %8103 = vmatpush.msk.msra.mxu1 %vm1242_vm0, %v1111_v6  ;;  %v8974_v8 = vshrl.u32 %v367_v4, 7  ;;  %v8170_v9 = vld [vmem:[%s13223_s1 + $0xc] sm:$0xf]  ;;  %s13773_s12 = smov (!%p325_p3, %s8028_s12), 1 }
  0x10   : > { %979 = vst.msk [vmem:[#allocation2 + $0x10] sm:$0xff] %vm976_vm1, %v13232_v2  ;;  %8137 = vmatpush.msk.msrb.mxu2 %vm1242_vm0, %v8136_v5  ;;  %v8204_v14 = vld [vmem:[%s13223_s1 + $0x10] sm:$0xf]  ;;  %s8681_s22 = sshll.u32 %s13773_s12, 8 }
  0x11   : > { %980 = vst.msk [vmem:[#allocation2 + $0x18] sm:$0xff] %vm976_vm1, %v13232_v2  ;;  %8171 = vmatpush.msk.msrb.mxu3 %vm1242_vm0, %v8170_v9  ;;  %v404_v10 = vand.u32 15, %v8974_v8  ;;  %8205 = vmatpush.msk.msrb.mxu0 %vm1242_vm0, %v8204_v14  ;;  %s9033_s25 = scalar_lea.vmem %s13222_s0, %s8681_s22  ;;  %v384_v16 = vadd.s32 128, %v8974_v8  ;;  %v370_v18 = vadd.s32 16, %v8974_v8  ;;  %v386_v36 = vadd.s32 144, %v8974_v8  ;;  %s13067_s13 = scalar_lea.vmem %s13231_s9, %s8681_s22 }
  0x12   : > { %981 = vst.msk [vmem:[#allocation2 + $0x20] sm:$0xff] %vm976_vm1, %v13232_v2  ;;  %v9044_v17 = vld [vmem:[%s9033_s25 + $0x70] sm:$0xff]  ;;  %v9050_v19 = vld [vmem:[%s9033_s25 + $0x68] sm:$0xff]  ;;  %v9055_v21 = vld [vmem:[%s9033_s25 + $0x78] sm:$0xff]  ;;  %v372_v41 = vadd.s32 32, %v8974_v8  ;;  %v388_v57 = vadd.s32 160, %v8974_v8 }
  0x13   : > { %982 = vst.msk [vmem:[#allocation2 + $0x28] sm:$0xff] %vm976_vm1, %v13232_v2  ;;  %vm784_vm2 = vcmp.ne.s32.totalorder %v404_v10, 0  ;;  %v516_v20 = vand.u32 15, %v384_v16  ;;  %v9060_v22 = vld [vmem:[%s9033_s25] sm:$0xff]  ;;  %v418_v24 = vand.u32 15, %v370_v18  ;;  %v9070_v25 = vld [vmem:[%s9033_s25 + $0x8] sm:$0xff] }
  0x14   : > { %983 = vst.msk [vmem:[#allocation2 + $0x30] sm:$0xff] %vm976_vm1, %v13232_v2  ;;  %v8995_v11 = vsel %vm784_vm2, 1.0, %v13232_v2  ;;  %v9065_v23 = vld [vmem:[%s9033_s25 + $0x80] sm:$0xff]  ;;  %v9075_v26 = vld [vmem:[%s9033_s25 + $0x88] sm:$0xff]  ;;  %v9080_v27 = vld [vmem:[%s9033_s25 + $0x10] sm:$0xff]  ;;  %v530_v43 = vand.u32 15, %v386_v36 }
  0x15   : > { %984 = vst.msk [vmem:[#allocation2 + $0x38] sm:$0xff] %vm976_vm1, %v13232_v2  ;;  %v1047_v12 = vld [vmem:[#allocation2] sm:$0xff]  ;;  %vm800_vm3 = vcmp.ne.s32.totalorder %v516_v20, 0  ;;  %vm786_vm4 = vcmp.ne.s32.totalorder %v418_v24, 0  ;;  %v9085_v28 = vld [vmem:[%s9033_s25 + $0x90] sm:$0xff]  ;;  %v9093_v30 = vld [vmem:[%s9033_s25 + $0x18] sm:$0xff] }
  0x16   : > { %v1112_v3 = vld [vmem:[#allocation2 + $0x1] sm:$0xff]  ;;  %985 = vst.msk [vmem:[#allocation2 + $0x40] sm:$0xff] %vm976_vm1, %v13232_v2  ;;  %v1079_v13 = vmul.f32 %v8995_v11, %v1047_v12  ;;  %v9088_v29 = vsel %vm800_vm3, 1.0, %v13232_v2  ;;  %v9099_v33 = vsel %vm786_vm4, 1.0, %v13232_v2  ;;  %v9104_v34 = vld [vmem:[%s9033_s25 + $0x98] sm:$0xff]  ;;  %v432_v44 = vand.u32 15, %v372_v41 }
  0x17   : > { %8071 = vmatmul.msk.f32.vlgmr.msra.gmra.mxu0 %vm976_vm1, %v1112_v3  ;;  %986 = vst.msk [vmem:[#allocation2 + $0x48] sm:$0xff] %vm976_vm1, %v13232_v2  ;;  %v1113_v7 = vld [vmem:[#allocation2 + $0x9] sm:$0xff]  ;;  %v9117_v39 = vld [vmem:[%s9033_s25 + $0x20] sm:$0xff]  ;;  %vm802_vm5 = vcmp.ne.s32.totalorder %v530_v43, 0  ;;  %v374_v61 = vadd.s32 48, %v8974_v8  ;;  %v544_v63 = vand.u32 15, %v388_v57 }
  0x18   : > { %987 = vst.msk [vmem:[#allocation2 + $0x50] sm:$0xff] %vm976_vm1, %v13232_v2  ;;  %8104 = vmatmul.msk.f32.vlgmr.msra.gmra.mxu1 %vm976_vm1, %v1079_v13  ;;  %v1048_v15 = vld [vmem:[#allocation2 + $0x8] sm:$0xff]  ;;  %v9132_v47 = vld [vmem:[%s9033_s25 + $0xa0] sm:$0xff]  ;;  %vm788_vm6 = vcmp.ne.s32.totalorder %v432_v44, 0  ;;  %v9147_v50 = vsel %vm802_vm5, 1.0, %v13232_v2  ;;  %v9169_v60 = vld [vmem:[%s9033_s25 + $0x30] sm:$0xff] }
  0x19   : > { %988 = vst.msk [vmem:[#allocation2 + $0x58] sm:$0xff] %vm976_vm1, %v13232_v2  ;;  %v9139_v49 = vld [vmem:[%s9033_s25 + $0x28] sm:$0xff]  ;;  %v9152_v53 = vsel %vm788_vm6, 1.0, %v13232_v2  ;;  %v446_v0 = vand.u32 15, %v374_v61  ;;  %v9182_v4 = vld [vmem:[%s9033_s25 + $0xb0] sm:$0xff]  ;;  %vm804_vm7 = vcmp.ne.s32.totalorder %v544_v63, 0 }
  0x1a   : > { %989 = vst.msk [vmem:[#allocation2 + $0x60] sm:$0xff] %vm976_vm1, %v13232_v2  ;;  %v9164_v59 = vld [vmem:[%s9033_s25 + $0xa8] sm:$0xff]  ;;  %v9189_v6 = vld [vmem:[%s9033_s25 + $0x38] sm:$0xff]  ;;  %v390_v16 = vadd.s32 176, %v8974_v8  ;;  %v9219_v24 = vld [vmem:[%s9033_s25 + $0x40] sm:$0xff] }
  0x1b   : > { %990 = vst.msk [vmem:[#allocation2 + $0x68] sm:$0xff] %vm976_vm1, %v13232_v2  ;;  %vm790_vm8 = vcmp.ne.s32.totalorder %v446_v0, 0  ;;  %v9214_v20 = vld [vmem:[%s9033_s25 + $0xb8] sm:$0xff]  ;;  %v9239_v44 = vld [vmem:[%s9033_s25 + $0x48] sm:$0xff] }
  0x1c   : > { %991 = vst.msk [vmem:[#allocation2 + $0x70] sm:$0xff] %vm976_vm1, %v13232_v2  ;;  %v9202_v12 = vsel %vm790_vm8, 1.0, %v13232_v2  ;;  %v9264_v0 = vld [vmem:[%s9033_s25 + $0xc8] sm:$0xff] }
  0x1d   : > { %992 = vst.msk [vmem:[#allocation2 + $0x78] sm:$0xff] %vm976_vm1, %v13232_v2 }
  0x1e   : > { %993 = vst.msk [vmem:[#allocation2 + $0x80] sm:$0xff] %vm976_vm1, %v13232_v2 }
  0x1f   : > { %994 = vst.msk [vmem:[#allocation2 + $0x88] sm:$0xff] %vm976_vm1, %v13232_v2  ;;  %8072 = vmatmul.msk.f32.gmra.mxu0 %vm976_vm1, %v1113_v7  ;;  %v9197_v7 = vsel %vm804_vm7, 1.0, %v13232_v2 }
  0x20   : > { %995 = vst.msk [vmem:[#allocation2 + $0x90] sm:$0xff] %vm976_vm1, %v13232_v2  ;;  %8105 = vmatmul.msk.f32.gmra.mxu1 %vm976_vm1, %v1048_v15 }
  0x21   : > { %996 = vst.msk [vmem:[#allocation2 + $0x98] sm:$0xff] %vm976_vm1, %v13232_v2 }
  0x22   : > { %997 = vst.msk [vmem:[#allocation2 + $0xa0] sm:$0xff] %vm976_vm1, %v13232_v2 }
  0x23   : > { %13354 = vst [vmem:[#allocation4_spill] sm:$0xff] %v8995_v11 }
  0x24   : > { %998 = vst.msk [vmem:[#allocation2 + $0xa8] sm:$0xff] %vm976_vm1, %v13232_v2 }
  0x25   : > { %999 = vst.msk [vmem:[#allocation2 + $0xb0] sm:$0xff] %vm976_vm1, %v13232_v2 }
  0x26   : > { %1000 = vst.msk [vmem:[#allocation2 + $0xb8] sm:$0xff] %vm976_vm1, %v13232_v2 }
  0x27   : > { %1001 = vst.msk [vmem:[#allocation2 + $0xc0] sm:$0xff] %vm976_vm1, %v13232_v2 }
  0x28   : > { %1002 = vst.msk [vmem:[#allocation2 + $0xc8] sm:$0xff] %vm976_vm1, %v13232_v2 }
  0x29   : > { %1003 = vst.msk [vmem:[#allocation2 + $0xd0] sm:$0xff] %vm976_vm1, %v13232_v2 }
  0x2a   : > { %1004 = vst.msk [vmem:[#allocation2 + $0xd8] sm:$0xff] %vm976_vm1, %v13232_v2 }
  0x2b   : > { %1005 = vst.msk [vmem:[#allocation2 + $0xe0] sm:$0xff] %vm976_vm1, %v13232_v2 }
  0x2c   : > { %1006 = vst.msk [vmem:[#allocation2 + $0xe8] sm:$0xff] %vm976_vm1, %v13232_v2 }
  0x2d   : > { %1007 = vst.msk [vmem:[#allocation2 + $0xf0] sm:$0xff] %vm976_vm1, %v13232_v2 }
  0x2e   : > { %1008 = vst.msk [vmem:[#allocation2 + $0xf8] sm:$0xff] %vm976_vm1, %v13232_v2 }
  0x2f   : > { %1009 = vst.msk [vmem:[#allocation2 + $0x100] sm:$0xff] %vm976_vm1, %v13232_v2 }
  0x30   : > { %1010 = vst.msk [vmem:[#allocation2 + $0x108] sm:$0xff] %vm976_vm1, %v13232_v2 }
  0x31   : > { %13355 = vst [vmem:[#allocation5_spill] sm:$0xff] %v9044_v17 }
  0x32   : > { %1011 = vst.msk [vmem:[#allocation2 + $0x110] sm:$0xff] %vm976_vm1, %v13232_v2 }
  0x33   : > { %13356 = vst [vmem:[#allocation6_spill] sm:$0xff] %v9050_v19 }
  0x34   : > { %1012 = vst.msk [vmem:[#allocation2 + $0x118] sm:$0xff] %vm976_vm1, %v13232_v2 }
  0x35   : > { %13357 = vst [vmem:[#allocation7_spill] sm:$0xff] %v9055_v21 }
  0x36   : > { %1029 = vst.msk [vmem:[#allocation2 + $0x81] sm:$0xff] %vm976_vm1, %v9044_v17 }
  0x37   : > { %13358 = vst [vmem:[#allocation8_spill] sm:$0xff] %v9060_v22 }
  0x38   : > { %1028 = vst.msk [vmem:[#allocation2 + $0x79] sm:$0xff] %vm976_vm1, %v9050_v19 }
  0x39   : > { %13359 = vst [vmem:[#allocation9_spill] sm:$0xff] %v9065_v23 }
  0x3a   : > { %1030 = vst.msk [vmem:[#allocation2 + $0x89] sm:$0xff] %vm976_vm1, %v9055_v21  ;;  %v398_v21 = vadd.s32 240, %v8974_v8 }
  0x3b   : > { %13360 = vst [vmem:[#allocation10_spill] sm:$0xff] %v9070_v25 }
  0x3c   : > { %1015 = vst.msk [vmem:[#allocation2 + $0x11] sm:$0xff] %vm976_vm1, %v9060_v22  ;;  %v614_v19 = vand.u32 15, %v398_v21  ;;  %v8238_v21 = vld [vmem:[%s13223_s1 + $0x14] sm:$0xf] }
  0x3d   : > { %13361 = vst [vmem:[#allocation11_spill] sm:$0xff] %v9075_v26  ;;  %v1128_v31 = vld [vmem:[#allocation2 + $0x81] sm:$0xff]  ;;  %8239 = vmatpush.msk.msrb.mxu1 %vm1242_vm0, %v8238_v21 }
  0x3e   : > { %1031 = vst.msk [vmem:[#allocation2 + $0x91] sm:$0xff] %vm976_vm1, %v9065_v23  ;;  %8087 = vmatmul.msk.f32.vlgmr.msra.gmra.mxu2 %vm976_vm1, %v1128_v31  ;;  %v376_v31 = vadd.s32 64, %v8974_v8  ;;  %vm814_vm3 = vcmp.ne.s32.totalorder %v614_v19, 0 }
  0x3f   : > { %13362 = vst [vmem:[#allocation12_spill] sm:$0xff] %v9080_v27  ;;  %v1063_v32 = vld [vmem:[#allocation2 + $0x80] sm:$0xff] }
  0x40   : > { %1016 = vst.msk [vmem:[#allocation2 + $0x19] sm:$0xff] %vm976_vm1, %v9070_v25  ;;  %v1095_v35 = vmul.f32 %v9088_v29, %v1063_v32  ;;  %v460_v36 = vand.u32 15, %v376_v31 }
  0x41   : > { %13363 = vst [vmem:[#allocation13_spill] sm:$0xff] %v9085_v28  ;;  %v1129_v42 = vld [vmem:[#allocation2 + $0x89] sm:$0xff] }
  0x42   : > { %13364 = vst [vmem:[#allocation14_spill] sm:$0xff] %v9088_v29  ;;  %8120 = vmatmul.msk.f32.vlgmr.msra.gmra.mxu3 %vm976_vm1, %v1095_v35  ;;  %v1064_v45 = vld [vmem:[#allocation2 + $0x88] sm:$0xff]  ;;  %v558_v35 = vand.u32 15, %v390_v16  ;;  %vm792_vm10 = vcmp.ne.s32.totalorder %v460_v36, 0  ;;  %v9289_v36 = vld [vmem:[%s9033_s25 + $0x58] sm:$0xff] }
  0x43   : > { %1032 = vst.msk [vmem:[#allocation2 + $0x99] sm:$0xff] %vm976_vm1, %v9075_v26  ;;  %v9110_v37 = vld [vmem:[#allocation2 + $0x11] sm:$0xff] }
  0x44   : > { %13365 = vst [vmem:[#allocation15_spill] sm:$0xff] %v9093_v30  ;;  %v9112_v38 = vld [vmem:[#allocation2 + $0x10] sm:$0xff]  ;;  %8073 = vmatmul.msk.f32.gmra.mxu0 %vm976_vm1, %v9110_v37  ;;  %vm806_vm9 = vcmp.ne.s32.totalorder %v558_v35, 0 }
  0x45   : > { %1017 = vst.msk [vmem:[#allocation2 + $0x21] sm:$0xff] %vm976_vm1, %v9080_v27  ;;  %v1081_v40 = vmul.f32 %v9099_v33, %v9112_v38  ;;  %v1065_v51 = vld [vmem:[#allocation2 + $0x90] sm:$0xff] }
  0x46   : > { %13366 = vst [vmem:[#allocation16_spill] sm:$0xff] %v9099_v33  ;;  %8088 = vmatmul.msk.f32.gmra.mxu2 %vm976_vm1, %v1129_v42  ;;  %v1130_v52 = vld [vmem:[#allocation2 + $0x91] sm:$0xff]  ;;  %v1097_v55 = vmul.f32 %v9147_v50, %v1065_v51  ;;  %v9232_v42 = vld [vmem:[%s9033_s25 + $0xc0] sm:$0xff] }
  0x47   : > { %1033 = vst.msk [vmem:[#allocation2 + $0xa1] sm:$0xff] %vm976_vm1, %v9085_v28  ;;  %8106 = vmatmul.msk.f32.gmra.mxu1 %vm976_vm1, %v1081_v40  ;;  %v9129_v46 = vld [vmem:[#allocation2 + $0x19] sm:$0xff] }
  0x48   : > { %13367 = vst [vmem:[#allocation17_spill] sm:$0xff] %v9104_v34  ;;  %v9136_v48 = vld [vmem:[#allocation2 + $0x18] sm:$0xff] }
  0x49   : > { %1018 = vst.msk [vmem:[#allocation2 + $0x29] sm:$0xff] %vm976_vm1, %v9093_v30 }
  0x4a   : > { %1034 = vst.msk [vmem:[#allocation2 + $0xa9] sm:$0xff] %vm976_vm1, %v9104_v34  ;;  %8121 = vmatmul.msk.f32.gmra.mxu3 %vm976_vm1, %v1064_v45  ;;  %v1131_v62 = vld [vmem:[#allocation2 + $0x99] sm:$0xff]  ;;  %v9247_v45 = vsel %vm806_vm9, 1.0, %v13232_v2 }
  0x4b   : > { %13368 = vst [vmem:[#allocation18_spill] sm:$0xff] %v9117_v39  ;;  %v1066_v1 = vld [vmem:[#allocation2 + $0x98] sm:$0xff] }
  0x4c   : > { %1019 = vst.msk [vmem:[#allocation2 + $0x31] sm:$0xff] %vm976_vm1, %v9117_v39  ;;  %8074 = vmatmul.msk.f32.gmra.mxu0 %vm976_vm1, %v9129_v46  ;;  %v9154_v54 = vld [vmem:[#allocation2 + $0x20] sm:$0xff] }
  0x4d   : > { %13369 = vst [vmem:[#allocation19_spill] sm:$0xff] %v9132_v47  ;;  %v9158_v56 = vld [vmem:[#allocation2 + $0x21] sm:$0xff]  ;;  %v1083_v58 = vmul.f32 %v9152_v53, %v9154_v54 }
  0x4e   : > { %1035 = vst.msk [vmem:[#allocation2 + $0xb1] sm:$0xff] %vm976_vm1, %v9132_v47  ;;  %8089 = vmatmul.msk.f32.gmra.mxu2 %vm976_vm1, %v1130_v52  ;;  %v1067_v9 = vld [vmem:[#allocation2 + $0xa0] sm:$0xff] }
  0x4f   : > { %13370 = vst [vmem:[#allocation20_spill] sm:$0xff] %v9139_v49  ;;  %8107 = vmatmul.msk.f32.gmra.mxu1 %vm976_vm1, %v9136_v48  ;;  %v1132_v10 = vld [vmem:[#allocation2 + $0xa1] sm:$0xff]  ;;  %v1099_v14 = vmul.f32 %v9197_v7, %v1067_v9  ;;  %v378_v9 = vadd.s32 80, %v8974_v8 }
  0x50   : > { %1020 = vst.msk [vmem:[#allocation2 + $0x39] sm:$0xff] %vm976_vm1, %v9139_v49  ;;  %v9179_v3 = vld [vmem:[#allocation2 + $0x29] sm:$0xff]  ;;  %v2470_v49 = vld [vmem:[#allocation2 + $0x1a] sm:$0xff] }
  0x51   : > { %13371 = vst [vmem:[#allocation21_spill] sm:$0xff] %v9147_v50  ;;  %v9186_v5 = vld [vmem:[#allocation2 + $0x28] sm:$0xff]  ;;  %v474_v16 = vand.u32 15, %v378_v9 }
  0x52   : > { %13372 = vst [vmem:[#allocation22_spill] sm:$0xff] %v9152_v53  ;;  %8122 = vmatmul.msk.f32.gmra.mxu3 %vm976_vm1, %v1097_v55  ;;  %v1133_v32 = vld [vmem:[#allocation2 + $0xa9] sm:$0xff]  ;;  %v9252_v55 = vsel %vm792_vm10, 1.0, %v13232_v2 }
  0x53   : > { %13373 = vst [vmem:[#allocation23_spill] sm:$0xff] %v9164_v59  ;;  %v9204_v13 = vld [vmem:[#allocation2 + $0x30] sm:$0xff]  ;;  %v1068_v40 = vld [vmem:[#allocation2 + $0xa8] sm:$0xff]  ;;  %vm794_vm12 = vcmp.ne.s32.totalorder %v474_v16, 0  ;;  %v9314_v16 = vld [vmem:[%s9033_s25 + $0xd8] sm:$0xff] }
  0x54   : > { %1036 = vst.msk [vmem:[#allocation2 + $0xb9] sm:$0xff] %vm976_vm1, %v9164_v59  ;;  %8075 = vmatmul.msk.f32.gmra.mxu0 %vm976_vm1, %v9158_v56  ;;  %v9208_v15 = vld [vmem:[#allocation2 + $0x31] sm:$0xff]  ;;  %v1085_v18 = vmul.f32 %v9202_v12, %v9204_v13  ;;  %v9359_v59 = vld [vmem:[%s9033_s25 + $0xe8] sm:$0xff] }
  0x55   : > { %13374 = vst [vmem:[#allocation24_spill] sm:$0xff] %v9169_v60  ;;  %v1069_v51 = vld [vmem:[#allocation2 + $0xb0] sm:$0xff]  ;;  %v2471_v27 = vld [vmem:[#allocation2 + $0x22] sm:$0xff] }
  0x56   : > { %1021 = vst.msk [vmem:[#allocation2 + $0x41] sm:$0xff] %vm976_vm1, %v9169_v60  ;;  %8090 = vmatmul.msk.f32.gmra.mxu2 %vm976_vm1, %v1131_v62  ;;  %v1134_v52 = vld [vmem:[#allocation2 + $0xb1] sm:$0xff]  ;;  %v392_v62 = vadd.s32 192, %v8974_v8 }
  0x57   : > { %8108 = vmatmul.msk.f32.gmra.mxu1 %vm976_vm1, %v1083_v58  ;;  %13375 = vst [vmem:[#allocation25_spill] sm:$0xff] %v9182_v4  ;;  %v9229_v41 = vld [vmem:[#allocation2 + $0x39] sm:$0xff]  ;;  %v1101_v58 = vmul.f32 %v9247_v45, %v1069_v51 }
  0x58   : > { %1037 = vst.msk [vmem:[#allocation2 + $0xc1] sm:$0xff] %vm976_vm1, %v9182_v4  ;;  %v9236_v43 = vld [vmem:[#allocation2 + $0x38] sm:$0xff] }
  0x59   : > { %13376 = vst [vmem:[#allocation26_spill] sm:$0xff] %v9189_v6 }
  0x5a   : > { %8123 = vmatmul.msk.f32.gmra.mxu3 %vm976_vm1, %v1066_v1  ;;  %1022 = vst.msk [vmem:[#allocation2 + $0x49] sm:$0xff] %vm976_vm1, %v9189_v6  ;;  %v9269_v1 = vld [vmem:[%s9033_s25 + $0x50] sm:$0xff] }
  0x5b   : > { %13377 = vst [vmem:[#allocation27_spill] sm:$0xff] %v9197_v7 }
  0x5c   : > { %8076 = vmatmul.msk.f32.gmra.mxu0 %vm976_vm1, %v9179_v3  ;;  %13378 = vst [vmem:[#allocation28_spill] sm:$0xff] %v9202_v12 }
  0x5d   : > { %13379 = vst [vmem:[#allocation29_spill] sm:$0xff] %v9214_v20  ;;  %v9254_v57 = vld [vmem:[#allocation2 + $0x40] sm:$0xff] }
  0x5e   : > { %8091 = vmatmul.msk.f32.gmra.mxu2 %vm976_vm1, %v1132_v10  ;;  %1038 = vst.msk [vmem:[#allocation2 + $0xc9] sm:$0xff] %vm976_vm1, %v9214_v20  ;;  %v9258_v61 = vld [vmem:[#allocation2 + $0x41] sm:$0xff]  ;;  %v1087_v63 = vmul.f32 %v9252_v55, %v9254_v57  ;;  %v1135_v10 = vld [vmem:[#allocation2 + $0xb9] sm:$0xff] }
  0x5f   : > { %8109 = vmatmul.msk.f32.gmra.mxu1 %vm976_vm1, %v9186_v5  ;;  %13380 = vst [vmem:[#allocation30_spill] sm:$0xff] %v9219_v24  ;;  %v1071_v51 = vld [vmem:[#allocation2 + $0xc0] sm:$0xff] }
  0x60   : > { %1023 = vst.msk [vmem:[#allocation2 + $0x51] sm:$0xff] %vm976_vm1, %v9219_v24 }
  0x61   : > { %13381 = vst [vmem:[#allocation31_spill] sm:$0xff] %v9232_v42  ;;  %v9279_v31 = vld [vmem:[#allocation2 + $0x49] sm:$0xff] }
  0x62   : > { %8124 = vmatmul.msk.f32.gmra.mxu3 %vm976_vm1, %v1099_v14  ;;  %1039 = vst.msk [vmem:[#allocation2 + $0xd1] sm:$0xff] %vm976_vm1, %v9232_v42  ;;  %v572_v14 = vand.u32 15, %v392_v62  ;;  %v9286_v35 = vld [vmem:[#allocation2 + $0x48] sm:$0xff]  ;;  %v9332_v42 = vld [vmem:[%s9033_s25 + $0xe0] sm:$0xff] }
  0x63   : > { %13382 = vst [vmem:[#allocation32_spill] sm:$0xff] %v9239_v44 }
  0x64   : > { %8077 = vmatmul.msk.f32.gmra.mxu0 %vm976_vm1, %v9208_v15  ;;  %1024 = vst.msk [vmem:[#allocation2 + $0x59] sm:$0xff] %vm976_vm1, %v9239_v44  ;;  %vm808_vm11 = vcmp.ne.s32.totalorder %v572_v14, 0  ;;  %v369_v44 = vadd.s32 8, %v8974_v8 }
  0x65   : > { %13383 = vst [vmem:[#allocation33_spill] sm:$0xff] %v9247_v45 }
  0x66   : > { %8092 = vmatmul.msk.f32.gmra.mxu2 %vm976_vm1, %v1133_v32  ;;  %13384 = vst [vmem:[#allocation34_spill] sm:$0xff] %v9252_v55  ;;  %v9282_v32 = vld [vmem:[%s9033_s25 + $0xd0] sm:$0xff]  ;;  %v411_v60 = vand.u32 15, %v369_v44 }
  0x67   : > { %8110 = vmatmul.msk.f32.gmra.mxu1 %vm976_vm1, %v1085_v18  ;;  %13385 = vst [vmem:[#allocation35_spill] sm:$0xff] %v9264_v0  ;;  %v1070_v18 = vld [vmem:[#allocation2 + $0xb8] sm:$0xff]  ;;  %v9304_v62 = vld [vmem:[#allocation2 + $0x50] sm:$0xff] }
  0x68   : > { %1040 = vst.msk [vmem:[#allocation2 + $0xd9] sm:$0xff] %vm976_vm1, %v9264_v0  ;;  %v9308_v9 = vld [vmem:[#allocation2 + $0x51] sm:$0xff]  ;;  %vm881_vm4 = vcmp.ne.s32.totalorder %v411_v60, 15  ;;  %v1913_v60 = vmul.f32 %v8995_v11, %v9112_v38 }
  0x69   : > { %13386 = vst [vmem:[#allocation36_spill] sm:$0xff] %v9269_v1  ;;  %v2473_v11 = vld [vmem:[#allocation2 + $0x32] sm:$0xff] }
  0x6a   : > { %8125 = vmatmul.msk.f32.gmra.mxu3 %vm976_vm1, %v1068_v40  ;;  %1025 = vst.msk [vmem:[#allocation2 + $0x61] sm:$0xff] %vm976_vm1, %v9269_v1  ;;  %v9297_v40 = vsel %vm808_vm11, 1.0, %v13232_v2 }
  0x6b   : > { %13387 = vst [vmem:[#allocation37_spill] sm:$0xff] %v9282_v32  ;;  %v9329_v0 = vld [vmem:[#allocation2 + $0x59] sm:$0xff] }
  0x6c   : > { %8078 = vmatmul.msk.f32.gmra.mxu0 %vm976_vm1, %v9229_v41  ;;  %1041 = vst.msk [vmem:[#allocation2 + $0xe1] sm:$0xff] %vm976_vm1, %v9282_v32 }
  0x6d   : > { %13388 = vst [vmem:[#allocation38_spill] sm:$0xff] %v9289_v36 }
  0x6e   : > { %8093 = vmatmul.msk.f32.gmra.mxu2 %vm976_vm1, %v1134_v52  ;;  %1026 = vst.msk [vmem:[#allocation2 + $0x69] sm:$0xff] %vm976_vm1, %v9289_v36  ;;  %v1136_v52 = vld [vmem:[#allocation2 + $0xc1] sm:$0xff] }
  0x6f   : > { %8111 = vmatmul.msk.f32.gmra.mxu1 %vm976_vm1, %v9236_v43  ;;  %13390 = vst [vmem:[#allocation40_spill] sm:$0xff] %v9314_v16  ;;  %v1074_v28 = vld [vmem:[#allocation2 + $0xd8] sm:$0xff] }
  0x70   : > { %1042 = vst.msk [vmem:[#allocation2 + $0xe9] sm:$0xff] %vm976_vm1, %v9314_v16  ;;  %v1072_v16 = vld [vmem:[#allocation2 + $0xc8] sm:$0xff] }
  0x71   : > { %13392 = vst [vmem:[#allocation42_spill] sm:$0xff] %v9332_v42 }
  0x72   : > { %8126 = vmatmul.msk.f32.gmra.mxu3 %vm976_vm1, %v1101_v58  ;;  %v9302_v58 = vsel %vm794_vm12, 1.0, %v13232_v2  ;;  %1043 = vst.msk [vmem:[#allocation2 + $0xf1] sm:$0xff] %vm976_vm1, %v9332_v42  ;;  %v9349_v42 = vld [vmem:[#allocation2 + $0x60] sm:$0xff] }
  0x73   : > { %13389 = vst [vmem:[#allocation39_spill] sm:$0xff] %v9302_v58  ;;  %v1089_v14 = vmul.f32 %v9302_v58, %v9304_v62 }
  0x74   : > { %8079 = vmatmul.msk.f32.gmra.mxu0 %vm976_vm1, %v9258_v61  ;;  %13395 = vst [vmem:[#allocation44_spill] sm:$0xff] %v9359_v59 }
  0x75   : > { %1044 = vst.msk [vmem:[#allocation2 + $0xf9] sm:$0xff] %vm976_vm1, %v9359_v59  ;;  %v9369_v26 = vld [vmem:[#allocation2 + $0x69] sm:$0xff]  ;;  %v8272_v59 = vld [vmem:[%s13223_s1 + $0x18] sm:$0xf] }
  0x76   : > { %8094 = vmatmul.msk.f32.gmra.mxu2 %vm976_vm1, %v1135_v10  ;;  %v394_v10 = vadd.s32 208, %v8974_v8  ;;  %v9371_v23 = vld [vmem:[#allocation2 + $0x68] sm:$0xff] }
  0x77   : > { %8112 = vmatmul.msk.f32.gmra.mxu1 %vm976_vm1, %v1087_v63  ;;  %v1103_v63 = vmul.f32 %v9297_v40, %v1071_v51  ;;  %v380_v51 = vadd.s32 96, %v8974_v8  ;;  %8273 = vmatpush.msk.msra.mxu2 %vm1242_vm0, %v8272_v59  ;;  %v1076_v59 = vld [vmem:[#allocation2 + $0xe8] sm:$0xff] }
  0x78   : > { %v586_v2 = vand.u32 15, %v394_v10  ;;  %v13393_v10 = vmov 0.0  }
  0x79   : > { %v488_v32 = vand.u32 15, %v380_v51  ;;  %v1073_v51 = vld [vmem:[#allocation2 + $0xd0] sm:$0xff]  ;;  %v9451_v44 = vsel %vm881_vm4, 1.0, %v13393_v10 }
  0x7a   : > { %8127 = vmatmul.msk.f32.gmra.mxu3 %vm976_vm1, %v1070_v18  ;;  %v9319_v18 = vld [vmem:[%s9033_s25 + $0x60] sm:$0xff]  ;;  %vm810_vm13 = vcmp.ne.s32.totalorder %v586_v2, 0  ;;  %v1077_v19 = vld [vmem:[#allocation2 + $0xf0] sm:$0xff]  ;;  %13398 = vst [vmem:[#allocation47_spill] sm:$0xff] %v9451_v44 }
  0x7b   : > { %13391 = vst [vmem:[#allocation41_spill] sm:$0xff] %v9319_v18  ;;  %vm796_vm14 = vcmp.ne.s32.totalorder %v488_v32, 0  ;;  %v396_v32 = vadd.s32 224, %v8974_v8 }
  0x7c   : > { %8080 = vmatmul.msk.f32.gmra.mxu0 %vm976_vm1, %v9279_v31  ;;  %1027 = vst.msk [vmem:[#allocation2 + $0x71] sm:$0xff] %vm976_vm1, %v9319_v18  ;;  %v9347_v2 = vsel %vm796_vm14, 1.0, %v13393_v10  ;;  %v1572_v18 = vld [vmem:[#allocation2 + $0xa] sm:$0xff] }
  0x7d   : > { %13394 = vst [vmem:[#allocation43_spill] sm:$0xff] %v9347_v2  ;;  %v1091_v4 = vmul.f32 %v9347_v2, %v9349_v42  ;;  %v600_v47 = vand.u32 15, %v396_v32 }
  0x7e   : > { %8095 = vmatmul.msk.f32.gmra.mxu2 %vm976_vm1, %v1136_v52  ;;  %v1137_v52 = vld [vmem:[#allocation2 + $0xc9] sm:$0xff] }
  0x7f   : > { %8113 = vmatmul.msk.f32.gmra.mxu1 %vm976_vm1, %v9286_v35  ;;  %vm812_vm15 = vcmp.ne.s32.totalorder %v600_v47, 0 }
  0x80   : > { %v9379_v32 = vsel %vm812_vm15, 1.0, %v13393_v10 }
  0x82   : > { %8128 = vmatmul.msk.f32.gmra.mxu3 %vm976_vm1, %v1103_v63  ;;  %v9336_v63 = vld [vmem:[#allocation2 + $0x58] sm:$0xff] }
  0x83   : > { %v9414_v36 = vld [vmem:[#allocation2 + $0x78] sm:$0xff] }
  0x84   : > { %8081 = vmatmul.msk.f32.gmra.mxu0 %vm976_vm1, %v9308_v9 }
  0x86   : > { %8096 = vmatmul.msk.f32.gmra.mxu2 %vm976_vm1, %v1137_v52  ;;  %v1138_v52 = vld [vmem:[#allocation2 + $0xd1] sm:$0xff] }
  0x87   : > { %8114 = vmatmul.msk.f32.gmra.mxu1 %vm976_vm1, %v1089_v14  ;;  %v9342_v14 = vsel %vm810_vm13, 1.0, %v13393_v10 }
  0x88   : > { %v1105_v20 = vmul.f32 %v9342_v14, %v1073_v51  ;;  %v382_v51 = vadd.s32 112, %v8974_v8 }
  0x8a   : > { %8129 = vmatmul.msk.f32.gmra.mxu3 %vm976_vm1, %v1072_v16  ;;  %v9353_v16 = vld [vmem:[#allocation2 + $0x61] sm:$0xff]  ;;  %v502_v34 = vand.u32 15, %v382_v51 }
  0x8b   : > { %v1140_v51 = vld [vmem:[#allocation2 + $0xe1] sm:$0xff] }
  0x8c   : > { %8082 = vmatmul.msk.f32.gmra.mxu0 %vm976_vm1, %v9329_v0  ;;  %vm798_vm2 = vcmp.ne.s32.totalorder %v502_v34, 0 }
  0x8d   : > { %v9386_v47 = vsel %vm798_vm2, 1.0, %v13393_v10 }
  0x8e   : > { %8097 = vmatmul.msk.f32.gmra.mxu2 %vm976_vm1, %v1138_v52  ;;  %v1139_v52 = vld [vmem:[#allocation2 + $0xd9] sm:$0xff]  ;;  %13396 = vst [vmem:[#allocation45_spill] sm:$0xff] %v9386_v47 }
  0x8f   : > { %8115 = vmatmul.msk.f32.gmra.mxu1 %vm976_vm1, %v9336_v63 }
  0x92   : > { %8130 = vmatmul.msk.f32.gmra.mxu3 %vm976_vm1, %v1105_v20  ;;  %v9376_v20 = vld [vmem:[#allocation2 + $0x2] sm:$0xff] }
  0x93   : > { %4993 = vst.msk [vmem:[#allocation2] sm:$0xff] %vm976_vm1, %v13393_v10 }
  0x94   : > { %8083 = vmatmul.msk.f32.gmra.mxu0 %vm976_vm1, %v9353_v16  ;;  %4994 = vst.msk [vmem:[#allocation2 + $0x8] sm:$0xff] %vm976_vm1, %v13393_v10  ;;  %v9428_v1 = vpop.f32.mrf.mxu0 }
  0x95   : > { %v9437_v24 = vpop.f32.mrf.mxu1 }
  0x96   : > { %8098 = vmatmul.msk.f32.gmra.mxu2 %vm976_vm1, %v1139_v52  ;;  %v9392_v52 = vld [vmem:[#allocation2 + $0x71] sm:$0xff] }
  0x97   : > { %8116 = vmatmul.msk.f32.gmra.mxu1 %vm976_vm1, %v1091_v4  ;;  %v1075_v4 = vld [vmem:[#allocation2 + $0xe0] sm:$0xff] }
  0x98   : > { %v1107_v34 = vmul.f32 %v9379_v32, %v1075_v4  ;;  %v8306_v4 = vld [vmem:[%s13223_s1 + $0x1c] sm:$0xf] }
  0x99   : > { %8307 = vmatpush.msk.msra.mxu3 %vm1242_vm0, %v8306_v4  ;;  %v2469_v4 = vld [vmem:[#allocation2 + $0x12] sm:$0xff] }
  0x9a   : > { %8131 = vmatmul.msk.f32.gmra.mxu3 %vm976_vm1, %v1074_v28  ;;  %v9388_v28 = vld [vmem:[#allocation2 + $0x70] sm:$0xff]  ;;  %4995 = vst.msk [vmem:[#allocation2 + $0x10] sm:$0xff] %vm976_vm1, %v13393_v10 }
  0x9b   : > { %v1093_v17 = vmul.f32 %v9386_v47, %v9388_v28  ;;  %4996 = vst.msk [vmem:[#allocation2 + $0x18] sm:$0xff] %vm976_vm1, %v13393_v10 }
  0x9c   : > { %8084 = vmatmul.msk.f32.gmra.mxu0 %vm976_vm1, %v9369_v26  ;;  %v9447_v21 = vpop.f32.mrf.mxu0 }
  0x9e   : > { %8099 = vmatmul.msk.f32.gmra.mxu2 %vm976_vm1, %v1140_v51  ;;  %v1141_v51 = vld [vmem:[#allocation2 + $0xe9] sm:$0xff] }
  0x9f   : > { %8117 = vmatmul.msk.f32.gmra.mxu1 %vm976_vm1, %v9371_v23 }
  0xa2   : > { %8132 = vmatmul.msk.f32.gmra.mxu3 %vm976_vm1, %v1107_v34  ;;  %v9412_v34 = vld [vmem:[#allocation2 + $0x79] sm:$0xff] }
  0xa4   : > { %8085 = vmatmul.msk.f32.gmra.mxu0 %vm976_vm1, %v9392_v52 }
  0xa6   : > { %8100 = vmatmul.msk.f32.gmra.mxu2 %vm976_vm1, %v1141_v51  ;;  %v9426_v51 = vsel %vm814_vm3, 1.0, %v13393_v10 }
  0xa7   : > { %8118 = vmatmul.msk.f32.gmra.mxu1 %vm976_vm1, %v1093_v17  ;;  %v8340_v17 = vld [vmem:[%s13223_s1 + $0x20] sm:$0xf]  ;;  %13397 = vst [vmem:[#allocation46_spill] sm:$0xff] %v9426_v51  ;;  %v1109_v6 = vmul.f32 %v9426_v51, %v1077_v19  ;;  %v1078_v19 = vld [vmem:[#allocation2 + $0xf8] sm:$0xff] }
  0xa8   : > { %8341 = vmatpush.msk.msra.mxu0 %vm1242_vm0, %v8340_v17  ;;  %v1143_v17 = vld [vmem:[#allocation2 + $0xf9] sm:$0xff] }
  0xaa   : > { %8133 = vmatmul.msk.f32.gmra.mxu3 %vm976_vm1, %v1076_v59  ;;  %v1142_v59 = vld [vmem:[#allocation2 + $0xf1] sm:$0xff] }
  0xac   : > { %8086 = vmatmul.msk.f32.gmra.mxu0 %vm976_vm1, %v9412_v34 }
  0xae   : > { %8101 = vmatmul.msk.f32.gmra.mxu2 %vm976_vm1, %v1142_v59  ;;  %v9453_v59 = vpop.f32.mrf.mxu1 }
  0xaf   : > { %8119 = vmatmul.msk.f32.gmra.mxu1 %vm976_vm1, %v9414_v36 }
  0xb2   : > { %8134 = vmatmul.msk.f32.gmra.mxu3 %vm976_vm1, %v1109_v6  ;;  %v2502_v6 = vmul.f32 %v9451_v44, %v2470_v49 }
  0xb4   : > { %8206 = vmatmul.msk.f32.vlgmr.msrb.gmra.mxu0 %vm976_vm1, %v9110_v37  ;;  %v371_v37 = vadd.s32 24, %v8974_v8 }
  0xb6   : > { %8102 = vmatmul.msk.f32.gmra.mxu2 %vm976_vm1, %v1143_v17  ;;  %v425_v39 = vand.u32 15, %v371_v37 }
  0xb7   : > { %8240 = vmatmul.msk.f32.vlgmr.msrb.gmra.mxu1 %vm976_vm1, %v2469_v4 }
  0xb8   : > { %vm883_vm5 = vcmp.ne.s32.totalorder %v425_v39, 15 }
  0xb9   : > { %v9480_v25 = vsel %vm883_vm5, 1.0, %v13393_v10 }
  0xba   : > { %8135 = vmatmul.msk.f32.gmra.mxu3 %vm976_vm1, %v1078_v19  ;;  %13400 = vst [vmem:[#allocation49_spill] sm:$0xff] %v9480_v25 }
  0xbc   : > { %8207 = vmatmul.msk.f32.gmra.mxu0 %vm976_vm1, %v9129_v46  ;;  %v1604_v46 = vmul.f32 %v9451_v44, %v1572_v18 }
  0xbe   : > { %8138 = vmatmul.msk.f32.vlgmr.msrb.gmra.mxu2 %vm976_vm1, %v9376_v20 }
  0xbf   : > { %8241 = vmatmul.msk.f32.gmra.mxu1 %vm976_vm1, %v2502_v6  ;;  %v2472_v6 = vld [vmem:[#allocation2 + $0x2a] sm:$0xff] }
  0xc1   : > { %v9465_v17 = vpop.f32.mrf.mxu0  ;;  %v1311_v19 = vpop.f32.mrf.mxu2 }
  0xc2   : > { %8172 = vmatmul.msk.f32.vlgmr.msrb.gmra.mxu3 %vm976_vm1, %v1913_v60  ;;  %v2504_v60 = vmul.f32 %v9480_v25, %v2472_v6 }
  0xc4   : > { %v9467_v30 = vpop.f32.mrf.mxu1  ;;  %8208 = vmatmul.msk.f32.gmra.mxu0 %vm976_vm1, %v9158_v56  ;;  %v373_v56 = vadd.s32 40, %v8974_v8 }
  0xc5   : > { %v1523_v38 = vpop.f32.mrf.mxu3 }
  0xc6   : > { %v9474_v20 = vadd.f32 %v1523_v38, %v1311_v19  ;;  %8139 = vmatmul.msk.f32.gmra.mxu2 %vm976_vm1, %v1604_v46  ;;  %v1915_v46 = vmul.f32 %v9099_v33, %v9154_v54 }
  0xc7   : > { %8242 = vmatmul.msk.f32.gmra.mxu1 %vm976_vm1, %v2471_v27 }
  0xc8   : > { %13399 = vst [vmem:[#allocation48_spill] sm:$0xff] %v9474_v20  ;;  %v439_v20 = vand.u32 15, %v373_v56 }
  0xc9   : > { %v9477_v37 = vpop.f32.mrf.mxu0  ;;  %v1314_v39 = vpop.f32.mrf.mxu2 }
  0xca   : > { %8173 = vmatmul.msk.f32.gmra.mxu3 %vm976_vm1, %v9136_v48  ;;  %vm885_vm6 = vcmp.ne.s32.totalorder %v439_v20, 15 }
  0xcc   : > { %v9483_v22 = vpop.f32.mrf.mxu1  ;;  %8209 = vmatmul.msk.f32.gmra.mxu0 %vm976_vm1, %v9179_v3 }
  0xcd   : > { %v1526_v18 = vpop.f32.mrf.mxu3 }
  0xce   : > { %v9491_v19 = vadd.f32 %v1526_v18, %v1314_v39  ;;  %8140 = vmatmul.msk.f32.gmra.mxu2 %vm976_vm1, %v2469_v4  ;;  %v2474_v39 = vld [vmem:[#allocation2 + $0x3a] sm:$0xff]  ;;  %v9511_v18 = vsel %vm885_vm6, 1.0, %v13393_v10 }
  0xcf   : > { %8243 = vmatmul.msk.f32.gmra.mxu1 %vm976_vm1, %v2504_v60  ;;  %v1606_v60 = vmul.f32 %v9480_v25, %v2470_v49  ;;  %13403 = vst [vmem:[#allocation52_spill] sm:$0xff] %v9511_v18 }
  0xd0   : > { %13401 = vst [vmem:[#allocation50_spill] sm:$0xff] %v9491_v19  ;;  %v2475_v19 = vld [vmem:[#allocation2 + $0x42] sm:$0xff] }
  0xd1   : > { %v9496_v38 = vpop.f32.mrf.mxu0  ;;  %v1317_v3 = vpop.f32.mrf.mxu2 }
  0xd2   : > { %8174 = vmatmul.msk.f32.gmra.mxu3 %vm976_vm1, %v1915_v46  ;;  %v2506_v46 = vmul.f32 %v9511_v18, %v2474_v39 }
  0xd4   : > { %v9498_v48 = vpop.f32.mrf.mxu1  ;;  %8210 = vmatmul.msk.f32.gmra.mxu0 %vm976_vm1, %v9208_v15  ;;  %v375_v15 = vadd.s32 56, %v8974_v8 }
  0xd5   : > { %v1529_v54 = vpop.f32.mrf.mxu3 }
  0xd6   : > { %v9505_v4 = vadd.f32 %v1529_v54, %v1317_v3  ;;  %8141 = vmatmul.msk.f32.gmra.mxu2 %vm976_vm1, %v1606_v60  ;;  %v1917_v60 = vmul.f32 %v9152_v53, %v9204_v13 }
  0xd7   : > { %8244 = vmatmul.msk.f32.gmra.mxu1 %vm976_vm1, %v2473_v11 }
  0xd8   : > { %13402 = vst [vmem:[#allocation51_spill] sm:$0xff] %v9505_v4  ;;  %v453_v4 = vand.u32 15, %v375_v15 }
  0xd9   : > { %v9508_v56 = vpop.f32.mrf.mxu0  ;;  %v1320_v49 = vpop.f32.mrf.mxu2 }
  0xda   : > { %8175 = vmatmul.msk.f32.gmra.mxu3 %vm976_vm1, %v9186_v5  ;;  %vm887_vm7 = vcmp.ne.s32.totalorder %v453_v4, 15 }
  0xdc   : > { %v9514_v33 = vpop.f32.mrf.mxu1  ;;  %8211 = vmatmul.msk.f32.gmra.mxu0 %vm976_vm1, %v9229_v41 }
  0xdd   : > { %v1532_v20 = vpop.f32.mrf.mxu3 }
  0xde   : > { %v9522_v3 = vadd.f32 %v1532_v20, %v1320_v49  ;;  %8142 = vmatmul.msk.f32.gmra.mxu2 %vm976_vm1, %v2471_v27  ;;  %v2476_v49 = vld [vmem:[#allocation2 + $0x4a] sm:$0xff]  ;;  %v9542_v20 = vsel %vm887_vm7, 1.0, %v13393_v10 }
  0xdf   : > { %8245 = vmatmul.msk.f32.gmra.mxu1 %vm976_vm1, %v2506_v46  ;;  %v1608_v46 = vmul.f32 %v9511_v18, %v2472_v6  ;;  %13406 = vst [vmem:[#allocation55_spill] sm:$0xff] %v9542_v20  ;;  %v377_v6 = vadd.s32 72, %v8974_v8 }
  0xe0   : > { %13404 = vst [vmem:[#allocation53_spill] sm:$0xff] %v9522_v3  ;;  %v2477_v3 = vld [vmem:[#allocation2 + $0x52] sm:$0xff] }
  0xe1   : > { %v9527_v54 = vpop.f32.mrf.mxu0  ;;  %v1323_v41 = vpop.f32.mrf.mxu2 }
  0xe2   : > { %8176 = vmatmul.msk.f32.gmra.mxu3 %vm976_vm1, %v1917_v60  ;;  %v2508_v60 = vmul.f32 %v9542_v20, %v2476_v49 }
  0xe4   : > { %v9529_v5 = vpop.f32.mrf.mxu1  ;;  %8212 = vmatmul.msk.f32.gmra.mxu0 %vm976_vm1, %v9258_v61 }
  0xe5   : > { %v1535_v13 = vpop.f32.mrf.mxu3 }
  0xe6   : > { %v9536_v27 = vadd.f32 %v1535_v13, %v1323_v41  ;;  %8143 = vmatmul.msk.f32.gmra.mxu2 %vm976_vm1, %v1608_v46  ;;  %v1919_v46 = vmul.f32 %v9202_v12, %v9254_v57 }
  0xe7   : > { %8246 = vmatmul.msk.f32.gmra.mxu1 %vm976_vm1, %v2475_v19 }
  0xe8   : > { %13405 = vst [vmem:[#allocation54_spill] sm:$0xff] %v9536_v27  ;;  %v467_v27 = vand.u32 15, %v377_v6 }
  0xe9   : > { %v9539_v15 = vpop.f32.mrf.mxu0  ;;  %v1326_v61 = vpop.f32.mrf.mxu2 }
  0xea   : > { %8177 = vmatmul.msk.f32.gmra.mxu3 %vm976_vm1, %v9236_v43  ;;  %vm889_vm8 = vcmp.ne.s32.totalorder %v467_v27, 15 }
  0xec   : > { %v9545_v53 = vpop.f32.mrf.mxu1  ;;  %8213 = vmatmul.msk.f32.gmra.mxu0 %vm976_vm1, %v9279_v31 }
  0xed   : > { %v1538_v4 = vpop.f32.mrf.mxu3 }
  0xee   : > { %v9553_v41 = vadd.f32 %v1538_v4, %v1326_v61  ;;  %8144 = vmatmul.msk.f32.gmra.mxu2 %vm976_vm1, %v2473_v11  ;;  %v2478_v61 = vld [vmem:[#allocation2 + $0x5a] sm:$0xff]  ;;  %v9573_v4 = vsel %vm889_vm8, 1.0, %v13393_v10 }
  0xef   : > { %8247 = vmatmul.msk.f32.gmra.mxu1 %vm976_vm1, %v2508_v60  ;;  %v1610_v60 = vmul.f32 %v9542_v20, %v2474_v39  ;;  %13409 = vst [vmem:[#allocation58_spill] sm:$0xff] %v9573_v4  ;;  %v379_v39 = vadd.s32 88, %v8974_v8  ;;  %v2209_v20 = vld [vmem:[#allocation2 + $0xa1] sm:$0xff] }
  0xf0   : > { %13407 = vst [vmem:[#allocation56_spill] sm:$0xff] %v9553_v41  ;;  %v2479_v41 = vld [vmem:[#allocation2 + $0x62] sm:$0xff] }
  0xf1   : > { %v9558_v13 = vpop.f32.mrf.mxu0  ;;  %v1329_v31 = vpop.f32.mrf.mxu2 }
  0xf2   : > { %8178 = vmatmul.msk.f32.gmra.mxu3 %vm976_vm1, %v1919_v46  ;;  %v2510_v46 = vmul.f32 %v9573_v4, %v2478_v61 }
  0xf4   : > { %v9560_v43 = vpop.f32.mrf.mxu1  ;;  %8214 = vmatmul.msk.f32.gmra.mxu0 %vm976_vm1, %v9308_v9 }
  0xf5   : > { %v1541_v57 = vpop.f32.mrf.mxu3 }
  0xf6   : > { %v9567_v11 = vadd.f32 %v1541_v57, %v1329_v31  ;;  %8145 = vmatmul.msk.f32.gmra.mxu2 %vm976_vm1, %v1610_v60  ;;  %v1921_v60 = vmul.f32 %v9252_v55, %v9304_v62 }
  0xf7   : > { %8248 = vmatmul.msk.f32.gmra.mxu1 %vm976_vm1, %v2477_v3 }
  0xf8   : > { %13408 = vst [vmem:[#allocation57_spill] sm:$0xff] %v9567_v11  ;;  %v481_v11 = vand.u32 15, %v379_v39 }
  0xf9   : > { %v9570_v6 = vpop.f32.mrf.mxu0  ;;  %v1332_v9 = vpop.f32.mrf.mxu2 }
  0xfa   : > { %8179 = vmatmul.msk.f32.gmra.mxu3 %vm976_vm1, %v9286_v35  ;;  %vm891_vm9 = vcmp.ne.s32.totalorder %v481_v11, 15 }
  0xfc   : > { %v9576_v12 = vpop.f32.mrf.mxu1  ;;  %8215 = vmatmul.msk.f32.gmra.mxu0 %vm976_vm1, %v9329_v0 }
  0xfd   : > { %v1544_v27 = vpop.f32.mrf.mxu3 }
  0xfe   : > { %v9584_v31 = vadd.f32 %v1544_v27, %v1332_v9  ;;  %8146 = vmatmul.msk.f32.gmra.mxu2 %vm976_vm1, %v2475_v19  ;;  %v2480_v9 = vld [vmem:[#allocation2 + $0x6a] sm:$0xff]  ;;  %v9604_v27 = vsel %vm891_vm9, 1.0, %v13393_v10 }
  0xff   : > { %8249 = vmatmul.msk.f32.gmra.mxu1 %vm976_vm1, %v2510_v46  ;;  %v1612_v46 = vmul.f32 %v9573_v4, %v2476_v49  ;;  %13412 = vst [vmem:[#allocation61_spill] sm:$0xff] %v9604_v27  ;;  %v381_v49 = vadd.s32 104, %v8974_v8 }
 0x100   : > { %13410 = vst [vmem:[#allocation59_spill] sm:$0xff] %v9584_v31 }
 0x101   : > { %v9589_v57 = vpop.f32.mrf.mxu0  ;;  %v1335_v0 = vpop.f32.mrf.mxu2 }
 0x102   : > { %8180 = vmatmul.msk.f32.gmra.mxu3 %vm976_vm1, %v1921_v60  ;;  %v2512_v60 = vmul.f32 %v9604_v27, %v2480_v9 }
 0x104   : > { %v9591_v35 = vpop.f32.mrf.mxu1  ;;  %8216 = vmatmul.msk.f32.gmra.mxu0 %vm976_vm1, %v9353_v16 }
 0x105   : > { %v1547_v62 = vpop.f32.mrf.mxu3 }
 0x106   : > { %v9598_v19 = vadd.f32 %v1547_v62, %v1335_v0  ;;  %8147 = vmatmul.msk.f32.gmra.mxu2 %vm976_vm1, %v1612_v46  ;;  %v1923_v46 = vmul.f32 %v9302_v58, %v9349_v42 }
 0x107   : > { %8250 = vmatmul.msk.f32.gmra.mxu1 %vm976_vm1, %v2479_v41 }
 0x108   : > { %13411 = vst [vmem:[#allocation60_spill] sm:$0xff] %v9598_v19  ;;  %v495_v19 = vand.u32 15, %v381_v49 }
 0x109   : > { %v9601_v39 = vpop.f32.mrf.mxu0  ;;  %v1338_v16 = vpop.f32.mrf.mxu2 }
 0x10a   : > { %8181 = vmatmul.msk.f32.gmra.mxu3 %vm976_vm1, %v9336_v63  ;;  %v2481_v63 = vld [vmem:[#allocation2 + $0x72] sm:$0xff]  ;;  %vm893_vm10 = vcmp.ne.s32.totalorder %v495_v19, 15 }
 0x10c   : > { %v9607_v55 = vpop.f32.mrf.mxu1  ;;  %8217 = vmatmul.msk.f32.gmra.mxu0 %vm976_vm1, %v9369_v26  ;;  %v1614_v26 = vmul.f32 %v9604_v27, %v2478_v61 }
 0x10d   : > { %v1550_v11 = vpop.f32.mrf.mxu3 }
 0x10e   : > { %v9615_v0 = vadd.f32 %v1550_v11, %v1338_v16  ;;  %8148 = vmatmul.msk.f32.gmra.mxu2 %vm976_vm1, %v2477_v3  ;;  %v2482_v16 = vld [vmem:[#allocation2 + $0x7a] sm:$0xff]  ;;  %v9635_v11 = vsel %vm893_vm10, 1.0, %v13393_v10 }
 0x10f   : > { %8251 = vmatmul.msk.f32.gmra.mxu1 %vm976_vm1, %v2512_v60  ;;  %13415 = vst [vmem:[#allocation64_spill] sm:$0xff] %v9635_v11 }
 0x110   : > { %13413 = vst [vmem:[#allocation62_spill] sm:$0xff] %v9615_v0  ;;  %v9653_v0 = vld [vmem:[#allocation2 + $0x82] sm:$0xff] }
 0x111   : > { %v9620_v62 = vpop.f32.mrf.mxu0  ;;  %v1341_v31 = vpop.f32.mrf.mxu2  ;;  %13417 = vst [vmem:[#allocation66_spill] sm:$0xff] %v9653_v0 }
 0x112   : > { %8182 = vmatmul.msk.f32.gmra.mxu3 %vm976_vm1, %v1923_v46 }
 0x114   : > { %8218 = vmatmul.msk.f32.gmra.mxu0 %vm976_vm1, %v9392_v52  ;;  %v9626_v60 = vpop.f32.mrf.mxu1  ;;  %v2514_v52 = vmul.f32 %v9635_v11, %v2482_v16 }
 0x115   : > { %v1553_v42 = vpop.f32.mrf.mxu3 }
 0x116   : > { %v9629_v3 = vadd.f32 %v1553_v42, %v1341_v31  ;;  %8149 = vmatmul.msk.f32.gmra.mxu2 %vm976_vm1, %v1614_v26  ;;  %v383_v31 = vadd.s32 120, %v8974_v8  ;;  %v1925_v42 = vmul.f32 %v9347_v2, %v9388_v28 }
 0x117   : > { %8252 = vmatmul.msk.f32.gmra.mxu1 %vm976_vm1, %v2481_v63 }
 0x118   : > { %13414 = vst [vmem:[#allocation63_spill] sm:$0xff] %v9629_v3  ;;  %v509_v58 = vand.u32 15, %v383_v31 }
 0x119   : > { %v9632_v49 = vpop.f32.mrf.mxu0  ;;  %v1344_v61 = vpop.f32.mrf.mxu2 }
 0x11a   : > { %8183 = vmatmul.msk.f32.gmra.mxu3 %vm976_vm1, %v9371_v23  ;;  %v2205_v23 = vld [vmem:[#allocation2 + $0x81] sm:$0xff]  ;;  %vm895_vm11 = vcmp.ne.s32.totalorder %v509_v58, 15 }
 0x11c   : > { %8219 = vmatmul.msk.f32.gmra.mxu0 %vm976_vm1, %v9412_v34  ;;  %v9644_v46 = vpop.f32.mrf.mxu1 }
 0x11d   : > { %v1556_v19 = vpop.f32.mrf.mxu3 }
 0x11e   : > { %v9646_v26 = vadd.f32 %v1556_v19, %v1344_v61  ;;  %8150 = vmatmul.msk.f32.gmra.mxu2 %vm976_vm1, %v2479_v41  ;;  %v9660_v61 = vld [vmem:[#allocation2 + $0x8a] sm:$0xff] }
 0x11f   : > { %8253 = vmatmul.msk.f32.gmra.mxu1 %vm976_vm1, %v2514_v52  ;;  %v1616_v52 = vmul.f32 %v9635_v11, %v2480_v9  ;;  %13418 = vst [vmem:[#allocation67_spill] sm:$0xff] %v9660_v61  ;;  %v2206_v19 = vld [vmem:[#allocation2 + $0x89] sm:$0xff]  ;;  %v2207_v11 = vld [vmem:[#allocation2 + $0x91] sm:$0xff] }
 0x120   : > { %13416 = vst [vmem:[#allocation65_spill] sm:$0xff] %v9646_v26 }
 0x121   : > { %v9651_v3 = vpop.f32.mrf.mxu0  ;;  %v1347_v34 = vpop.f32.mrf.mxu2 }
 0x122   : > { %8184 = vmatmul.msk.f32.gmra.mxu3 %vm976_vm1, %v1925_v42 }
 0x124   : > { %8220 = vmatmul.msk.f32.gmra.mxu0 %vm976_vm1, %v2205_v23  ;;  %v9667_v42 = vpop.f32.mrf.mxu1  ;;  %v9670_v23 = vsel %vm895_vm11, 1.0, %v13393_v10 }
 0x125   : > { %v1559_v28 = vpop.f32.mrf.mxu3  ;;  %13420 = vst [vmem:[#allocation69_spill] sm:$0xff] %v9670_v23  ;;  %v2516_v58 = vmul.f32 %v9670_v23, %v9660_v61 }
 0x126   : > { %v9662_v41 = vadd.f32 %v1559_v28, %v1347_v34  ;;  %8151 = vmatmul.msk.f32.gmra.mxu2 %vm976_vm1, %v1616_v52  ;;  %v1895_v34 = vld [vmem:[#allocation2 + $0x80] sm:$0xff]  ;;  %v385_v52 = vadd.s32 136, %v8974_v8 }
 0x127   : > { %8254 = vmatmul.msk.f32.gmra.mxu1 %vm976_vm1, %v9653_v0  ;;  %v1927_v2 = vmul.f32 %v9386_v47, %v1895_v34  ;;  %v2208_v47 = vld [vmem:[#allocation2 + $0x99] sm:$0xff] }
 0x128   : > { %13419 = vst [vmem:[#allocation68_spill] sm:$0xff] %v9662_v41  ;;  %v523_v27 = vand.u32 15, %v385_v52  ;;  %v1896_v52 = vld [vmem:[#allocation2 + $0x88] sm:$0xff] }
 0x129   : > { %v9665_v31 = vpop.f32.mrf.mxu0  ;;  %v1350_v9 = vpop.f32.mrf.mxu2 }
 0x12a   : > { %8185 = vmatmul.msk.f32.gmra.mxu3 %vm976_vm1, %v9414_v36  ;;  %v9685_v36 = vld [vmem:[#allocation2 + $0x92] sm:$0xff]  ;;  %vm897_vm12 = vcmp.ne.s32.totalorder %v523_v27, 15 }
 0x12c   : > { %8221 = vmatmul.msk.f32.gmra.mxu0 %vm976_vm1, %v2206_v19  ;;  %v9683_v4 = vpop.f32.mrf.mxu1 }
 0x12d   : > { %v1562_v28 = vpop.f32.mrf.mxu3 }
 0x12e   : > { %v9679_v41 = vadd.f32 %v1562_v28, %v1350_v9  ;;  %8152 = vmatmul.msk.f32.gmra.mxu2 %vm976_vm1, %v2481_v63  ;;  %v9692_v63 = vld [vmem:[#allocation2 + $0x9a] sm:$0xff] }
 0x12f   : > { %8255 = vmatmul.msk.f32.gmra.mxu1 %vm976_vm1, %v2516_v58  ;;  %v1618_v58 = vmul.f32 %v9670_v23, %v2482_v16 }
 0x130   : > { %13421 = vst [vmem:[#allocation70_spill] sm:$0xff] %v9679_v41  ;;  %v1897_v41 = vld [vmem:[#allocation2 + $0x90] sm:$0xff] }
 0x131   : > { %v2341_v26 = vpop.f32.mrf.mxu0  ;;  %v1353_v19 = vpop.f32.mrf.mxu2 }
 0x132   : > { %8186 = vmatmul.msk.f32.gmra.mxu3 %vm976_vm1, %v1927_v2  ;;  %v9698_v2 = vsel %vm897_vm12, 1.0, %v13393_v10 }
 0x133   : > { %13423 = vst [vmem:[#allocation72_spill] sm:$0xff] %v9698_v2  ;;  %v2518_v16 = vmul.f32 %v9698_v2, %v9692_v63 }
 0x134   : > { %8222 = vmatmul.msk.f32.gmra.mxu0 %vm976_vm1, %v2207_v11  ;;  %v2651_v27 = vpop.f32.mrf.mxu1 }
 0x135   : > { %v1565_v9 = vpop.f32.mrf.mxu3 }
 0x136   : > { %v9694_v34 = vadd.f32 %v1565_v9, %v1353_v19  ;;  %8153 = vmatmul.msk.f32.gmra.mxu2 %vm976_vm1, %v1618_v58  ;;  %v387_v19 = vadd.s32 152, %v8974_v8 }
 0x137   : > { %8256 = vmatmul.msk.f32.gmra.mxu1 %vm976_vm1, %v9685_v36 }
 0x138   : > { %13422 = vst [vmem:[#allocation71_spill] sm:$0xff] %v9694_v34  ;;  %v1929_v34 = vmul.f32 %v9088_v29, %v1897_v41  ;;  %v537_v18 = vand.u32 15, %v387_v19  ;;  %v1620_v41 = vmul.f32 %v9698_v2, %v9660_v61  ;;  %v9721_v29 = vld [vmem:[#allocation2 + $0xaa] sm:$0xff]  ;;  %v389_v61 = vadd.s32 168, %v8974_v8 }
 0x139   : > { %v2344_v28 = vpop.f32.mrf.mxu0  ;;  %v1356_v11 = vpop.f32.mrf.mxu2 }
 0x13a   : > { %8187 = vmatmul.msk.f32.gmra.mxu3 %vm976_vm1, %v1896_v52  ;;  %v1476_v52 = vadd.f32 %v9437_v24, %v9428_v1  ;;  %vm899_vm13 = vcmp.ne.s32.totalorder %v537_v18, 15  ;;  %v1898_v1 = vld [vmem:[#allocation2 + $0x98] sm:$0xff]  ;;  %v1479_v18 = vadd.f32 %v9453_v59, %v9447_v21 }
 0x13b   : > { %v2211_v59 = vld [vmem:[#allocation2 + $0xb1] sm:$0xff] }
 0x13c   : > { %8223 = vmatmul.msk.f32.gmra.mxu0 %vm976_vm1, %v2208_v47  ;;  %v9713_v47 = vld [vmem:[#allocation2 + $0xa2] sm:$0xff] }
 0x13d   : > { %v1568_v58 = vpop.f32.mrf.mxu3 }
 0x13e   : > { %v9706_v9 = vadd.f32 %v1568_v58, %v1356_v11  ;;  %8154 = vmatmul.msk.f32.gmra.mxu2 %vm976_vm1, %v9653_v0  ;;  %v2654_v58 = vpop.f32.mrf.mxu1 }
 0x13f   : > { %8257 = vmatmul.msk.f32.gmra.mxu1 %vm976_vm1, %v2518_v16 }
 0x140   : > { %13424 = vst [vmem:[#allocation73_spill] sm:$0xff] %v9706_v9  ;;  %v2210_v9 = vld [vmem:[#allocation2 + $0xa9] sm:$0xff] }
 0x141   : > { %v2347_v23 = vpop.f32.mrf.mxu0  ;;  %v1753_v16 = vpop.f32.mrf.mxu2 }
 0x142   : > { %8188 = vmatmul.msk.f32.gmra.mxu3 %vm976_vm1, %v1929_v34  ;;  %v1849_v11 = vadd.f32 %v1753_v16, %v1476_v52 }
 0x144   : > { %8224 = vmatmul.msk.f32.gmra.mxu0 %vm976_vm1, %v2209_v20  ;;  %v9725_v20 = vsel %vm899_vm13, 1.0, %v13393_v10 }
 0x145   : > { %v2063_v19 = vpop.f32.mrf.mxu3  ;;  %13425 = vst [vmem:[#allocation74_spill] sm:$0xff] %v9725_v20  ;;  %v2520_v16 = vmul.f32 %v9725_v20, %v9721_v29 }
 0x146   : > { %v2159_v24 = vadd.f32 %v2063_v19, %v1849_v11  ;;  %8155 = vmatmul.msk.f32.gmra.mxu2 %vm976_vm1, %v1620_v41  ;;  %v1899_v19 = vld [vmem:[#allocation2 + $0xa0] sm:$0xff] }
 0x147   : > { %8258 = vmatmul.msk.f32.gmra.mxu1 %vm976_vm1, %v9713_v47  ;;  %v1931_v25 = vmul.f32 %v9147_v50, %v1899_v19 }
 0x148   : > { %v2437_v52 = vadd.f32 %v2341_v26, %v2159_v24  ;;  %v2657_v24 = vpop.f32.mrf.mxu1 }
 0x149   : > { %v2350_v34 = vpop.f32.mrf.mxu0  ;;  %v1756_v11 = vpop.f32.mrf.mxu2 }
 0x14a   : > { %v9731_v2 = vadd.f32 %v2651_v27, %v2437_v52  ;;  %8189 = vmatmul.msk.f32.gmra.mxu3 %vm976_vm1, %v1898_v1  ;;  %v1850_v41 = vadd.f32 %v1756_v11, %v1479_v18  ;;  %v551_v1 = vand.u32 15, %v389_v61  ;;  %v9744_v52 = vld [vmem:[#allocation2 + $0xb2] sm:$0xff]  ;;  %v9754_v61 = vld [vmem:[#allocation2 + $0xba] sm:$0xff] }
 0x14c   : > { %8225 = vmatmul.msk.f32.gmra.mxu0 %vm976_vm1, %v2210_v9  ;;  %v1482_v9 = vadd.f32 %v9467_v30, %v9465_v17  ;;  %vm901_vm14 = vcmp.ne.s32.totalorder %v551_v1, 15  ;;  %v1900_v17 = vld [vmem:[#allocation2 + $0xa8] sm:$0xff] }
 0x14d   : > { %v2066_v26 = vpop.f32.mrf.mxu3  ;;  %v9758_v19 = vsel %vm901_vm14, 1.0, %v13393_v10 }
 0x14e   : > { %v2160_v0 = vadd.f32 %v2066_v26, %v1850_v41  ;;  %8156 = vmatmul.msk.f32.gmra.mxu2 %vm976_vm1, %v9685_v36  ;;  %v1622_v41 = vmul.f32 %v9725_v20, %v9692_v63  ;;  %13426 = vst [vmem:[#allocation75_spill] sm:$0xff] %v9758_v19 }
 0x14f   : > { %8259 = vmatmul.msk.f32.gmra.mxu1 %vm976_vm1, %v2520_v16 }
 0x150   : > { %v2438_v27 = vadd.f32 %v2344_v28, %v2160_v0 }
 0x151   : > { %v9740_v21 = vpop.f32.mrf.mxu0  ;;  %v1759_v18 = vpop.f32.mrf.mxu2 }
 0x152   : > { %v9746_v16 = vadd.f32 %v2654_v58, %v2438_v27  ;;  %8190 = vmatmul.msk.f32.gmra.mxu3 %vm976_vm1, %v1931_v25  ;;  %v1851_v11 = vadd.f32 %v1759_v18, %v1482_v9  ;;  %v2660_v25 = vpop.f32.mrf.mxu1  ;;  %v2212_v58 = vld [vmem:[#allocation2 + $0xb9] sm:$0xff]  ;;  %v1485_v27 = vadd.f32 %v9483_v22, %v9477_v37  ;;  %v8374_v18 = vld [vmem:[%s13225_s3 + $0x4] sm:$0xf] }
 0x153   : > { %8375 = vmatpush.msk.msra.mxu1 %vm1242_vm0, %v8374_v18 }
 0x154   : > { %8226 = vmatmul.msk.f32.gmra.mxu0 %vm976_vm1, %v2211_v59  ;;  %v2522_v59 = vmul.f32 %v9758_v19, %v9754_v61 }
 0x155   : > { %v2069_v0 = vpop.f32.mrf.mxu3 }
 0x156   : > { %v2161_v30 = vadd.f32 %v2069_v0, %v1851_v11  ;;  %8157 = vmatmul.msk.f32.gmra.mxu2 %vm976_vm1, %v1622_v41  ;;  %v1901_v41 = vld [vmem:[#allocation2 + $0xb0] sm:$0xff] }
 0x157   : > { %8260 = vmatmul.msk.f32.gmra.mxu1 %vm976_vm1, %v9744_v52 }
 0x158   : > { %v2439_v26 = vadd.f32 %v2347_v23, %v2161_v30  ;;  %v391_v23 = vadd.s32 184, %v8974_v8  ;;  %v2213_v30 = vld [vmem:[#allocation2 + $0xc1] sm:$0xff] }
 0x159   : > { %v2356_v28 = vpop.f32.mrf.mxu0  ;;  %v1762_v9 = vpop.f32.mrf.mxu2 }
 0x15a   : > { %v9764_v1 = vadd.f32 %v2657_v24, %v2439_v26  ;;  %8191 = vmatmul.msk.f32.gmra.mxu3 %vm976_vm1, %v1900_v17  ;;  %v1852_v11 = vadd.f32 %v1762_v9, %v1485_v27  ;;  %v1933_v24 = vmul.f32 %v9197_v7, %v1901_v41  ;;  %v1488_v26 = vadd.f32 %v9498_v48, %v9496_v38  ;;  %v2663_v27 = vpop.f32.mrf.mxu1  ;;  %v9779_v9 = vld [vmem:[#allocation2 + $0xc2] sm:$0xff]  ;;  %v9789_v38 = vld [vmem:[#allocation2 + $0xca] sm:$0xff] }
 0x15b   : > { %v1624_v41 = vmul.f32 %v9758_v19, %v9721_v29 }
 0x15c   : > { %8227 = vmatmul.msk.f32.gmra.mxu0 %vm976_vm1, %v2212_v58  ;;  %v565_v58 = vand.u32 15, %v391_v23 }
 0x15d   : > { %v2072_v22 = vpop.f32.mrf.mxu3 }
 0x15e   : > { %v2162_v37 = vadd.f32 %v2072_v22, %v1852_v11  ;;  %8158 = vmatmul.msk.f32.gmra.mxu2 %vm976_vm1, %v9713_v47  ;;  %vm903_vm15 = vcmp.ne.s32.totalorder %v565_v58, 15  ;;  %v2214_v22 = vld [vmem:[#allocation2 + $0xc9] sm:$0xff] }
 0x15f   : > { %8261 = vmatmul.msk.f32.gmra.mxu1 %vm976_vm1, %v2522_v59 }
 0x160   : > { %v2440_v17 = vadd.f32 %v2350_v34, %v2162_v37  ;;  %v9793_v37 = vsel %vm903_vm15, 1.0, %v13393_v10 }
 0x161   : > { %v2359_v0 = vpop.f32.mrf.mxu0  ;;  %v1765_v18 = vpop.f32.mrf.mxu2  ;;  %13428 = vst [vmem:[#allocation77_spill] sm:$0xff] %v9793_v37 }
 0x162   : > { %v9781_v59 = vadd.f32 %v2660_v25, %v2440_v17  ;;  %8192 = vmatmul.msk.f32.gmra.mxu3 %vm976_vm1, %v1933_v24  ;;  %v1853_v11 = vadd.f32 %v1765_v18, %v1488_v26  ;;  %v1902_v25 = vld [vmem:[#allocation2 + $0xb8] sm:$0xff]  ;;  %v1491_v17 = vadd.f32 %v9514_v33, %v9508_v56 }
 0x163   : > { %v2215_v56 = vld [vmem:[#allocation2 + $0xd1] sm:$0xff] }
 0x164   : > { %13427 = vst [vmem:[#allocation76_spill] sm:$0xff] %v9781_v59  ;;  %8228 = vmatmul.msk.f32.gmra.mxu0 %vm976_vm1, %v2213_v30  ;;  %v2524_v30 = vmul.f32 %v9793_v37, %v9789_v38 }
 0x165   : > { %v2075_v34 = vpop.f32.mrf.mxu3 }
 0x166   : > { %v2163_v48 = vadd.f32 %v2075_v34, %v1853_v11  ;;  %8159 = vmatmul.msk.f32.gmra.mxu2 %vm976_vm1, %v1624_v41  ;;  %v2666_v11 = vpop.f32.mrf.mxu1  ;;  %v1903_v41 = vld [vmem:[#allocation2 + $0xc0] sm:$0xff] }
 0x167   : > { %8262 = vmatmul.msk.f32.gmra.mxu1 %vm976_vm1, %v9779_v9  ;;  %v1935_v59 = vmul.f32 %v9247_v45, %v1903_v41  ;;  %v2216_v41 = vld [vmem:[#allocation2 + $0xd9] sm:$0xff] }
 0x168   : > { %v2441_v24 = vadd.f32 %v9740_v21, %v2163_v48  ;;  %v393_v21 = vadd.s32 200, %v8974_v8 }
 0x169   : > { %v2362_v23 = vpop.f32.mrf.mxu0  ;;  %v1768_v26 = vpop.f32.mrf.mxu2 }
 0x16a   : > { %v9800_v58 = vadd.f32 %v2663_v27, %v2441_v24  ;;  %8193 = vmatmul.msk.f32.gmra.mxu3 %vm976_vm1, %v1902_v25  ;;  %v1854_v18 = vadd.f32 %v1768_v26, %v1491_v17  ;;  %v579_v25 = vand.u32 15, %v393_v21  ;;  %v9813_v24 = vld [vmem:[#allocation2 + $0xd2] sm:$0xff] }
 0x16c   : > { %8229 = vmatmul.msk.f32.gmra.mxu0 %vm976_vm1, %v2214_v22  ;;  %v1494_v22 = vadd.f32 %v9529_v5, %v9527_v54  ;;  %vm905_vm2 = vcmp.ne.s32.totalorder %v579_v25, 15  ;;  %v9823_v54 = vld [vmem:[#allocation2 + $0xda] sm:$0xff] }
 0x16d   : > { %v2078_v34 = vpop.f32.mrf.mxu3  ;;  %v9827_v21 = vsel %vm905_vm2, 1.0, %v13393_v10 }
 0x16e   : > { %v2164_v48 = vadd.f32 %v2078_v34, %v1854_v18  ;;  %8160 = vmatmul.msk.f32.gmra.mxu2 %vm976_vm1, %v9744_v52  ;;  %v1626_v52 = vmul.f32 %v9793_v37, %v9754_v61  ;;  %v2669_v18 = vpop.f32.mrf.mxu1  ;;  %13429 = vst [vmem:[#allocation78_spill] sm:$0xff] %v9827_v21  ;;  %v2526_v61 = vmul.f32 %v9827_v21, %v9823_v54 }
 0x16f   : > { %8263 = vmatmul.msk.f32.gmra.mxu1 %vm976_vm1, %v2524_v30 }
 0x170   : > { %v2442_v27 = vadd.f32 %v2356_v28, %v2164_v48  ;;  %v1497_v48 = vadd.f32 %v9545_v53, %v9539_v15 }
 0x171   : > { %v9809_v33 = vpop.f32.mrf.mxu0  ;;  %v1771_v17 = vpop.f32.mrf.mxu2 }
 0x172   : > { %v9815_v30 = vadd.f32 %v2666_v11, %v2442_v27  ;;  %8194 = vmatmul.msk.f32.gmra.mxu3 %vm976_vm1, %v1935_v59  ;;  %v1855_v26 = vadd.f32 %v1771_v17, %v1494_v22  ;;  %v1904_v11 = vld [vmem:[#allocation2 + $0xc8] sm:$0xff]  ;;  %v1905_v22 = vld [vmem:[#allocation2 + $0xd0] sm:$0xff] }
 0x174   : > { %8230 = vmatmul.msk.f32.gmra.mxu0 %vm976_vm1, %v2215_v56 }
 0x175   : > { %v2081_v28 = vpop.f32.mrf.mxu3 }
 0x176   : > { %v2165_v5 = vadd.f32 %v2081_v28, %v1855_v26  ;;  %8161 = vmatmul.msk.f32.gmra.mxu2 %vm976_vm1, %v1626_v52  ;;  %v1937_v52 = vmul.f32 %v9297_v40, %v1905_v22  ;;  %v2672_v53 = vpop.f32.mrf.mxu1  ;;  %v2217_v28 = vld [vmem:[#allocation2 + $0xe1] sm:$0xff] }
 0x177   : > { %8264 = vmatmul.msk.f32.gmra.mxu1 %vm976_vm1, %v9813_v24 }
 0x178   : > { %v2443_v34 = vadd.f32 %v2359_v0, %v2165_v5  ;;  %v395_v0 = vadd.s32 216, %v8974_v8 }
 0x179   : > { %v2368_v59 = vpop.f32.mrf.mxu0  ;;  %v1774_v27 = vpop.f32.mrf.mxu2 }
 0x17a   : > { %v9833_v56 = vadd.f32 %v2669_v18, %v2443_v34  ;;  %8195 = vmatmul.msk.f32.gmra.mxu3 %vm976_vm1, %v1904_v11  ;;  %v1856_v25 = vadd.f32 %v1774_v27, %v1497_v48  ;;  %v593_v5 = vand.u32 15, %v395_v0  ;;  %v1500_v11 = vadd.f32 %v9560_v43, %v9558_v13  ;;  %v9847_v34 = vld [vmem:[%s9033_s25 + $0xf0] sm:$0xff] }
 0x17b   : > { %13430 = vst [vmem:[#allocation79_spill] sm:$0xff] %v9847_v34  ;;  %v9859_v43 = vld [vmem:[#allocation2 + $0xea] sm:$0xff] }
 0x17c   : > { %8231 = vmatmul.msk.f32.gmra.mxu0 %vm976_vm1, %v2216_v41  ;;  %v9844_v41 = vld [vmem:[#allocation2 + $0xe2] sm:$0xff]  ;;  %1045 = vst.msk [vmem:[#allocation2 + $0x101] sm:$0xff] %vm976_vm1, %v9847_v34  ;;  %vm907_vm3 = vcmp.ne.s32.totalorder %v593_v5, 15  ;;  %v2785_v34 = vld [vmem:[#allocation2 + $0x50] sm:$0xff] }
 0x17d   : > { %v2084_v17 = vpop.f32.mrf.mxu3  ;;  %v2218_v0 = vld [vmem:[#allocation2 + $0xe9] sm:$0xff]  ;;  %v1907_v5 = vld [vmem:[#allocation2 + $0xe0] sm:$0xff] }
 0x17e   : > { %v2166_v26 = vadd.f32 %v2084_v17, %v1856_v25  ;;  %8162 = vmatmul.msk.f32.gmra.mxu2 %vm976_vm1, %v9779_v9  ;;  %v1906_v25 = vld [vmem:[#allocation2 + $0xd8] sm:$0xff]  ;;  %v9863_v17 = vsel %vm907_vm3, 1.0, %v13393_v10 }
 0x17f   : > { %8265 = vmatmul.msk.f32.gmra.mxu1 %vm976_vm1, %v2526_v61 }
 0x180   : > { %v2444_v18 = vadd.f32 %v2362_v23, %v2166_v26  ;;  %v1628_v23 = vmul.f32 %v9827_v21, %v9789_v38  ;;  %v2528_v38 = vmul.f32 %v9863_v17, %v9859_v43 }
 0x181   : > { %v2371_v15 = vpop.f32.mrf.mxu0  ;;  %v1777_v48 = vpop.f32.mrf.mxu2 }
 0x182   : > { %v9849_v61 = vadd.f32 %v2672_v53, %v2444_v18  ;;  %8196 = vmatmul.msk.f32.gmra.mxu3 %vm976_vm1, %v1937_v52  ;;  %v1857_v9 = vadd.f32 %v1777_v48, %v1500_v11  ;;  %v1503_v52 = vadd.f32 %v9576_v12, %v9570_v6  ;;  %v9873_v53 = vld [vmem:[%s9033_s25 + $0xf8] sm:$0xff]  ;;  %v1939_v12 = vmul.f32 %v9342_v14, %v1907_v5 }
 0x183   : > { %13431 = vst [vmem:[#allocation80_spill] sm:$0xff] %v9873_v53 }
 0x184   : > { %8232 = vmatmul.msk.f32.gmra.mxu0 %vm976_vm1, %v2217_v28  ;;  %1046 = vst.msk [vmem:[#allocation2 + $0x109] sm:$0xff] %vm976_vm1, %v9873_v53  ;;  %v3373_v53 = vld [vmem:[#allocation2 + $0x52] sm:$0xff] }
 0x185   : > { %v2087_v13 = vpop.f32.mrf.mxu3 }
 0x186   : > { %v2167_v27 = vadd.f32 %v2087_v13, %v1857_v9  ;;  %8163 = vmatmul.msk.f32.gmra.mxu2 %vm976_vm1, %v1628_v23  ;;  %v2219_v9 = vld [vmem:[#allocation2 + $0xf1] sm:$0xff] }
 0x187   : > { %8266 = vmatmul.msk.f32.gmra.mxu1 %vm976_vm1, %v9844_v41 }
 0x188   : > { %v9866_v26 = vadd.f32 %v9809_v33, %v2167_v27  ;;  %v397_v33 = vadd.s32 232, %v8974_v8  ;;  %v1506_v27 = vadd.f32 %v9591_v35, %v9589_v57  ;;  %v1908_v57 = vld [vmem:[#allocation2 + $0xe8] sm:$0xff] }
 0x189   : > { %v2374_v22 = vpop.f32.mrf.mxu0  ;;  %v1780_v28 = vpop.f32.mrf.mxu2 }
 0x18a   : > { %8197 = vmatmul.msk.f32.gmra.mxu3 %vm976_vm1, %v1906_v25  ;;  %v1858_v18 = vadd.f32 %v1780_v28, %v1503_v52  ;;  %v607_v13 = vand.u32 15, %v397_v33  ;;  %v9888_v25 = vld [vmem:[#allocation2 + $0xf2] sm:$0xff]  ;;  %v1630_v52 = vmul.f32 %v9863_v17, %v9823_v54 }
 0x18c   : > { %8233 = vmatmul.msk.f32.gmra.mxu0 %vm976_vm1, %v2218_v0  ;;  %vm909_vm4 = vcmp.ne.s32.totalorder %v607_v13, 15  ;;  %v399_v13 = vadd.s32 248, %v8974_v8  ;;  %v9921_v8 = vld [vmem:[#allocation2 + $0x21] sm:$0xff] }
 0x18d   : > { %v2090_v11 = vpop.f32.mrf.mxu3  ;;  %v9900_v5 = vsel %vm909_vm4, 1.0, %v13393_v10 }
 0x18e   : > { %v2168_v48 = vadd.f32 %v2090_v11, %v1858_v18  ;;  %8164 = vmatmul.msk.f32.gmra.mxu2 %vm976_vm1, %v9813_v24  ;;  %v2220_v18 = vld [vmem:[#allocation2 + $0xf9] sm:$0xff]  ;;  %13432 = vst [vmem:[#allocation81_spill] sm:$0xff] %v9900_v5  ;;  %v1509_v11 = vadd.f32 %v9607_v55, %v9601_v39  ;;  %v2221_v55 = vld [vmem:[#allocation2 + $0x101] sm:$0xff] }
 0x18f   : > { %8267 = vmatmul.msk.f32.gmra.mxu1 %vm976_vm1, %v2528_v38 }
 0x190   : > { %v9884_v23 = vadd.f32 %v2368_v59, %v2168_v48  ;;  %v9896_v59 = vld [vmem:[#allocation2 + $0xfa] sm:$0xff] }
 0x191   : > { %v2377_v6 = vpop.f32.mrf.mxu0  ;;  %v1783_v0 = vpop.f32.mrf.mxu2  ;;  %v2530_v54 = vmul.f32 %v9900_v5, %v9896_v59 }
 0x192   : > { %8198 = vmatmul.msk.f32.gmra.mxu3 %vm976_vm1, %v1939_v12  ;;  %v1859_v38 = vadd.f32 %v1783_v0, %v1506_v27 }
 0x194   : > { %8234 = vmatmul.msk.f32.gmra.mxu0 %vm976_vm1, %v2219_v9  ;;  %v1909_v9 = vld [vmem:[#allocation2 + $0xf0] sm:$0xff] }
 0x195   : > { %v2093_v24 = vpop.f32.mrf.mxu3  ;;  %v1941_v0 = vmul.f32 %v9379_v32, %v1909_v9  ;;  %v2222_v9 = vld [vmem:[#allocation2 + $0x109] sm:$0xff] }
 0x196   : > { %v2169_v28 = vadd.f32 %v2093_v24, %v1859_v38  ;;  %8165 = vmatmul.msk.f32.gmra.mxu2 %vm976_vm1, %v1630_v52  ;;  %v621_v52 = vand.u32 15, %v399_v13  ;;  %v3367_v24 = vld [vmem:[#allocation2 + $0x22] sm:$0xff] }
 0x197   : > { %8268 = vmatmul.msk.f32.gmra.mxu1 %vm976_vm1, %v9888_v25 }
 0x198   : > { %v9902_v33 = vadd.f32 %v2371_v15, %v2169_v28  ;;  %v1512_v28 = vadd.f32 %v9626_v60, %v9620_v62  ;;  %vm911_vm5 = vcmp.ne.s32.totalorder %v621_v52, 15  ;;  %v2500_v60 = vld [vmem:[#allocation2 + $0x10a] sm:$0xff] }
 0x199   : > { %v2380_v35 = vpop.f32.mrf.mxu0  ;;  %v1786_v48 = vpop.f32.mrf.mxu2  ;;  %v9932_v13 = vsel %vm911_vm5, 1.0, %v13393_v10  ;;  %v9939_v52 = vld [vmem:[#allocation2 + $0x29] sm:$0xff] }
 0x19a   : > { %8199 = vmatmul.msk.f32.gmra.mxu3 %vm976_vm1, %v1908_v57  ;;  %v1860_v12 = vadd.f32 %v1786_v48, %v1509_v11  ;;  %v2499_v57 = vld [vmem:[#allocation2 + $0x102] sm:$0xff]  ;;  %v1910_v48 = vld [vmem:[#allocation2 + $0xf8] sm:$0xff]  ;;  %13433 = vst [vmem:[#allocation82_spill] sm:$0xff] %v9932_v13 }
 0x19c   : > { %8235 = vmatmul.msk.f32.gmra.mxu0 %vm976_vm1, %v2220_v18  ;;  %v9919_v18 = vld [vmem:[#allocation2 + $0x20] sm:$0xff] }
 0x19d   : > { %v2096_v27 = vpop.f32.mrf.mxu3  ;;  %4997 = vst.msk [vmem:[#allocation2 + $0x20] sm:$0xff] %vm976_vm1, %v13393_v10 }
 0x19e   : > { %v2170_v15 = vadd.f32 %v2096_v27, %v1860_v12  ;;  %8166 = vmatmul.msk.f32.gmra.mxu2 %vm976_vm1, %v9844_v41 }
 0x19f   : > { %8269 = vmatmul.msk.f32.gmra.mxu1 %vm976_vm1, %v2530_v54 }
 0x1a0   : > { %v9915_v39 = vadd.f32 %v2374_v22, %v2170_v15  ;;  %v1632_v22 = vmul.f32 %v9900_v5, %v9859_v43  ;;  %v2532_v15 = vmul.f32 %v9932_v13, %v2500_v60  ;;  %v1515_v43 = vadd.f32 %v9644_v46, %v9632_v49  ;;  %v3369_v60 = vld [vmem:[#allocation2 + $0x32] sm:$0xff] }
 0x1a1   : > { %v2383_v38 = vpop.f32.mrf.mxu0  ;;  %v1789_v54 = vpop.f32.mrf.mxu2 }
 0x1a2   : > { %8200 = vmatmul.msk.f32.gmra.mxu3 %vm976_vm1, %v1941_v0  ;;  %v1861_v41 = vadd.f32 %v1789_v54, %v1512_v28  ;;  %v3368_v0 = vld [vmem:[#allocation2 + $0x2a] sm:$0xff] }
 0x1a4   : > { %8236 = vmatmul.msk.f32.gmra.mxu0 %vm976_vm1, %v2221_v55  ;;  %v2780_v55 = vld [vmem:[#allocation2 + $0x28] sm:$0xff] }
 0x1a5   : > { %v2099_v62 = vpop.f32.mrf.mxu3  ;;  %4998 = vst.msk [vmem:[#allocation2 + $0x28] sm:$0xff] %vm976_vm1, %v13393_v10 }
 0x1a6   : > { %v2171_v11 = vadd.f32 %v2099_v62, %v1861_v41  ;;  %8167 = vmatmul.msk.f32.gmra.mxu2 %vm976_vm1, %v1632_v22  ;;  %v1518_v62 = vadd.f32 %v9667_v42, %v9651_v3  ;;  %v1912_v3 = vld [vmem:[#allocation2 + $0x108] sm:$0xff] }
 0x1a7   : > { %8270 = vmatmul.msk.f32.gmra.mxu1 %vm976_vm1, %v2499_v57 }
 0x1a8   : > { %v9934_v27 = vadd.f32 %v2377_v6, %v2171_v11  ;;  %v1911_v6 = vld [vmem:[#allocation2 + $0x100] sm:$0xff]  ;;  %v2781_v11 = vld [vmem:[#allocation2 + $0x30] sm:$0xff] }
 0x1a9   : > { %v2386_v12 = vpop.f32.mrf.mxu0  ;;  %v1792_v28 = vpop.f32.mrf.mxu2  ;;  %v1943_v49 = vmul.f32 %v9426_v51, %v1911_v6  ;;  %v3370_v6 = vld [vmem:[#allocation2 + $0x3a] sm:$0xff] }
 0x1aa   : > { %8201 = vmatmul.msk.f32.gmra.mxu3 %vm976_vm1, %v1910_v48  ;;  %v1862_v57 = vadd.f32 %v1792_v28, %v1515_v43  ;;  %v3091_v48 = vld [vmem:[#allocation2 + $0x31] sm:$0xff]  ;;  %v3400_v28 = vmul.f32 %v9451_v44, %v3368_v0  ;;  %v13434_v0 = vld [vmem:[#allocation4_spill] sm:$0xff] }
 0x1ab   : > { %4999 = vst.msk [vmem:[#allocation2 + $0x30] sm:$0xff] %vm976_vm1, %v13393_v10 }
 0x1ac   : > { %8237 = vmatmul.msk.f32.gmra.mxu0 %vm976_vm1, %v2222_v9 }
 0x1ad   : > { %v2102_v54 = vpop.f32.mrf.mxu3 }
 0x1ae   : > { %v2172_v41 = vadd.f32 %v2102_v54, %v1862_v57  ;;  %8168 = vmatmul.msk.f32.gmra.mxu2 %vm976_vm1, %v9888_v25  ;;  %v1634_v25 = vmul.f32 %v9932_v13, %v9896_v59  ;;  %v2782_v54 = vld [vmem:[#allocation2 + $0x38] sm:$0xff] }
 0x1af   : > { %8271 = vmatmul.msk.f32.gmra.mxu1 %vm976_vm1, %v2532_v15 }
 0x1b0   : > { %v9949_v22 = vadd.f32 %v2380_v35, %v2172_v41  ;;  %v3092_v41 = vld [vmem:[#allocation2 + $0x39] sm:$0xff] }
 0x1b1   : > { %v2389_v46 = vpop.f32.mrf.mxu0  ;;  %v1795_v9 = vpop.f32.mrf.mxu2  ;;  %5000 = vst.msk [vmem:[#allocation2 + $0x38] sm:$0xff] %vm976_vm1, %v13393_v10 }
 0x1b2   : > { %8202 = vmatmul.msk.f32.gmra.mxu3 %vm976_vm1, %v1943_v49  ;;  %v1863_v15 = vadd.f32 %v1795_v9, %v1518_v62  ;;  %v2811_v62 = vmul.f32 %v13434_v0, %v9919_v18  ;;  %v13436_v18 = vld [vmem:[#allocation48_spill] sm:$0xff] }
 0x1b4   : > { %8342 = vmatmul.msk.f32.vlgmr.msra.gmra.mxu0 %vm976_vm1, %v3367_v24  ;;  %v1521_v24 = vadd.f32 %v9683_v4, %v9665_v31 }
 0x1b5   : > { %v2105_v35 = vpop.f32.mrf.mxu3 }
 0x1b6   : > { %v2173_v43 = vadd.f32 %v2105_v35, %v1863_v15  ;;  %8169 = vmatmul.msk.f32.gmra.mxu2 %vm976_vm1, %v1634_v25  ;;  %v3371_v15 = vld [vmem:[#allocation2 + $0x42] sm:$0xff] }
 0x1b7   : > { %v2783_v25 = vld [vmem:[#allocation2 + $0x40] sm:$0xff] }
 0x1b8   : > { %v9961_v57 = vadd.f32 %v2383_v38, %v2173_v43  ;;  %v3093_v35 = vld [vmem:[#allocation2 + $0x41] sm:$0xff] }
 0x1b9   : > { %v2392_v42 = vpop.f32.mrf.mxu0  ;;  %v1798_v49 = vpop.f32.mrf.mxu2  ;;  %5001 = vst.msk [vmem:[#allocation2 + $0x40] sm:$0xff] %vm976_vm1, %v13393_v10 }
 0x1ba   : > { %8203 = vmatmul.msk.f32.gmra.mxu3 %vm976_vm1, %v1912_v3  ;;  %v1864_v59 = vadd.f32 %v1798_v49, %v1521_v24  ;;  %v13437_v49 = vld [vmem:[#allocation49_spill] sm:$0xff] }
 0x1bc   : > { %8343 = vmatmul.msk.f32.gmra.mxu0 %vm976_vm1, %v3400_v28 }
 0x1bd   : > { %v2108_v38 = vpop.f32.mrf.mxu3 }
 0x1be   : > { %v2174_v9 = vadd.f32 %v2108_v38, %v1864_v59  ;;  %8274 = vmatmul.msk.f32.vlgmr.msra.gmra.mxu2 %vm976_vm1, %v2811_v62  ;;  %v3402_v59 = vmul.f32 %v13437_v49, %v3370_v6  ;;  %v3372_v38 = vld [vmem:[#allocation2 + $0x4a] sm:$0xff]  ;;  %v3374_v49 = vld [vmem:[#allocation2 + $0x5a] sm:$0xff] }
 0x1bf   : > { %v13440_v6 = vld [vmem:[#allocation16_spill] sm:$0xff] }
 0x1c0   : > { %v9972_v31 = vadd.f32 %v2386_v12, %v2174_v9  ;;  %v2784_v9 = vld [vmem:[#allocation2 + $0x48] sm:$0xff] }
 0x1c1   : > { %v2395_v4 = vpop.f32.mrf.mxu0  ;;  %v1801_v43 = vpop.f32.mrf.mxu2 }
 0x1c2   : > { %13435 = vst [vmem:[#allocation4_spill] sm:$0xff] %v9972_v31  ;;  %8308 = vmatmul.msk.f32.vlgmr.msra.gmra.mxu3 %vm976_vm1, %v9921_v8  ;;  %v1865_v28 = vadd.f32 %v1801_v43, %v13436_v18  ;;  %v3094_v8 = vld [vmem:[#allocation2 + $0x49] sm:$0xff]  ;;  %v13439_v43 = vld [vmem:[#allocation50_spill] sm:$0xff] }
 0x1c3   : > { %5002 = vst.msk [vmem:[#allocation2 + $0x48] sm:$0xff] %vm976_vm1, %v13393_v10 }
 0x1c4   : > { %8344 = vmatmul.msk.f32.gmra.mxu0 %vm976_vm1, %v3369_v60 }
 0x1c5   : > { %v2111_v3 = vpop.f32.mrf.mxu3 }
 0x1c6   : > { %v2175_v24 = vadd.f32 %v2111_v3, %v1865_v28  ;;  %8275 = vmatmul.msk.f32.gmra.mxu2 %vm976_vm1, %v2780_v55  ;;  %v2813_v28 = vmul.f32 %v13440_v6, %v2781_v11 }
 0x1c8   : > { %v9982_v62 = vadd.f32 %v2389_v46, %v2175_v24 }
 0x1c9   : > { %v2398_v12 = vpop.f32.mrf.mxu0  ;;  %v1804_v60 = vpop.f32.mrf.mxu2 }
 0x1ca   : > { %13438 = vst [vmem:[#allocation48_spill] sm:$0xff] %v9982_v62  ;;  %8309 = vmatmul.msk.f32.gmra.mxu3 %vm976_vm1, %v9939_v52  ;;  %v1866_v18 = vadd.f32 %v1804_v60, %v13439_v43  ;;  %v3095_v52 = vld [vmem:[#allocation2 + $0x51] sm:$0xff]  ;;  %v13442_v60 = vld [vmem:[#allocation51_spill] sm:$0xff] }
 0x1cb   : > { %5003 = vst.msk [vmem:[#allocation2 + $0x50] sm:$0xff] %vm976_vm1, %v13393_v10 }
 0x1cc   : > { %8345 = vmatmul.msk.f32.gmra.mxu0 %vm976_vm1, %v3402_v59 }
 0x1cd   : > { %v2114_v55 = vpop.f32.mrf.mxu3 }
 0x1ce   : > { %v2176_v3 = vadd.f32 %v2114_v55, %v1866_v18  ;;  %8276 = vmatmul.msk.f32.gmra.mxu2 %vm976_vm1, %v2813_v28  ;;  %v13443_v55 = vld [vmem:[#allocation52_spill] sm:$0xff] }
 0x1cf   : > { %v3404_v28 = vmul.f32 %v13443_v55, %v3372_v38  ;;  %v3375_v55 = vld [vmem:[#allocation2 + $0x62] sm:$0xff] }
 0x1d0   : > { %v9992_v24 = vadd.f32 %v2392_v42, %v2176_v3 }
 0x1d1   : > { %v2401_v46 = vpop.f32.mrf.mxu0  ;;  %v1807_v59 = vpop.f32.mrf.mxu2 }
 0x1d2   : > { %13441 = vst [vmem:[#allocation50_spill] sm:$0xff] %v9992_v24  ;;  %8310 = vmatmul.msk.f32.gmra.mxu3 %vm976_vm1, %v3091_v48  ;;  %v1867_v11 = vadd.f32 %v1807_v59, %v13442_v60  ;;  %v2786_v24 = vld [vmem:[#allocation2 + $0x58] sm:$0xff] }
 0x1d3   : > { %v3096_v48 = vld [vmem:[#allocation2 + $0x59] sm:$0xff]  ;;  %v13445_v59 = vld [vmem:[#allocation53_spill] sm:$0xff] }
 0x1d4   : > { %8346 = vmatmul.msk.f32.gmra.mxu0 %vm976_vm1, %v3371_v15  ;;  %5004 = vst.msk [vmem:[#allocation2 + $0x58] sm:$0xff] %vm976_vm1, %v13393_v10 }
 0x1d5   : > { %v2117_v43 = vpop.f32.mrf.mxu3 }
 0x1d6   : > { %v2177_v18 = vadd.f32 %v2117_v43, %v1867_v11  ;;  %8277 = vmatmul.msk.f32.gmra.mxu2 %vm976_vm1, %v2782_v54  ;;  %v13446_v11 = vld [vmem:[#allocation22_spill] sm:$0xff] }
 0x1d7   : > { %v2815_v38 = vmul.f32 %v13446_v11, %v2783_v25  ;;  %v2788_v11 = vld [vmem:[#allocation2 + $0x68] sm:$0xff] }
 0x1d8   : > { %v10001_v3 = vadd.f32 %v2395_v4, %v2177_v18 }
 0x1d9   : > { %v2404_v42 = vpop.f32.mrf.mxu0  ;;  %v1810_v15 = vpop.f32.mrf.mxu2 }
 0x1da   : > { %13444 = vst [vmem:[#allocation51_spill] sm:$0xff] %v10001_v3  ;;  %8311 = vmatmul.msk.f32.gmra.mxu3 %vm976_vm1, %v3092_v41  ;;  %v1868_v60 = vadd.f32 %v1810_v15, %v13445_v59  ;;  %v2787_v3 = vld [vmem:[#allocation2 + $0x60] sm:$0xff] }
 0x1db   : > { %v3097_v41 = vld [vmem:[#allocation2 + $0x61] sm:$0xff]  ;;  %v13448_v15 = vld [vmem:[#allocation54_spill] sm:$0xff] }
 0x1dc   : > { %8347 = vmatmul.msk.f32.gmra.mxu0 %vm976_vm1, %v3404_v28  ;;  %5005 = vst.msk [vmem:[#allocation2 + $0x60] sm:$0xff] %vm976_vm1, %v13393_v10 }
 0x1dd   : > { %v2120_v43 = vpop.f32.mrf.mxu3 }
 0x1de   : > { %v2178_v54 = vadd.f32 %v2120_v43, %v1868_v60  ;;  %8278 = vmatmul.msk.f32.gmra.mxu2 %vm976_vm1, %v2815_v38  ;;  %v13449_v43 = vld [vmem:[#allocation55_spill] sm:$0xff] }
 0x1df   : > { %v3406_v38 = vmul.f32 %v13449_v43, %v3374_v49  ;;  %v3377_v43 = vld [vmem:[#allocation2 + $0x72] sm:$0xff] }
 0x1e0   : > { %v10010_v18 = vadd.f32 %v2398_v12, %v2178_v54 }
 0x1e1   : > { %v2407_v4 = vpop.f32.mrf.mxu0  ;;  %v1813_v28 = vpop.f32.mrf.mxu2 }
 0x1e2   : > { %13447 = vst [vmem:[#allocation53_spill] sm:$0xff] %v10010_v18  ;;  %8312 = vmatmul.msk.f32.gmra.mxu3 %vm976_vm1, %v3093_v35  ;;  %v1869_v25 = vadd.f32 %v1813_v28, %v13448_v15  ;;  %v3376_v18 = vld [vmem:[#allocation2 + $0x6a] sm:$0xff] }
 0x1e3   : > { %v3098_v35 = vld [vmem:[#allocation2 + $0x69] sm:$0xff] }
 0x1e4   : > { %8348 = vmatmul.msk.f32.gmra.mxu0 %vm976_vm1, %v3373_v53  ;;  %5006 = vst.msk [vmem:[#allocation2 + $0x68] sm:$0xff] %vm976_vm1, %v13393_v10  ;;  %v13451_v28 = vld [vmem:[#allocation56_spill] sm:$0xff] }
 0x1e5   : > { %v2123_v59 = vpop.f32.mrf.mxu3 }
 0x1e6   : > { %v2179_v60 = vadd.f32 %v2123_v59, %v1869_v25  ;;  %8279 = vmatmul.msk.f32.gmra.mxu2 %vm976_vm1, %v2784_v9  ;;  %v13452_v25 = vld [vmem:[#allocation28_spill] sm:$0xff] }
 0x1e7   : > { %v2817_v49 = vmul.f32 %v13452_v25, %v2785_v34  ;;  %v2790_v25 = vld [vmem:[#allocation2 + $0x78] sm:$0xff] }
 0x1e8   : > { %v10019_v54 = vadd.f32 %v2401_v46, %v2179_v60 }
 0x1e9   : > { %v2410_v12 = vpop.f32.mrf.mxu0  ;;  %v1816_v53 = vpop.f32.mrf.mxu2 }
 0x1ea   : > { %13450 = vst [vmem:[#allocation54_spill] sm:$0xff] %v10019_v54  ;;  %8313 = vmatmul.msk.f32.gmra.mxu3 %vm976_vm1, %v3094_v8  ;;  %v1870_v15 = vadd.f32 %v1816_v53, %v13451_v28  ;;  %v2789_v54 = vld [vmem:[#allocation2 + $0x70] sm:$0xff] }
 0x1eb   : > { %v3099_v8 = vld [vmem:[#allocation2 + $0x71] sm:$0xff] }
 0x1ec   : > { %8349 = vmatmul.msk.f32.gmra.mxu0 %vm976_vm1, %v3406_v38  ;;  %5007 = vst.msk [vmem:[#allocation2 + $0x70] sm:$0xff] %vm976_vm1, %v13393_v10  ;;  %v13454_v53 = vld [vmem:[#allocation57_spill] sm:$0xff] }
 0x1ed   : > { %v2126_v59 = vpop.f32.mrf.mxu3 }
 0x1ee   : > { %v2180_v9 = vadd.f32 %v2126_v59, %v1870_v15  ;;  %8280 = vmatmul.msk.f32.gmra.mxu2 %vm976_vm1, %v2817_v49  ;;  %v13455_v59 = vld [vmem:[#allocation58_spill] sm:$0xff] }
 0x1ef   : > { %v3408_v49 = vmul.f32 %v13455_v59, %v3376_v18  ;;  %v3101_v59 = vld [vmem:[#allocation2 + $0x81] sm:$0xff] }
 0x1f0   : > { %v10028_v46 = vadd.f32 %v2404_v42, %v2180_v9  ;;  %v3378_v9 = vld [vmem:[#allocation2 + $0x7a] sm:$0xff] }
 0x1f1   : > { %v2413_v60 = vpop.f32.mrf.mxu0  ;;  %v1819_v38 = vpop.f32.mrf.mxu2 }
 0x1f2   : > { %13453 = vst [vmem:[#allocation56_spill] sm:$0xff] %v10028_v46  ;;  %8314 = vmatmul.msk.f32.gmra.mxu3 %vm976_vm1, %v3095_v52  ;;  %v1871_v34 = vadd.f32 %v1819_v38, %v13454_v53  ;;  %v3100_v46 = vld [vmem:[#allocation2 + $0x79] sm:$0xff]  ;;  %v13457_v38 = vld [vmem:[#allocation59_spill] sm:$0xff] }
 0x1f3   : > { %5008 = vst.msk [vmem:[#allocation2 + $0x78] sm:$0xff] %vm976_vm1, %v13393_v10 }
 0x1f4   : > { %8350 = vmatmul.msk.f32.gmra.mxu0 %vm976_vm1, %v3375_v55 }
 0x1f5   : > { %v2129_v28 = vpop.f32.mrf.mxu3 }
 0x1f6   : > { %v2181_v15 = vadd.f32 %v2129_v28, %v1871_v34  ;;  %8281 = vmatmul.msk.f32.gmra.mxu2 %vm976_vm1, %v2786_v24  ;;  %v13458_v34 = vld [vmem:[#allocation34_spill] sm:$0xff] }
 0x1f7   : > { %v2819_v18 = vmul.f32 %v13458_v34, %v2787_v3 }
 0x1f8   : > { %v10037_v42 = vadd.f32 %v2407_v4, %v2181_v15  ;;  %v2791_v15 = vld [vmem:[#allocation2 + $0x80] sm:$0xff] }
 0x1f9   : > { %v1822_v52 = vpop.f32.mrf.mxu2  ;;  %v2416_v55 = vpop.f32.mrf.mxu0  ;;  %5009 = vst.msk [vmem:[#allocation2 + $0x80] sm:$0xff] %vm976_vm1, %v13393_v10 }
 0x1fa   : > { %13456 = vst [vmem:[#allocation57_spill] sm:$0xff] %v10037_v42  ;;  %8315 = vmatmul.msk.f32.gmra.mxu3 %vm976_vm1, %v3096_v48  ;;  %v1872_v53 = vadd.f32 %v1822_v52, %v13457_v38 }
 0x1fc   : > { %8351 = vmatmul.msk.f32.gmra.mxu0 %vm976_vm1, %v3408_v49  ;;  %v13460_v49 = vld [vmem:[#allocation60_spill] sm:$0xff] }
 0x1fd   : > { %v2132_v28 = vpop.f32.mrf.mxu3 }
 0x1fe   : > { %v2182_v24 = vadd.f32 %v2132_v28, %v1872_v53  ;;  %8282 = vmatmul.msk.f32.gmra.mxu2 %vm976_vm1, %v2819_v18  ;;  %v13461_v53 = vld [vmem:[#allocation61_spill] sm:$0xff]  ;;  %v2792_v18 = vld [vmem:[#allocation2 + $0x88] sm:$0xff] }
 0x1ff   : > { %v3410_v28 = vmul.f32 %v13461_v53, %v3378_v9 }
 0x200   : > { %v10046_v4 = vadd.f32 %v2410_v12, %v2182_v24  ;;  %v3102_v24 = vld [vmem:[#allocation2 + $0x89] sm:$0xff] }
 0x201   : > { %v1825_v48 = vpop.f32.mrf.mxu2  ;;  %v2419_v38 = vpop.f32.mrf.mxu0  ;;  %5010 = vst.msk [vmem:[#allocation2 + $0x88] sm:$0xff] %vm976_vm1, %v13393_v10 }
 0x202   : > { %13459 = vst [vmem:[#allocation59_spill] sm:$0xff] %v10046_v4  ;;  %8316 = vmatmul.msk.f32.gmra.mxu3 %vm976_vm1, %v3097_v41  ;;  %v1873_v52 = vadd.f32 %v1825_v48, %v13460_v49  ;;  %v13464_v49 = vld [vmem:[#allocation39_spill] sm:$0xff] }
 0x204   : > { %8352 = vmatmul.msk.f32.gmra.mxu0 %vm976_vm1, %v3377_v43  ;;  %v13463_v43 = vld [vmem:[#allocation62_spill] sm:$0xff] }
 0x205   : > { %v2135_v3 = vpop.f32.mrf.mxu3 }
 0x206   : > { %v2183_v34 = vadd.f32 %v2135_v3, %v1873_v52  ;;  %8283 = vmatmul.msk.f32.gmra.mxu2 %vm976_vm1, %v2788_v11  ;;  %v2821_v52 = vmul.f32 %v13464_v49, %v2789_v54  ;;  %v13469_v49 = vld [vmem:[#allocation64_spill] sm:$0xff] }
 0x208   : > { %v10055_v12 = vadd.f32 %v2413_v60, %v2183_v34  ;;  %v2793_v60 = vld [vmem:[#allocation2 + $0x90] sm:$0xff] }
 0x209   : > { %v1828_v41 = vpop.f32.mrf.mxu2  ;;  %v2422_v53 = vpop.f32.mrf.mxu0  ;;  %v3103_v34 = vld [vmem:[#allocation2 + $0x91] sm:$0xff] }
 0x20a   : > { %13462 = vst [vmem:[#allocation60_spill] sm:$0xff] %v10055_v12  ;;  %8317 = vmatmul.msk.f32.gmra.mxu3 %vm976_vm1, %v3098_v35  ;;  %v1874_v48 = vadd.f32 %v1828_v41, %v13463_v43  ;;  %v13467_v41 = vld [vmem:[#allocation63_spill] sm:$0xff] }
 0x20b   : > { %5011 = vst.msk [vmem:[#allocation2 + $0x90] sm:$0xff] %vm976_vm1, %v13393_v10 }
 0x20c   : > { %8353 = vmatmul.msk.f32.gmra.mxu0 %vm976_vm1, %v3410_v28  ;;  %v13466_v28 = vld [vmem:[#allocation66_spill] sm:$0xff] }
 0x20d   : > { %v2138_v3 = vpop.f32.mrf.mxu3 }
 0x20e   : > { %v2184_v9 = vadd.f32 %v2138_v3, %v1874_v48  ;;  %8284 = vmatmul.msk.f32.gmra.mxu2 %vm976_vm1, %v2821_v52  ;;  %v13468_v3 = vld [vmem:[#allocation67_spill] sm:$0xff] }
 0x20f   : > { %v3412_v52 = vmul.f32 %v13469_v49, %v13468_v3 }
 0x210   : > { %v10064_v11 = vadd.f32 %v2416_v55, %v2184_v9 }
 0x211   : > { %v1831_v35 = vpop.f32.mrf.mxu2  ;;  %v2425_v55 = vpop.f32.mrf.mxu0 }
 0x212   : > { %13465 = vst [vmem:[#allocation62_spill] sm:$0xff] %v10064_v11  ;;  %8318 = vmatmul.msk.f32.gmra.mxu3 %vm976_vm1, %v3099_v8  ;;  %v1875_v54 = vadd.f32 %v1831_v35, %v13467_v41  ;;  %v2794_v8 = vld [vmem:[#allocation2 + $0x98] sm:$0xff] }
 0x213   : > { %v3104_v11 = vld [vmem:[#allocation2 + $0x99] sm:$0xff]  ;;  %v13471_v35 = vld [vmem:[#allocation65_spill] sm:$0xff] }
 0x214   : > { %8354 = vmatmul.msk.f32.gmra.mxu0 %vm976_vm1, %v13466_v28  ;;  %5012 = vst.msk [vmem:[#allocation2 + $0x98] sm:$0xff] %vm976_vm1, %v13393_v10 }
 0x215   : > { %v2141_v43 = vpop.f32.mrf.mxu3 }
 0x216   : > { %v2185_v48 = vadd.f32 %v2141_v43, %v1875_v54  ;;  %8285 = vmatmul.msk.f32.gmra.mxu2 %vm976_vm1, %v2790_v25  ;;  %v13472_v54 = vld [vmem:[#allocation43_spill] sm:$0xff] }
 0x217   : > { %v2823_v43 = vmul.f32 %v13472_v54, %v2791_v15  ;;  %v13478_v54 = vld [vmem:[#allocation45_spill] sm:$0xff] }
 0x218   : > { %v10075_v9 = vadd.f32 %v2419_v38, %v2185_v48  ;;  %v2795_v38 = vld [vmem:[#allocation2 + $0xa0] sm:$0xff] }
 0x219   : > { %v1834_v28 = vpop.f32.mrf.mxu2  ;;  %v3105_v48 = vld [vmem:[#allocation2 + $0xa1] sm:$0xff] }
 0x21a   : > { %13470 = vst [vmem:[#allocation66_spill] sm:$0xff] %v10075_v9  ;;  %8319 = vmatmul.msk.f32.gmra.mxu3 %vm976_vm1, %v3100_v46  ;;  %v1876_v41 = vadd.f32 %v1834_v28, %v13471_v35  ;;  %v2428_v9 = vpop.f32.mrf.mxu0 }
 0x21b   : > { %5013 = vst.msk [vmem:[#allocation2 + $0xa0] sm:$0xff] %vm976_vm1, %v13393_v10 }
 0x21c   : > { %8355 = vmatmul.msk.f32.gmra.mxu0 %vm976_vm1, %v3412_v52  ;;  %v13474_v52 = vld [vmem:[#allocation68_spill] sm:$0xff] }
 0x21d   : > { %v2144_v3 = vpop.f32.mrf.mxu3 }
 0x21e   : > { %v2186_v49 = vadd.f32 %v2144_v3, %v1876_v41  ;;  %8286 = vmatmul.msk.f32.gmra.mxu2 %vm976_vm1, %v2823_v43  ;;  %v13475_v41 = vld [vmem:[#allocation69_spill] sm:$0xff]  ;;  %v3106_v43 = vld [vmem:[#allocation2 + $0xa9] sm:$0xff]  ;;  %v13477_v3 = vld [vmem:[#allocation70_spill] sm:$0xff] }
 0x220   : > { %v10084_v25 = vadd.f32 %v2422_v53, %v2186_v49  ;;  %v3414_v53 = vmul.f32 %v13475_v41, %v9692_v63  ;;  %v2798_v41 = vld [vmem:[#allocation2 + $0xb8] sm:$0xff] }
 0x221   : > { %v1837_v46 = vpop.f32.mrf.mxu2 }
 0x222   : > { %13473 = vst [vmem:[#allocation63_spill] sm:$0xff] %v10084_v25  ;;  %8320 = vmatmul.msk.f32.gmra.mxu3 %vm976_vm1, %v3101_v59  ;;  %v1877_v15 = vadd.f32 %v1837_v46, %v13474_v52  ;;  %v2825_v46 = vmul.f32 %v13478_v54, %v2793_v60  ;;  %v2431_v52 = vpop.f32.mrf.mxu0  ;;  %v2797_v60 = vld [vmem:[#allocation2 + $0xb0] sm:$0xff]  ;;  %v3108_v54 = vld [vmem:[#allocation2 + $0xb9] sm:$0xff] }
 0x224   : > { %8356 = vmatmul.msk.f32.gmra.mxu0 %vm976_vm1, %v9685_v36  ;;  %v2796_v36 = vld [vmem:[#allocation2 + $0xa8] sm:$0xff] }
 0x225   : > { %v2147_v28 = vpop.f32.mrf.mxu3  ;;  %5014 = vst.msk [vmem:[#allocation2 + $0xa8] sm:$0xff] %vm976_vm1, %v13393_v10 }
 0x226   : > { %v2187_v35 = vadd.f32 %v2147_v28, %v1877_v15  ;;  %8287 = vmatmul.msk.f32.gmra.mxu2 %vm976_vm1, %v2792_v18 }
 0x228   : > { %v10095_v49 = vadd.f32 %v2425_v55, %v2187_v35  ;;  %v13480_v55 = vld [vmem:[#allocation71_spill] sm:$0xff]  ;;  %v3385_v35 = vld [vmem:[#allocation2 + $0xb2] sm:$0xff] }
 0x229   : > { %v1840_v59 = vpop.f32.mrf.mxu2 }
 0x22a   : > { %13476 = vst [vmem:[#allocation67_spill] sm:$0xff] %v10095_v49  ;;  %8321 = vmatmul.msk.f32.gmra.mxu3 %vm976_vm1, %v3102_v24  ;;  %v1878_v25 = vadd.f32 %v1840_v59, %v13477_v3 }
 0x22c   : > { %8357 = vmatmul.msk.f32.gmra.mxu0 %vm976_vm1, %v3414_v53  ;;  %v3107_v53 = vld [vmem:[#allocation2 + $0xb1] sm:$0xff] }
 0x22d   : > { %v2150_v63 = vpop.f32.mrf.mxu3  ;;  %5015 = vst.msk [vmem:[#allocation2 + $0xb0] sm:$0xff] %vm976_vm1, %v13393_v10 }
 0x22e   : > { %v2188_v15 = vadd.f32 %v2150_v63, %v1878_v25  ;;  %8288 = vmatmul.msk.f32.gmra.mxu2 %vm976_vm1, %v2825_v46  ;;  %v2434_v25 = vpop.f32.mrf.mxu0  ;;  %v13483_v63 = vld [vmem:[#allocation73_spill] sm:$0xff] }
 0x230   : > { %v10104_v18 = vadd.f32 %v2428_v9, %v2188_v15  ;;  %v13481_v9 = vld [vmem:[#allocation72_spill] sm:$0xff] }
 0x231   : > { %v1843_v24 = vpop.f32.mrf.mxu2  ;;  %v3416_v46 = vmul.f32 %v13481_v9, %v9721_v29 }
 0x232   : > { %13479 = vst [vmem:[#allocation65_spill] sm:$0xff] %v10104_v18  ;;  %8322 = vmatmul.msk.f32.gmra.mxu3 %vm976_vm1, %v3103_v34  ;;  %v1879_v28 = vadd.f32 %v1843_v24, %v13480_v55  ;;  %v13484_v24 = vld [vmem:[#allocation14_spill] sm:$0xff] }
 0x233   : > { %v2827_v55 = vmul.f32 %v13484_v24, %v2795_v38  ;;  %v3386_v18 = vld [vmem:[#allocation2 + $0xba] sm:$0xff] }
 0x234   : > { %8358 = vmatmul.msk.f32.gmra.mxu0 %vm976_vm1, %v9713_v47  ;;  %5016 = vst.msk [vmem:[#allocation2 + $0xb8] sm:$0xff] %vm976_vm1, %v13393_v10 }
 0x235   : > { %v2153_v59 = vpop.f32.mrf.mxu3 }
 0x236   : > { %v2189_v3 = vadd.f32 %v2153_v59, %v1879_v28  ;;  %8289 = vmatmul.msk.f32.gmra.mxu2 %vm976_vm1, %v2794_v8  ;;  %v3549_v8 = vpop.f32.mrf.mxu0  ;;  %v3387_v59 = vld [vmem:[#allocation2 + $0xc2] sm:$0xff] }
 0x238   : > { %v10115_v34 = vadd.f32 %v2431_v52, %v2189_v3  ;;  %v2799_v3 = vld [vmem:[#allocation2 + $0xc0] sm:$0xff] }
 0x239   : > { %v1846_v47 = vpop.f32.mrf.mxu2 }
 0x23a   : > { %13482 = vst [vmem:[#allocation68_spill] sm:$0xff] %v10115_v34  ;;  %8323 = vmatmul.msk.f32.gmra.mxu3 %vm976_vm1, %v3104_v11  ;;  %v1880_v15 = vadd.f32 %v1846_v47, %v13483_v63  ;;  %v10133_v63 = vpop.f32.mrf.mxu1 }
 0x23c   : > { %8359 = vmatmul.msk.f32.gmra.mxu0 %vm976_vm1, %v3416_v46  ;;  %v10129_v46 = vld [vmem:[#allocation2 + $0xc1] sm:$0xff] }
 0x23d   : > { %v2156_v29 = vpop.f32.mrf.mxu3  ;;  %5017 = vst.msk [vmem:[#allocation2 + $0xc0] sm:$0xff] %vm976_vm1, %v13393_v10 }
 0x23e   : > { %v2190_v28 = vadd.f32 %v2156_v29, %v1880_v15  ;;  %8290 = vmatmul.msk.f32.gmra.mxu2 %vm976_vm1, %v2827_v55 }
 0x240   : > { %v10124_v52 = vadd.f32 %v2434_v25, %v2190_v28  ;;  %v3552_v25 = vpop.f32.mrf.mxu0 }
 0x241   : > { %v2961_v11 = vpop.f32.mrf.mxu2 }
 0x242   : > { %13485 = vst [vmem:[#allocation70_spill] sm:$0xff] %v10124_v52  ;;  %8324 = vmatmul.msk.f32.gmra.mxu3 %vm976_vm1, %v3105_v48  ;;  %v3057_v38 = vadd.f32 %v2961_v11, %v9731_v2  ;;  %v10138_v48 = vld [vmem:[%s13224_s2] ss:$0 sm:$0xff]  ;;  %v2829_v11 = vmul.f32 %v9147_v50, %v2797_v60  ;;  %v13486_v50 = vld [vmem:[#allocation76_spill] sm:$0xff] }
 0x244   : > { %8360 = vmatmul.msk.f32.gmra.mxu0 %vm976_vm1, %v3385_v35  ;;  %v3418_v35 = vmul.f32 %v9725_v20, %v3386_v18 }
 0x245   : > { %v3239_v47 = vpop.f32.mrf.mxu3 }
 0x246   : > { %v3335_v15 = vadd.f32 %v3239_v47, %v3057_v38  ;;  %8291 = vmatmul.msk.f32.gmra.mxu2 %vm976_vm1, %v2796_v36  ;;  %v3388_v47 = vld [vmem:[#allocation2 + $0xca] sm:$0xff] }
 0x248   : > { %v3645_v2 = vadd.f32 %v3549_v8, %v3335_v15  ;;  %v10154_v15 = vld [vmem:[#allocation2 + $0xc8] sm:$0xff] }
 0x249   : > { %v2964_v29 = vpop.f32.mrf.mxu2 }
 0x24a   : > { %v10143_v55 = vadd.f32 %v10138_v48, %v3645_v2  ;;  %8325 = vmatmul.msk.f32.gmra.mxu3 %vm976_vm1, %v3106_v43  ;;  %v3058_v28 = vadd.f32 %v2964_v29, %v9746_v16  ;;  %v10156_v43 = vld [vmem:[#allocation2 + $0xc9] sm:$0xff]  ;;  %v2678_v2 = vpop.f32.mrf.mxu1 }
 0x24b   : > { %5018 = vst.msk [vmem:[#allocation2 + $0xc8] sm:$0xff] %vm976_vm1, %v13393_v10 }
 0x24c   : > { %8361 = vmatmul.msk.f32.gmra.mxu0 %vm976_vm1, %v3418_v35  ;;  %v10150_v38 = vmul.f32 0.70710677, %v10143_v55 }
 0x24d   : > { %v3242_v18 = vpop.f32.mrf.mxu3 }
 0x24e   : > { %v3841_v36 = vand.u32 2147483647, %v10150_v38  ;;  %v3336_v8 = vadd.f32 %v3242_v18, %v3058_v28  ;;  %8292 = vmatmul.msk.f32.gmra.mxu2 %vm976_vm1, %v2829_v11  ;;  %v3555_v11 = vpop.f32.mrf.mxu0  ;;  %vm3777_vm6 = vcmp.ge.f32.partialorder %v10150_v38, 0.0  ;;  %v3390_v38 = vld [vmem:[#allocation2 + $0xda] sm:$0xff] }
 0x250   : > { %v3873_v35 = vmul.f32 0.3275911, %v3841_v36  ;;  %v3646_v52 = vadd.f32 %v3552_v25, %v3336_v8 }
 0x251   : > { %v2967_v29 = vpop.f32.mrf.mxu2 }
 0x252   : > { %v10160_v16 = vadd.f32 1.0, %v3873_v35  ;;  %v10163_v60 = vadd.f32 %v10138_v48, %v3646_v52  ;;  %8326 = vmatmul.msk.f32.gmra.mxu3 %vm976_vm1, %v3107_v53  ;;  %v3059_v28 = vadd.f32 %v2967_v29, %v9764_v1  ;;  %v3420_v35 = vmul.f32 %v9758_v19, %v3388_v47  ;;  %v2681_v1 = vpop.f32.mrf.mxu1 }
 0x253   : > { %v4705_v19 = vsub.f32 0.0, %v3841_v36  ;;  %v10214_v42 = vadd.f32 %v2681_v1, %v9902_v33 }
 0x254   : > { %8362 = vmatmul.msk.f32.gmra.mxu0 %vm976_vm1, %v3387_v59  ;;  %8699 = vrcp.f32 %v10160_v16  ;;  %v10170_v25 = vmul.f32 0.70710677, %v10163_v60  ;;  %v3946_v49 = vand.u32 2147483647, %v10160_v16  ;;  %vm3942_vm8 = vweird.f32 %v10160_v16 }
 0x255   : > { %v3245_v18 = vpop.f32.mrf.mxu3  ;;  %v4737_v12 = vmul.f32 %v4705_v19, %v3841_v36 }
 0x256   : > { %v3337_v8 = vadd.f32 %v3245_v18, %v3059_v28  ;;  %v10174_v52 = vand.u32 2147483647, %v10170_v25  ;;  %8293 = vmatmul.msk.f32.gmra.mxu2 %vm976_vm1, %v2798_v41  ;;  %v2831_v18 = vmul.f32 %v9197_v7, %v2799_v3  ;;  %v3389_v41 = vld [vmem:[#allocation2 + $0xd2] sm:$0xff]  ;;  %v3948_v3 = vand.u32 2147483648, %v10160_v16  ;;  %v3558_v7 = vpop.f32.mrf.mxu0 }
 0x257   : > { %vm3947_vm10 = vcmp.eq.f32.partialorder %v3946_v49, 8.507059e+37  ;;  %vm3778_vm11 = vcmp.ge.f32.partialorder %v10170_v25, 0.0  ;;  %v10258_v25 = vld [vmem:[#allocation2 + $0xd8] sm:$0xff] }
 0x258   : > { %v3647_v53 = vadd.f32 %v3555_v11, %v3337_v8  ;;  %v3874_v59 = vmul.f32 0.3275911, %v10174_v52  ;;  %v10187_v11 = vld [vmem:[#allocation2 + $0xd0] sm:$0xff]  ;;  %v3949_v19 = vor.u32 1.1754944e-38, %v3948_v3 }
 0x259   : > { %v2970_v20 = vpop.f32.mrf.mxu2  ;;  %v10189_v8 = vld [vmem:[#allocation2 + $0xd1] sm:$0xff] }
 0x25a   : > { %v8700_v34 = vpop.eup %8699  ;;  %v10179_v29 = vadd.f32 %v10138_v48, %v3647_v53  ;;  %8327 = vmatmul.msk.f32.gmra.mxu3 %vm976_vm1, %v3108_v54  ;;  %v10184_v28 = vadd.f32 1.0, %v3874_v59  ;;  %v3060_v54 = vadd.f32 %v2970_v20, %v13486_v50  ;;  %5019 = vst.msk [vmem:[#allocation2 + $0xd0] sm:$0xff] %vm976_vm1, %v13393_v10  ;;  %v10207_v20 = vadd.f32 %v10133_v63, %v9866_v26  ;;  %v2684_v36 = vpop.f32.mrf.mxu1 }
 0x25b   : > { %v3938_v47 = vmul.f32 %v8700_v34, %v10160_v16  ;;  %vm3943_vm7 = vweird.f32 %v8700_v34 }
 0x25c   : > { %8363 = vmatmul.msk.f32.gmra.mxu0 %vm976_vm1, %v3420_v35  ;;  %v10192_v53 = vmul.f32 0.70710677, %v10179_v29  ;;  %8701 = vrcp.f32 %v10184_v28  ;;  %vm3944_vm9 = vmor %vm3942_vm8, %vm3943_vm7  ;;  %v3961_v1 = vand.u32 2147483647, %v10184_v28  ;;  %vm3957_vm13 = vweird.f32 %v10184_v28 }
 0x25d   : > { %v3939_v35 = vsub.f32 1.0, %v3938_v47  ;;  %v3248_v59 = vpop.f32.mrf.mxu3  ;;  %v10210_v47 = vadd.f32 %v2678_v2, %v9884_v23 }
 0x25e   : > { %v10201_v9 = vand.u32 2147483647, %v10192_v53  ;;  %v3338_v50 = vadd.f32 %v3248_v59, %v3060_v54  ;;  %8294 = vmatmul.msk.f32.gmra.mxu2 %vm976_vm1, %v2831_v18  ;;  %v10218_v54 = vmul.f32 0.5, %v10143_v55  ;;  %v13312_v18 = vmov -1.0  }
 0x25f   : > { %v3940_v24 = vmul.f32 %v8700_v34, %v3939_v35  ;;  %v10223_v26 = vsel %vm3777_vm6, 1.0, %v13312_v18  ;;  %v10253_v59 = vadd.f32 %v2684_v36, %v9915_v39  ;;  %vm3962_vm15 = vcmp.eq.f32.partialorder %v3961_v1, 8.507059e+37 }
 0x260   : > { %v3875_v4 = vmul.f32 0.3275911, %v10201_v9  ;;  %v3648_v44 = vadd.f32 %v3558_v7, %v3338_v50  ;;  %vm3779_vm2 = vcmp.ge.f32.partialorder %v10192_v53, 0.0 }
 0x261   : > { %v3941_v35 = vadd.f32 %v8700_v34, %v3940_v24  ;;  %v2973_v33 = vpop.f32.mrf.mxu2 }
 0x262   : > { %v10226_v23 = vadd.f32 1.0, %v3875_v4  ;;  %8328 = vmatmul.msk.f32.gmra.mxu3 %vm976_vm1, %v10129_v46  ;;  %v8702_v7 = vpop.eup %8701  ;;  %v10232_v63 = vadd.f32 %v10138_v48, %v3648_v44  ;;  %v3061_v55 = vadd.f32 %v2973_v33, %v9800_v58  ;;  %v10237_v4 = vmul.f32 1.442695, %v4737_v12 }
 0x263   : > { %v3945_v24 = vsel %vm3944_vm9, %v8700_v34, %v3941_v35  ;;  %v3953_v16 = vmul.f32 %v8702_v7, %v10184_v28  ;;  %v10243_v34 = vmul.f32 0.5, %v10163_v60  ;;  %v4706_v44 = vsub.f32 0.0, %v10174_v52  ;;  %v5127_v35 = vld [vmem:[#allocation2 + $0x1] sm:$0xff] }
 0x264   : > { %8364 = vmatmul.msk.f32.gmra.mxu0 %vm976_vm1, %v3389_v41  ;;  %v10235_v2 = vsel %vm3947_vm10, %v3949_v19, %v3945_v24  ;;  %8703 = vrcp.f32 %v10226_v23  ;;  %v10249_v12 = vmul.f32 0.70710677, %v10232_v63  ;;  %v3422_v41 = vmul.f32 %v9793_v37, %v3390_v38  ;;  %v10260_v19 = vld [vmem:[#allocation2 + $0xd9] sm:$0xff]  ;;  %v3561_v38 = vpop.f32.mrf.mxu0  ;;  %8376 = vmatmul.msk.f32.vlgmr.msra.gmra.mxu1 %vm976_vm1, %v5127_v35 }
 0x265   : > { %v4417_v46 = vmul.f32 1.0614054, %v10235_v2  ;;  %v3251_v58 = vpop.f32.mrf.mxu3  ;;  %v3954_v49 = vsub.f32 1.0, %v3953_v16  ;;  %v3963_v60 = vand.u32 2147483648, %v10184_v28  ;;  %v10263_v33 = vsel %vm3778_vm11, 1.0, %v13312_v18  ;;  %5020 = vst.msk [vmem:[#allocation2 + $0xd8] sm:$0xff] %vm976_vm1, %v13393_v10 }
 0x266   : > { %v3339_v50 = vadd.f32 %v3251_v58, %v3061_v55  ;;  %8295 = vmatmul.msk.f32.gmra.mxu2 %vm976_vm1, %v10154_v15  ;;  %vm3958_vm12 = vweird.f32 %v8702_v7  ;;  %v10266_v39 = vand.u32 2147483647, %v10249_v12  ;;  %v4738_v55 = vmul.f32 %v4706_v44, %v10174_v52 }
 0x267   : > { %v4449_v3 = vadd.f32 -1.4531521, %v4417_v46  ;;  %v3955_v24 = vmul.f32 %v8702_v7, %v3954_v49  ;;  %v2833_v16 = vmul.f32 %v9247_v45, %v10187_v11  ;;  %v10277_v49 = vmul.f32 0.5, %v10179_v29  ;;  %vm3959_vm14 = vmor %vm3957_vm13, %vm3958_vm12 }
 0x268   : > { %v3649_v36 = vadd.f32 %v3561_v38, %v3339_v50  ;;  %v3876_v35 = vmul.f32 0.3275911, %v10266_v39  ;;  %v3964_v11 = vor.u32 1.1754944e-38, %v3963_v60  ;;  %v3978_v60 = vand.u32 2147483648, %v10226_v23 }
 0x269   : > { %v4481_v15 = vmul.f32 %v4449_v3, %v10235_v2  ;;  %v3956_v58 = vadd.f32 %v8702_v7, %v3955_v24  ;;  %v2976_v18 = vpop.f32.mrf.mxu2  ;;  %vm3972_vm4 = vweird.f32 %v10226_v23  ;;  %vm3780_vm11 = vcmp.ge.f32.partialorder %v10249_v12, 0.0 }
 0x26a   : > { %v8704_v46 = vpop.eup %8703  ;;  %8329 = vmatmul.msk.f32.gmra.mxu3 %vm976_vm1, %v10156_v43  ;;  %v10285_v28 = vadd.f32 1.0, %v3876_v35  ;;  %v10288_v29 = vadd.f32 %v10138_v48, %v3649_v36  ;;  %v3062_v50 = vadd.f32 %v2976_v18, %v9815_v30  ;;  %v3976_v30 = vand.u32 2147483647, %v10226_v23  ;;  %v3391_v18 = vld [vmem:[#allocation2 + $0xe2] sm:$0xff] }
 0x26b   : > { %v4513_v52 = vadd.f32 1.4214138, %v4481_v15  ;;  %v3968_v44 = vmul.f32 %v8704_v46, %v10226_v23  ;;  %v3960_v3 = vsel %vm3959_vm14, %v8702_v7, %v3956_v58  ;;  %v4707_v7 = vsub.f32 0.0, %v10201_v9  ;;  %v5128_v58 = vld [vmem:[#allocation2 + $0x9] sm:$0xff] }
 0x26c   : > { %8365 = vmatmul.msk.f32.gmra.mxu0 %vm976_vm1, %v3422_v41  ;;  %v10292_v24 = vsel %vm3962_vm15, %v3964_v11, %v3960_v3  ;;  %8705 = vrcp.f32 %v10285_v28  ;;  %vm3973_vm3 = vweird.f32 %v8704_v46  ;;  %8377 = vmatmul.msk.f32.gmra.mxu1 %vm976_vm1, %v5128_v58  ;;  %v10308_v3 = vld [vmem:[#allocation2 + $0xe1] sm:$0xff]  ;;  %v13487_v23 = vmov -1.0  }
 0x26d   : > { %v4545_v43 = vmul.f32 %v4513_v52, %v10235_v2  ;;  %v3969_v41 = vsub.f32 1.0, %v3968_v44  ;;  %v3254_v38 = vpop.f32.mrf.mxu3  ;;  %v4418_v1 = vmul.f32 1.0614054, %v10292_v24  ;;  %8707 = vpow2.f32 %v10237_v4  ;;  %v10305_v44 = vld [vmem:[#allocation2 + $0xe0] sm:$0xff]  ;;  %vm3974_vm5 = vmor %vm3972_vm4, %vm3973_vm3 }
 0x26e   : > { %8296 = vmatmul.msk.f32.gmra.mxu2 %vm976_vm1, %v2833_v16  ;;  %v10303_v52 = vmul.f32 0.70710677, %v10288_v29  ;;  %v3340_v11 = vadd.f32 %v3254_v38, %v3062_v50  ;;  %5021 = vst.msk [vmem:[#allocation2 + $0xe0] sm:$0xff] %vm976_vm1, %v13393_v10  ;;  %v3979_v16 = vor.u32 1.1754944e-38, %v3978_v60  ;;  %v4739_v50 = vmul.f32 %v4707_v7, %v10201_v9 }
 0x26f   : > { %v4577_v15 = vadd.f32 -0.28449672, %v4545_v43  ;;  %v3970_v36 = vmul.f32 %v8704_v46, %v3969_v41  ;;  %v4450_v35 = vadd.f32 -1.4531521, %v4418_v1  ;;  %v4771_v41 = vmul.f32 1.442695, %v4738_v55 }
 0x270   : > { %v10318_v38 = vand.u32 2147483647, %v10303_v52  ;;  %v10326_v1 = vsel %vm3779_vm2, 1.0, %v13487_v23  ;;  %vm3977_vm6 = vcmp.eq.f32.partialorder %v3976_v30, 8.507059e+37  ;;  %v3991_v30 = vand.u32 2147483647, %v10285_v28 }
 0x271   : > { %v4609_v43 = vmul.f32 %v4577_v15, %v10235_v2  ;;  %v3971_v37 = vadd.f32 %v8704_v46, %v3970_v36  ;;  %v4482_v4 = vmul.f32 %v4450_v35, %v10292_v24  ;;  %v3564_v36 = vpop.f32.mrf.mxu0  ;;  %8709 = vpow2.f32 %v4771_v41  ;;  %v2979_v53 = vpop.f32.mrf.mxu2 }
 0x272   : > { %8330 = vmatmul.msk.f32.gmra.mxu3 %vm976_vm1, %v10189_v8  ;;  %v8706_v60 = vpop.eup %8705  ;;  %v3877_v7 = vmul.f32 0.3275911, %v10318_v38  ;;  %v3650_v35 = vadd.f32 %v3564_v36, %v3340_v11  ;;  %v3993_v11 = vand.u32 2147483648, %v10285_v28  ;;  %vm3987_vm8 = vweird.f32 %v10285_v28 }
 0x273   : > { %v4641_v55 = vadd.f32 0.2548296, %v4609_v43  ;;  %v3975_v15 = vsel %vm3974_vm5, %v8704_v46, %v3971_v37  ;;  %v4514_v58 = vadd.f32 1.4214138, %v4482_v4  ;;  %v3983_v43 = vmul.f32 %v8706_v60, %v10285_v28  ;;  %v8708_v45 = vpop.eup %8707 }
 0x274   : > { %8366 = vmatmul.msk.f32.gmra.mxu0 %vm976_vm1, %v3391_v18  ;;  %v10328_v9 = vsel %vm3977_vm6, %v3979_v16, %v3975_v15  ;;  %v4773_v46 = vmul.f32 1.442695, %v4739_v50  ;;  %v10336_v4 = vadd.f32 1.0, %v3877_v7  ;;  %v10343_v41 = vadd.f32 %v10138_v48, %v3650_v35  ;;  %v10354_v35 = vld [vmem:[#allocation2 + $0xea] sm:$0xff] }
 0x275   : > { %v4673_v8 = vmul.f32 %v4641_v55, %v10235_v2  ;;  %v4419_v18 = vmul.f32 1.0614054, %v10328_v9  ;;  %v4546_v37 = vmul.f32 %v4514_v58, %v10292_v24  ;;  %v3984_v6 = vsub.f32 1.0, %v3983_v43 }
 0x276   : > { %8297 = vmatmul.msk.f32.gmra.mxu2 %vm976_vm1, %v10258_v25  ;;  %8711 = vrcp.f32 %v10336_v4  ;;  %v3063_v50 = vadd.f32 %v2979_v53, %v9833_v56  ;;  %vm3988_vm7 = vweird.f32 %v8706_v60  ;;  %v4708_v25 = vsub.f32 0.0, %v10266_v39  ;;  %v10356_v56 = vld [vmem:[#allocation2 + $0xe8] sm:$0xff] }
 0x277   : > { %v4833_v16 = vmul.f32 %v8708_v45, %v4673_v8  ;;  %v4451_v15 = vadd.f32 -1.4531521, %v4419_v18  ;;  %v4578_v2 = vadd.f32 -0.28449672, %v4546_v37  ;;  %v3985_v58 = vmul.f32 %v8706_v60, %v3984_v6  ;;  %v3257_v45 = vpop.f32.mrf.mxu3  ;;  %v10358_v18 = vld [vmem:[#allocation2 + $0xe9] sm:$0xff]  ;;  %v8710_v6 = vpop.eup %8709  ;;  %vm3989_vm9 = vmor %vm3987_vm8, %vm3988_vm7 }
 0x278   : > { %8713 = vpow2.f32 %v4773_v46  ;;  %v10349_v8 = vmul.f32 0.5, %v10232_v63  ;;  %5022 = vst.msk [vmem:[#allocation2 + $0xe8] sm:$0xff] %vm976_vm1, %v13393_v10  ;;  %v10366_v46 = vmul.f32 0.70710677, %v10343_v41  ;;  %vm3992_vm10 = vcmp.eq.f32.partialorder %v3991_v30, 8.507059e+37 }
 0x279   : > { %v4865_v55 = vsub.f32 1.0, %v4833_v16  ;;  %v4483_v36 = vmul.f32 %v4451_v15, %v10328_v9  ;;  %v4610_v7 = vmul.f32 %v4578_v2, %v10292_v24  ;;  %v3986_v37 = vadd.f32 %v8706_v60, %v3985_v58 }
 0x27a   : > { %8331 = vmatmul.msk.f32.gmra.mxu3 %vm976_vm1, %v10260_v19  ;;  %v3994_v19 = vor.u32 1.1754944e-38, %v3993_v11  ;;  %v3341_v16 = vadd.f32 %v3257_v45, %v3063_v50  ;;  %vm4002_vm13 = vweird.f32 %v10336_v4  ;;  %v4709_v12 = vsub.f32 0.0, %v10318_v38 }
 0x27b   : > { %v4897_v43 = vmul.f32 %v4865_v55, %v10223_v26  ;;  %v4515_v53 = vadd.f32 1.4214138, %v4483_v36  ;;  %v4642_v63 = vadd.f32 0.2548296, %v4610_v7  ;;  %v3990_v62 = vsel %vm3989_vm9, %v8706_v60, %v3986_v37  ;;  %v3567_v7 = vpop.f32.mrf.mxu0  ;;  %v2982_v60 = vpop.f32.mrf.mxu2 }
 0x27c   : > { %v8712_v26 = vpop.eup %8711  ;;  %v10371_v28 = vsel %vm3992_vm10, %v3994_v19, %v3990_v62  ;;  %v10374_v36 = vand.u32 2147483647, %v10366_v46  ;;  %v3651_v62 = vadd.f32 %v3567_v7, %v3341_v16  ;;  %v4006_v19 = vand.u32 2147483647, %v10336_v4 }
 0x27d   : > { %v4929_v15 = vadd.f32 1.0, %v4897_v43  ;;  %v4547_v2 = vmul.f32 %v4515_v53, %v10328_v9  ;;  %v4674_v55 = vmul.f32 %v4642_v63, %v10292_v24  ;;  %v4420_v50 = vmul.f32 1.0614054, %v10371_v28 }
 0x27e   : > { %v3998_v45 = vmul.f32 %v8712_v26, %v10336_v4  ;;  %v8714_v30 = vpop.eup %8713  ;;  %v4740_v24 = vmul.f32 %v4708_v25, %v10266_v39  ;;  %v3878_v53 = vmul.f32 0.3275911, %v10374_v36  ;;  %vm4003_vm12 = vweird.f32 %v8712_v26 }
 0x27f   : > { %v4961_v11 = vmul.f32 %v4929_v15, %v10218_v54  ;;  %v4579_v58 = vadd.f32 -0.28449672, %v4547_v2  ;;  %v4834_v43 = vmul.f32 %v8710_v6, %v4674_v55  ;;  %v4452_v63 = vadd.f32 -1.4531521, %v4420_v50  ;;  %v3260_v55 = vpop.f32.mrf.mxu3  ;;  %vm4004_vm14 = vmor %vm4002_vm13, %vm4003_vm12 }
 0x280   : > { %v3999_v54 = vsub.f32 1.0, %v3998_v45  ;;  %v4008_v2 = vand.u32 2147483648, %v10336_v4  ;;  %v10385_v31 = vadd.f32 1.0, %v3878_v53  ;;  %v3064_v6 = vadd.f32 %v2982_v60, %v9849_v61  ;;  %v10396_v45 = vpop.f32.mrf.mxu1  ;;  %v10400_v60 = vld [vmem:[#allocation2 + $0xf2] sm:$0xff] }
 0x281   : > { %5030 = vst.msk [vmem:[#allocation2 + $0x11] sm:$0xff] %vm976_vm1, %v4961_v11  ;;  %v4611_v37 = vmul.f32 %v4579_v58, %v10328_v9  ;;  %v4866_v15 = vsub.f32 1.0, %v4834_v43  ;;  %v4484_v25 = vmul.f32 %v4452_v63, %v10371_v28  ;;  %v4775_v58 = vmul.f32 1.442695, %v4740_v24  ;;  %v10402_v43 = vld [vmem:[#allocation2 + $0xf0] sm:$0xff] }
 0x282   : > { %8332 = vmatmul.msk.f32.gmra.mxu3 %vm976_vm1, %v10308_v3  ;;  %v4000_v16 = vmul.f32 %v8712_v26, %v3999_v54  ;;  %8715 = vrcp.f32 %v10385_v31  ;;  %v10394_v50 = vadd.f32 %v10138_v48, %v3651_v62  ;;  %v10404_v53 = vld [vmem:[#allocation2 + $0xf1] sm:$0xff]  ;;  %v10409_v24 = vsel %vm3780_vm11, 1.0, %v13487_v23 }
 0x283   : > { %v4643_v39 = vadd.f32 0.2548296, %v4611_v37  ;;  %v4898_v11 = vmul.f32 %v4866_v15, %v10263_v33  ;;  %v4516_v7 = vadd.f32 1.4214138, %v4484_v25  ;;  %v4009_v62 = vor.u32 1.1754944e-38, %v4008_v2  ;;  %5023 = vst.msk [vmem:[#allocation2 + $0xf0] sm:$0xff] %vm976_vm1, %v13393_v10 }
 0x284   : > { %v4001_v3 = vadd.f32 %v8712_v26, %v4000_v16  ;;  %vm4007_vm15 = vcmp.eq.f32.partialorder %v4006_v19, 8.507059e+37  ;;  %8717 = vpow2.f32 %v4775_v58  ;;  %vm4017_vm3 = vweird.f32 %v10385_v31 }
 0x285   : > { %v4675_v61 = vmul.f32 %v4643_v39, %v10328_v9  ;;  %v4930_v33 = vadd.f32 1.0, %v4898_v11  ;;  %v3342_v9 = vadd.f32 %v3260_v55, %v3064_v6  ;;  %v4548_v37 = vmul.f32 %v4516_v7, %v10371_v28 }
 0x286   : > { %v4005_v63 = vsel %vm4004_vm14, %v8712_v26, %v4001_v3  ;;  %v10420_v39 = vmul.f32 0.70710677, %v10394_v50  ;;  %v2835_v55 = vmul.f32 %v9297_v40, %v10305_v44  ;;  %v3424_v11 = vmul.f32 %v9827_v21, %v10354_v35 }
 0x287   : > { %v4835_v4 = vmul.f32 %v8714_v30, %v4675_v61  ;;  %v4962_v54 = vmul.f32 %v4930_v33, %v10243_v34  ;;  %v10416_v15 = vsel %vm4007_vm15, %v4009_v62, %v4005_v63  ;;  %v4580_v6 = vadd.f32 -0.28449672, %v4548_v37  ;;  %v3570_v30 = vpop.f32.mrf.mxu0  ;;  %v2985_v33 = vpop.f32.mrf.mxu2 }
 0x288   : > { %v5129_v25 = vld [vmem:[#allocation2 + $0x11] sm:$0xff]  ;;  %v4421_v16 = vmul.f32 1.0614054, %v10416_v15  ;;  %v10424_v26 = vpop.eup %8715  ;;  %v10428_v34 = vand.u32 2147483647, %v10420_v39  ;;  %v3652_v19 = vadd.f32 %v3570_v30, %v3342_v9  ;;  %v4741_v62 = vmul.f32 %v4709_v12, %v10318_v38  ;;  %8298 = vmatmul.msk.f32.gmra.mxu2 %vm976_vm1, %v2835_v55  ;;  %8367 = vmatmul.msk.f32.gmra.mxu0 %vm976_vm1, %v3424_v11 }
 0x289   : > { %v4867_v2 = vsub.f32 1.0, %v4835_v4  ;;  %8378 = vmatmul.msk.f32.gmra.mxu1 %vm976_vm1, %v5129_v25  ;;  %5031 = vst.msk [vmem:[#allocation2 + $0x19] sm:$0xff] %vm976_vm1, %v4962_v54  ;;  %v4612_v61 = vmul.f32 %v4580_v6, %v10371_v28  ;;  %v4013_v3 = vmul.f32 %v10424_v26, %v10385_v31  ;;  %v4021_v9 = vand.u32 2147483647, %v10385_v31  ;;  %v10454_v25 = vpop.f32.mrf.mxu1 }
 0x28a   : > { %8333 = vmatmul.msk.f32.gmra.mxu3 %vm976_vm1, %v10358_v18  ;;  %v4453_v7 = vadd.f32 -1.4531521, %v4421_v16  ;;  %v4023_v44 = vand.u32 2147483648, %v10385_v31  ;;  %v3879_v35 = vmul.f32 0.3275911, %v10428_v34  ;;  %vm4018_vm2 = vweird.f32 %v10424_v26  ;;  %v8718_v12 = vpop.eup %8717 }
 0x28b   : > { %v4899_v58 = vmul.f32 %v4867_v2, %v10326_v1  ;;  %v4644_v18 = vadd.f32 0.2548296, %v4612_v61  ;;  %v4014_v37 = vsub.f32 1.0, %v4013_v3  ;;  %v10451_v38 = vadd.f32 %v10138_v48, %v3652_v19  ;;  %v3263_v19 = vpop.f32.mrf.mxu3  ;;  %vm10477_vm5 = vmor %vm4017_vm3, %vm4018_vm2 }
 0x28c   : > { %v4485_v4 = vmul.f32 %v4453_v7, %v10416_v15  ;;  %v10448_v63 = vadd.f32 1.0, %v3879_v35  ;;  %v3065_v54 = vadd.f32 %v2985_v33, %v10207_v20  ;;  %v10460_v55 = vmul.f32 0.5, %v10288_v29  ;;  %v5126_v29 = vld [vmem:[%s13225_s3] sm:$0xf] }
 0x28d   : > { %v4931_v1 = vadd.f32 1.0, %v4899_v58  ;;  %v4676_v6 = vmul.f32 %v4644_v18, %v10371_v28  ;;  %v4015_v30 = vmul.f32 %v10424_v26, %v4014_v37  ;;  %v4777_v11 = vmul.f32 1.442695, %v4741_v62  ;;  %v8441_v28 = vld [vmem:[%s13225_s3 + $0x8] sm:$0xf]  ;;  %8408 = vmatpush.msk.msrb.mxu2 %vm1242_vm0, %v5126_v29  ;;  %v10486_v33 = vld [vmem:[#allocation2 + $0xfa] sm:$0xff] }
 0x28e   : > { %v4517_v16 = vadd.f32 1.4214138, %v4485_v4  ;;  %v4710_v58 = vsub.f32 0.0, %v10374_v36  ;;  %8719 = vrcp.f32 %v10448_v63  ;;  %vm3781_vm4 = vcmp.ge.f32.partialorder %v10303_v52, 0.0  ;;  %8442 = vmatpush.msk.msrb.mxu3 %vm1242_vm0, %v8441_v28 }
 0x28f   : > { %v4963_v2 = vmul.f32 %v4931_v1, %v10277_v49  ;;  %v4836_v20 = vmul.f32 %v8718_v12, %v4676_v6  ;;  %v4016_v49 = vadd.f32 %v10424_v26, %v4015_v30  ;;  %vm4022_vm6 = vcmp.eq.f32.partialorder %v4021_v9, 8.507059e+37  ;;  %v10493_v9 = vld [vmem:[#allocation2 + $0xf8] sm:$0xff] }
 0x290   : > { %v4549_v61 = vmul.f32 %v4517_v16, %v10416_v15  ;;  %v4024_v3 = vor.u32 1.1754944e-38, %v4023_v44  ;;  %v10484_v31 = vmul.f32 0.70710677, %v10451_v38  ;;  %v3343_v18 = vadd.f32 %v3263_v19, %v3065_v54  ;;  %v5130_v4 = vld [vmem:[#allocation2 + $0x19] sm:$0xff]  ;;  %8299 = vmatmul.msk.f32.gmra.mxu2 %vm976_vm1, %v10356_v56  ;;  %8368 = vmatmul.msk.f32.gmra.mxu0 %vm976_vm1, %v10400_v60  ;;  %v3573_v54 = vpop.f32.mrf.mxu0  ;;  %v2988_v19 = vpop.f32.mrf.mxu2 }
 0x291   : > { %5032 = vst.msk [vmem:[#allocation2 + $0x21] sm:$0xff] %vm976_vm1, %v4963_v2  ;;  %v4868_v62 = vsub.f32 1.0, %v4836_v20  ;;  %v4020_v1 = vsel %vm10477_vm5, %v10424_v26, %v4016_v49  ;;  %v3116_v44 = vld [vmem:[#allocation2 + $0xf9] sm:$0xff]  ;;  %8721 = vpow2.f32 %v4777_v11  ;;  %v4742_v12 = vmul.f32 %v4710_v58, %v10374_v36  ;;  %8379 = vmatmul.msk.f32.gmra.mxu1 %vm976_vm1, %v5130_v4 }
 0x292   : > { %v4581_v35 = vadd.f32 -0.28449672, %v4549_v61  ;;  %8334 = vmatmul.msk.f32.gmra.mxu3 %vm976_vm1, %v10404_v53  ;;  %v10495_v37 = vsel %vm4022_vm6, %v4024_v3, %v4020_v1  ;;  %v10499_v2 = vand.u32 2147483647, %v10484_v31  ;;  %5024 = vst.msk [vmem:[#allocation2 + $0xf8] sm:$0xff] %vm976_vm1, %v13393_v10  ;;  %vm3782_vm7 = vcmp.ge.f32.partialorder %v10366_v46, 0.0 }
 0x293   : > { %v4900_v53 = vmul.f32 %v4868_v62, %v10409_v24  ;;  %v4422_v36 = vmul.f32 1.0614054, %v10495_v37  ;;  %v3813_v56 = vsel %vm3781_vm4, 1.0, %v13487_v23  ;;  %v10516_v60 = vmul.f32 0.5, %v10343_v41  ;;  %v10528_v41 = vpop.f32.mrf.mxu1 }
 0x294   : > { %v4613_v26 = vmul.f32 %v4581_v35, %v10416_v15  ;;  %v8720_v6 = vpop.eup %8719  ;;  %v3880_v16 = vmul.f32 0.3275911, %v10499_v2  ;;  %v3653_v24 = vadd.f32 %v3573_v54, %v3343_v18  ;;  %v10521_v20 = vsel %vm3782_vm7, 1.0, %v13487_v23 }
 0x295   : > { %v4932_v30 = vadd.f32 1.0, %v4900_v53  ;;  %v4454_v58 = vadd.f32 -1.4531521, %v4422_v36  ;;  %v4028_v46 = vmul.f32 %v8720_v6, %v10448_v63  ;;  %v4779_v61 = vmul.f32 1.442695, %v4742_v12 }
 0x296   : > { %v4645_v11 = vadd.f32 0.2548296, %v4613_v26  ;;  %v10523_v49 = vadd.f32 1.0, %v3880_v16  ;;  %v10526_v52 = vadd.f32 %v10138_v48, %v3653_v24  ;;  %v4036_v35 = vand.u32 2147483647, %v10448_v63  ;;  %v10549_v16 = vld [vmem:[#allocation2 + $0x100] sm:$0xff] }
 0x297   : > { %v4964_v29 = vmul.f32 %v4932_v30, %v10349_v8  ;;  %v4486_v7 = vmul.f32 %v4454_v58, %v10495_v37  ;;  %v4029_v3 = vsub.f32 1.0, %v4028_v46  ;;  %v8722_v62 = vpop.eup %8721  ;;  %v4038_v1 = vand.u32 2147483648, %v10448_v63  ;;  %v3117_v24 = vld [vmem:[#allocation2 + $0x101] sm:$0xff] }
 0x298   : > { %v4677_v28 = vmul.f32 %v4645_v11, %v10416_v15  ;;  %8723 = vrcp.f32 %v10523_v49  ;;  %v3066_v18 = vadd.f32 %v2988_v19, %v10210_v47  ;;  %v5131_v4 = vld [vmem:[#allocation2 + $0x21] sm:$0xff]  ;;  %vm4033_vm8 = vweird.f32 %v8720_v6  ;;  %v3266_v15 = vpop.f32.mrf.mxu3 }
 0x299   : > { %5033 = vst.msk [vmem:[#allocation2 + $0x29] sm:$0xff] %vm976_vm1, %v4964_v29  ;;  %v4518_v53 = vadd.f32 1.4214138, %v4486_v7  ;;  %v4030_v8 = vmul.f32 %v8720_v6, %v4029_v3  ;;  %v10541_v26 = vadd.f32 %v10396_v45, %v9934_v27  ;;  %8725 = vpow2.f32 %v4779_v61  ;;  %v10547_v47 = vld [vmem:[#allocation2 + $0x102] sm:$0xff]  ;;  %v8475_v27 = vld [vmem:[%s13225_s3 + $0xc] sm:$0xf]  ;;  %8380 = vmatmul.msk.f32.gmra.mxu1 %vm976_vm1, %v5131_v4  ;;  %v3576_v7 = vpop.f32.mrf.mxu0 }
 0x29a   : > { %v4837_v12 = vmul.f32 %v8722_v62, %v4677_v28  ;;  %8335 = vmatmul.msk.f32.gmra.mxu3 %vm976_vm1, %v3116_v44  ;;  %v4711_v36 = vsub.f32 0.0, %v10428_v34  ;;  %v10545_v54 = vmul.f32 0.70710677, %v10526_v52  ;;  %vm4032_vm9 = vweird.f32 %v10448_v63  ;;  %v8509_v45 = vld [vmem:[%s13225_s3 + $0x10] sm:$0xf]  ;;  %5025 = vst.msk [vmem:[#allocation2 + $0x100] sm:$0xff] %vm976_vm1, %v13393_v10  ;;  %8476 = vmatpush.msk.msrb.mxu0 %vm1242_vm0, %v8475_v27 }
 0x29b   : > { %v4550_v11 = vmul.f32 %v4518_v53, %v10495_v37  ;;  %v4031_v58 = vadd.f32 %v8720_v6, %v4030_v8  ;;  %vm4034_vm10 = vmor %vm4032_vm9, %vm4033_vm8  ;;  %v4039_v44 = vor.u32 1.1754944e-38, %v4038_v1  ;;  %8510 = vmatpush.msk.msrb.mxu1 %vm1242_vm0, %v8509_v45  ;;  %v3344_v46 = vadd.f32 %v3266_v15, %v3066_v18 }
 0x29c   : > { %v4869_v30 = vsub.f32 1.0, %v4837_v12  ;;  %v10566_v63 = vand.u32 2147483647, %v10545_v54  ;;  %v2837_v19 = vmul.f32 %v9342_v14, %v10402_v43  ;;  %vm4037_vm11 = vcmp.eq.f32.partialorder %v4036_v35, 8.507059e+37 }
 0x29d   : > { %v4582_v29 = vadd.f32 -0.28449672, %v4550_v11  ;;  %v4035_v28 = vsel %vm4034_vm10, %v8720_v6, %v4031_v58  ;;  %v4743_v1 = vmul.f32 %v4711_v36, %v10428_v34  ;;  %v3654_v12 = vadd.f32 %v3576_v7, %v3344_v46  ;;  %v2991_v6 = vpop.f32.mrf.mxu2  ;;  %v10587_v11 = vpop.f32.mrf.mxu1 }
 0x29e   : > { %v4901_v61 = vmul.f32 %v4869_v30, %v3813_v56  ;;  %v8724_v3 = vpop.eup %8723  ;;  %v10570_v62 = vsel %vm4037_vm11, %v4039_v44, %v4035_v28  ;;  %v3881_v4 = vmul.f32 0.3275911, %v10566_v63  ;;  %8300 = vmatmul.msk.f32.gmra.mxu2 %vm976_vm1, %v2837_v19  ;;  %v10579_v8 = vmul.f32 0.5, %v10394_v50 }
 0x29f   : > { %v4614_v18 = vmul.f32 %v4582_v29, %v10495_v37  ;;  %v4423_v43 = vmul.f32 1.0614054, %v10570_v62  ;;  %v4043_v56 = vmul.f32 %v8724_v3, %v10523_v49  ;;  %v8726_v35 = vpop.eup %8725  ;;  %v4712_v15 = vsub.f32 0.0, %v10499_v2 }
 0x2a0   : > { %v4933_v53 = vadd.f32 1.0, %v4901_v61  ;;  %v10582_v34 = vadd.f32 1.0, %v3881_v4  ;;  %v10585_v36 = vadd.f32 %v10138_v48, %v3654_v12  ;;  %v5132_v30 = vld [vmem:[#allocation2 + $0x29] sm:$0xff]  ;;  %v4781_v46 = vmul.f32 1.442695, %v4743_v1 }
 0x2a1   : > { %v4646_v27 = vadd.f32 0.2548296, %v4614_v18  ;;  %v4455_v45 = vadd.f32 -1.4531521, %v4423_v43  ;;  %v4044_v44 = vsub.f32 1.0, %v4043_v56  ;;  %v4053_v19 = vand.u32 2147483648, %v10523_v49  ;;  %8381 = vmatmul.msk.f32.gmra.mxu1 %vm976_vm1, %v5132_v30 }
 0x2a2   : > { %v4965_v58 = vmul.f32 %v4933_v53, %v10460_v55  ;;  %8336 = vmatmul.msk.f32.gmra.mxu3 %vm976_vm1, %v3117_v24  ;;  %v4051_v50 = vand.u32 2147483647, %v10523_v49  ;;  %8727 = vrcp.f32 %v10582_v34  ;;  %vm4048_vm12 = vweird.f32 %v8724_v3  ;;  %v3269_v55 = vpop.f32.mrf.mxu3  ;;  %v10607_v1 = vld [vmem:[#allocation2 + $0x10a] sm:$0xff] }
 0x2a3   : > { %v4678_v48 = vmul.f32 %v4646_v27, %v10495_v37  ;;  %v4487_v61 = vmul.f32 %v4455_v45, %v10570_v62  ;;  %v4045_v29 = vmul.f32 %v8724_v3, %v4044_v44  ;;  %v10600_v24 = vadd.f32 %v10454_v25, %v9949_v22  ;;  %v10609_v37 = vld [vmem:[#allocation2 + $0x108] sm:$0xff]  ;;  %v3579_v45 = vpop.f32.mrf.mxu0 }
 0x2a4   : > { %5034 = vst.msk [vmem:[#allocation2 + $0x31] sm:$0xff] %vm976_vm1, %v4965_v58  ;;  %vm3783_vm13 = vcmp.ge.f32.partialorder %v10420_v39, 0.0  ;;  %v4744_v28 = vmul.f32 %v4712_v15, %v10499_v2  ;;  %v10605_v7 = vmul.f32 0.70710677, %v10585_v36  ;;  %v3118_v4 = vld [vmem:[#allocation2 + $0x109] sm:$0xff]  ;;  %vm4047_vm14 = vweird.f32 %v10523_v49 }
 0x2a5   : > { %v4838_v12 = vmul.f32 %v8726_v35, %v4678_v48  ;;  %v4519_v53 = vadd.f32 1.4214138, %v4487_v61  ;;  %v4046_v18 = vadd.f32 %v8724_v3, %v4045_v29  ;;  %5026 = vst.msk [vmem:[#allocation2 + $0x108] sm:$0xff] %vm976_vm1, %v13393_v10  ;;  %vm4049_vm15 = vmor %vm4047_vm14, %vm4048_vm12  ;;  %v4054_v22 = vor.u32 1.1754944e-38, %v4053_v19  ;;  %v2994_v44 = vpop.f32.mrf.mxu2  ;;  %v10639_v61 = vpop.f32.mrf.mxu1 }
 0x2a6   : > { %v10616_v25 = vand.u32 2147483647, %v10605_v7  ;;  %v3426_v2 = vmul.f32 %v9863_v17, %v10486_v33  ;;  %v3067_v43 = vadd.f32 %v2991_v6, %v10214_v42  ;;  %8301 = vmatmul.msk.f32.gmra.mxu2 %vm976_vm1, %v10493_v9  ;;  %vm4052_vm2 = vcmp.eq.f32.partialorder %v4051_v50, 8.507059e+37 }
 0x2a7   : > { %v4870_v56 = vsub.f32 1.0, %v4838_v12  ;;  %v4551_v49 = vmul.f32 %v4519_v53, %v10570_v62  ;;  %v4050_v35 = vsel %vm4049_vm15, %v8724_v3, %v4046_v18  ;;  %v10627_v30 = vsel %vm3783_vm13, 1.0, %v13487_v23 }
 0x2a8   : > { %v8728_v15 = vpop.eup %8727  ;;  %v10629_v58 = vsel %vm4052_vm2, %v4054_v22, %v4050_v35  ;;  %v3882_v33 = vmul.f32 0.3275911, %v10616_v25  ;;  %8369 = vmatmul.msk.f32.gmra.mxu0 %vm976_vm1, %v3426_v2  ;;  %v3345_v42 = vadd.f32 %v3269_v55, %v3067_v43  ;;  %8729 = vpow2.f32 %v4781_v46 }
 0x2a9   : > { %v4902_v9 = vmul.f32 %v4870_v56, %v10521_v20  ;;  %v4583_v6 = vadd.f32 -0.28449672, %v4551_v49  ;;  %v4424_v27 = vmul.f32 1.0614054, %v10629_v58  ;;  %v4058_v3 = vmul.f32 %v8728_v15, %v10582_v34  ;;  %v10656_v49 = vld [vmem:[%s13224_s2] ss:$0 sm:$0xff] }
 0x2aa   : > { %8337 = vmatmul.msk.f32.gmra.mxu3 %vm976_vm1, %v3118_v4  ;;  %v4783_v39 = vmul.f32 1.442695, %v4744_v28  ;;  %v10637_v50 = vadd.f32 1.0, %v3882_v33  ;;  %v3655_v19 = vadd.f32 %v3579_v45, %v3345_v42  ;;  %vm4063_vm3 = vweird.f32 %v8728_v15  ;;  %v3272_v2 = vpop.f32.mrf.mxu3 }
 0x2ab   : > { %v5133_v48 = vld [vmem:[#allocation2 + $0x31] sm:$0xff]  ;;  %v4934_v29 = vadd.f32 1.0, %v4902_v9  ;;  %v4615_v20 = vmul.f32 %v4583_v6, %v10570_v62  ;;  %v4456_v55 = vadd.f32 -1.4531521, %v4424_v27  ;;  %v4059_v12 = vsub.f32 1.0, %v4058_v3 }
 0x2ac   : > { %8382 = vmatmul.msk.f32.gmra.mxu1 %vm976_vm1, %v5133_v48  ;;  %v4066_v53 = vand.u32 2147483647, %v10582_v34  ;;  %v4068_v4 = vand.u32 2147483648, %v10582_v34  ;;  %8731 = vrcp.f32 %v10637_v50  ;;  %v10649_v43 = vmul.f32 0.5, %v10451_v38  ;;  %v10666_v6 = vld [vmem:[#allocation2 + $0x110] sm:$0xff] }
 0x2ad   : > { %v4966_v46 = vmul.f32 %v4934_v29, %v10516_v60  ;;  %v4647_v28 = vadd.f32 0.2548296, %v4615_v20  ;;  %v4488_v18 = vmul.f32 %v4456_v55, %v10629_v58  ;;  %v4060_v22 = vmul.f32 %v8728_v15, %v4059_v12  ;;  %v3119_v60 = vld [vmem:[#allocation2 + $0x111] sm:$0xff] }
 0x2ae   : > { %vm4062_vm4 = vweird.f32 %v10582_v34  ;;  %v4713_v56 = vsub.f32 0.0, %v10566_v63  ;;  %v10659_v35 = vadd.f32 %v10656_v49, %v3655_v19  ;;  %v3068_v9 = vadd.f32 %v2994_v44, %v10253_v59  ;;  %v10664_v34 = vld [vmem:[#allocation2 + $0x112] sm:$0xff]  ;;  %v8730_v27 = vpop.eup %8729 }
 0x2af   : > { %5035 = vst.msk [vmem:[#allocation2 + $0x39] sm:$0xff] %vm976_vm1, %v4966_v46  ;;  %v4679_v33 = vmul.f32 %v4647_v28, %v10570_v62  ;;  %v4520_v42 = vadd.f32 1.4214138, %v4488_v18  ;;  %v4061_v38 = vadd.f32 %v8728_v15, %v4060_v22  ;;  %8733 = vpow2.f32 %v4783_v39  ;;  %vm4064_vm5 = vmor %vm4062_vm4, %vm4063_vm3  ;;  %v10694_v22 = vpop.f32.mrf.mxu1 }
 0x2b0   : > { %v4069_v3 = vor.u32 1.1754944e-38, %v4068_v4  ;;  %v10670_v45 = vmul.f32 0.70710677, %v10659_v35  ;;  %8370 = vmatmul.msk.f32.gmra.mxu0 %vm976_vm1, %v10547_v47  ;;  %v2839_v62 = vmul.f32 %v9379_v32, %v10549_v16  ;;  %5027 = vst.msk [vmem:[#allocation2 + $0x110] sm:$0xff] %vm976_vm1, %v13393_v10  ;;  %vm4067_vm6 = vcmp.eq.f32.partialorder %v4066_v53, 8.507059e+37  ;;  %v3582_v53 = vpop.f32.mrf.mxu0  ;;  %v2997_v4 = vpop.f32.mrf.mxu2 }
 0x2b1   : > { %v4839_v59 = vmul.f32 %v8730_v27, %v4679_v33  ;;  %v4552_v44 = vmul.f32 %v4520_v42, %v10629_v58  ;;  %v4065_v19 = vsel %vm4064_vm5, %v8728_v15, %v4061_v38  ;;  %v4745_v29 = vmul.f32 %v4713_v56, %v10566_v63 }
 0x2b2   : > { %8338 = vmatmul.msk.f32.gmra.mxu3 %vm976_vm1, %v3119_v60  ;;  %v8732_v39 = vpop.eup %8731  ;;  %v10680_v48 = vsel %vm4067_vm6, %v4069_v3, %v4065_v19  ;;  %v10684_v47 = vand.u32 2147483647, %v10670_v45  ;;  %v3346_v20 = vadd.f32 %v3272_v2, %v3068_v9  ;;  %8302 = vmatmul.msk.f32.gmra.mxu2 %vm976_vm1, %v2839_v62  ;;  %v4081_v46 = vand.u32 2147483647, %v10637_v50  ;;  %v3275_v19 = vpop.f32.mrf.mxu3 }
 0x2b3   : > { %v4871_v16 = vsub.f32 1.0, %v4839_v59  ;;  %v4584_v55 = vadd.f32 -0.28449672, %v4552_v44  ;;  %v4425_v12 = vmul.f32 1.0614054, %v10680_v48  ;;  %v4073_v15 = vmul.f32 %v8732_v39, %v10637_v50 }
 0x2b4   : > { %v4083_v28 = vand.u32 2147483648, %v10637_v50  ;;  %v3883_v63 = vmul.f32 0.3275911, %v10684_v47  ;;  %v3428_v18 = vmul.f32 %v9900_v5, %v10607_v1  ;;  %vm4078_vm7 = vweird.f32 %v8732_v39 }
 0x2b5   : > { %v4903_v2 = vmul.f32 %v4871_v16, %v10627_v30  ;;  %v4616_v56 = vmul.f32 %v4584_v55, %v10629_v58  ;;  %v4457_v60 = vadd.f32 -1.4531521, %v4425_v12  ;;  %v4074_v33 = vsub.f32 1.0, %v4073_v15  ;;  %v8734_v42 = vpop.eup %8733 }
 0x2b6   : > { %v10698_v38 = vadd.f32 1.0, %v3883_v63  ;;  %v3656_v9 = vadd.f32 %v3582_v53, %v3346_v20  ;;  %v3069_v27 = vadd.f32 %v2997_v4, %v10541_v26  ;;  %v5134_v3 = vld [vmem:[#allocation2 + $0x39] sm:$0xff]  ;;  %vm3784_vm8 = vcmp.ge.f32.partialorder %v10484_v31, 0.0 }
 0x2b7   : > { %v4935_v62 = vadd.f32 1.0, %v4903_v2  ;;  %v4648_v59 = vadd.f32 0.2548296, %v4616_v56  ;;  %v4489_v1 = vmul.f32 %v4457_v60, %v10680_v48  ;;  %v4075_v44 = vmul.f32 %v8732_v39, %v4074_v33  ;;  %8383 = vmatmul.msk.f32.gmra.mxu1 %vm976_vm1, %v5134_v3 }
 0x2b8   : > { %vm4077_vm9 = vweird.f32 %v10637_v50  ;;  %v4714_v30 = vsub.f32 0.0, %v10616_v25  ;;  %8735 = vrcp.f32 %v10698_v38  ;;  %8371 = vmatmul.msk.f32.gmra.mxu0 %vm976_vm1, %v3428_v18  ;;  %v4785_v12 = vmul.f32 1.442695, %v4745_v29  ;;  %v3585_v56 = vpop.f32.mrf.mxu0 }
 0x2b9   : > { %v4967_v26 = vmul.f32 %v4935_v62, %v10579_v8  ;;  %v4680_v20 = vmul.f32 %v4648_v59, %v10629_v58  ;;  %v4521_v16 = vadd.f32 1.4214138, %v4489_v1  ;;  %v4076_v55 = vadd.f32 %v8732_v39, %v4075_v44  ;;  %vm4079_vm10 = vmor %vm4077_vm9, %vm4078_vm7 }
 0x2ba   : > { %vm4082_vm11 = vcmp.eq.f32.partialorder %v4081_v46, 8.507059e+37  ;;  %v4084_v15 = vor.u32 1.1754944e-38, %v4083_v28  ;;  %v10712_v53 = vadd.f32 %v10656_v49, %v3656_v9  ;;  %8303 = vmatmul.msk.f32.gmra.mxu2 %vm976_vm1, %v10609_v37  ;;  %v3347_v58 = vadd.f32 %v3275_v19, %v3069_v27 }
 0x2bb   : > { %5036 = vst.msk [vmem:[#allocation2 + $0x41] sm:$0xff] %vm976_vm1, %v4967_v26  ;;  %v4840_v50 = vmul.f32 %v8734_v42, %v4680_v20  ;;  %v4553_v8 = vmul.f32 %v4521_v16, %v10680_v48  ;;  %v4080_v4 = vsel %vm4079_vm10, %v8732_v39, %v4076_v55  ;;  %v3816_v29 = vsel %vm3784_vm8, 1.0, %v13487_v23  ;;  %v3000_v39 = vpop.f32.mrf.mxu2  ;;  %v10734_v42 = vpop.f32.mrf.mxu1 }
 0x2bc   : > { %v10721_v63 = vsel %vm4082_vm11, %v4084_v15, %v4080_v4  ;;  %v4746_v46 = vmul.f32 %v4714_v30, %v10616_v25  ;;  %v10725_v28 = vmul.f32 0.70710677, %v10712_v53  ;;  %vm3785_vm12 = vcmp.ge.f32.partialorder %v10545_v54, 0.0  ;;  %v3278_v16 = vpop.f32.mrf.mxu3 }
 0x2bd   : > { %v4872_v18 = vsub.f32 1.0, %v4840_v50  ;;  %v4585_v37 = vadd.f32 -0.28449672, %v4553_v8  ;;  %v4426_v2 = vmul.f32 1.0614054, %v10721_v63  ;;  %8737 = vpow2.f32 %v4785_v12 }
 0x2be   : > { %v8736_v60 = vpop.eup %8735  ;;  %v10730_v31 = vand.u32 2147483647, %v10725_v28  ;;  %v3657_v33 = vadd.f32 %v3585_v56, %v3347_v58  ;;  %v2841_v25 = vmul.f32 %v9426_v51, %v10666_v6  ;;  %v4787_v59 = vmul.f32 1.442695, %v4746_v46 }
 0x2bf   : > { %v4904_v9 = vmul.f32 %v4872_v18, %v3816_v29  ;;  %v4617_v27 = vmul.f32 %v4585_v37, %v10680_v48  ;;  %v4458_v3 = vadd.f32 -1.4531521, %v4426_v2  ;;  %v4088_v62 = vmul.f32 %v8736_v60, %v10698_v38 }
 0x2c0   : > { %v4096_v1 = vand.u32 2147483647, %v10698_v38  ;;  %v3884_v44 = vmul.f32 0.3275911, %v10730_v31  ;;  %8372 = vmatmul.msk.f32.gmra.mxu0 %vm976_vm1, %v10664_v34  ;;  %v3070_v19 = vadd.f32 %v3000_v39, %v10600_v24  ;;  %vm4093_vm13 = vweird.f32 %v8736_v60 }
 0x2c1   : > { %v4936_v30 = vadd.f32 1.0, %v4904_v9  ;;  %v4649_v6 = vadd.f32 0.2548296, %v4617_v27  ;;  %v4490_v26 = vmul.f32 %v4458_v3, %v10721_v63  ;;  %v4089_v20 = vsub.f32 1.0, %v4088_v62  ;;  %v2810_v9 = vld [vmem:[#allocation2 + $0x118] sm:$0xff] }
 0x2c2   : > { %v4098_v55 = vand.u32 2147483648, %v10698_v38  ;;  %v10745_v12 = vadd.f32 1.0, %v3884_v44  ;;  %v10748_v15 = vadd.f32 %v10656_v49, %v3657_v33  ;;  %8304 = vmatmul.msk.f32.gmra.mxu2 %vm976_vm1, %v2841_v25  ;;  %v5135_v50 = vld [vmem:[#allocation2 + $0x41] sm:$0xff]  ;;  %v3348_v29 = vadd.f32 %v3278_v16, %v3070_v19  ;;  %v3588_v25 = vpop.f32.mrf.mxu0 }
 0x2c3   : > { %v4968_v34 = vmul.f32 %v4936_v30, %v10649_v43  ;;  %v4681_v24 = vmul.f32 %v4649_v6, %v10680_v48  ;;  %v4522_v8 = vadd.f32 1.4214138, %v4490_v26  ;;  %v4090_v4 = vmul.f32 %v8736_v60, %v4089_v20  ;;  %8384 = vmatmul.msk.f32.gmra.mxu1 %vm976_vm1, %v5135_v50  ;;  %v8738_v58 = vpop.eup %8737  ;;  %v10771_v62 = vpop.f32.mrf.mxu1 }
 0x2c4   : > { %8739 = vrcp.f32 %v10745_v12  ;;  %vm4092_vm14 = vweird.f32 %v10698_v38  ;;  %v3817_v43 = vsel %vm3785_vm12, 1.0, %v13487_v23  ;;  %v4099_v48 = vor.u32 1.1754944e-38, %v4098_v55 }
 0x2c5   : > { %5037 = vst.msk [vmem:[#allocation2 + $0x49] sm:$0xff] %vm976_vm1, %v4968_v34  ;;  %v4841_v46 = vmul.f32 %v8738_v58, %v4681_v24  ;;  %v4554_v18 = vmul.f32 %v4522_v8, %v10721_v63  ;;  %v4091_v37 = vadd.f32 %v8736_v60, %v4090_v4  ;;  %8741 = vpow2.f32 %v4787_v59  ;;  %vm4094_vm15 = vmor %vm4092_vm14, %vm4093_vm13  ;;  %v3003_v58 = vpop.f32.mrf.mxu2 }
 0x2c6   : > { %v10763_v2 = vmul.f32 0.70710677, %v10748_v15  ;;  %vm4097_vm2 = vcmp.eq.f32.partialorder %v4096_v1, 8.507059e+37  ;;  %v4715_v38 = vsub.f32 0.0, %v10684_v47  ;;  %v3658_v3 = vadd.f32 %v3588_v25, %v3348_v29 }
 0x2c7   : > { %v4873_v56 = vsub.f32 1.0, %v4841_v46  ;;  %v4586_v39 = vadd.f32 -0.28449672, %v4554_v18  ;;  %v4095_v33 = vsel %vm4094_vm15, %v8736_v60, %v4091_v37  ;;  %v2761_v60 = vadd.f32 %v10528_v41, %v9961_v57 }
 0x2c8   : > { %v10765_v27 = vsel %vm4097_vm2, %v4099_v48, %v4095_v33  ;;  %v10769_v54 = vand.u32 2147483647, %v10763_v2  ;;  %v3721_v1 = vmul.f32 0.5, %v10526_v52  ;;  %vm1013_vm3 = vcmask 25600   ;;  %v3281_v48 = vpop.f32.mrf.mxu3 }
 0x2c9   : > { %v4905_v59 = vmul.f32 %v4873_v56, %v3817_v43  ;;  %v4618_v44 = vmul.f32 %v4586_v39, %v10721_v63  ;;  %v4427_v19 = vmul.f32 1.0614054, %v10765_v27  ;;  %vm3786_vm4 = vcmp.ge.f32.partialorder %v10605_v7, 0.0  ;;  %1014 = vst.msk [vmem:[#allocation2 + $0x120] sm:$0x3] %vm1013_vm3, %v13393_v10 }
 0x2ca   : > { %v8740_v30 = vpop.eup %8739  ;;  %v3885_v6 = vmul.f32 0.3275911, %v10769_v54  ;;  %8305 = vmatmul.msk.f32.gmra.mxu2 %vm976_vm1, %v2810_v9  ;;  %v4747_v34 = vmul.f32 %v4715_v38, %v10684_v47  ;;  %v10786_v57 = vadd.f32 %v10656_v49, %v3658_v3  ;;  %v3722_v29 = vmul.f32 0.5, %v10585_v36 }
 0x2cb   : > { %v4937_v26 = vadd.f32 1.0, %v4905_v59  ;;  %v4650_v20 = vadd.f32 0.2548296, %v4618_v44  ;;  %v4459_v16 = vadd.f32 -1.4531521, %v4427_v19  ;;  %v4103_v55 = vmul.f32 %v8740_v30, %v10745_v12  ;;  %v8742_v50 = vpop.eup %8741  ;;  %v10809_v44 = vpop.f32.mrf.mxu1 }
 0x2cc   : > { %v10783_v24 = vadd.f32 1.0, %v3885_v6  ;;  %v4111_v46 = vand.u32 2147483647, %v10745_v12  ;;  %v4113_v47 = vand.u32 2147483648, %v10745_v12  ;;  %vm4108_vm5 = vweird.f32 %v8740_v30 }
 0x2cd   : > { %v4969_v52 = vmul.f32 %v4937_v26, %v3721_v1  ;;  %v4682_v41 = vmul.f32 %v4650_v20, %v10721_v63  ;;  %v4491_v8 = vmul.f32 %v4459_v16, %v10765_v27  ;;  %v4104_v4 = vsub.f32 1.0, %v4103_v55 }
 0x2ce   : > { %8743 = vrcp.f32 %v10783_v24  ;;  %v3818_v63 = vsel %vm3786_vm4, 1.0, %v13487_v23  ;;  %v4789_v56 = vmul.f32 1.442695, %v4747_v34  ;;  %v10801_v36 = vmul.f32 0.70710677, %v10786_v57 }
 0x2cf   : > { %5038 = vst.msk [vmem:[#allocation2 + $0x51] sm:$0xff] %vm976_vm1, %v4969_v52  ;;  %v4842_v18 = vmul.f32 %v8742_v50, %v4682_v41  ;;  %v4523_v37 = vadd.f32 1.4214138, %v4491_v8  ;;  %v4105_v43 = vmul.f32 %v8740_v30, %v4104_v4  ;;  %v3071_v39 = vadd.f32 %v3003_v58, %v2761_v60  ;;  %v3591_v41 = vpop.f32.mrf.mxu0 }
 0x2d0   : > { %vm4107_vm6 = vweird.f32 %v10745_v12  ;;  %v4114_v38 = vor.u32 1.1754944e-38, %v4113_v47  ;;  %v4716_v3 = vsub.f32 0.0, %v10730_v31  ;;  %v10807_v59 = vand.u32 2147483647, %v10801_v36  ;;  %v3398_v60 = vld [vmem:[#allocation2 + $0x11a] sm:$0xff] }
 0x2d1   : > { %v4874_v33 = vsub.f32 1.0, %v4842_v18  ;;  %v4555_v25 = vmul.f32 %v4523_v37, %v10765_v27  ;;  %v4106_v9 = vadd.f32 %v8740_v30, %v4105_v43  ;;  %vm4109_vm7 = vmor %vm4107_vm6, %vm4108_vm5  ;;  %v3349_v7 = vadd.f32 %v3281_v48, %v3071_v39  ;;  %v3120_v26 = vld [vmem:[#allocation2 + $0x119] sm:$0xff] }
 0x2d2   : > { %vm4112_vm8 = vcmp.eq.f32.partialorder %v4111_v46, 8.507059e+37  ;;  %8745 = vpow2.f32 %v4789_v56  ;;  %v3886_v12 = vmul.f32 0.3275911, %v10807_v59  ;;  %v3430_v55 = vmul.f32 %v9932_v13, %v3398_v60  ;;  %8339 = vmatmul.msk.f32.gmra.mxu3 %vm976_vm1, %v3120_v26  ;;  %5028 = vst.msk [vmem:[#allocation2 + $0x118] sm:$0xff] %vm976_vm1, %v13393_v10  ;;  %v10833_v56 = vld [vmem:[#allocation2 + $0x10] sm:$0xff] }
 0x2d3   : > { %v4906_v19 = vmul.f32 %v4874_v33, %v3818_v63  ;;  %v4587_v1 = vadd.f32 -0.28449672, %v4555_v25  ;;  %v4110_v6 = vsel %vm4109_vm7, %v8740_v30, %v4106_v9  ;;  %5029 = vst.msk [vmem:[#allocation2 + $0x120] sm:$0x3] %vm1013_vm3, %v13393_v10  ;;  %v4748_v8 = vmul.f32 %v4716_v3, %v10730_v31 }
 0x2d4   : > { %v8744_v20 = vpop.eup %8743  ;;  %v10811_v16 = vsel %vm4112_vm8, %v4114_v38, %v4110_v6  ;;  %v10824_v4 = vadd.f32 1.0, %v3886_v12  ;;  %8373 = vmatmul.msk.f32.gmra.mxu0 %vm976_vm1, %v3430_v55  ;;  %v3659_v58 = vadd.f32 %v3591_v41, %v3349_v7  ;;  %v4126_v43 = vand.u32 2147483647, %v10783_v24 }
 0x2d5   : > { %v4938_v50 = vadd.f32 1.0, %v4906_v19  ;;  %v4619_v34 = vmul.f32 %v4587_v1, %v10765_v27  ;;  %v4428_v30 = vmul.f32 1.0614054, %v10811_v16  ;;  %v4118_v52 = vmul.f32 %v8744_v20, %v10783_v24  ;;  %v10846_v1 = vpop.f32.mrf.mxu1 }
 0x2d6   : > { %v4128_v48 = vand.u32 2147483648, %v10783_v24  ;;  %8747 = vrcp.f32 %v10824_v4  ;;  %vm4123_vm9 = vweird.f32 %v8744_v20  ;;  %vm3787_vm10 = vcmp.ge.f32.partialorder %v10670_v45, 0.0 }
 0x2d7   : > { %v4970_v46 = vmul.f32 %v4938_v50, %v3722_v29  ;;  %v4651_v47 = vadd.f32 0.2548296, %v4619_v34  ;;  %v4460_v18 = vadd.f32 -1.4531521, %v4428_v30  ;;  %v4119_v37 = vsub.f32 1.0, %v4118_v52 }
 0x2d8   : > { %v8746_v29 = vpop.eup %8745  ;;  %v4791_v39 = vmul.f32 1.442695, %v4748_v8  ;;  %v10837_v33 = vadd.f32 %v10656_v49, %v3659_v58  ;;  %vm4122_vm11 = vweird.f32 %v10783_v24  ;;  %v4717_v3 = vsub.f32 0.0, %v10769_v54 }
 0x2d9   : > { %5039 = vst.msk [vmem:[#allocation2 + $0x59] sm:$0xff] %vm976_vm1, %v4970_v46  ;;  %v4683_v10 = vmul.f32 %v4651_v47, %v10765_v27  ;;  %v4492_v31 = vmul.f32 %v4460_v18, %v10811_v16  ;;  %v4120_v63 = vmul.f32 %v8744_v20, %v4119_v37  ;;  %vm4124_vm12 = vmor %vm4122_vm11, %vm4123_vm9  ;;  %v4129_v27 = vor.u32 1.1754944e-38, %v4128_v48 }
 0x2da   : > { %v10842_v7 = vmul.f32 0.70710677, %v10837_v33  ;;  %v5927_v19 = vmul.f32 %v13434_v0, %v10833_v56  ;;  %vm4127_vm13 = vcmp.eq.f32.partialorder %v4126_v43, 8.507059e+37  ;;  %v3819_v24 = vsel %vm3787_vm10, 1.0, %v13487_v23 }
 0x2db   : > { %v4843_v25 = vmul.f32 %v8746_v29, %v4683_v10  ;;  %v4524_v9 = vadd.f32 1.4214138, %v4492_v31  ;;  %v4121_v38 = vadd.f32 %v8744_v20, %v4120_v63  ;;  %8749 = vpow2.f32 %v4791_v39 }
 0x2dc   : > { %v8748_v12 = vpop.eup %8747  ;;  %v10855_v50 = vand.u32 2147483647, %v10842_v7  ;;  %8477 = vmatmul.msk.f32.vlgmr.msrb.gmra.mxu0 %vm976_vm1, %v5927_v19  ;;  %v4749_v8 = vmul.f32 %v4717_v3, %v10769_v54  ;;  %v4141_v37 = vand.u32 2147483647, %v10824_v4  ;;  %v4143_v43 = vand.u32 2147483648, %v10824_v4  ;;  %v13490_v54 = vld [vmem:[#allocation4_spill] sm:$0xff] }
 0x2dd   : > { %v4875_v6 = vsub.f32 1.0, %v4843_v25  ;;  %v4556_v60 = vmul.f32 %v4524_v9, %v10811_v16  ;;  %v4125_v26 = vsel %vm4124_vm12, %v8744_v20, %v4121_v38  ;;  %v4133_v41 = vmul.f32 %v8748_v12, %v10824_v4  ;;  %v3006_v25 = vpop.f32.mrf.mxu2  ;;  %v10879_v3 = vld [vmem:[#allocation2 + $0x18] sm:$0xff] }
 0x2de   : > { %v10852_v55 = vsel %vm4127_vm13, %v4129_v27, %v4125_v26  ;;  %v3723_v20 = vmul.f32 0.5, %v10659_v35  ;;  %v3887_v45 = vmul.f32 0.3275911, %v10855_v50  ;;  %vm4138_vm14 = vweird.f32 %v8748_v12  ;;  %v5062_v26 = vld [vmem:[#allocation2] sm:$0xff] }
 0x2df   : > { %v4907_v34 = vmul.f32 %v4875_v6, %v3819_v24  ;;  %v4588_v30 = vadd.f32 -0.28449672, %v4556_v60  ;;  %v4429_v52 = vmul.f32 1.0614054, %v10852_v55  ;;  %v4134_v18 = vsub.f32 1.0, %v4133_v41  ;;  %v3284_v60 = vpop.f32.mrf.mxu3 }
 0x2e0   : > { %v10866_v48 = vadd.f32 1.0, %v3887_v45  ;;  %v2762_v29 = vadd.f32 %v10587_v11, %v13490_v54  ;;  %v10872_v39 = vmul.f32 0.5, %v10712_v53  ;;  %vm3788_vm15 = vcmp.ge.f32.partialorder %v10725_v28, 0.0  ;;  %v10892_v45 = vld [vmem:[#allocation2 + $0x20] sm:$0xff] }
 0x2e1   : > { %v4939_v58 = vadd.f32 1.0, %v4907_v34  ;;  %v4620_v46 = vmul.f32 %v4588_v30, %v10811_v16  ;;  %v4461_v47 = vadd.f32 -1.4531521, %v4429_v52  ;;  %v4135_v63 = vmul.f32 %v8748_v12, %v4134_v18  ;;  %v8750_v19 = vpop.eup %8749  ;;  %v3594_v30 = vpop.f32.mrf.mxu0 }
 0x2e2   : > { %8751 = vrcp.f32 %v10866_v48  ;;  %vm4137_vm2 = vweird.f32 %v10824_v4  ;;  %vm3789_vm3 = vcmp.ge.f32.partialorder %v10763_v2, 0.0  ;;  %v4793_v11 = vmul.f32 1.442695, %v4749_v8 }
 0x2e3   : > { %v4971_v10 = vmul.f32 %v4939_v58, %v3723_v20  ;;  %v4652_v31 = vadd.f32 0.2548296, %v4620_v46  ;;  %v4493_v35 = vmul.f32 %v4461_v47, %v10852_v55  ;;  %v4136_v27 = vadd.f32 %v8748_v12, %v4135_v63  ;;  %vm4139_vm4 = vmor %vm4137_vm2, %vm4138_vm14  ;;  %v13491_v58 = vld [vmem:[#allocation48_spill] sm:$0xff] }
 0x2e4   : > { %v4144_v53 = vor.u32 1.1754944e-38, %v4143_v43  ;;  %v3072_v6 = vadd.f32 %v3006_v25, %v2762_v29  ;;  %8478 = vmatmul.msk.f32.gmra.mxu0 %vm976_vm1, %v10879_v3  ;;  %vm4142_vm5 = vcmp.eq.f32.partialorder %v4141_v37, 8.507059e+37  ;;  %v4718_v41 = vsub.f32 0.0, %v10807_v59 }
 0x2e5   : > { %5040 = vst.msk [vmem:[#allocation2 + $0x61] sm:$0xff] %vm976_vm1, %v4971_v10  ;;  %v4684_v9 = vmul.f32 %v4652_v31, %v10811_v16  ;;  %v4525_v38 = vadd.f32 1.4214138, %v4493_v35  ;;  %v10885_v16 = vpop.f32.mrf.mxu1  ;;  %v4140_v34 = vsel %vm4139_vm4, %v8748_v12, %v4136_v27  ;;  %v5094_v8 = vmul.f32 %v13434_v0, %v5062_v26  ;;  %v5136_v10 = vld [vmem:[#allocation2 + $0x49] sm:$0xff] }
 0x2e6   : > { %v10888_v52 = vsel %vm4142_vm5, %v4144_v53, %v4140_v34  ;;  %v3350_v20 = vadd.f32 %v3284_v60, %v3072_v6  ;;  %v2763_v46 = vadd.f32 %v10639_v61, %v13491_v58  ;;  %v3820_v37 = vsel %vm3788_vm15, 1.0, %v13487_v23  ;;  %8385 = vmatmul.msk.f32.gmra.mxu1 %vm976_vm1, %v5136_v10  ;;  %v5585_v61 = vld [vmem:[#allocation2 + $0x2] sm:$0xff]  ;;  %v5586_v26 = vld [vmem:[#allocation2 + $0xa] sm:$0xff] }
 0x2e7   : > { %v4844_v24 = vmul.f32 %v8750_v19, %v4684_v9  ;;  %v4557_v4 = vmul.f32 %v4525_v38, %v10852_v55  ;;  %v4430_v43 = vmul.f32 1.0614054, %v10888_v52  ;;  %v3821_v31 = vsel %vm3789_vm3, 1.0, %v13487_v23  ;;  %8409 = vmatmul.msk.f32.vlgmr.msrb.gmra.mxu2 %vm976_vm1, %v5094_v8  ;;  %8443 = vmatmul.msk.f32.vlgmr.msrb.gmra.mxu3 %vm976_vm1, %v5585_v61  ;;  %v3009_v38 = vpop.f32.mrf.mxu2  ;;  %v13492_v27 = vld [vmem:[#allocation16_spill] sm:$0xff]  ;;  %v3287_v34 = vpop.f32.mrf.mxu3 }
 0x2e8   : > { %v8752_v12 = vpop.eup %8751  ;;  %8753 = vpow2.f32 %v4793_v11  ;;  %v3660_v35 = vadd.f32 %v3594_v30, %v3350_v20  ;;  %v4750_v28 = vmul.f32 %v4718_v41, %v10807_v59  ;;  %v4156_v2 = vand.u32 2147483647, %v10866_v48  ;;  %v5063_v10 = vld [vmem:[#allocation2 + $0x8] sm:$0xff] }
 0x2e9   : > { %v4876_v47 = vsub.f32 1.0, %v4844_v24  ;;  %v4589_v18 = vadd.f32 -0.28449672, %v4557_v4  ;;  %v4462_v29 = vadd.f32 -1.4531521, %v4430_v43  ;;  %v4148_v25 = vmul.f32 %v8752_v12, %v10866_v48 }
 0x2ea   : > { %v10911_v9 = vadd.f32 %v10656_v49, %v3660_v35  ;;  %v5929_v19 = vmul.f32 %v13492_v27, %v10892_v45  ;;  %vm4153_vm6 = vweird.f32 %v8752_v12  ;;  %v4158_v24 = vand.u32 2147483648, %v10866_v48 }
 0x2eb   : > { %v4908_v63 = vmul.f32 %v4876_v47, %v3820_v37  ;;  %v4621_v54 = vmul.f32 %v4589_v18, %v10852_v55  ;;  %v4494_v6 = vmul.f32 %v4462_v29, %v10888_v52  ;;  %v4149_v60 = vsub.f32 1.0, %v4148_v25  ;;  %v13493_v37 = vld [vmem:[#allocation47_spill] sm:$0xff] }
 0x2ec   : > { %v10918_v59 = vmul.f32 0.70710677, %v10911_v9  ;;  %v3073_v4 = vadd.f32 %v3009_v38, %v2763_v46  ;;  %8479 = vmatmul.msk.f32.gmra.mxu0 %vm976_vm1, %v5929_v19  ;;  %v4795_v47 = vmul.f32 1.442695, %v4750_v28  ;;  %v5618_v35 = vmul.f32 %v13493_v37, %v5586_v26 }
 0x2ed   : > { %v4940_v11 = vadd.f32 1.0, %v4908_v63  ;;  %v4653_v53 = vadd.f32 0.2548296, %v4621_v54  ;;  %v4526_v20 = vadd.f32 1.4214138, %v4494_v6  ;;  %v4150_v8 = vmul.f32 %v8752_v12, %v4149_v60  ;;  %v10927_v61 = vpop.f32.mrf.mxu1  ;;  %v5137_v54 = vld [vmem:[#allocation2 + $0x51] sm:$0xff] }
 0x2ee   : > { %v8754_v58 = vpop.eup %8753  ;;  %v10924_v18 = vand.u32 2147483647, %v10918_v59  ;;  %v3351_v43 = vadd.f32 %v3287_v34, %v3073_v4  ;;  %vm4152_vm7 = vweird.f32 %v10866_v48  ;;  %v4159_v29 = vor.u32 1.1754944e-38, %v4158_v24  ;;  %8386 = vmatmul.msk.f32.gmra.mxu1 %vm976_vm1, %v5137_v54  ;;  %v10947_v34 = vld [vmem:[#allocation2 + $0x28] sm:$0xff] }
 0x2ef   : > { %v4972_v30 = vmul.f32 %v4940_v11, %v10872_v39  ;;  %v4685_v41 = vmul.f32 %v4653_v53, %v10852_v55  ;;  %v4558_v39 = vmul.f32 %v4526_v20, %v10888_v52  ;;  %v4151_v63 = vadd.f32 %v8752_v12, %v4150_v8  ;;  %v3597_v55 = vpop.f32.mrf.mxu0  ;;  %vm4154_vm8 = vmor %vm4152_vm7, %vm4153_vm6  ;;  %8410 = vmatmul.msk.f32.gmra.mxu2 %vm976_vm1, %v5063_v10 }
 0x2f0   : > { %v4719_v25 = vsub.f32 0.0, %v10855_v50  ;;  %v3888_v28 = vmul.f32 0.3275911, %v10924_v18  ;;  %v3661_v38 = vadd.f32 %v3597_v55, %v3351_v43  ;;  %vm4157_vm9 = vcmp.eq.f32.partialorder %v4156_v2, 8.507059e+37  ;;  %8444 = vmatmul.msk.f32.gmra.mxu3 %vm976_vm1, %v5618_v35  ;;  %v10961_v43 = vld [vmem:[#allocation2 + $0x30] sm:$0xff]  ;;  %v13494_v55 = vld [vmem:[#allocation50_spill] sm:$0xff] }
 0x2f1   : > { %5041 = vst.msk [vmem:[#allocation2 + $0x69] sm:$0xff] %vm976_vm1, %v4972_v30  ;;  %v4845_v46 = vmul.f32 %v8754_v58, %v4685_v41  ;;  %v4590_v11 = vadd.f32 -0.28449672, %v4558_v39  ;;  %v4155_v53 = vsel %vm4154_vm8, %v8752_v12, %v4151_v63  ;;  %8755 = vpow2.f32 %v4795_v47 }
 0x2f2   : > { %v10938_v48 = vsel %vm4157_vm9, %v4159_v29, %v4155_v53  ;;  %v10940_v6 = vadd.f32 1.0, %v3888_v28  ;;  %v10943_v60 = vadd.f32 %v10656_v49, %v3661_v38  ;;  %v3725_v12 = vmul.f32 0.5, %v10748_v15  ;;  %v13495_v28 = vld [vmem:[#allocation22_spill] sm:$0xff] }
 0x2f3   : > { %v4877_v19 = vsub.f32 1.0, %v4845_v46  ;;  %v4622_v24 = vmul.f32 %v4590_v11, %v10888_v52  ;;  %v4431_v4 = vmul.f32 1.0614054, %v10938_v48  ;;  %v4751_v20 = vmul.f32 %v4719_v25, %v10855_v50  ;;  %v5587_v50 = vld [vmem:[#allocation2 + $0x12] sm:$0xff]  ;;  %v3012_v25 = vpop.f32.mrf.mxu2 }
 0x2f4   : > { %8757 = vrcp.f32 %v10940_v6  ;;  %8480 = vmatmul.msk.f32.gmra.mxu0 %vm976_vm1, %v10947_v34  ;;  %v5096_v8 = vmul.f32 %v13492_v27, %v10833_v56  ;;  %vm3790_vm10 = vcmp.ge.f32.partialorder %v10801_v36, 0.0  ;;  %v2764_v54 = vadd.f32 %v10694_v22, %v13494_v55 }
 0x2f5   : > { %v4909_v26 = vmul.f32 %v4877_v19, %v3821_v31  ;;  %v4654_v30 = vadd.f32 0.2548296, %v4622_v24  ;;  %v4463_v41 = vadd.f32 -1.4531521, %v4431_v4  ;;  %v10955_v31 = vmul.f32 0.70710677, %v10943_v60  ;;  %v2723_v46 = vpop.f32.mrf.mxu1 }
 0x2f6   : > { %v4797_v63 = vmul.f32 1.442695, %v4751_v20  ;;  %v5931_v38 = vmul.f32 %v13495_v28, %v10961_v43  ;;  %v13496_v19 = vld [vmem:[#allocation51_spill] sm:$0xff]  ;;  %v3822_v22 = vsel %vm3790_vm10, 1.0, %v13487_v23  ;;  %v3290_v20 = vpop.f32.mrf.mxu3  ;;  %vm4167_vm12 = vweird.f32 %v10940_v6 }
 0x2f7   : > { %v4941_v2 = vadd.f32 1.0, %v4909_v26  ;;  %v4686_v47 = vmul.f32 %v4654_v30, %v10888_v52  ;;  %v4495_v15 = vmul.f32 %v4463_v41, %v10938_v48  ;;  %v8756_v10 = vpop.eup %8755  ;;  %v10964_v35 = vand.u32 2147483647, %v10955_v31  ;;  %8411 = vmatmul.msk.f32.gmra.mxu2 %vm976_vm1, %v5096_v8  ;;  %v3600_v4 = vpop.f32.mrf.mxu0 }
 0x2f8   : > { %8445 = vmatmul.msk.f32.gmra.mxu3 %vm976_vm1, %v5587_v50  ;;  %v10977_v11 = vadd.f32 %v10734_v42, %v13496_v19  ;;  %v3074_v41 = vadd.f32 %v3012_v25, %v2764_v54  ;;  %8759 = vpow2.f32 %v4797_v63  ;;  %v13499_v54 = vld [vmem:[#allocation54_spill] sm:$0xff]  ;;  %vm3791_vm15 = vcmp.ge.f32.partialorder %v10842_v7, 0.0 }
 0x2f9   : > { %v4973_v58 = vmul.f32 %v4941_v2, %v3725_v12  ;;  %v4846_v56 = vmul.f32 %v8756_v10, %v4686_v47  ;;  %v4527_v39 = vadd.f32 1.4214138, %v4495_v15  ;;  %v3889_v29 = vmul.f32 0.3275911, %v10964_v35  ;;  %v5588_v12 = vld [vmem:[#allocation2 + $0x1a] sm:$0xff] }
 0x2fa   : > { %v8758_v52 = vpop.eup %8757  ;;  %v3726_v2 = vmul.f32 0.5, %v10786_v57  ;;  %v4171_v47 = vand.u32 2147483647, %v10940_v6  ;;  %v4173_v15 = vand.u32 2147483648, %v10940_v6  ;;  %v13497_v57 = vld [vmem:[#allocation49_spill] sm:$0xff]  ;;  %v10999_v63 = vadd.f32 %v10809_v44, %v13499_v54 }
 0x2fb   : > { %5042 = vst.msk [vmem:[#allocation2 + $0x71] sm:$0xff] %vm976_vm1, %v4973_v58  ;;  %v4878_v53 = vsub.f32 1.0, %v4846_v56  ;;  %v4559_v26 = vmul.f32 %v4527_v39, %v10938_v48  ;;  %v4163_v24 = vmul.f32 %v8758_v52, %v10940_v6  ;;  %v10985_v30 = vadd.f32 1.0, %v3889_v29  ;;  %v13498_v39 = vld [vmem:[#allocation53_spill] sm:$0xff]  ;;  %v13500_v29 = vld [vmem:[#allocation56_spill] sm:$0xff] }
 0x2fc   : > { %8481 = vmatmul.msk.f32.gmra.mxu0 %vm976_vm1, %v5931_v38  ;;  %v5620_v10 = vmul.f32 %v13497_v57, %v5588_v12  ;;  %vm4168_vm11 = vweird.f32 %v8758_v52  ;;  %v10995_v55 = vadd.f32 %v10771_v62, %v13498_v39  ;;  %v11003_v25 = vadd.f32 %v10846_v1, %v13500_v29  ;;  %v13501_v62 = vld [vmem:[#allocation57_spill] sm:$0xff] }
 0x2fd   : > { %v4910_v42 = vmul.f32 %v4878_v53, %v3822_v22  ;;  %v4591_v8 = vadd.f32 -0.28449672, %v4559_v26  ;;  %v4164_v58 = vsub.f32 1.0, %v4163_v24  ;;  %8761 = vrcp.f32 %v10985_v30  ;;  %v5138_v24 = vld [vmem:[#allocation2 + $0x59] sm:$0xff]  ;;  %vm11013_vm13 = vmor %vm4167_vm12, %vm4168_vm11 }
 0x2fe   : > { %v3352_v38 = vadd.f32 %v3290_v20, %v3074_v41  ;;  %v11011_v44 = vadd.f32 %v10885_v16, %v13501_v62  ;;  %v4174_v1 = vor.u32 1.1754944e-38, %v4173_v15  ;;  %v4720_v22 = vsub.f32 0.0, %v10924_v18  ;;  %8387 = vmatmul.msk.f32.gmra.mxu1 %vm976_vm1, %v5138_v24  ;;  %v13504_v41 = vld [vmem:[#allocation59_spill] sm:$0xff]  ;;  %v2726_v20 = vpop.f32.mrf.mxu1  ;;  %v3293_v54 = vpop.f32.mrf.mxu3 }
 0x2ff   : > { %v4942_v36 = vadd.f32 1.0, %v4910_v42  ;;  %v4623_v50 = vmul.f32 %v4591_v8, %v10938_v48  ;;  %v4165_v56 = vmul.f32 %v8758_v52, %v4164_v58  ;;  %8412 = vmatmul.msk.f32.gmra.mxu2 %vm976_vm1, %v10879_v3  ;;  %v11021_v6 = vadd.f32 %v10927_v61, %v13504_v41  ;;  %v11027_v8 = vld [vmem:[#allocation2 + $0x38] sm:$0xff] }
 0x300   : > { %8446 = vmatmul.msk.f32.gmra.mxu3 %vm976_vm1, %v5620_v10  ;;  %v3662_v3 = vadd.f32 %v3600_v4, %v3352_v38  ;;  %vm4172_vm14 = vcmp.eq.f32.partialorder %v4171_v47, 8.507059e+37  ;;  %v13505_v4 = vld [vmem:[#allocation60_spill] sm:$0xff]  ;;  %v5098_v29 = vmul.f32 %v13495_v28, %v10892_v45  ;;  %v3823_v38 = vsel %vm3791_vm15, 1.0, %v13487_v23 }
 0x301   : > { %v4974_v19 = vmul.f32 %v4942_v36, %v3726_v2  ;;  %v4655_v53 = vadd.f32 0.2548296, %v4623_v50  ;;  %v4166_v26 = vadd.f32 %v8758_v52, %v4165_v56  ;;  %v8760_v2 = vpop.eup %8759  ;;  %v11030_v15 = vadd.f32 %v2723_v46, %v13505_v4  ;;  %v3015_v36 = vpop.f32.mrf.mxu2 }
 0x302   : > { %v11036_v61 = vadd.f32 %v10656_v49, %v3662_v3  ;;  %v3603_v46 = vpop.f32.mrf.mxu0  ;;  %v4752_v56 = vmul.f32 %v4720_v22, %v10924_v18  ;;  %v3075_v39 = vadd.f32 %v3015_v36, %v10977_v11  ;;  %v4186_v24 = vand.u32 2147483647, %v10985_v30  ;;  %v5589_v11 = vld [vmem:[#allocation2 + $0x22] sm:$0xff] }
 0x303   : > { %5043 = vst.msk [vmem:[#allocation2 + $0x79] sm:$0xff] %vm976_vm1, %v4974_v19  ;;  %v4687_v16 = vmul.f32 %v4655_v53, %v10938_v48  ;;  %v4170_v42 = vsel %vm11013_vm13, %v8758_v52, %v4166_v26  ;;  %v8762_v58 = vpop.eup %8761  ;;  %v3727_v48 = vmul.f32 0.5, %v10837_v33  ;;  %v11051_v26 = vld [vmem:[#allocation2 + $0x40] sm:$0xff]  ;;  %v4188_v18 = vand.u32 2147483648, %v10985_v30 }
 0x304   : > { %v11033_v10 = vsel %vm4172_vm14, %v4174_v1, %v4170_v42  ;;  %8482 = vmatmul.msk.f32.gmra.mxu0 %vm976_vm1, %v11027_v8  ;;  %v4178_v50 = vmul.f32 %v8762_v58, %v10985_v30  ;;  %v11045_v7 = vmul.f32 0.70710677, %v11036_v61  ;;  %v3353_v12 = vadd.f32 %v3293_v54, %v3075_v39  ;;  %v5139_v3 = vld [vmem:[#allocation2 + $0x61] sm:$0xff]  ;;  %v13506_v42 = vld [vmem:[#allocation28_spill] sm:$0xff] }
 0x305   : > { %v4847_v52 = vmul.f32 %v8760_v2, %v4687_v16  ;;  %v4432_v47 = vmul.f32 1.0614054, %v11033_v10  ;;  %vm4183_vm2 = vweird.f32 %v8762_v58  ;;  %v4799_v2 = vmul.f32 1.442695, %v4752_v56 }
 0x306   : > { %v4179_v53 = vsub.f32 1.0, %v4178_v50  ;;  %v11056_v62 = vand.u32 2147483647, %v11045_v7  ;;  %v3663_v16 = vadd.f32 %v3603_v46, %v3353_v12  ;;  %8388 = vmatmul.msk.f32.gmra.mxu1 %vm976_vm1, %v5139_v3  ;;  %v5933_v4 = vmul.f32 %v13506_v42, %v11051_v26  ;;  %v5590_v46 = vld [vmem:[#allocation2 + $0x2a] sm:$0xff]  ;;  %v13509_v3 = vld [vmem:[#allocation66_spill] sm:$0xff] }
 0x307   : > { %v4879_v33 = vsub.f32 1.0, %v4847_v52  ;;  %v4464_v19 = vadd.f32 -1.4531521, %v4432_v47  ;;  %8413 = vmatmul.msk.f32.gmra.mxu2 %vm976_vm1, %v5098_v29  ;;  %vm4182_vm3 = vweird.f32 %v10985_v30  ;;  %vm4187_vm5 = vcmp.eq.f32.partialorder %v4186_v24, 8.507059e+37  ;;  %v2729_v29 = vpop.f32.mrf.mxu1  ;;  %v13507_v30 = vld [vmem:[#allocation62_spill] sm:$0xff] }
 0x308   : > { %v4180_v22 = vmul.f32 %v8762_v58, %v4179_v53  ;;  %8447 = vmatmul.msk.f32.gmra.mxu3 %vm976_vm1, %v5589_v11  ;;  %v3890_v41 = vmul.f32 0.3275911, %v11056_v62  ;;  %vm4184_vm4 = vmor %vm4182_vm3, %vm4183_vm2  ;;  %v4189_v50 = vor.u32 1.1754944e-38, %v4188_v18  ;;  %v11069_v56 = vadd.f32 %v10656_v49, %v3663_v16  ;;  %v3296_v49 = vpop.f32.mrf.mxu3 }
 0x309   : > { %v4911_v1 = vmul.f32 %v4879_v33, %v3823_v38  ;;  %v4496_v45 = vmul.f32 %v4464_v19, %v11033_v10  ;;  %v3018_v54 = vpop.f32.mrf.mxu2  ;;  %v11075_v12 = vadd.f32 %v2726_v20, %v13507_v30  ;;  %v4721_v18 = vsub.f32 0.0, %v10964_v35 }
 0x30a   : > { %v4181_v47 = vadd.f32 %v8762_v58, %v4180_v22  ;;  %v11066_v39 = vadd.f32 1.0, %v3890_v41  ;;  %v3076_v53 = vadd.f32 %v3018_v54, %v10995_v55  ;;  %v5592_v55 = vld [vmem:[#allocation2 + $0x3a] sm:$0xff]  ;;  %v11085_v20 = vadd.f32 %v2729_v29, %v13509_v3 }
 0x30b   : > { %v4943_v36 = vadd.f32 1.0, %v4911_v1  ;;  %v4528_v52 = vadd.f32 1.4214138, %v4496_v45  ;;  %v3606_v1 = vpop.f32.mrf.mxu0  ;;  %v11088_v41 = vmul.f32 0.70710677, %v11069_v56  ;;  %v5100_v16 = vmul.f32 %v13506_v42, %v10961_v43 }
 0x30c   : > { %8483 = vmatmul.msk.f32.gmra.mxu0 %vm976_vm1, %v5933_v4  ;;  %v4185_v19 = vsel %vm4184_vm4, %v8762_v58, %v4181_v47  ;;  %8763 = vrcp.f32 %v11066_v39  ;;  %v3354_v45 = vadd.f32 %v3296_v49, %v3076_v53  ;;  %v13508_v58 = vld [vmem:[#allocation52_spill] sm:$0xff]  ;;  %vm3792_vm6 = vcmp.ge.f32.partialorder %v10918_v59, 0.0 }
 0x30d   : > { %v4975_v38 = vmul.f32 %v4943_v36, %v3727_v48  ;;  %v4560_v33 = vmul.f32 %v4528_v52, %v11033_v10  ;;  %v11077_v24 = vsel %vm4187_vm5, %v4189_v50, %v4185_v19  ;;  %v5622_v22 = vmul.f32 %v13508_v58, %v5590_v46  ;;  %v5140_v47 = vld [vmem:[#allocation2 + $0x69] sm:$0xff] }
 0x30e   : > { %v4433_v48 = vmul.f32 1.0614054, %v11077_v24  ;;  %8765 = vpow2.f32 %v4799_v2  ;;  %v3664_v52 = vadd.f32 %v3606_v1, %v3354_v45  ;;  %vm3793_vm7 = vcmp.ge.f32.partialorder %v10955_v31, 0.0  ;;  %8389 = vmatmul.msk.f32.gmra.mxu1 %vm976_vm1, %v5140_v47 }
 0x30f   : > { %5044 = vst.msk [vmem:[#allocation2 + $0x81] sm:$0xff] %vm976_vm1, %v4975_v38  ;;  %v4592_v11 = vadd.f32 -0.28449672, %v4560_v33  ;;  %8414 = vmatmul.msk.f32.gmra.mxu2 %vm976_vm1, %v10947_v34  ;;  %v4753_v2 = vmul.f32 %v4721_v18, %v10964_v35  ;;  %v11100_v50 = vand.u32 2147483647, %v11088_v41  ;;  %v13510_v34 = vld [vmem:[#allocation55_spill] sm:$0xff]  ;;  %vm4197_vm9 = vweird.f32 %v11066_v39 }
 0x310   : > { %v4465_v36 = vadd.f32 -1.4531521, %v4433_v48  ;;  %8448 = vmatmul.msk.f32.gmra.mxu3 %vm976_vm1, %v5622_v22  ;;  %v11104_v43 = vmul.f32 %v13510_v34, %v5592_v55  ;;  %v4722_v29 = vsub.f32 0.0, %v11056_v62  ;;  %v11111_v38 = vld [vmem:[%s13224_s2] ss:$0 sm:$0xff]  ;;  %v11116_v33 = vld [vmem:[#allocation2 + $0x48] sm:$0xff] }
 0x311   : > { %v4624_v4 = vmul.f32 %v4592_v11, %v11033_v10  ;;  %v11114_v35 = vadd.f32 %v11111_v38, %v3664_v52  ;;  %v3728_v53 = vmul.f32 0.5, %v10911_v9  ;;  %v3824_v30 = vsel %vm3792_vm6, 1.0, %v13487_v23  ;;  %v3021_v49 = vpop.f32.mrf.mxu2  ;;  %v13511_v11 = vld [vmem:[#allocation34_spill] sm:$0xff] }
 0x312   : > { %v4497_v46 = vmul.f32 %v4465_v36, %v11077_v24  ;;  %v8764_v19 = vpop.eup %8763  ;;  %v3891_v18 = vmul.f32 0.3275911, %v11100_v50  ;;  %v11127_v48 = vmul.f32 %v13511_v11, %v11051_v26  ;;  %v11131_v45 = vmul.f32 0.5, %v10943_v60  ;;  %v3299_v36 = vpop.f32.mrf.mxu3 }
 0x313   : > { %v4656_v54 = vadd.f32 0.2548296, %v4624_v4  ;;  %v4193_v22 = vmul.f32 %v8764_v19, %v11066_v39  ;;  %v11137_v55 = vsel %vm3793_vm7, 1.0, %v13487_v23  ;;  %v4801_v3 = vmul.f32 1.442695, %v4753_v2 }
 0x314   : > { %8484 = vmatmul.msk.f32.gmra.mxu0 %vm976_vm1, %v11116_v33  ;;  %v4529_v9 = vadd.f32 1.4214138, %v4497_v46  ;;  %v8766_v59 = vpop.eup %8765  ;;  %v11139_v4 = vadd.f32 1.0, %v3891_v18  ;;  %v11142_v26 = vmul.f32 0.70710677, %v11114_v35  ;;  %v4754_v47 = vmul.f32 %v4722_v29, %v11056_v62  ;;  %v5594_v46 = vld [vmem:[#allocation2 + $0x4a] sm:$0xff] }
 0x315   : > { %v4688_v1 = vmul.f32 %v4656_v54, %v11033_v10  ;;  %v4194_v52 = vsub.f32 1.0, %v4193_v22  ;;  %v5903_v54 = vld [vmem:[#allocation2 + $0x50] sm:$0xff]  ;;  %v4201_v34 = vand.u32 2147483647, %v11066_v39  ;;  %v4203_v31 = vand.u32 2147483648, %v11066_v39 }
 0x316   : > { %v4561_v60 = vmul.f32 %v4529_v9, %v11077_v24  ;;  %8767 = vrcp.f32 %v11139_v4  ;;  %v3077_v2 = vadd.f32 %v3021_v49, %v10999_v63  ;;  %v5591_v18 = vld [vmem:[#allocation2 + $0x32] sm:$0xff]  ;;  %vm4198_vm8 = vweird.f32 %v8764_v19  ;;  %v3609_v9 = vpop.f32.mrf.mxu0 }
 0x317   : > { %v4848_v10 = vmul.f32 %v8766_v59, %v4688_v1  ;;  %8415 = vmatmul.msk.f32.gmra.mxu2 %vm976_vm1, %v5100_v16  ;;  %v4195_v59 = vmul.f32 %v8764_v19, %v4194_v52  ;;  %v5141_v22 = vld [vmem:[#allocation2 + $0x71] sm:$0xff]  ;;  %8769 = vpow2.f32 %v4801_v3  ;;  %v11153_v62 = vand.u32 2147483647, %v11142_v26  ;;  %v13512_v63 = vld [vmem:[#allocation58_spill] sm:$0xff]  ;;  %vm4199_vm10 = vmor %vm4197_vm9, %vm4198_vm8 }
 0x318   : > { %v4593_v1 = vadd.f32 -0.28449672, %v4561_v60  ;;  %8449 = vmatmul.msk.f32.gmra.mxu3 %vm976_vm1, %v5591_v18  ;;  %8390 = vmatmul.msk.f32.gmra.mxu1 %vm976_vm1, %v5141_v22  ;;  %v5935_v29 = vmul.f32 %v13511_v11, %v5903_v54  ;;  %v11158_v49 = vmul.f32 %v13512_v63, %v5594_v46  ;;  %vm4202_vm11 = vcmp.eq.f32.partialorder %v4201_v34, 8.507059e+37  ;;  %v11164_v63 = vld [vmem:[#allocation2 + $0x60] sm:$0xff] }
 0x319   : > { %v4880_v42 = vsub.f32 1.0, %v4848_v10  ;;  %v4196_v60 = vadd.f32 %v8764_v19, %v4195_v59  ;;  %v4204_v52 = vor.u32 1.1754944e-38, %v4203_v31  ;;  %v3892_v3 = vmul.f32 0.3275911, %v11153_v62  ;;  %v3024_v58 = vpop.f32.mrf.mxu2 }
 0x31a   : > { %v4625_v10 = vmul.f32 %v4593_v1, %v11077_v24  ;;  %v3355_v18 = vadd.f32 %v3299_v36, %v3077_v2  ;;  %v4803_v46 = vmul.f32 1.442695, %v4754_v47  ;;  %v3078_v34 = vadd.f32 %v3024_v58, %v11003_v25 }
 0x31b   : > { %v4912_v16 = vmul.f32 %v4880_v42, %v3824_v30  ;;  %v4200_v28 = vsel %vm4199_vm10, %v8764_v19, %v4196_v60  ;;  %v11168_v1 = vadd.f32 1.0, %v3892_v3  ;;  %v4723_v47 = vsub.f32 0.0, %v11100_v50 }
 0x31c   : > { %8485 = vmatmul.msk.f32.gmra.mxu0 %vm976_vm1, %v5935_v29  ;;  %v4657_v11 = vadd.f32 0.2548296, %v4625_v10  ;;  %v8768_v42 = vpop.eup %8767  ;;  %v11166_v30 = vsel %vm4202_vm11, %v4204_v52, %v4200_v28  ;;  %v3665_v39 = vadd.f32 %v3609_v9, %v3355_v18  ;;  %v3302_v29 = vpop.f32.mrf.mxu3  ;;  %v13513_v28 = vld [vmem:[#allocation39_spill] sm:$0xff]  ;;  %vm3794_vm12 = vcmp.ge.f32.partialorder %v11045_v7, 0.0 }
 0x31d   : > { %v4944_v22 = vadd.f32 1.0, %v4912_v16  ;;  %v4434_v2 = vmul.f32 1.0614054, %v11166_v30  ;;  %v4208_v59 = vmul.f32 %v8768_v42, %v11139_v4  ;;  %v8770_v19 = vpop.eup %8769  ;;  %8771 = vrcp.f32 %v11168_v1 }
 0x31e   : > { %v4689_v36 = vmul.f32 %v4657_v11, %v11077_v24  ;;  %v11180_v9 = vmul.f32 %v13513_v28, %v11164_v63  ;;  %v11183_v25 = vmul.f32 %v13513_v28, %v5903_v54  ;;  %8773 = vpow2.f32 %v4803_v46  ;;  %v5142_v11 = vld [vmem:[#allocation2 + $0x79] sm:$0xff]  ;;  %v3612_v18 = vpop.f32.mrf.mxu0 }
 0x31f   : > { %v4976_v31 = vmul.f32 %v4944_v22, %v3728_v53  ;;  %8416 = vmatmul.msk.f32.gmra.mxu2 %vm976_vm1, %v11027_v8  ;;  %v4466_v58 = vadd.f32 -1.4531521, %v4434_v2  ;;  %v4209_v53 = vsub.f32 1.0, %v4208_v59  ;;  %v4216_v8 = vand.u32 2147483647, %v11139_v4  ;;  %v11196_v22 = vld [vmem:[#allocation2 + $0x58] sm:$0xff] }
 0x320   : > { %v4849_v24 = vmul.f32 %v8770_v19, %v4689_v36  ;;  %8450 = vmatmul.msk.f32.gmra.mxu3 %vm976_vm1, %v11104_v43  ;;  %v4218_v16 = vand.u32 2147483648, %v11139_v4  ;;  %v11192_v10 = vadd.f32 %v11111_v38, %v3665_v39  ;;  %v3356_v54 = vadd.f32 %v3302_v29, %v3078_v34  ;;  %8391 = vmatmul.msk.f32.gmra.mxu1 %vm976_vm1, %v5142_v11  ;;  %v11207_v29 = vpop.f32.mrf.mxu1 }
 0x321   : > { %5045 = vst.msk [vmem:[#allocation2 + $0x89] sm:$0xff] %vm976_vm1, %v4976_v31  ;;  %v4498_v52 = vmul.f32 %v4466_v58, %v11166_v30  ;;  %v4210_v3 = vmul.f32 %v8768_v42, %v4209_v53  ;;  %vm4213_vm13 = vweird.f32 %v8768_v42  ;;  %v4755_v43 = vmul.f32 %v4723_v47, %v11100_v50 }
 0x322   : > { %v4881_v60 = vsub.f32 1.0, %v4849_v24  ;;  %v4724_v46 = vsub.f32 0.0, %v11153_v62  ;;  %v11201_v31 = vmul.f32 0.70710677, %v11192_v10  ;;  %v3666_v39 = vadd.f32 %v3612_v18, %v3356_v54 }
 0x323   : > { %v4530_v36 = vadd.f32 1.4214138, %v4498_v52  ;;  %v4211_v2 = vadd.f32 %v8768_v42, %v4210_v3  ;;  %vm4212_vm14 = vweird.f32 %v11139_v4  ;;  %v8772_v59 = vpop.eup %8771  ;;  %vm4217_vm2 = vcmp.eq.f32.partialorder %v4216_v8, 8.507059e+37  ;;  %v3027_v4 = vpop.f32.mrf.mxu2  ;;  %v5593_v52 = vld [vmem:[#allocation2 + $0x42] sm:$0xff] }
 0x324   : > { %8486 = vmatmul.msk.f32.gmra.mxu0 %vm976_vm1, %v11196_v22  ;;  %v4913_v34 = vmul.f32 %v4881_v60, %v11137_v55  ;;  %vm4214_vm15 = vmor %vm4212_vm14, %vm4213_vm13  ;;  %v4219_v50 = vor.u32 1.1754944e-38, %v4218_v16  ;;  %v11210_v19 = vand.u32 2147483647, %v11201_v31  ;;  %v11213_v47 = vadd.f32 %v11111_v38, %v3666_v39  ;;  %v8774_v24 = vpop.eup %8773 }
 0x325   : > { %v4562_v55 = vmul.f32 %v4530_v36, %v11166_v30  ;;  %v4215_v53 = vsel %vm4214_vm15, %v8768_v42, %v4211_v2  ;;  %v4223_v11 = vmul.f32 %v8772_v59, %v11168_v1  ;;  %v4231_v60 = vand.u32 2147483647, %v11168_v1 }
 0x326   : > { %v4945_v58 = vadd.f32 1.0, %v4913_v34  ;;  %v11217_v54 = vsel %vm4217_vm2, %v4219_v50, %v4215_v53  ;;  %v4756_v8 = vmul.f32 %v4724_v46, %v11153_v62  ;;  %v3893_v16 = vmul.f32 0.3275911, %v11210_v19  ;;  %v5143_v34 = vld [vmem:[#allocation2 + $0x81] sm:$0xff] }
 0x327   : > { %8417 = vmatmul.msk.f32.gmra.mxu2 %vm976_vm1, %v11127_v48  ;;  %v4594_v18 = vadd.f32 -0.28449672, %v4562_v55  ;;  %v4435_v42 = vmul.f32 1.0614054, %v11217_v54  ;;  %v4224_v39 = vsub.f32 1.0, %v4223_v11  ;;  %v4233_v36 = vand.u32 2147483648, %v11168_v1 }
 0x328   : > { %v4977_v3 = vmul.f32 %v4945_v58, %v11131_v45  ;;  %8451 = vmatmul.msk.f32.gmra.mxu3 %vm976_vm1, %v5593_v52  ;;  %v11228_v2 = vadd.f32 1.0, %v3893_v16  ;;  %v11231_v62 = vmul.f32 0.70710677, %v11213_v47  ;;  %v3079_v46 = vadd.f32 %v3027_v4, %v11011_v44  ;;  %8392 = vmatmul.msk.f32.gmra.mxu1 %vm976_vm1, %v5143_v34  ;;  %v3305_v58 = vpop.f32.mrf.mxu3  ;;  %v5596_v52 = vld [vmem:[#allocation2 + $0x5a] sm:$0xff] }
 0x329   : > { %v4626_v48 = vmul.f32 %v4594_v18, %v11166_v30  ;;  %v4467_v45 = vadd.f32 -1.4531521, %v4435_v42  ;;  %v4225_v50 = vmul.f32 %v8772_v59, %v4224_v39  ;;  %vm4228_vm3 = vweird.f32 %v8772_v59 }
 0x32a   : > { %5046 = vst.msk [vmem:[#allocation2 + $0x91] sm:$0xff] %vm976_vm1, %v4977_v3  ;;  %v11238_v55 = vmul.f32 0.5, %v11036_v61  ;;  %v3826_v53 = vsel %vm3794_vm12, 1.0, %v13487_v23  ;;  %v4805_v11 = vmul.f32 1.442695, %v4755_v43  ;;  %8775 = vrcp.f32 %v11228_v2 }
 0x32b   : > { %v4658_v44 = vadd.f32 0.2548296, %v4626_v48  ;;  %v4499_v4 = vmul.f32 %v4467_v45, %v11217_v54  ;;  %v4226_v16 = vadd.f32 %v8772_v59, %v4225_v50  ;;  %vm4227_vm4 = vweird.f32 %v11168_v1  ;;  %v3030_v48 = vpop.f32.mrf.mxu2  ;;  %v5144_v45 = vld [vmem:[#allocation2 + $0x89] sm:$0xff] }
 0x32c   : > { %8487 = vmatmul.msk.f32.gmra.mxu0 %vm976_vm1, %v11180_v9  ;;  %vm4229_vm5 = vmor %vm4227_vm4, %vm4228_vm3  ;;  %v4234_v61 = vor.u32 1.1754944e-38, %v4233_v36  ;;  %v4807_v3 = vmul.f32 1.442695, %v4756_v8  ;;  %v11249_v18 = vand.u32 2147483647, %v11231_v62  ;;  %v3357_v7 = vadd.f32 %v3305_v58, %v3079_v46  ;;  %v11252_v9 = vpop.f32.mrf.mxu1  ;;  %v13514_v8 = vld [vmem:[#allocation61_spill] sm:$0xff] }
 0x32d   : > { %v4690_v43 = vmul.f32 %v4658_v44, %v11166_v30  ;;  %v4531_v42 = vadd.f32 1.4214138, %v4499_v4  ;;  %v4230_v39 = vsel %vm4229_vm5, %v8772_v59, %v4226_v16  ;;  %vm4232_vm6 = vcmp.eq.f32.partialorder %v4231_v60, 8.507059e+37  ;;  %v3615_v60 = vpop.f32.mrf.mxu0 }
 0x32e   : > { %vm3795_vm7 = vcmp.ge.f32.partialorder %v11088_v41, 0.0  ;;  %v11255_v34 = vsel %vm4232_vm6, %v4234_v61, %v4230_v39  ;;  %v3894_v1 = vmul.f32 0.3275911, %v11249_v18  ;;  %v11261_v36 = vmul.f32 %v13514_v8, %v5596_v52  ;;  %v11274_v52 = vld [vmem:[#allocation2 + $0x68] sm:$0xff] }
 0x32f   : > { %8418 = vmatmul.msk.f32.gmra.mxu2 %vm976_vm1, %v11116_v33  ;;  %v4850_v46 = vmul.f32 %v8774_v24, %v4690_v43  ;;  %v4563_v30 = vmul.f32 %v4531_v42, %v11217_v54  ;;  %8777 = vpow2.f32 %v4805_v11  ;;  %v4436_v59 = vmul.f32 1.0614054, %v11255_v34 }
 0x330   : > { %8452 = vmatmul.msk.f32.gmra.mxu3 %vm976_vm1, %v11158_v49  ;;  %v8776_v50 = vpop.eup %8775  ;;  %v11268_v58 = vmul.f32 0.5, %v11069_v56  ;;  %8779 = vpow2.f32 %v4807_v3  ;;  %v11270_v33 = vadd.f32 1.0, %v3894_v1  ;;  %v3667_v44 = vadd.f32 %v3615_v60, %v3357_v7  ;;  %8393 = vmatmul.msk.f32.gmra.mxu1 %vm976_vm1, %v5144_v45  ;;  %v3308_v39 = vpop.f32.mrf.mxu3  ;;  %v11286_v1 = vld [vmem:[#allocation2 + $0x70] sm:$0xff] }
 0x331   : > { %v4882_v24 = vsub.f32 1.0, %v4850_v46  ;;  %v4595_v11 = vadd.f32 -0.28449672, %v4563_v30  ;;  %v4468_v4 = vadd.f32 -1.4531521, %v4436_v59  ;;  %v4238_v16 = vmul.f32 %v8776_v50, %v11228_v2 }
 0x332   : > { %v3827_v49 = vsel %vm3795_vm7, 1.0, %v13487_v23  ;;  %v4246_v56 = vand.u32 2147483647, %v11228_v2  ;;  %v4725_v61 = vsub.f32 0.0, %v11210_v19  ;;  %8781 = vrcp.f32 %v11270_v33 }
 0x333   : > { %v4914_v3 = vmul.f32 %v4882_v24, %v3826_v53  ;;  %v4627_v7 = vmul.f32 %v4595_v11, %v11217_v54  ;;  %v4500_v43 = vmul.f32 %v4468_v4, %v11255_v34  ;;  %v4239_v42 = vsub.f32 1.0, %v4238_v16 }
 0x334   : > { %8488 = vmatmul.msk.f32.gmra.mxu0 %vm976_vm1, %v11274_v52  ;;  %vm4243_vm8 = vweird.f32 %v8776_v50  ;;  %v4248_v41 = vand.u32 2147483648, %v11228_v2  ;;  %v11290_v46 = vadd.f32 %v11111_v38, %v3667_v44  ;;  %v3080_v30 = vadd.f32 %v3030_v48, %v11021_v6  ;;  %v5595_v44 = vld [vmem:[#allocation2 + $0x52] sm:$0xff]  ;;  %v13515_v6 = vld [vmem:[#allocation43_spill] sm:$0xff] }
 0x335   : > { %v8778_v59 = vpop.eup %8777  ;;  %v4946_v60 = vadd.f32 1.0, %v4914_v3  ;;  %v4659_v45 = vadd.f32 0.2548296, %v4627_v7  ;;  %v4532_v53 = vadd.f32 1.4214138, %v4500_v43  ;;  %v4240_v24 = vmul.f32 %v8776_v50, %v4239_v42 }
 0x336   : > { %v11293_v11 = vpop.eup %8779  ;;  %vm4242_vm9 = vweird.f32 %v11228_v2  ;;  %v4757_v4 = vmul.f32 %v4725_v61, %v11210_v19  ;;  %v11298_v16 = vmul.f32 0.70710677, %v11290_v46  ;;  %v5939_v48 = vmul.f32 %v13515_v6, %v11286_v1  ;;  %v5145_v2 = vld [vmem:[#allocation2 + $0x91] sm:$0xff]  ;;  %v11308_v61 = vpop.f32.mrf.mxu1 }
 0x337   : > { %8419 = vmatmul.msk.f32.gmra.mxu2 %vm976_vm1, %v11183_v25  ;;  %v4978_v3 = vmul.f32 %v4946_v60, %v11238_v55  ;;  %v4691_v7 = vmul.f32 %v4659_v45, %v11217_v54  ;;  %v4564_v43 = vmul.f32 %v4532_v53, %v11255_v34  ;;  %v4241_v42 = vadd.f32 %v8776_v50, %v4240_v24  ;;  %vm4244_vm10 = vmor %vm4242_vm9, %vm4243_vm8  ;;  %v3618_v53 = vpop.f32.mrf.mxu0  ;;  %v3033_v24 = vpop.f32.mrf.mxu2 }
 0x338   : > { %8453 = vmatmul.msk.f32.gmra.mxu3 %vm976_vm1, %v5595_v44  ;;  %v8782_v19 = vpop.eup %8781  ;;  %vm4247_vm11 = vcmp.eq.f32.partialorder %v4246_v56, 8.507059e+37  ;;  %v4249_v25 = vor.u32 1.1754944e-38, %v4248_v41  ;;  %v11312_v8 = vand.u32 2147483647, %v11298_v16  ;;  %v3358_v28 = vadd.f32 %v3308_v39, %v3080_v30  ;;  %8394 = vmatmul.msk.f32.gmra.mxu1 %vm976_vm1, %v5145_v2  ;;  %v3311_v27 = vpop.f32.mrf.mxu3 }
 0x339   : > { %5047 = vst.msk [vmem:[#allocation2 + $0x99] sm:$0xff] %vm976_vm1, %v4978_v3  ;;  %v4851_v54 = vmul.f32 %v8778_v59, %v4691_v7  ;;  %vm3796_vm12 = vcmp.ge.f32.partialorder %v11142_v26, 0.0  ;;  %v4596_v55 = vadd.f32 -0.28449672, %v4564_v43  ;;  %v4245_v60 = vsel %vm4244_vm10, %v8776_v50, %v4241_v42 }
 0x33a   : > { %v4253_v45 = vmul.f32 %v8782_v19, %v11270_v33  ;;  %v11318_v44 = vsel %vm4247_vm11, %v4249_v25, %v4245_v60  ;;  %v4261_v56 = vand.u32 2147483647, %v11270_v33  ;;  %v4263_v41 = vand.u32 2147483648, %v11270_v33 }
 0x33b   : > { %v3895_v39 = vmul.f32 0.3275911, %v11312_v8  ;;  %v4883_v30 = vsub.f32 1.0, %v4851_v54  ;;  %v4628_v59 = vmul.f32 %v4596_v55, %v11255_v34  ;;  %v4437_v3 = vmul.f32 1.0614054, %v11318_v44 }
 0x33c   : > { %8489 = vmatmul.msk.f32.gmra.mxu0 %vm976_vm1, %v5939_v48  ;;  %v4254_v50 = vsub.f32 1.0, %v4253_v45  ;;  %vm4258_vm13 = vweird.f32 %v8782_v19  ;;  %v3668_v43 = vadd.f32 %v3618_v53, %v3358_v28  ;;  %v3081_v42 = vadd.f32 %v3033_v24, %v11030_v15 }
 0x33d   : > { %v11326_v7 = vadd.f32 1.0, %v3895_v39  ;;  %v4915_v2 = vmul.f32 %v4883_v30, %v3827_v49  ;;  %v4660_v25 = vadd.f32 0.2548296, %v4628_v59  ;;  %v4469_v60 = vadd.f32 -1.4531521, %v4437_v3 }
 0x33e   : > { %v4255_v57 = vmul.f32 %v8782_v19, %v4254_v50  ;;  %v4809_v37 = vmul.f32 1.442695, %v4757_v4  ;;  %vm4257_vm14 = vweird.f32 %v11270_v33  ;;  %v4726_v48 = vsub.f32 0.0, %v11249_v18 }
 0x33f   : > { %8783 = vrcp.f32 %v11326_v7  ;;  %8420 = vmatmul.msk.f32.gmra.mxu2 %vm976_vm1, %v11196_v22  ;;  %v4947_v54 = vadd.f32 1.0, %v4915_v2  ;;  %v4692_v28 = vmul.f32 %v4660_v25, %v11255_v34  ;;  %v4501_v15 = vmul.f32 %v4469_v60, %v11318_v44  ;;  %vm4259_vm15 = vmor %vm4257_vm14, %vm4258_vm13  ;;  %v3621_v59 = vpop.f32.mrf.mxu0  ;;  %v5597_v60 = vld [vmem:[#allocation2 + $0x62] sm:$0xff] }
 0x340   : > { %v4256_v49 = vadd.f32 %v8782_v19, %v4255_v57  ;;  %8454 = vmatmul.msk.f32.gmra.mxu3 %vm976_vm1, %v11261_v36  ;;  %vm4262_vm2 = vcmp.eq.f32.partialorder %v4261_v56, 8.507059e+37  ;;  %v4264_v33 = vor.u32 1.1754944e-38, %v4263_v41  ;;  %v11340_v4 = vadd.f32 %v11111_v38, %v3668_v43  ;;  %v5146_v45 = vld [vmem:[#allocation2 + $0x99] sm:$0xff]  ;;  %v11347_v36 = vpop.f32.mrf.mxu1 }
 0x341   : > { %v3359_v55 = vadd.f32 %v3311_v27, %v3081_v42  ;;  %v4979_v22 = vmul.f32 %v4947_v54, %v11268_v58  ;;  %v4852_v53 = vmul.f32 %v11293_v11, %v4692_v28  ;;  %v4533_v34 = vadd.f32 1.4214138, %v4501_v15  ;;  %8395 = vmatmul.msk.f32.gmra.mxu1 %vm976_vm1, %v5146_v45  ;;  %v11345_v57 = vld [vmem:[#allocation2 + $0x78] sm:$0xff] }
 0x342   : > { %v4260_v24 = vsel %vm4259_vm15, %v8782_v19, %v4256_v49  ;;  %v4758_v56 = vmul.f32 %v4726_v48, %v11249_v18  ;;  %v11353_v41 = vmul.f32 0.70710677, %v11340_v4  ;;  %v5106_v27 = vmul.f32 %v13515_v6, %v11164_v63  ;;  %v3036_v18 = vpop.f32.mrf.mxu2 }
 0x343   : > { %v11349_v39 = vsel %vm4262_vm2, %v4264_v33, %v4260_v24  ;;  %5048 = vst.msk [vmem:[#allocation2 + $0xa1] sm:$0xff] %vm976_vm1, %v4979_v22  ;;  %v3732_v58 = vmul.f32 0.5, %v11114_v35  ;;  %v4884_v11 = vsub.f32 1.0, %v4852_v53  ;;  %v4565_v19 = vmul.f32 %v4533_v34, %v11318_v44 }
 0x344   : > { %8490 = vmatmul.msk.f32.gmra.mxu0 %vm976_vm1, %v11345_v57  ;;  %v4438_v30 = vmul.f32 1.0614054, %v11349_v39  ;;  %v3828_v50 = vsel %vm3796_vm12, 1.0, %v13487_v23  ;;  %8785 = vpow2.f32 %v4809_v37  ;;  %v11367_v63 = vand.u32 2147483647, %v11353_v41 }
 0x345   : > { %v8784_v3 = vpop.eup %8783  ;;  %v3669_v43 = vadd.f32 %v3621_v59, %v3359_v55  ;;  %v4916_v42 = vmul.f32 %v4884_v11, %v3828_v50  ;;  %v4597_v2 = vadd.f32 -0.28449672, %v4565_v19  ;;  %v4811_v48 = vmul.f32 1.442695, %v4758_v56  ;;  %v3314_v55 = vpop.f32.mrf.mxu3  ;;  %v13516_v11 = vld [vmem:[#allocation63_spill] sm:$0xff] }
 0x346   : > { %v4470_v35 = vadd.f32 -1.4531521, %v4438_v30  ;;  %v4268_v25 = vmul.f32 %v8784_v3, %v11326_v7  ;;  %v4276_v54 = vand.u32 2147483647, %v11326_v7  ;;  %v3896_v28 = vmul.f32 0.3275911, %v11367_v63 }
 0x347   : > { %v3082_v15 = vadd.f32 %v3036_v18, %v11075_v12  ;;  %8421 = vmatmul.msk.f32.gmra.mxu2 %vm976_vm1, %v5106_v27  ;;  %v4948_v37 = vadd.f32 1.0, %v4916_v42  ;;  %v4629_v26 = vmul.f32 %v4597_v2, %v11318_v44  ;;  %vm4273_vm3 = vweird.f32 %v8784_v3  ;;  %v13517_v30 = vld [vmem:[#allocation67_spill] sm:$0xff] }
 0x348   : > { %v4502_v49 = vmul.f32 %v4470_v35, %v11349_v39  ;;  %v4269_v33 = vsub.f32 1.0, %v4268_v25  ;;  %8455 = vmatmul.msk.f32.gmra.mxu3 %vm976_vm1, %v5597_v60  ;;  %v4278_v45 = vand.u32 2147483648, %v11326_v7  ;;  %v11378_v22 = vadd.f32 1.0, %v3896_v28  ;;  %v11402_v2 = vpop.f32.mrf.mxu1  ;;  %v3624_v60 = vpop.f32.mrf.mxu0 }
 0x349   : > { %v11381_v53 = vadd.f32 %v11111_v38, %v3669_v43  ;;  %v4980_v12 = vmul.f32 %v4948_v37, %v3732_v58  ;;  %v4661_v34 = vadd.f32 0.2548296, %v4629_v26  ;;  %v11385_v19 = vadd.f32 %v11207_v29, %v13516_v11 }
 0x34a   : > { %v4534_v24 = vadd.f32 1.4214138, %v4502_v49  ;;  %v4270_v56 = vmul.f32 %v8784_v3, %v4269_v33  ;;  %v8786_v27 = vpop.eup %8785  ;;  %v11389_v59 = vadd.f32 %v11252_v9, %v13517_v30  ;;  %8787 = vrcp.f32 %v11378_v22  ;;  %v5147_v50 = vld [vmem:[#allocation2 + $0xa1] sm:$0xff] }
 0x34b   : > { %v3360_v18 = vadd.f32 %v3314_v55, %v3082_v15  ;;  %5049 = vst.msk [vmem:[#allocation2 + $0xa9] sm:$0xff] %vm976_vm1, %v4980_v12  ;;  %v4693_v58 = vmul.f32 %v4661_v34, %v11318_v44  ;;  %vm4272_vm4 = vweird.f32 %v11326_v7  ;;  %8396 = vmatmul.msk.f32.gmra.mxu1 %vm976_vm1, %v5147_v50  ;;  %vm3797_vm5 = vcmp.ge.f32.partialorder %v11201_v31, 0.0 }
 0x34c   : > { %v4566_v43 = vmul.f32 %v4534_v24, %v11349_v39  ;;  %v4271_v42 = vadd.f32 %v8784_v3, %v4270_v56  ;;  %8789 = vpow2.f32 %v4811_v48  ;;  %vm4274_vm6 = vmor %vm4272_vm4, %vm4273_vm3  ;;  %v4279_v29 = vor.u32 1.1754944e-38, %v4278_v45 }
 0x34d   : > { %v11400_v9 = vmul.f32 0.70710677, %v11381_v53  ;;  %v4853_v35 = vmul.f32 %v8786_v27, %v4693_v58  ;;  %vm4277_vm7 = vcmp.eq.f32.partialorder %v4276_v54, 8.507059e+37  ;;  %v4727_v7 = vsub.f32 0.0, %v11312_v8  ;;  %v3039_v54 = vpop.f32.mrf.mxu2 }
 0x34e   : > { %v4598_v44 = vadd.f32 -0.28449672, %v4566_v43  ;;  %v4275_v25 = vsel %vm4274_vm6, %v8784_v3, %v4271_v42  ;;  %v3670_v48 = vadd.f32 %v3624_v60, %v3360_v18  ;;  %v3733_v37 = vmul.f32 0.5, %v11192_v10 }
 0x34f   : > { %v11404_v28 = vsel %vm4277_vm7, %v4279_v29, %v4275_v25  ;;  %v11408_v15 = vand.u32 2147483647, %v11400_v9  ;;  %8422 = vmatmul.msk.f32.gmra.mxu2 %vm976_vm1, %v11274_v52  ;;  %v4885_v26 = vsub.f32 1.0, %v4853_v35  ;;  %v3829_v55 = vsel %vm3797_vm5, 1.0, %v13487_v23  ;;  %v3317_v29 = vpop.f32.mrf.mxu3 }
 0x350   : > { %v4630_v49 = vmul.f32 %v4598_v44, %v11349_v39  ;;  %v4439_v3 = vmul.f32 1.0614054, %v11404_v28  ;;  %v8788_v33 = vpop.eup %8787  ;;  %v3734_v45 = vmul.f32 0.5, %v11213_v47  ;;  %vm3798_vm8 = vcmp.ge.f32.partialorder %v11231_v62, 0.0  ;;  %v11435_v25 = vpop.f32.mrf.mxu1 }
 0x351   : > { %v3897_v12 = vmul.f32 0.3275911, %v11408_v15  ;;  %v4917_v52 = vmul.f32 %v4885_v26, %v3829_v55  ;;  %v4283_v24 = vmul.f32 %v8788_v33, %v11378_v22  ;;  %v4759_v27 = vmul.f32 %v4727_v7, %v11312_v8 }
 0x352   : > { %v4662_v34 = vadd.f32 0.2548296, %v4630_v49  ;;  %v4471_v10 = vadd.f32 -1.4531521, %v4439_v3  ;;  %v8790_v56 = vpop.eup %8789  ;;  %v11426_v30 = vadd.f32 %v11111_v38, %v3670_v48  ;;  %v3083_v31 = vadd.f32 %v3039_v54, %v11085_v20  ;;  %v5148_v47 = vld [vmem:[#allocation2 + $0xa9] sm:$0xff] }
 0x353   : > { %v11423_v11 = vadd.f32 1.0, %v3897_v12  ;;  %v4949_v18 = vadd.f32 1.0, %v4917_v52  ;;  %v4284_v43 = vsub.f32 1.0, %v4283_v24  ;;  %8397 = vmatmul.msk.f32.gmra.mxu1 %vm976_vm1, %v5148_v47  ;;  %vm4288_vm9 = vweird.f32 %v8788_v33 }
 0x354   : > { %v4694_v50 = vmul.f32 %v4662_v34, %v11349_v39  ;;  %v4503_v58 = vmul.f32 %v4471_v10, %v11404_v28  ;;  %v4291_v42 = vand.u32 2147483647, %v11378_v22  ;;  %v4293_v8 = vand.u32 2147483648, %v11378_v22  ;;  %v3627_v10 = vpop.f32.mrf.mxu0 }
 0x355   : > { %8791 = vrcp.f32 %v11423_v11  ;;  %v4981_v35 = vmul.f32 %v4949_v18, %v3733_v37  ;;  %v4285_v60 = vmul.f32 %v8788_v33, %v4284_v43  ;;  %v3830_v39 = vsel %vm3798_vm8, 1.0, %v13487_v23 }
 0x356   : > { %v4854_v44 = vmul.f32 %v8790_v56, %v4694_v50  ;;  %v4535_v20 = vadd.f32 1.4214138, %v4503_v58  ;;  %v4813_v7 = vmul.f32 1.442695, %v4759_v27  ;;  %vm4287_vm10 = vweird.f32 %v11378_v22  ;;  %v3042_v58 = vpop.f32.mrf.mxu2 }
 0x357   : > { %v11442_v48 = vmul.f32 0.70710677, %v11426_v30  ;;  %5050 = vst.msk [vmem:[#allocation2 + $0xb1] sm:$0xff] %vm976_vm1, %v4981_v35  ;;  %v4286_v49 = vadd.f32 %v8788_v33, %v4285_v60  ;;  %v3361_v3 = vadd.f32 %v3317_v29, %v3083_v31  ;;  %v11447_v54 = vmul.f32 0.5, %v11290_v46  ;;  %vm4289_vm11 = vmor %vm4287_vm10, %vm4288_vm9 }
 0x358   : > { %v4886_v26 = vsub.f32 1.0, %v4854_v44  ;;  %v4567_v37 = vmul.f32 %v4535_v20, %v11404_v28  ;;  %v4294_v62 = vor.u32 1.1754944e-38, %v4293_v8  ;;  %v4728_v55 = vsub.f32 0.0, %v11367_v63 }
 0x359   : > { %v11452_v22 = vand.u32 2147483647, %v11442_v48  ;;  %v4290_v34 = vsel %vm4289_vm11, %v8788_v33, %v4286_v49  ;;  %vm4292_vm12 = vcmp.eq.f32.partialorder %v4291_v42, 8.507059e+37  ;;  %8793 = vpow2.f32 %v4813_v7  ;;  %v3320_v49 = vpop.f32.mrf.mxu3 }
 0x35a   : > { %v4918_v12 = vmul.f32 %v4886_v26, %v3830_v39  ;;  %v4599_v52 = vadd.f32 -0.28449672, %v4567_v37  ;;  %v11454_v56 = vsel %vm4292_vm12, %v4294_v62, %v4290_v34  ;;  %v3671_v27 = vadd.f32 %v3627_v10, %v3361_v3  ;;  %v11474_v37 = vpop.f32.mrf.mxu1 }
 0x35b   : > { %v8792_v24 = vpop.eup %8791  ;;  %v3898_v46 = vmul.f32 0.3275911, %v11452_v22  ;;  %v4440_v18 = vmul.f32 1.0614054, %v11454_v56  ;;  %vm3799_vm13 = vcmp.ge.f32.partialorder %v11298_v16, 0.0  ;;  %v4760_v33 = vmul.f32 %v4728_v55, %v11367_v63 }
 0x35c   : > { %v4950_v31 = vadd.f32 1.0, %v4918_v12  ;;  %v4631_v47 = vmul.f32 %v4599_v52, %v11404_v28  ;;  %v4298_v50 = vmul.f32 %v8792_v24, %v11423_v11  ;;  %v11465_v42 = vadd.f32 %v11111_v38, %v3671_v27 }
 0x35d   : > { %v11462_v43 = vadd.f32 1.0, %v3898_v46  ;;  %v4472_v35 = vadd.f32 -1.4531521, %v4440_v18  ;;  %v4306_v20 = vand.u32 2147483647, %v11423_v11  ;;  %v4308_v60 = vand.u32 2147483648, %v11423_v11  ;;  %v3630_v18 = vpop.f32.mrf.mxu0 }
 0x35e   : > { %v4982_v8 = vmul.f32 %v4950_v31, %v3734_v45  ;;  %v4663_v29 = vadd.f32 0.2548296, %v4631_v47  ;;  %v4299_v44 = vsub.f32 1.0, %v4298_v50  ;;  %v3084_v39 = vadd.f32 %v3042_v58, %v11385_v19  ;;  %v5149_v7 = vld [vmem:[#allocation2 + $0xb1] sm:$0xff] }
 0x35f   : > { %8795 = vrcp.f32 %v11462_v43  ;;  %v4504_v26 = vmul.f32 %v4472_v35, %v11454_v56  ;;  %vm4303_vm14 = vweird.f32 %v8792_v24  ;;  %8398 = vmatmul.msk.f32.gmra.mxu1 %vm976_vm1, %v5149_v7  ;;  %v8794_v3 = vpop.eup %8793  ;;  %v3831_v62 = vsel %vm3799_vm13, 1.0, %v13487_v23 }
 0x360   : > { %5051 = vst.msk [vmem:[#allocation2 + $0xb9] sm:$0xff] %vm976_vm1, %v4982_v8  ;;  %v4695_v63 = vmul.f32 %v4663_v29, %v11404_v28  ;;  %v4300_v45 = vmul.f32 %v8792_v24, %v4299_v44  ;;  %v11481_v19 = vmul.f32 0.5, %v11340_v4  ;;  %v4815_v55 = vmul.f32 1.442695, %v4760_v33 }
 0x361   : > { %v11484_v28 = vmul.f32 0.70710677, %v11465_v42  ;;  %v4536_v52 = vadd.f32 1.4214138, %v4504_v26  ;;  %vm4302_vm15 = vweird.f32 %v11423_v11  ;;  %v4309_v10 = vor.u32 1.1754944e-38, %v4308_v60  ;;  %v3045_v60 = vpop.f32.mrf.mxu2 }
 0x362   : > { %v4855_v12 = vmul.f32 %v8794_v3, %v4695_v63  ;;  %v4301_v34 = vadd.f32 %v8792_v24, %v4300_v45  ;;  %vm4304_vm2 = vmor %vm4302_vm15, %vm4303_vm14  ;;  %v4729_v46 = vsub.f32 0.0, %v11408_v15  ;;  %v3362_v16 = vadd.f32 %v3320_v49, %v3084_v39 }
 0x363   : > { %v11489_v27 = vand.u32 2147483647, %v11484_v28  ;;  %v4568_v4 = vmul.f32 %v4536_v52, %v11454_v56  ;;  %vm4307_vm3 = vcmp.eq.f32.partialorder %v4306_v20, 8.507059e+37  ;;  %8797 = vpow2.f32 %v4815_v55  ;;  %v11510_v52 = vpop.f32.mrf.mxu1 }
 0x364   : > { %v4887_v31 = vsub.f32 1.0, %v4855_v12  ;;  %v4305_v47 = vsel %vm4304_vm2, %v8792_v24, %v4301_v34  ;;  %v3672_v33 = vadd.f32 %v3630_v18, %v3362_v16  ;;  %v4761_v39 = vmul.f32 %v4729_v46, %v11408_v15  ;;  %v5598_v46 = vld [vmem:[#allocation2 + $0x6a] sm:$0xff]  ;;  %v11512_v16 = vld [vmem:[#allocation2 + $0x80] sm:$0xff] }
 0x365   : > { %v8796_v50 = vpop.eup %8795  ;;  %v11492_v58 = vsel %vm4307_vm3, %v4309_v10, %v4305_v47  ;;  %v3899_v11 = vmul.f32 0.3275911, %v11489_v27  ;;  %v4600_v29 = vadd.f32 -0.28449672, %v4568_v4  ;;  %v4321_v24 = vand.u32 2147483647, %v11462_v43  ;;  %v3323_v10 = vpop.f32.mrf.mxu3 }
 0x366   : > { %v4919_v8 = vmul.f32 %v4887_v31, %v3831_v62  ;;  %v4441_v35 = vmul.f32 1.0614054, %v11492_v58  ;;  %v4313_v44 = vmul.f32 %v8796_v50, %v11462_v43  ;;  %v11502_v7 = vadd.f32 %v11111_v38, %v3672_v33 }
 0x367   : > { %v11499_v20 = vadd.f32 1.0, %v3899_v11  ;;  %v4632_v26 = vmul.f32 %v4600_v29, %v11454_v56  ;;  %vm4318_vm4 = vweird.f32 %v8796_v50  ;;  %v4323_v3 = vand.u32 2147483648, %v11462_v43  ;;  %v13518_v29 = vld [vmem:[#allocation64_spill] sm:$0xff] }
 0x368   : > { %v4951_v63 = vadd.f32 1.0, %v4919_v8  ;;  %v4473_v45 = vadd.f32 -1.4531521, %v4441_v35  ;;  %v4314_v49 = vsub.f32 1.0, %v4313_v44  ;;  %v3085_v62 = vadd.f32 %v3045_v60, %v11389_v59  ;;  %v13519_v44 = vld [vmem:[#allocation45_spill] sm:$0xff] }
 0x369   : > { %8799 = vrcp.f32 %v11499_v20  ;;  %v4664_v55 = vadd.f32 0.2548296, %v4632_v26  ;;  %v8798_v31 = vpop.eup %8797  ;;  %vm3800_vm5 = vcmp.ge.f32.partialorder %v11353_v41, 0.0  ;;  %v4817_v4 = vmul.f32 1.442695, %v4761_v39 }
 0x36a   : > { %v4983_v15 = vmul.f32 %v4951_v63, %v11447_v54  ;;  %v4505_v12 = vmul.f32 %v4473_v45, %v11492_v58  ;;  %v4315_v34 = vmul.f32 %v8796_v50, %v4314_v49  ;;  %vm4317_vm6 = vweird.f32 %v11462_v43 }
 0x36b   : > { %v4730_v59 = vsub.f32 0.0, %v11452_v22  ;;  %v4696_v54 = vmul.f32 %v4664_v55, %v11454_v56  ;;  %v11520_v11 = vmul.f32 0.70710677, %v11502_v7  ;;  %vm4319_vm7 = vmor %vm4317_vm6, %vm4318_vm4  ;;  %v4324_v33 = vor.u32 1.1754944e-38, %v4323_v3  ;;  %v3633_v56 = vpop.f32.mrf.mxu0 }
 0x36c   : > { %5052 = vst.msk [vmem:[#allocation2 + $0xc1] sm:$0xff] %vm976_vm1, %v4983_v15  ;;  %v4537_v47 = vadd.f32 1.4214138, %v4505_v12  ;;  %v4316_v18 = vadd.f32 %v8796_v50, %v4315_v34  ;;  %v3363_v8 = vadd.f32 %v3323_v10, %v3085_v62  ;;  %v5630_v35 = vmul.f32 %v13518_v29, %v5598_v46 }
 0x36d   : > { %v5941_v43 = vmul.f32 %v13519_v44, %v11512_v16  ;;  %v4856_v60 = vmul.f32 %v8798_v31, %v4696_v54  ;;  %vm4322_vm8 = vcmp.eq.f32.partialorder %v4321_v24, 8.507059e+37  ;;  %v3832_v45 = vsel %vm3800_vm5, 1.0, %v13487_v23 }
 0x36e   : > { %v4569_v39 = vmul.f32 %v4537_v47, %v11492_v58  ;;  %v4320_v63 = vsel %vm4319_vm7, %v8796_v50, %v4316_v18  ;;  %v11533_v3 = vand.u32 2147483647, %v11520_v11  ;;  %v3673_v62 = vadd.f32 %v3633_v56, %v3363_v8  ;;  %8456 = vmatmul.msk.f32.gmra.mxu3 %vm976_vm1, %v5630_v35  ;;  %v5599_v56 = vld [vmem:[#allocation2 + $0x72] sm:$0xff] }
 0x36f   : > { %v8800_v26 = vpop.eup %8799  ;;  %v11530_v49 = vsel %vm4322_vm8, %v4324_v33, %v4320_v63  ;;  %8491 = vmatmul.msk.f32.gmra.mxu0 %vm976_vm1, %v5941_v43  ;;  %v4888_v15 = vsub.f32 1.0, %v4856_v60  ;;  %8801 = vpow2.f32 %v4817_v4  ;;  %v4762_v41 = vmul.f32 %v4730_v59, %v11452_v22  ;;  %v11550_v59 = vpop.f32.mrf.mxu1 }
 0x370   : > { %v4601_v55 = vadd.f32 -0.28449672, %v4569_v39  ;;  %v4442_v50 = vmul.f32 1.0614054, %v11530_v49  ;;  %v4328_v24 = vmul.f32 %v8800_v26, %v11499_v20  ;;  %v3900_v12 = vmul.f32 0.3275911, %v11533_v3 }
 0x371   : > { %v11542_v34 = vadd.f32 %v11111_v38, %v3673_v62  ;;  %v4920_v10 = vmul.f32 %v4888_v15, %v3832_v45  ;;  %vm4333_vm9 = vweird.f32 %v8800_v26  ;;  %v4336_v47 = vand.u32 2147483647, %v11499_v20  ;;  %v11559_v45 = vld [vmem:[#allocation2 + $0x88] sm:$0xff] }
 0x372   : > { %v4633_v46 = vmul.f32 %v4601_v55, %v11492_v58  ;;  %v4474_v31 = vadd.f32 -1.4531521, %v4442_v50  ;;  %v4329_v54 = vsub.f32 1.0, %v4328_v24  ;;  %v4338_v18 = vand.u32 2147483648, %v11499_v20 }
 0x373   : > { %v11547_v33 = vadd.f32 1.0, %v3900_v12  ;;  %v4952_v4 = vadd.f32 1.0, %v4920_v10  ;;  %vm4332_vm10 = vweird.f32 %v11499_v20  ;;  %v11555_v35 = vmul.f32 0.70710677, %v11542_v34  ;;  %v5600_v10 = vld [vmem:[#allocation2 + $0x7a] sm:$0xff] }
 0x374   : > { %v4665_v8 = vadd.f32 0.2548296, %v4633_v46  ;;  %v4506_v22 = vmul.f32 %v4474_v31, %v11530_v49  ;;  %v4330_v38 = vmul.f32 %v8800_v26, %v4329_v54  ;;  %vm3801_vm11 = vcmp.ge.f32.partialorder %v11400_v9, 0.0  ;;  %vm4334_vm12 = vmor %vm4332_vm10, %vm4333_vm9  ;;  %v13521_v9 = vld [vmem:[#allocation14_spill] sm:$0xff] }
 0x375   : > { %8803 = vrcp.f32 %v11547_v33  ;;  %v4984_v43 = vmul.f32 %v4952_v4, %v11481_v19  ;;  %v8802_v62 = vpop.eup %8801  ;;  %v4819_v15 = vmul.f32 1.442695, %v4762_v41  ;;  %v4339_v20 = vor.u32 1.1754944e-38, %v4338_v18  ;;  %v11577_v18 = vld [vmem:[#allocation2 + $0x90] sm:$0xff] }
 0x376   : > { %v4697_v60 = vmul.f32 %v4665_v8, %v11492_v58  ;;  %v4538_v39 = vadd.f32 1.4214138, %v4506_v22  ;;  %v4331_v63 = vadd.f32 %v8800_v26, %v4330_v38  ;;  %8457 = vmatmul.msk.f32.gmra.mxu3 %vm976_vm1, %v5599_v56  ;;  %vm4337_vm13 = vcmp.eq.f32.partialorder %v4336_v47, 8.507059e+37 }
 0x377   : > { %8492 = vmatmul.msk.f32.gmra.mxu0 %vm976_vm1, %v11559_v45  ;;  %5053 = vst.msk [vmem:[#allocation2 + $0xc9] sm:$0xff] %vm976_vm1, %v4984_v43  ;;  %v4731_v24 = vsub.f32 0.0, %v11489_v27  ;;  %v11572_v41 = vand.u32 2147483647, %v11555_v35  ;;  %v5108_v12 = vmul.f32 %v13519_v44, %v11286_v1  ;;  %v3833_v47 = vsel %vm3801_vm11, 1.0, %v13487_v23 }
 0x378   : > { %v4857_v19 = vmul.f32 %v8802_v62, %v4697_v60  ;;  %v4570_v58 = vmul.f32 %v4538_v39, %v11530_v49  ;;  %v4335_v55 = vsel %vm4334_vm12, %v8800_v26, %v4331_v63  ;;  %v3737_v26 = vmul.f32 0.5, %v11381_v53  ;;  %v13520_v53 = vld [vmem:[#allocation69_spill] sm:$0xff] }
 0x379   : > { %v11568_v50 = vsel %vm4337_vm13, %v4339_v20, %v4335_v55  ;;  %8805 = vpow2.f32 %v4819_v15  ;;  %v3901_v8 = vmul.f32 0.3275911, %v11572_v41  ;;  %8423 = vmatmul.msk.f32.gmra.mxu2 %vm976_vm1, %v5108_v12  ;;  %v4763_v60 = vmul.f32 %v4731_v24, %v11489_v27 }
 0x37a   : > { %v4889_v46 = vsub.f32 1.0, %v4857_v19  ;;  %v4602_v31 = vadd.f32 -0.28449672, %v4570_v58  ;;  %v4443_v54 = vmul.f32 1.0614054, %v11568_v50  ;;  %v5632_v63 = vmul.f32 %v13520_v53, %v5600_v10  ;;  %v11594_v19 = vpop.f32.mrf.mxu1 }
 0x37b   : > { %v8804_v4 = vpop.eup %8803  ;;  %v11588_v39 = vadd.f32 1.0, %v3901_v8  ;;  %v5943_v56 = vmul.f32 %v13521_v9, %v11577_v18  ;;  %v4351_v55 = vand.u32 2147483647, %v11547_v33  ;;  %v4353_v12 = vand.u32 2147483648, %v11547_v33 }
 0x37c   : > { %v4921_v1 = vmul.f32 %v4889_v46, %v3833_v47  ;;  %v4634_v22 = vmul.f32 %v4602_v31, %v11530_v49  ;;  %v4475_v38 = vadd.f32 -1.4531521, %v4443_v54  ;;  %v4343_v43 = vmul.f32 %v8804_v4, %v11547_v33 }
 0x37d   : > { %vm4348_vm14 = vweird.f32 %v8804_v4  ;;  %8807 = vrcp.f32 %v11588_v39  ;;  %vm3802_vm15 = vcmp.ge.f32.partialorder %v11442_v48, 0.0  ;;  %v4821_v54 = vmul.f32 1.442695, %v4763_v60 }
 0x37e   : > { %v4953_v62 = vadd.f32 1.0, %v4921_v1  ;;  %v4666_v15 = vadd.f32 0.2548296, %v4634_v22  ;;  %v4507_v20 = vmul.f32 %v4475_v38, %v11568_v50  ;;  %v4344_v58 = vsub.f32 1.0, %v4343_v43  ;;  %8458 = vmatmul.msk.f32.gmra.mxu3 %vm976_vm1, %v5632_v63 }
 0x37f   : > { %8493 = vmatmul.msk.f32.gmra.mxu0 %vm976_vm1, %v5943_v56  ;;  %v8806_v31 = vpop.eup %8805  ;;  %vm4347_vm2 = vweird.f32 %v11547_v33  ;;  %v4354_v22 = vor.u32 1.1754944e-38, %v4353_v12  ;;  %vm4352_vm4 = vcmp.eq.f32.partialorder %v4351_v55, 8.507059e+37  ;;  %v3834_v63 = vsel %vm3802_vm15, 1.0, %v13487_v23 }
 0x380   : > { %v4985_v27 = vmul.f32 %v4953_v62, %v3737_v26  ;;  %v4698_v24 = vmul.f32 %v4666_v15, %v11530_v49  ;;  %v4539_v10 = vadd.f32 1.4214138, %v4507_v20  ;;  %v4345_v46 = vmul.f32 %v8804_v4, %v4344_v58  ;;  %vm4349_vm3 = vmor %vm4347_vm2, %vm4348_vm14  ;;  %v11618_v58 = vld [vmem:[#allocation2 + $0x98] sm:$0xff] }
 0x381   : > { %v4732_v26 = vsub.f32 0.0, %v11533_v3  ;;  %8424 = vmatmul.msk.f32.gmra.mxu2 %vm976_vm1, %v11345_v57  ;;  %8809 = vpow2.f32 %v4821_v54  ;;  %v5601_v57 = vld [vmem:[#allocation2 + $0x82] sm:$0xff]  ;;  %v4368_v54 = vand.u32 2147483648, %v11588_v39  ;;  %vm3803_vm6 = vcmp.ge.f32.partialorder %v11484_v28, 0.0 }
 0x382   : > { %5054 = vst.msk [vmem:[#allocation2 + $0xd1] sm:$0xff] %vm976_vm1, %v4985_v27  ;;  %v4858_v47 = vmul.f32 %v8806_v31, %v4698_v24  ;;  %v4571_v8 = vmul.f32 %v4539_v10, %v11568_v50  ;;  %v4346_v1 = vadd.f32 %v8804_v4, %v4345_v46  ;;  %v11625_v24 = vpop.f32.mrf.mxu1  ;;  %v3636_v46 = vpop.f32.mrf.mxu0  ;;  %v4366_v31 = vand.u32 2147483647, %v11588_v39 }
 0x383   : > { %v8808_v60 = vpop.eup %8807  ;;  %v4764_v55 = vmul.f32 %v4732_v26, %v11533_v3  ;;  %v11633_v26 = vld [vmem:[#allocation2 + $0xa0] sm:$0xff]  ;;  %vm4362_vm7 = vweird.f32 %v11588_v39  ;;  %vm3804_vm10 = vcmp.ge.f32.partialorder %v11520_v11, 0.0  ;;  %vm3805_vm11 = vcmp.ge.f32.partialorder %v11555_v35, 0.0  ;;  %v11714_v35 = vld [vmem:[#allocation2 + $0xb8] sm:$0xff] }
 0x384   : > { %v4890_v49 = vsub.f32 1.0, %v4858_v47  ;;  %v4603_v38 = vadd.f32 -0.28449672, %v4571_v8  ;;  %v4350_v43 = vsel %vm4349_vm3, %v8804_v4, %v4346_v1  ;;  %v4358_v20 = vmul.f32 %v8808_v60, %v11588_v39 }
 0x385   : > { %v11613_v56 = vsel %vm4352_vm4, %v4354_v22, %v4350_v43  ;;  %v3738_v4 = vmul.f32 0.5, %v11426_v30  ;;  %vm4363_vm5 = vweird.f32 %v8808_v60  ;;  %v5110_v30 = vmul.f32 %v13521_v9, %v11512_v16  ;;  %v5602_v22 = vld [vmem:[#allocation2 + $0x8a] sm:$0xff] }
 0x386   : > { %v4922_v33 = vmul.f32 %v4890_v49, %v3834_v63  ;;  %v4635_v62 = vmul.f32 %v4603_v38, %v11568_v50  ;;  %v4444_v15 = vmul.f32 1.0614054, %v11613_v56  ;;  %8459 = vmatmul.msk.f32.gmra.mxu3 %vm976_vm1, %v5601_v57  ;;  %v4359_v10 = vsub.f32 1.0, %v4358_v20  ;;  %v13522_v38 = vld [vmem:[#allocation65_spill] sm:$0xff]  ;;  %vm4364_vm8 = vmor %vm4362_vm7, %vm4363_vm5 }
 0x387   : > { %8494 = vmatmul.msk.f32.gmra.mxu0 %vm976_vm1, %v11618_v58  ;;  %v8810_v49 = vpop.eup %8809  ;;  %v2776_v43 = vadd.f32 %v11308_v61, %v13522_v38  ;;  %v4823_v63 = vmul.f32 1.442695, %v4764_v55  ;;  %v4369_v20 = vor.u32 1.1754944e-38, %v4368_v54  ;;  %vm4367_vm9 = vcmp.eq.f32.partialorder %v4366_v31, 8.507059e+37 }
 0x388   : > { %v4954_v48 = vadd.f32 1.0, %v4922_v33  ;;  %v4667_v12 = vadd.f32 0.2548296, %v4635_v62  ;;  %v4476_v27 = vadd.f32 -1.4531521, %v4444_v15  ;;  %v4360_v1 = vmul.f32 %v8808_v60, %v4359_v10  ;;  %v3048_v62 = vpop.f32.mrf.mxu2  ;;  %v3326_v15 = vpop.f32.mrf.mxu3 }
 0x389   : > { %8425 = vmatmul.msk.f32.gmra.mxu2 %vm976_vm1, %v5110_v30  ;;  %v3086_v57 = vadd.f32 %v3048_v62, %v2776_v43  ;;  %v3835_v39 = vsel %vm3803_vm6, 1.0, %v13487_v23  ;;  %8811 = vpow2.f32 %v4823_v63 }
 0x38a   : > { %v4986_v3 = vmul.f32 %v4954_v48, %v3738_v4  ;;  %v4699_v47 = vmul.f32 %v4667_v12, %v11568_v50  ;;  %v4508_v8 = vmul.f32 %v4476_v27, %v11613_v56  ;;  %v4361_v50 = vadd.f32 %v8808_v60, %v4360_v1  ;;  %v13523_v4 = vld [vmem:[#allocation72_spill] sm:$0xff]  ;;  %v13524_v48 = vld [vmem:[#allocation21_spill] sm:$0xff]  ;;  %v11654_v38 = vpop.f32.mrf.mxu1 }
 0x38b   : > { %v5634_v61 = vmul.f32 %v13523_v4, %v5602_v22  ;;  %v5945_v55 = vmul.f32 %v13524_v48, %v11633_v26 }
 0x38c   : > { %5055 = vst.msk [vmem:[#allocation2 + $0xd9] sm:$0xff] %vm976_vm1, %v4986_v3  ;;  %v4859_v16 = vmul.f32 %v8810_v49, %v4699_v47  ;;  %v4540_v33 = vadd.f32 1.4214138, %v4508_v8  ;;  %v4365_v10 = vsel %vm4364_vm8, %v8808_v60, %v4361_v50  ;;  %v4733_v3 = vsub.f32 0.0, %v11572_v41 }
 0x38d   : > { %v4370_v30 = vsel %vm4367_vm9, %v4369_v20, %v4365_v10  ;;  %v3364_v47 = vadd.f32 %v3326_v15, %v3086_v57  ;;  %v3739_v60 = vmul.f32 0.5, %v11465_v42  ;;  %v5603_v20 = vld [vmem:[#allocation2 + $0x92] sm:$0xff]  ;;  %v11674_v57 = vld [vmem:[#allocation2 + $0xa8] sm:$0xff]  ;;  %v5112_v10 = vmul.f32 %v13524_v48, %v11577_v18 }
 0x38e   : > { %v4891_v12 = vsub.f32 1.0, %v4859_v16  ;;  %v4572_v27 = vmul.f32 %v4540_v33, %v11613_v56  ;;  %8460 = vmatmul.msk.f32.gmra.mxu3 %vm976_vm1, %v5634_v61  ;;  %v4445_v1 = vmul.f32 1.0614054, %v4370_v30  ;;  %v4765_v43 = vmul.f32 %v4733_v3, %v11572_v41  ;;  %v11657_v16 = vpop.f32.mrf.mxu0  ;;  %v11662_v33 = vld [vmem:[%s13224_s2] ss:$0 sm:$0xff] }
 0x38f   : > { %8495 = vmatmul.msk.f32.gmra.mxu0 %vm976_vm1, %v5945_v55  ;;  %v3674_v22 = vadd.f32 %v3636_v46, %v3364_v47  ;;  %v8812_v61 = vpop.eup %8811  ;;  %v5604_v47 = vld [vmem:[#allocation2 + $0x9a] sm:$0xff] }
 0x390   : > { %v4923_v54 = vmul.f32 %v4891_v12, %v3835_v39  ;;  %v4604_v8 = vadd.f32 -0.28449672, %v4572_v27  ;;  %v4477_v28 = vadd.f32 -1.4531521, %v4445_v1  ;;  %v4825_v55 = vmul.f32 1.442695, %v4765_v43 }
 0x391   : > { %v11665_v63 = vadd.f32 %v11662_v33, %v3674_v22  ;;  %8426 = vmatmul.msk.f32.gmra.mxu2 %vm976_vm1, %v11559_v45  ;;  %v13525_v18 = vld [vmem:[#allocation74_spill] sm:$0xff] }
 0x392   : > { %v4955_v31 = vadd.f32 1.0, %v4923_v54  ;;  %v4636_v49 = vmul.f32 %v4604_v8, %v11613_v56  ;;  %v4509_v50 = vmul.f32 %v4477_v28, %v4370_v30  ;;  %v11686_v54 = vld [vmem:[#allocation2 + $0xb0] sm:$0xff]  ;;  %v3836_v8 = vsel %vm3804_vm10, 1.0, %v13487_v23  ;;  %v13526_v28 = vld [vmem:[#allocation27_spill] sm:$0xff] }
 0x393   : > { %v11670_v62 = vmul.f32 0.70710677, %v11665_v63  ;;  %8813 = vpow2.f32 %v4825_v55  ;;  %v5947_v43 = vmul.f32 %v13526_v28, %v11686_v54  ;;  %v13527_v55 = vld [vmem:[#allocation68_spill] sm:$0xff] }
 0x394   : > { %v4987_v42 = vmul.f32 %v4955_v31, %v3739_v60  ;;  %v4668_v46 = vadd.f32 0.2548296, %v4636_v49  ;;  %v4541_v15 = vadd.f32 1.4214138, %v4509_v50  ;;  %v11692_v60 = vpop.f32.mrf.mxu1  ;;  %v5636_v49 = vmul.f32 %v13525_v18, %v5604_v47  ;;  %v3329_v47 = vpop.f32.mrf.mxu3 }
 0x395   : > { %v11677_v12 = vand.u32 2147483647, %v11670_v62  ;;  %vm3806_vm3 = vcmp.ge.f32.partialorder %v11670_v62, 0.0 }
 0x396   : > { %5056 = vst.msk [vmem:[#allocation2 + $0xe1] sm:$0xff] %vm976_vm1, %v4987_v42  ;;  %v4700_v41 = vmul.f32 %v4668_v46, %v11613_v56  ;;  %8461 = vmatmul.msk.f32.gmra.mxu3 %vm976_vm1, %v5603_v20  ;;  %v4573_v27 = vmul.f32 %v4541_v15, %v4370_v30  ;;  %v11695_v31 = vpop.f32.mrf.mxu0  ;;  %v3740_v42 = vmul.f32 0.5, %v11502_v7  ;;  %v5150_v20 = vld [vmem:[#allocation2 + $0xb9] sm:$0xff] }
 0x397   : > { %8496 = vmatmul.msk.f32.gmra.mxu0 %vm976_vm1, %v11674_v57  ;;  %v3902_v56 = vmul.f32 0.3275911, %v11677_v12  ;;  %8399 = vmatmul.msk.f32.gmra.mxu1 %vm976_vm1, %v5150_v20  ;;  %v5151_v20 = vld [vmem:[#allocation2 + $0xc1] sm:$0xff] }
 0x398   : > { %v4860_v45 = vmul.f32 %v8812_v61, %v4700_v41  ;;  %v4605_v3 = vadd.f32 -0.28449672, %v4573_v27 }
 0x399   : > { %v11689_v1 = vadd.f32 1.0, %v3902_v56  ;;  %8427 = vmatmul.msk.f32.gmra.mxu2 %vm976_vm1, %v5112_v10  ;;  %v8814_v61 = vpop.eup %8813  ;;  %v3051_v56 = vpop.f32.mrf.mxu2 }
 0x39a   : > { %v4892_v39 = vsub.f32 1.0, %v4860_v45  ;;  %v4637_v22 = vmul.f32 %v4605_v3, %v4370_v30  ;;  %v2777_v45 = vadd.f32 %v11347_v36, %v13527_v55  ;;  %v3837_v3 = vsel %vm3805_vm11, 1.0, %v13487_v23 }
 0x39b   : > { %8815 = vrcp.f32 %v11689_v1  ;;  %v5114_v55 = vmul.f32 %v13526_v28, %v11633_v26  ;;  %vm4377_vm13 = vweird.f32 %v11689_v1 }
 0x39c   : > { %v4924_v11 = vmul.f32 %v4892_v39, %v3836_v8  ;;  %v4669_v50 = vadd.f32 0.2548296, %v4637_v22  ;;  %v3087_v39 = vadd.f32 %v3051_v56, %v2777_v45  ;;  %v11712_v22 = vpop.f32.mrf.mxu1 }
 0x39e   : > { %v4956_v46 = vadd.f32 1.0, %v4924_v11  ;;  %8462 = vmatmul.msk.f32.gmra.mxu3 %vm976_vm1, %v5636_v49  ;;  %v4701_v15 = vmul.f32 %v4669_v50, %v4370_v30  ;;  %v3365_v36 = vadd.f32 %v3329_v47, %v3087_v39  ;;  %v5605_v49 = vld [vmem:[#allocation2 + $0xa2] sm:$0xff]  ;;  %v4734_v47 = vsub.f32 0.0, %v11677_v12 }
 0x39f   : > { %8497 = vmatmul.msk.f32.gmra.mxu0 %vm976_vm1, %v5947_v43  ;;  %v3741_v43 = vmul.f32 0.5, %v11542_v34  ;;  %8400 = vmatmul.msk.f32.gmra.mxu1 %vm976_vm1, %v5151_v20 }
 0x3a0   : > { %v4988_v41 = vmul.f32 %v4956_v46, %v3740_v42  ;;  %v4861_v7 = vmul.f32 %v8814_v61, %v4701_v15  ;;  %v4381_v42 = vand.u32 2147483647, %v11689_v1  ;;  %v11719_v46 = vpop.f32.mrf.mxu0  ;;  %v3675_v15 = vadd.f32 %v11657_v16, %v3365_v36  ;;  %v13528_v61 = vld [vmem:[#allocation70_spill] sm:$0xff] }
 0x3a1   : > { %v8816_v27 = vpop.eup %8815  ;;  %8428 = vmatmul.msk.f32.gmra.mxu2 %vm976_vm1, %v11618_v58  ;;  %v4383_v58 = vand.u32 2147483648, %v11689_v1  ;;  %v2778_v34 = vadd.f32 %v11402_v2, %v13528_v61  ;;  %v3054_v39 = vpop.f32.mrf.mxu2 }
 0x3a2   : > { %5057 = vst.msk [vmem:[#allocation2 + $0xe9] sm:$0xff] %vm976_vm1, %v4988_v41  ;;  %v4893_v10 = vsub.f32 1.0, %v4861_v7  ;;  %v4373_v30 = vmul.f32 %v8816_v27, %v11689_v1  ;;  %vm4378_vm12 = vweird.f32 %v8816_v27  ;;  %v11732_v56 = vadd.f32 %v11662_v33, %v3675_v15 }
 0x3a3   : > { %vm4379_vm14 = vmor %vm4377_vm13, %vm4378_vm12  ;;  %v4384_v16 = vor.u32 1.1754944e-38, %v4383_v58  ;;  %vm4382_vm15 = vcmp.eq.f32.partialorder %v4381_v42, 8.507059e+37  ;;  %vm7799_vm12 = vcmask 24576  }
 0x3a4   : > { %v4925_v8 = vmul.f32 %v4893_v10, %v3837_v3  ;;  %v4374_v11 = vsub.f32 1.0, %v4373_v30  ;;  %v5606_v10 = vld [vmem:[#allocation2 + $0xaa] sm:$0xff]  ;;  %v11734_v30 = vld [vmem:[#allocation2 + $0xc0] sm:$0xff]  ;;  %v11739_v26 = vmul.f32 0.70710677, %v11732_v56  ;;  %v3088_v3 = vadd.f32 %v3054_v39, %v2778_v34 }
 0x3a5   : > { %v5152_v34 = vld [vmem:[#allocation2 + $0xc9] sm:$0xff] }
 0x3a6   : > { %8463 = vmatmul.msk.f32.gmra.mxu3 %vm976_vm1, %v5605_v49  ;;  %v4957_v50 = vadd.f32 1.0, %v4925_v8  ;;  %v4375_v41 = vmul.f32 %v8816_v27, %v4374_v11  ;;  %v3332_v8 = vpop.f32.mrf.mxu3  ;;  %v13529_v11 = vld [vmem:[#allocation75_spill] sm:$0xff]  ;;  %v13530_v49 = vld [vmem:[#allocation33_spill] sm:$0xff] }
 0x3a7   : > { %8498 = vmatmul.msk.f32.gmra.mxu0 %vm976_vm1, %v11714_v35  ;;  %v5638_v36 = vmul.f32 %v13529_v11, %v5606_v10  ;;  %8401 = vmatmul.msk.f32.gmra.mxu1 %vm976_vm1, %v5152_v34 }
 0x3a8   : > { %v4989_v45 = vmul.f32 %v4957_v50, %v3741_v43  ;;  %v4376_v7 = vadd.f32 %v8816_v27, %v4375_v41  ;;  %v5949_v43 = vmul.f32 %v13530_v49, %v11734_v30  ;;  %v11746_v50 = vand.u32 2147483647, %v11739_v26  ;;  %v11750_v42 = vpop.f32.mrf.mxu0 }
 0x3a9   : > { %8429 = vmatmul.msk.f32.gmra.mxu2 %vm976_vm1, %v5114_v55  ;;  %v3366_v41 = vadd.f32 %v3332_v8, %v3088_v3  ;;  %13531 = vst [vmem:[#allocation71_spill] sm:$0xff] %v11750_v42  ;;  %v4766_v55 = vmul.f32 %v4734_v47, %v11677_v12 }
 0x3aa   : > { %5058 = vst.msk [vmem:[#allocation2 + $0xf1] sm:$0xff] %vm976_vm1, %v4989_v45  ;;  %v4380_v2 = vsel %vm4379_vm14, %v8816_v27, %v4376_v7  ;;  %v11748_v27 = vpop.f32.mrf.mxu1  ;;  %v3903_v20 = vmul.f32 0.3275911, %v11746_v50 }
 0x3ab   : > { %v4385_v1 = vsel %vm4382_vm15, %v4384_v16, %v4380_v2  ;;  %v3676_v61 = vadd.f32 %v11695_v31, %v3366_v41  ;;  %v5489_v16 = vpop.f32.mrf.mxu2  ;;  %v4827_v2 = vmul.f32 1.442695, %v4766_v55  ;;  %v5608_v55 = vld [vmem:[#allocation2 + $0xba] sm:$0xff] }
 0x3ac   : > { %v4446_v58 = vmul.f32 1.0614054, %v4385_v1  ;;  %v11758_v7 = vadd.f32 1.0, %v3903_v20  ;;  %v5490_v47 = vadd.f32 %v5489_v16, %v11435_v25  ;;  %v5116_v20 = vmul.f32 %v13530_v49, %v11686_v54  ;;  %v13533_v54 = vld [vmem:[#allocation77_spill] sm:$0xff] }
 0x3ad   : > { %v11761_v10 = vadd.f32 %v11662_v33, %v3676_v61  ;;  %v11772_v33 = vld [vmem:[#allocation2 + $0xc8] sm:$0xff] }
 0x3ae   : > { %8464 = vmatmul.msk.f32.gmra.mxu3 %vm976_vm1, %v5638_v36  ;;  %v4478_v15 = vadd.f32 -1.4531521, %v4446_v58  ;;  %8817 = vrcp.f32 %v11758_v7  ;;  %v5767_v12 = vpop.f32.mrf.mxu3  ;;  %v5607_v36 = vld [vmem:[#allocation2 + $0xb2] sm:$0xff]  ;;  %v4398_v49 = vand.u32 2147483648, %v11758_v7  ;;  %vm4392_vm4 = vweird.f32 %v11758_v7 }
 0x3af   : > { %8499 = vmatmul.msk.f32.gmra.mxu0 %vm976_vm1, %v5949_v43  ;;  %v11767_v31 = vmul.f32 0.70710677, %v11761_v10  ;;  %v11782_v41 = vadd.f32 %v5767_v12, %v5490_v47  ;;  %8819 = vpow2.f32 %v4827_v2 }
 0x3b0   : > { %v4510_v45 = vmul.f32 %v4478_v15, %v4385_v1  ;;  %v11784_v15 = vld [vmem:[#allocation2 + $0xd1] sm:$0xff] }
 0x3b1   : > { %8430 = vmatmul.msk.f32.gmra.mxu2 %vm976_vm1, %v11674_v57  ;;  %v11775_v43 = vand.u32 2147483647, %v11767_v31  ;;  %v11777_v57 = vpop.f32.mrf.mxu0  ;;  %8402 = vmatmul.msk.f32.gmra.mxu1 %vm976_vm1, %v11784_v15  ;;  %vm3808_vm11 = vcmp.ge.f32.partialorder %v11767_v31, 0.0 }
 0x3b2   : > { %v4542_v39 = vadd.f32 1.4214138, %v4510_v45  ;;  %v11770_v8 = vpop.f32.mrf.mxu1  ;;  %13532 = vst [vmem:[#allocation73_spill] sm:$0xff] %v11777_v57  ;;  %v11791_v45 = vld [vmem:[#allocation2 + $0xd0] sm:$0xff]  ;;  %v5640_v57 = vmul.f32 %v13533_v54, %v5608_v55  ;;  %v11813_v55 = vld [vmem:[#allocation2 + $0xd9] sm:$0xff]  ;;  %v3742_v54 = vmul.f32 0.5, %v11665_v63 }
 0x3b3   : > { %v3904_v25 = vmul.f32 0.3275911, %v11775_v43  ;;  %v5492_v12 = vpop.f32.mrf.mxu2 }
 0x3b4   : > { %v4574_v3 = vmul.f32 %v4542_v39, %v4385_v1  ;;  %v8818_v61 = vpop.eup %8817 }
 0x3b5   : > { %v4388_v16 = vmul.f32 %v8818_v61, %v11758_v7  ;;  %v11794_v39 = vadd.f32 1.0, %v3904_v25  ;;  %vm4393_vm2 = vweird.f32 %v8818_v61 }
 0x3b6   : > { %8465 = vmatmul.msk.f32.gmra.mxu3 %vm976_vm1, %v5607_v36  ;;  %v4606_v58 = vadd.f32 -0.28449672, %v4574_v3  ;;  %v5493_v3 = vadd.f32 %v5492_v12, %v11474_v37  ;;  %v5770_v36 = vpop.f32.mrf.mxu3  ;;  %v4396_v37 = vand.u32 2147483647, %v11758_v7  ;;  %vm4394_vm5 = vmor %vm4392_vm4, %vm4393_vm2 }
 0x3b7   : > { %8500 = vmatmul.msk.f32.gmra.mxu0 %vm976_vm1, %v11772_v33  ;;  %v4389_v47 = vsub.f32 1.0, %v4388_v16  ;;  %8821 = vrcp.f32 %v11794_v39  ;;  %vm4407_vm8 = vweird.f32 %v11794_v39 }
 0x3b8   : > { %v4638_v34 = vmul.f32 %v4606_v58, %v4385_v1  ;;  %v5951_v58 = vmul.f32 %v9297_v40, %v11791_v45  ;;  %v11803_v25 = vadd.f32 %v5770_v36, %v5493_v3  ;;  %vm4397_vm6 = vcmp.eq.f32.partialorder %v4396_v37, 8.507059e+37 }
 0x3b9   : > { %8431 = vmatmul.msk.f32.gmra.mxu2 %vm976_vm1, %v5116_v20  ;;  %v8820_v20 = vpop.eup %8819  ;;  %v11808_v16 = vpop.f32.mrf.mxu0  ;;  %8403 = vmatmul.msk.f32.gmra.mxu1 %vm976_vm1, %v11813_v55 }
 0x3ba   : > { %v4670_v2 = vadd.f32 0.2548296, %v4638_v34  ;;  %13534 = vst [vmem:[#allocation76_spill] sm:$0xff] %v11803_v25  ;;  %v11805_v11 = vpop.f32.mrf.mxu1  ;;  %v4390_v34 = vmul.f32 %v8818_v61, %v4389_v47  ;;  %v4399_v47 = vor.u32 1.1754944e-38, %v4398_v49 }
 0x3bb   : > { %13535 = vst [vmem:[#allocation4_spill] sm:$0xff] %v11808_v16  ;;  %v5495_v62 = vpop.f32.mrf.mxu2 }
 0x3bc   : > { %v4702_v42 = vmul.f32 %v4670_v2, %v4385_v1  ;;  %v4391_v12 = vadd.f32 %v8818_v61, %v4390_v34  ;;  %v4735_v2 = vsub.f32 0.0, %v11746_v50  ;;  %v5496_v49 = vadd.f32 %v5495_v62, %v11510_v52 }
 0x3bd   : > { %v8822_v36 = vpop.eup %8821 }
 0x3be   : > { %8466 = vmatmul.msk.f32.gmra.mxu3 %vm976_vm1, %v5640_v57  ;;  %v4862_v1 = vmul.f32 %v8820_v20, %v4702_v42  ;;  %v3838_v57 = vsel %vm3806_vm3, 1.0, %v13487_v23  ;;  %v4403_v7 = vmul.f32 %v8822_v36, %v11794_v39  ;;  %v5773_v16 = vpop.f32.mrf.mxu3  ;;  %vm4408_vm7 = vweird.f32 %v8822_v36 }
 0x3bf   : > { %8501 = vmatmul.msk.f32.gmra.mxu0 %vm976_vm1, %v5951_v58  ;;  %v4395_v58 = vsel %vm4394_vm5, %v8818_v61, %v4391_v12  ;;  %v4413_v12 = vand.u32 2147483648, %v11794_v39  ;;  %vm4409_vm9 = vmor %vm4407_vm8, %vm4408_vm7 }
 0x3c0   : > { %v4894_v3 = vsub.f32 1.0, %v4862_v1  ;;  %v11822_v20 = vsel %vm4397_vm6, %v4399_v47, %v4395_v58  ;;  %v4767_v1 = vmul.f32 %v4735_v2, %v11746_v50  ;;  %v4404_v37 = vsub.f32 1.0, %v4403_v7  ;;  %v11845_v2 = vld [vmem:[#allocation2 + $0xe1] sm:$0xff] }
 0x3c1   : > { %8432 = vmatmul.msk.f32.gmra.mxu2 %vm976_vm1, %v11714_v35  ;;  %v4447_v34 = vmul.f32 1.0614054, %v11822_v20  ;;  %v11832_v35 = vld [vmem:[#allocation2 + $0xc2] sm:$0xff]  ;;  %v11838_v58 = vpop.f32.mrf.mxu0  ;;  %v4411_v50 = vand.u32 2147483647, %v11794_v39  ;;  %8404 = vmatmul.msk.f32.gmra.mxu1 %vm976_vm1, %v11845_v2 }
 0x3c2   : > { %v4926_v42 = vmul.f32 %v4894_v3, %v3838_v57  ;;  %v11830_v25 = vpop.f32.mrf.mxu1  ;;  %v11834_v3 = vld [vmem:[#allocation2 + $0xd8] sm:$0xff]  ;;  %v11836_v57 = vadd.f32 %v5773_v16, %v5496_v49  ;;  %13536 = vst [vmem:[#allocation48_spill] sm:$0xff] %v11838_v58  ;;  %v4405_v63 = vmul.f32 %v8822_v36, %v4404_v37  ;;  %v11850_v16 = vld [vmem:[#allocation2 + $0xca] sm:$0xff]  ;;  %v11857_v49 = vld [vmem:[#allocation2 + $0xe0] sm:$0xff] }
 0x3c3   : > { %v4479_v47 = vadd.f32 -1.4531521, %v4447_v34  ;;  %v8543_v34 = vld [vmem:[%s13225_s3 + $0x14] sm:$0xf]  ;;  %v8577_v37 = vld [vmem:[%s13225_s3 + $0x18] sm:$0xf] }
 0x3c4   : > { %v4958_v61 = vadd.f32 1.0, %v4926_v42  ;;  %v4829_v42 = vmul.f32 1.442695, %v4767_v1  ;;  %v4406_v7 = vadd.f32 %v8822_v36, %v4405_v63  ;;  %v5498_v1 = vpop.f32.mrf.mxu2  ;;  %8544 = vmatpush.msk.msra.mxu2 %vm1242_vm0, %v8543_v34  ;;  %v8611_v39 = vld [vmem:[%s13225_s3 + $0x1c] sm:$0xf]  ;;  %vm4412_vm10 = vcmp.eq.f32.partialorder %v4411_v50, 8.507059e+37  ;;  %8578 = vmatpush.msk.msra.mxu3 %vm1242_vm0, %v8577_v37 }
 0x3c5   : > { %v4511_v62 = vmul.f32 %v4479_v47, %v11822_v20  ;;  %8612 = vmatpush.msk.msra.mxu0 %vm1242_vm0, %v8611_v39  ;;  %v8645_v63 = vld [vmem:[%s13225_s3 + $0x20] sm:$0xf]  ;;  %v11886_v37 = vld [vmem:[#allocation2 + $0xe9] sm:$0xff] }
 0x3c6   : > { %8467 = vmatmul.msk.f32.gmra.mxu3 %vm976_vm1, %v11832_v35  ;;  %v4990_v52 = vmul.f32 %v4958_v61, %v3742_v54  ;;  %v4414_v54 = vor.u32 1.1754944e-38, %v4413_v12  ;;  %v5118_v12 = vmul.f32 %v9297_v40, %v11734_v30  ;;  %v4410_v47 = vsel %vm4409_vm9, %v8822_v36, %v4406_v7  ;;  %v5776_v36 = vpop.f32.mrf.mxu3  ;;  %8646 = vmatpush.msk.msra.mxu1 %vm1242_vm0, %v8645_v63 }
 0x3c7   : > { %8502 = vmatmul.msk.f32.gmra.mxu0 %vm976_vm1, %v11834_v3  ;;  %v4543_v61 = vadd.f32 1.4214138, %v4511_v62  ;;  %v5642_v62 = vmul.f32 %v9827_v21, %v11850_v16  ;;  %v4736_v30 = vsub.f32 0.0, %v11775_v43  ;;  %8823 = vpow2.f32 %v4829_v42 }
 0x3c8   : > { %5059 = vst.msk [vmem:[#allocation2 + $0xf9] sm:$0xff] %vm976_vm1, %v4990_v52  ;;  %v5499_v52 = vadd.f32 %v5498_v1, %v11550_v59  ;;  %v4415_v58 = vsel %vm4412_vm10, %v4414_v54, %v4410_v47  ;;  %v5953_v59 = vmul.f32 %v9342_v14, %v11857_v49  ;;  %vm3807_vm0 = vcmp.ge.f32.partialorder %v11739_v26, 0.0  ;;  %v11922_v26 = vld [vmem:[#allocation2 + $0xf0] sm:$0xff] }
 0x3c9   : > { %v4575_v34 = vmul.f32 %v4543_v61, %v11822_v20  ;;  %8433 = vmatmul.msk.f32.gmra.mxu2 %vm976_vm1, %v5118_v12  ;;  %v4448_v50 = vmul.f32 1.0614054, %v4415_v58  ;;  %v11888_v61 = vpop.f32.mrf.mxu0  ;;  %v4768_v47 = vmul.f32 %v4736_v30, %v11775_v43  ;;  %8405 = vmatmul.msk.f32.gmra.mxu1 %vm976_vm1, %v11886_v37  ;;  %v11904_v30 = vld [vmem:[#allocation2 + $0xf1] sm:$0xff] }
 0x3ca   : > { %v11882_v7 = vadd.f32 %v5776_v36, %v5499_v52  ;;  %v11884_v1 = vpop.f32.mrf.mxu1  ;;  %13538 = vst [vmem:[#allocation51_spill] sm:$0xff] %v11888_v61 }
 0x3cb   : > { %v4607_v39 = vadd.f32 -0.28449672, %v4575_v34  ;;  %v4480_v54 = vadd.f32 -1.4531521, %v4448_v50 }
 0x3cc   : > { %13537 = vst [vmem:[#allocation50_spill] sm:$0xff] %v11882_v7  ;;  %v5501_v36 = vpop.f32.mrf.mxu2 }
 0x3cd   : > { %v4639_v12 = vmul.f32 %v4607_v39, %v11822_v20  ;;  %v4512_v52 = vmul.f32 %v4480_v54, %v4415_v58  ;;  %v5502_v34 = vadd.f32 %v5501_v36, %v11594_v19  ;;  %v8824_v42 = vpop.eup %8823  ;;  %v11906_v39 = vld [vmem:[#allocation2 + $0xd2] sm:$0xff]  ;;  %v11908_v54 = vld [vmem:[#allocation2 + $0xe8] sm:$0xff] }
 0x3ce   : > { %8468 = vmatmul.msk.f32.gmra.mxu3 %vm976_vm1, %v5642_v62  ;;  %v4831_v62 = vmul.f32 1.442695, %v4768_v47  ;;  %v5779_v7 = vpop.f32.mrf.mxu3  ;;  %v11920_v47 = vld [vmem:[#allocation2 + $0xda] sm:$0xff] }
 0x3cf   : > { %8503 = vmatmul.msk.f32.gmra.mxu0 %vm976_vm1, %v5953_v59  ;;  %v4671_v63 = vadd.f32 0.2548296, %v4639_v12  ;;  %v4544_v21 = vadd.f32 1.4214138, %v4512_v52  ;;  %v11900_v50 = vadd.f32 %v5779_v7, %v5502_v34  ;;  %v3839_v7 = vsel %vm3807_vm0, 1.0, %v13487_v23 }
 0x3d0   : > { %8825 = vpow2.f32 %v4831_v62  ;;  %v3743_v62 = vmul.f32 0.5, %v11732_v56 }
 0x3d1   : > { %v4703_v61 = vmul.f32 %v4671_v63, %v11822_v20  ;;  %8434 = vmatmul.msk.f32.gmra.mxu2 %vm976_vm1, %v11772_v33  ;;  %v4576_v59 = vmul.f32 %v4544_v21, %v4415_v58  ;;  %v11911_v20 = vpop.f32.mrf.mxu0  ;;  %8406 = vmatmul.msk.f32.gmra.mxu1 %vm976_vm1, %v11904_v30  ;;  %v5120_v63 = vmul.f32 %v9342_v14, %v11791_v45  ;;  %v11937_v45 = vld [vmem:[#allocation2 + $0xf9] sm:$0xff] }
 0x3d2   : > { %v11902_v43 = vpop.f32.mrf.mxu1  ;;  %13539 = vst [vmem:[#allocation53_spill] sm:$0xff] %v11911_v20 }
 0x3d3   : > { %v4863_v19 = vmul.f32 %v8824_v42, %v4703_v61  ;;  %v4608_v21 = vadd.f32 -0.28449672, %v4576_v59 }
 0x3d4   : > { %v5504_v52 = vpop.f32.mrf.mxu2 }
 0x3d5   : > { %v4895_v33 = vsub.f32 1.0, %v4863_v19  ;;  %v4640_v12 = vmul.f32 %v4608_v21, %v4415_v58  ;;  %v5505_v34 = vadd.f32 %v5504_v52, %v11625_v24  ;;  %v5644_v19 = vmul.f32 %v9863_v17, %v11920_v47 }
 0x3d6   : > { %8469 = vmatmul.msk.f32.gmra.mxu3 %vm976_vm1, %v11906_v39  ;;  %v5782_v59 = vpop.f32.mrf.mxu3  ;;  %v5955_v21 = vmul.f32 %v9379_v32, %v11922_v26  ;;  %v8826_v24 = vpop.eup %8825  ;;  %v3840_v52 = vsel %vm3808_vm11, 1.0, %v13487_v23  ;;  %v11996_v23 = vld [vmem:[#allocation2 + $0xf2] sm:$0xff] }
 0x3d7   : > { %8504 = vmatmul.msk.f32.gmra.mxu0 %vm976_vm1, %v11908_v54  ;;  %v4927_v61 = vmul.f32 %v4895_v33, %v3839_v7  ;;  %v4672_v36 = vadd.f32 0.2548296, %v4640_v12  ;;  %v11933_v7 = vadd.f32 %v5782_v59, %v5505_v34  ;;  %13543 = vst [vmem:[#allocation59_spill] sm:$0xff] %v11996_v23 }
 0x3d9   : > { %v4959_v42 = vadd.f32 1.0, %v4927_v61  ;;  %8435 = vmatmul.msk.f32.gmra.mxu2 %vm976_vm1, %v5120_v63  ;;  %v4704_v33 = vmul.f32 %v4672_v36, %v4415_v58  ;;  %v11939_v56 = vpop.f32.mrf.mxu0  ;;  %8407 = vmatmul.msk.f32.gmra.mxu1 %vm976_vm1, %v11937_v45 }
 0x3da   : > { %v11935_v20 = vpop.f32.mrf.mxu1 }
 0x3db   : > { %v4991_v12 = vmul.f32 %v4959_v42, %v3743_v62  ;;  %v4864_v61 = vmul.f32 %v8826_v24, %v4704_v33  ;;  %v3744_v42 = vmul.f32 0.5, %v11761_v10  ;;  %v11958_v33 = vld [vmem:[#allocation2 + $0xf8] sm:$0xff]  ;;  %v11968_v10 = vld [vmem:[#allocation2 + $0xea] sm:$0xff] }
 0x3dc   : > { %v5507_v63 = vpop.f32.mrf.mxu2 }
 0x3dd   : > { %5060 = vst.msk [vmem:[#allocation2 + $0x101] sm:$0xff] %vm976_vm1, %v4991_v12  ;;  %v4896_v58 = vsub.f32 1.0, %v4864_v61  ;;  %v5508_v34 = vadd.f32 %v5507_v63, %v11654_v38  ;;  %v6205_v12 = vld [vmem:[#allocation2 + $0x11] sm:$0xff] }
 0x3de   : > { %8470 = vmatmul.msk.f32.gmra.mxu3 %vm976_vm1, %v5644_v19  ;;  %v5785_v62 = vpop.f32.mrf.mxu3 }
 0x3df   : > { %8505 = vmatmul.msk.f32.gmra.mxu0 %vm976_vm1, %v5955_v21  ;;  %v4928_v36 = vmul.f32 %v4896_v58, %v3840_v52  ;;  %v11952_v59 = vadd.f32 %v5785_v62, %v5508_v34  ;;  %v11956_v21 = vld [vmem:[#allocation2 + $0xe2] sm:$0xff]  ;;  %v5122_v52 = vmul.f32 %v9379_v32, %v11857_v49  ;;  %v5646_v34 = vmul.f32 %v9900_v5, %v11968_v10 }
 0x3e1   : > { %8436 = vmatmul.msk.f32.gmra.mxu2 %vm976_vm1, %v11834_v3  ;;  %v4960_v31 = vadd.f32 1.0, %v4928_v36  ;;  %v11960_v24 = vpop.f32.mrf.mxu0  ;;  %8511 = vmatmul.msk.f32.vlgmr.msrb.gmra.mxu1 %vm976_vm1, %v6205_v12 }
 0x3e2   : > { %v11954_v19 = vpop.f32.mrf.mxu1  ;;  %13540 = vst [vmem:[#allocation54_spill] sm:$0xff] %v11960_v24 }
 0x3e3   : > { %v4992_v38 = vmul.f32 %v4960_v31, %v3744_v42 }
 0x3e4   : > { %v11970_v61 = vld [vmem:[#allocation2 + $0x100] sm:$0xff]  ;;  %v5510_v58 = vpop.f32.mrf.mxu2 }
 0x3e5   : > { %5061 = vst.msk [vmem:[#allocation2 + $0x109] sm:$0xff] %vm976_vm1, %v4992_v38  ;;  %v5511_v63 = vadd.f32 %v5510_v58, %v11692_v60  ;;  %v5957_v62 = vmul.f32 %v9426_v51, %v11970_v61  ;;  %v6206_v60 = vld [vmem:[#allocation2 + $0x19] sm:$0xff] }
 0x3e6   : > { %8471 = vmatmul.msk.f32.gmra.mxu3 %vm976_vm1, %v11956_v21  ;;  %v5788_v36 = vpop.f32.mrf.mxu3 }
 0x3e7   : > { %8506 = vmatmul.msk.f32.gmra.mxu0 %vm976_vm1, %v11958_v33  ;;  %v11980_v42 = vadd.f32 %v5788_v36, %v5511_v63 }
 0x3e9   : > { %8437 = vmatmul.msk.f32.gmra.mxu2 %vm976_vm1, %v5122_v52  ;;  %v11984_v38 = vpop.f32.mrf.mxu0  ;;  %8512 = vmatmul.msk.f32.gmra.mxu1 %vm976_vm1, %v6206_v60 }
 0x3ea   : > { %v11982_v31 = vpop.f32.mrf.mxu1  ;;  %13541 = vst [vmem:[#allocation56_spill] sm:$0xff] %v11984_v38 }
 0x3ec   : > { %v5513_v12 = vpop.f32.mrf.mxu2  ;;  %v11998_v38 = vld [vmem:[#allocation2 + $0x108] sm:$0xff] }
 0x3ed   : > { %v5514_v58 = vadd.f32 %v5513_v12, %v11712_v22  ;;  %13544 = vst [vmem:[#allocation60_spill] sm:$0xff] %v11998_v38  ;;  %v6207_v22 = vld [vmem:[#allocation2 + $0x21] sm:$0xff]  ;;  %v5124_v12 = vmul.f32 %v9426_v51, %v11922_v26 }
 0x3ee   : > { %8472 = vmatmul.msk.f32.gmra.mxu3 %vm976_vm1, %v5646_v34  ;;  %v5791_v52 = vpop.f32.mrf.mxu3 }
 0x3ef   : > { %8507 = vmatmul.msk.f32.gmra.mxu0 %vm976_vm1, %v5957_v62  ;;  %v11992_v63 = vadd.f32 %v5791_v52, %v5514_v58  ;;  %v12007_v62 = vld [vmem:[#allocation2 + $0xfa] sm:$0xff] }
 0x3f0   : > { %13546 = vst [vmem:[#allocation66_spill] sm:$0xff] %v12007_v62 }
 0x3f1   : > { %8438 = vmatmul.msk.f32.gmra.mxu2 %vm976_vm1, %v11908_v54  ;;  %13542 = vst [vmem:[#allocation57_spill] sm:$0xff] %v11992_v63  ;;  %v12000_v34 = vpop.f32.mrf.mxu0  ;;  %8513 = vmatmul.msk.f32.gmra.mxu1 %vm976_vm1, %v6207_v22 }
 0x3f2   : > { %v11994_v36 = vpop.f32.mrf.mxu1  ;;  %13545 = vst [vmem:[#allocation62_spill] sm:$0xff] %v12000_v34  ;;  %v5648_v34 = vmul.f32 %v9932_v13, %v12007_v62  ;;  %v6483_v13 = vld [vmem:[#allocation2 + $0x12] sm:$0xff]  ;;  %v6211_v62 = vld [vmem:[#allocation2 + $0x41] sm:$0xff] }
 0x3f4   : > { %v5516_v60 = vpop.f32.mrf.mxu2 }
 0x3f5   : > { %v5517_v58 = vadd.f32 %v5516_v60, %v11748_v27  ;;  %v6793_v27 = vld [vmem:[#allocation2 + $0x20] sm:$0xff] }
 0x3f6   : > { %8473 = vmatmul.msk.f32.gmra.mxu3 %vm976_vm1, %v11996_v23  ;;  %v5794_v52 = vpop.f32.mrf.mxu3  ;;  %v6213_v23 = vld [vmem:[#allocation2 + $0x51] sm:$0xff] }
 0x3f7   : > { %8508 = vmatmul.msk.f32.gmra.mxu0 %vm976_vm1, %v11998_v38  ;;  %v12015_v5 = vadd.f32 %v5794_v52, %v5517_v58  ;;  %v6208_v38 = vld [vmem:[#allocation2 + $0x29] sm:$0xff]  ;;  %v6825_v58 = vmul.f32 %v13434_v0, %v6793_v27 }
 0x3f8   : > { %v6794_v27 = vld [vmem:[#allocation2 + $0x28] sm:$0xff] }
 0x3f9   : > { %8439 = vmatmul.msk.f32.gmra.mxu2 %vm976_vm1, %v5124_v12  ;;  %13547 = vst [vmem:[#allocation43_spill] sm:$0xff] %v12015_v5  ;;  %v12019_v63 = vpop.f32.mrf.mxu0  ;;  %8514 = vmatmul.msk.f32.gmra.mxu1 %vm976_vm1, %v6208_v38 }
 0x3fa   : > { %v12017_v24 = vpop.f32.mrf.mxu1  ;;  %13548 = vst [vmem:[#allocation63_spill] sm:$0xff] %v12019_v63 }
 0x3fc   : > { %v5519_v60 = vpop.f32.mrf.mxu2 }
 0x3fd   : > { %v5520_v12 = vadd.f32 %v5519_v60, %v11770_v8 }
 0x3fe   : > { %8474 = vmatmul.msk.f32.gmra.mxu3 %vm976_vm1, %v5648_v34  ;;  %v5797_v51 = vpop.f32.mrf.mxu3 }
 0x3ff   : > { %8613 = vmatmul.msk.f32.vlgmr.msra.gmra.mxu0 %vm976_vm1, %v6207_v22  ;;  %v12028_v52 = vadd.f32 %v5797_v51, %v5520_v12  ;;  %v6209_v22 = vld [vmem:[#allocation2 + $0x31] sm:$0xff] }
 0x401   : > { %8440 = vmatmul.msk.f32.gmra.mxu2 %vm976_vm1, %v11958_v33  ;;  %13549 = vst [vmem:[#allocation67_spill] sm:$0xff] %v12028_v52  ;;  %v12032_v34 = vpop.f32.mrf.mxu0  ;;  %8515 = vmatmul.msk.f32.gmra.mxu1 %vm976_vm1, %v6209_v22 }
 0x402   : > { %v12030_v63 = vpop.f32.mrf.mxu1  ;;  %13550 = vst [vmem:[#allocation45_spill] sm:$0xff] %v12032_v34  ;;  %v13553_v34 = vld [vmem:[#allocation47_spill] sm:$0xff] }
 0x404   : > { %v5522_v8 = vpop.f32.mrf.mxu2 }
 0x405   : > { %v5523_v60 = vadd.f32 %v5522_v8, %v11805_v11  ;;  %v6795_v11 = vld [vmem:[#allocation2 + $0x30] sm:$0xff] }
 0x406   : > { %8579 = vmatmul.msk.f32.vlgmr.msra.gmra.mxu3 %vm976_vm1, %v6825_v58  ;;  %v5800_v5 = vpop.f32.mrf.mxu3  ;;  %v6484_v58 = vld [vmem:[#allocation2 + $0x1a] sm:$0xff] }
 0x407   : > { %8614 = vmatmul.msk.f32.gmra.mxu0 %vm976_vm1, %v6208_v38  ;;  %v12039_v51 = vadd.f32 %v5800_v5, %v5523_v60  ;;  %v6210_v38 = vld [vmem:[#allocation2 + $0x39] sm:$0xff]  ;;  %v6516_v52 = vmul.f32 %v13553_v34, %v6484_v58  ;;  %v13554_v60 = vld [vmem:[#allocation16_spill] sm:$0xff] }
 0x409   : > { %8545 = vmatmul.msk.f32.vlgmr.msra.gmra.mxu2 %vm976_vm1, %v6483_v13  ;;  %13551 = vst [vmem:[#allocation69_spill] sm:$0xff] %v12039_v51  ;;  %v12043_v12 = vpop.f32.mrf.mxu0  ;;  %8516 = vmatmul.msk.f32.gmra.mxu1 %vm976_vm1, %v6210_v38  ;;  %v6827_v51 = vmul.f32 %v13554_v60, %v6795_v11  ;;  %v12074_v60 = vld [vmem:[#allocation2 + $0x2a] sm:$0xff] }
 0x40a   : > { %v12041_v0 = vpop.f32.mrf.mxu1  ;;  %13552 = vst [vmem:[#allocation14_spill] sm:$0xff] %v12043_v12 }
 0x40b   : > { %13559 = vst [vmem:[#allocation27_spill] sm:$0xff] %v12074_v60 }
 0x40c   : > { %v5525_v8 = vpop.f32.mrf.mxu2 }
 0x40d   : > { %v5526_v5 = vadd.f32 %v5525_v8, %v11830_v25  ;;  %v12062_v8 = vld [vmem:[#allocation2 + $0x22] sm:$0xff] }
 0x40e   : > { %8580 = vmatmul.msk.f32.gmra.mxu3 %vm976_vm1, %v6794_v27  ;;  %v5803_v13 = vpop.f32.mrf.mxu3 }
 0x40f   : > { %8615 = vmatmul.msk.f32.gmra.mxu0 %vm976_vm1, %v6209_v22  ;;  %v12052_v12 = vadd.f32 %v5803_v13, %v5526_v5  ;;  %v6796_v13 = vld [vmem:[#allocation2 + $0x38] sm:$0xff] }
 0x411   : > { %8546 = vmatmul.msk.f32.gmra.mxu2 %vm976_vm1, %v6516_v52  ;;  %13555 = vst [vmem:[#allocation65_spill] sm:$0xff] %v12052_v12  ;;  %v12056_v22 = vpop.f32.mrf.mxu0  ;;  %8517 = vmatmul.msk.f32.gmra.mxu1 %vm976_vm1, %v6211_v62 }
 0x412   : > { %v12054_v27 = vpop.f32.mrf.mxu1  ;;  %13556 = vst [vmem:[#allocation72_spill] sm:$0xff] %v12056_v22  ;;  %v13560_v22 = vld [vmem:[#allocation49_spill] sm:$0xff] }
 0x414   : > { %v5528_v58 = vpop.f32.mrf.mxu2 }
 0x415   : > { %v5529_v25 = vadd.f32 %v5528_v58, %v11884_v1  ;;  %v6797_v1 = vld [vmem:[#allocation2 + $0x40] sm:$0xff] }
 0x416   : > { %8581 = vmatmul.msk.f32.gmra.mxu3 %vm976_vm1, %v6827_v51  ;;  %v5806_v52 = vpop.f32.mrf.mxu3 }
 0x417   : > { %8616 = vmatmul.msk.f32.gmra.mxu0 %vm976_vm1, %v6210_v38  ;;  %v12066_v11 = vadd.f32 %v5806_v52, %v5529_v25  ;;  %v6212_v38 = vld [vmem:[#allocation2 + $0x49] sm:$0xff]  ;;  %v6518_v25 = vmul.f32 %v13560_v22, %v12074_v60  ;;  %v6215_v60 = vld [vmem:[#allocation2 + $0x61] sm:$0xff] }
 0x419   : > { %8547 = vmatmul.msk.f32.gmra.mxu2 %vm976_vm1, %v12062_v8  ;;  %13557 = vst [vmem:[#allocation21_spill] sm:$0xff] %v12066_v11  ;;  %v12070_v51 = vpop.f32.mrf.mxu0  ;;  %8518 = vmatmul.msk.f32.gmra.mxu1 %vm976_vm1, %v6212_v38 }
 0x41a   : > { %v12068_v5 = vpop.f32.mrf.mxu1  ;;  %13558 = vst [vmem:[#allocation74_spill] sm:$0xff] %v12070_v51  ;;  %v13561_v51 = vld [vmem:[#allocation22_spill] sm:$0xff] }
 0x41b   : > { %v6829_v12 = vmul.f32 %v13561_v51, %v6797_v1  ;;  %v6798_v1 = vld [vmem:[#allocation2 + $0x48] sm:$0xff] }
 0x41c   : > { %v5531_v58 = vpop.f32.mrf.mxu2 }
 0x41d   : > { %v5532_v52 = vadd.f32 %v5531_v58, %v11902_v43  ;;  %v12092_v58 = vld [vmem:[#allocation2 + $0x32] sm:$0xff] }
 0x41e   : > { %8582 = vmatmul.msk.f32.gmra.mxu3 %vm976_vm1, %v6796_v13  ;;  %v5809_v11 = vpop.f32.mrf.mxu3  ;;  %13564 = vst [vmem:[#allocation16_spill] sm:$0xff] %v12092_v58 }
 0x41f   : > { %8617 = vmatmul.msk.f32.gmra.mxu0 %vm976_vm1, %v6211_v62  ;;  %v12082_v13 = vadd.f32 %v5809_v11, %v5532_v52  ;;  %v12104_v52 = vld [vmem:[#allocation2 + $0x3a] sm:$0xff] }
 0x420   : > { %13567 = vst [vmem:[#allocation84_spill] sm:$0xff] %v12104_v52 }
 0x421   : > { %8548 = vmatmul.msk.f32.gmra.mxu2 %vm976_vm1, %v6518_v25  ;;  %13562 = vst [vmem:[#allocation68_spill] sm:$0xff] %v12082_v13  ;;  %v12086_v34 = vpop.f32.mrf.mxu0  ;;  %8519 = vmatmul.msk.f32.gmra.mxu1 %vm976_vm1, %v6213_v23 }
 0x422   : > { %v12084_v62 = vpop.f32.mrf.mxu1  ;;  %13563 = vst [vmem:[#allocation70_spill] sm:$0xff] %v12086_v34  ;;  %v13568_v34 = vld [vmem:[#allocation52_spill] sm:$0xff] }
 0x424   : > { %v5534_v22 = vpop.f32.mrf.mxu2 }
 0x425   : > { %v5535_v43 = vadd.f32 %v5534_v22, %v11935_v20  ;;  %v6799_v20 = vld [vmem:[#allocation2 + $0x50] sm:$0xff] }
 0x426   : > { %8583 = vmatmul.msk.f32.gmra.mxu3 %vm976_vm1, %v6829_v12  ;;  %v5812_v25 = vpop.f32.mrf.mxu3 }
 0x427   : > { %8618 = vmatmul.msk.f32.gmra.mxu0 %vm976_vm1, %v6212_v38  ;;  %v12096_v11 = vadd.f32 %v5812_v25, %v5535_v43  ;;  %v6214_v38 = vld [vmem:[#allocation2 + $0x59] sm:$0xff]  ;;  %v6520_v43 = vmul.f32 %v13568_v34, %v12104_v52  ;;  %v6217_v52 = vld [vmem:[#allocation2 + $0x71] sm:$0xff] }
 0x429   : > { %8549 = vmatmul.msk.f32.gmra.mxu2 %vm976_vm1, %v12092_v58  ;;  %13565 = vst [vmem:[#allocation22_spill] sm:$0xff] %v12096_v11  ;;  %v12100_v12 = vpop.f32.mrf.mxu0  ;;  %8520 = vmatmul.msk.f32.gmra.mxu1 %vm976_vm1, %v6214_v38 }
 0x42a   : > { %v12098_v51 = vpop.f32.mrf.mxu1  ;;  %13566 = vst [vmem:[#allocation83_spill] sm:$0xff] %v12100_v12  ;;  %v13569_v12 = vld [vmem:[#allocation28_spill] sm:$0xff] }
 0x42b   : > { %v6831_v13 = vmul.f32 %v13569_v12, %v6799_v20  ;;  %v6800_v20 = vld [vmem:[#allocation2 + $0x58] sm:$0xff] }
 0x42c   : > { %v5537_v22 = vpop.f32.mrf.mxu2 }
 0x42d   : > { %v5538_v25 = vadd.f32 %v5537_v22, %v11954_v19  ;;  %v12122_v22 = vld [vmem:[#allocation2 + $0x42] sm:$0xff] }
 0x42e   : > { %8584 = vmatmul.msk.f32.gmra.mxu3 %vm976_vm1, %v6798_v1  ;;  %v5815_v11 = vpop.f32.mrf.mxu3  ;;  %13572 = vst [vmem:[#allocation86_spill] sm:$0xff] %v12122_v22 }
 0x42f   : > { %8619 = vmatmul.msk.f32.gmra.mxu0 %vm976_vm1, %v6213_v23  ;;  %v12112_v1 = vadd.f32 %v5815_v11, %v5538_v25  ;;  %v12134_v25 = vld [vmem:[#allocation2 + $0x4a] sm:$0xff] }
 0x430   : > { %13575 = vst [vmem:[#allocation89_spill] sm:$0xff] %v12134_v25 }
 0x431   : > { %8550 = vmatmul.msk.f32.gmra.mxu2 %vm976_vm1, %v6520_v43  ;;  %13570 = vst [vmem:[#allocation28_spill] sm:$0xff] %v12112_v1  ;;  %v12116_v58 = vpop.f32.mrf.mxu0  ;;  %8521 = vmatmul.msk.f32.gmra.mxu1 %vm976_vm1, %v6215_v60 }
 0x432   : > { %v12114_v23 = vpop.f32.mrf.mxu1  ;;  %13571 = vst [vmem:[#allocation85_spill] sm:$0xff] %v12116_v58  ;;  %v13576_v58 = vld [vmem:[#allocation55_spill] sm:$0xff] }
 0x434   : > { %v5540_v34 = vpop.f32.mrf.mxu2 }
 0x435   : > { %v5541_v19 = vadd.f32 %v5540_v34, %v11982_v31  ;;  %v6801_v31 = vld [vmem:[#allocation2 + $0x60] sm:$0xff] }
 0x436   : > { %8585 = vmatmul.msk.f32.gmra.mxu3 %vm976_vm1, %v6831_v13  ;;  %v5818_v43 = vpop.f32.mrf.mxu3 }
 0x437   : > { %8620 = vmatmul.msk.f32.gmra.mxu0 %vm976_vm1, %v6214_v38  ;;  %v12126_v11 = vadd.f32 %v5818_v43, %v5541_v19  ;;  %v6216_v38 = vld [vmem:[#allocation2 + $0x69] sm:$0xff]  ;;  %v6522_v19 = vmul.f32 %v13576_v58, %v12134_v25  ;;  %v6219_v25 = vld [vmem:[#allocation2 + $0x81] sm:$0xff] }
 0x439   : > { %8551 = vmatmul.msk.f32.gmra.mxu2 %vm976_vm1, %v12122_v22  ;;  %13573 = vst [vmem:[#allocation87_spill] sm:$0xff] %v12126_v11  ;;  %v12130_v13 = vpop.f32.mrf.mxu0  ;;  %8522 = vmatmul.msk.f32.gmra.mxu1 %vm976_vm1, %v6216_v38 }
 0x43a   : > { %v12128_v12 = vpop.f32.mrf.mxu1  ;;  %13574 = vst [vmem:[#allocation88_spill] sm:$0xff] %v12130_v13  ;;  %v13577_v13 = vld [vmem:[#allocation34_spill] sm:$0xff] }
 0x43b   : > { %v6833_v1 = vmul.f32 %v13577_v13, %v6801_v31  ;;  %v6802_v31 = vld [vmem:[#allocation2 + $0x68] sm:$0xff] }
 0x43c   : > { %v5543_v34 = vpop.f32.mrf.mxu2 }
 0x43d   : > { %v5544_v43 = vadd.f32 %v5543_v34, %v11994_v36  ;;  %v12152_v34 = vld [vmem:[#allocation2 + $0x52] sm:$0xff] }
 0x43e   : > { %8586 = vmatmul.msk.f32.gmra.mxu3 %vm976_vm1, %v6800_v20  ;;  %v5821_v11 = vpop.f32.mrf.mxu3  ;;  %13580 = vst [vmem:[#allocation91_spill] sm:$0xff] %v12152_v34 }
 0x43f   : > { %8621 = vmatmul.msk.f32.gmra.mxu0 %vm976_vm1, %v6215_v60  ;;  %v12142_v20 = vadd.f32 %v5821_v11, %v5544_v43  ;;  %v12164_v43 = vld [vmem:[#allocation2 + $0x5a] sm:$0xff] }
 0x441   : > { %8552 = vmatmul.msk.f32.gmra.mxu2 %vm976_vm1, %v6522_v19  ;;  %13578 = vst [vmem:[#allocation34_spill] sm:$0xff] %v12142_v20  ;;  %v12146_v22 = vpop.f32.mrf.mxu0  ;;  %8523 = vmatmul.msk.f32.gmra.mxu1 %vm976_vm1, %v6217_v52 }
 0x442   : > { %v12144_v60 = vpop.f32.mrf.mxu1  ;;  %13579 = vst [vmem:[#allocation90_spill] sm:$0xff] %v12146_v22  ;;  %v13583_v22 = vld [vmem:[#allocation58_spill] sm:$0xff] }
 0x444   : > { %v5546_v58 = vpop.f32.mrf.mxu2 }
 0x445   : > { %v5547_v36 = vadd.f32 %v5546_v58, %v12017_v24  ;;  %v6803_v24 = vld [vmem:[#allocation2 + $0x70] sm:$0xff] }
 0x446   : > { %8587 = vmatmul.msk.f32.gmra.mxu3 %vm976_vm1, %v6833_v1  ;;  %v5824_v19 = vpop.f32.mrf.mxu3 }
 0x447   : > { %8622 = vmatmul.msk.f32.gmra.mxu0 %vm976_vm1, %v6216_v38  ;;  %v12156_v11 = vadd.f32 %v5824_v19, %v5547_v36  ;;  %v6218_v38 = vld [vmem:[#allocation2 + $0x79] sm:$0xff]  ;;  %v6524_v36 = vmul.f32 %v13583_v22, %v12164_v43 }
 0x449   : > { %8553 = vmatmul.msk.f32.gmra.mxu2 %vm976_vm1, %v12152_v34  ;;  %13581 = vst [vmem:[#allocation92_spill] sm:$0xff] %v12156_v11  ;;  %v12160_v1 = vpop.f32.mrf.mxu0  ;;  %8524 = vmatmul.msk.f32.gmra.mxu1 %vm976_vm1, %v6218_v38 }
 0x44a   : > { %v12158_v13 = vpop.f32.mrf.mxu1  ;;  %13582 = vst [vmem:[#allocation93_spill] sm:$0xff] %v12160_v1  ;;  %v13584_v1 = vld [vmem:[#allocation39_spill] sm:$0xff] }
 0x44b   : > { %v6835_v20 = vmul.f32 %v13584_v1, %v6803_v24  ;;  %v6804_v24 = vld [vmem:[#allocation2 + $0x78] sm:$0xff] }
 0x44c   : > { %v5549_v58 = vpop.f32.mrf.mxu2 }
 0x44d   : > { %v5550_v19 = vadd.f32 %v5549_v58, %v12030_v63  ;;  %v12182_v58 = vld [vmem:[#allocation2 + $0x62] sm:$0xff] }
 0x44e   : > { %8588 = vmatmul.msk.f32.gmra.mxu3 %vm976_vm1, %v6802_v31  ;;  %v5827_v11 = vpop.f32.mrf.mxu3  ;;  %13587 = vst [vmem:[#allocation95_spill] sm:$0xff] %v12182_v58 }
 0x44f   : > { %8623 = vmatmul.msk.f32.gmra.mxu0 %vm976_vm1, %v6217_v52  ;;  %v12172_v31 = vadd.f32 %v5827_v11, %v5550_v19  ;;  %v12194_v19 = vld [vmem:[#allocation2 + $0x6a] sm:$0xff] }
 0x451   : > { %8554 = vmatmul.msk.f32.gmra.mxu2 %vm976_vm1, %v6524_v36  ;;  %13585 = vst [vmem:[#allocation39_spill] sm:$0xff] %v12172_v31  ;;  %v12176_v34 = vpop.f32.mrf.mxu0  ;;  %8525 = vmatmul.msk.f32.gmra.mxu1 %vm976_vm1, %v6219_v25 }
 0x452   : > { %v12174_v52 = vpop.f32.mrf.mxu1  ;;  %13586 = vst [vmem:[#allocation94_spill] sm:$0xff] %v12176_v34  ;;  %v13590_v34 = vld [vmem:[#allocation61_spill] sm:$0xff] }
 0x454   : > { %v5552_v22 = vpop.f32.mrf.mxu2 }
 0x455   : > { %v5553_v63 = vadd.f32 %v5552_v22, %v12041_v0  ;;  %v6805_v0 = vld [vmem:[#allocation2 + $0x80] sm:$0xff] }
 0x456   : > { %8589 = vmatmul.msk.f32.gmra.mxu3 %vm976_vm1, %v6835_v20  ;;  %v5830_v36 = vpop.f32.mrf.mxu3 }
 0x457   : > { %8624 = vmatmul.msk.f32.gmra.mxu0 %vm976_vm1, %v6218_v38  ;;  %v12186_v11 = vadd.f32 %v5830_v36, %v5553_v63  ;;  %v6220_v38 = vld [vmem:[#allocation2 + $0x89] sm:$0xff]  ;;  %v6526_v63 = vmul.f32 %v13590_v34, %v12194_v19 }
 0x459   : > { %8555 = vmatmul.msk.f32.gmra.mxu2 %vm976_vm1, %v12182_v58  ;;  %13588 = vst [vmem:[#allocation96_spill] sm:$0xff] %v12186_v11  ;;  %v12190_v20 = vpop.f32.mrf.mxu0  ;;  %8526 = vmatmul.msk.f32.gmra.mxu1 %vm976_vm1, %v6220_v38  ;;  %v6221_v58 = vld [vmem:[#allocation2 + $0x91] sm:$0xff] }
 0x45a   : > { %v12188_v1 = vpop.f32.mrf.mxu1  ;;  %13589 = vst [vmem:[#allocation97_spill] sm:$0xff] %v12190_v20  ;;  %v6837_v20 = vmul.f32 %v13515_v6, %v6805_v0  ;;  %v6806_v0 = vld [vmem:[#allocation2 + $0x88] sm:$0xff] }
 0x45c   : > { %v5555_v22 = vpop.f32.mrf.mxu2 }
 0x45d   : > { %v5556_v36 = vadd.f32 %v5555_v22, %v12054_v27  ;;  %v12212_v22 = vld [vmem:[#allocation2 + $0x72] sm:$0xff] }
 0x45e   : > { %8590 = vmatmul.msk.f32.gmra.mxu3 %vm976_vm1, %v6804_v24  ;;  %v5833_v11 = vpop.f32.mrf.mxu3 }
 0x45f   : > { %8625 = vmatmul.msk.f32.gmra.mxu0 %vm976_vm1, %v6219_v25  ;;  %v12202_v24 = vadd.f32 %v5833_v11, %v5556_v36  ;;  %v12224_v36 = vld [vmem:[#allocation2 + $0x7a] sm:$0xff] }
 0x461   : > { %8556 = vmatmul.msk.f32.gmra.mxu2 %vm976_vm1, %v6526_v63  ;;  %13591 = vst [vmem:[#allocation98_spill] sm:$0xff] %v12202_v24  ;;  %v12206_v31 = vpop.f32.mrf.mxu0  ;;  %8527 = vmatmul.msk.f32.gmra.mxu1 %vm976_vm1, %v6221_v58 }
 0x462   : > { %v12204_v25 = vpop.f32.mrf.mxu1  ;;  %13592 = vst [vmem:[#allocation99_spill] sm:$0xff] %v12206_v31 }
 0x464   : > { %v5558_v34 = vpop.f32.mrf.mxu2 }
 0x465   : > { %v5559_v27 = vadd.f32 %v5558_v34, %v12068_v5  ;;  %v6807_v5 = vld [vmem:[#allocation2 + $0x90] sm:$0xff] }
 0x466   : > { %8591 = vmatmul.msk.f32.gmra.mxu3 %vm976_vm1, %v6837_v20  ;;  %v5836_v63 = vpop.f32.mrf.mxu3 }
 0x467   : > { %8626 = vmatmul.msk.f32.gmra.mxu0 %vm976_vm1, %v6220_v38  ;;  %v12216_v6 = vadd.f32 %v5836_v63, %v5559_v27  ;;  %v6222_v38 = vld [vmem:[#allocation2 + $0x99] sm:$0xff]  ;;  %v6528_v27 = vmul.f32 %v13518_v29, %v12224_v36 }
 0x469   : > { %8557 = vmatmul.msk.f32.gmra.mxu2 %vm976_vm1, %v12212_v22  ;;  %13593 = vst [vmem:[#allocation100_spill] sm:$0xff] %v12216_v6  ;;  %v12220_v20 = vpop.f32.mrf.mxu0  ;;  %8528 = vmatmul.msk.f32.gmra.mxu1 %vm976_vm1, %v6222_v38  ;;  %v6223_v6 = vld [vmem:[#allocation2 + $0xa1] sm:$0xff] }
 0x46a   : > { %v12218_v11 = vpop.f32.mrf.mxu1  ;;  %13594 = vst [vmem:[#allocation101_spill] sm:$0xff] %v12220_v20  ;;  %v6839_v20 = vmul.f32 %v13519_v44, %v6807_v5  ;;  %v8839_v5 = vld [vmem:[#allocation2 + $0x98] sm:$0xff] }
 0x46c   : > { %v5561_v34 = vpop.f32.mrf.mxu2 }
 0x46d   : > { %v5562_v63 = vadd.f32 %v5561_v34, %v12084_v62 }
 0x46e   : > { %8592 = vmatmul.msk.f32.gmra.mxu3 %vm976_vm1, %v6806_v0  ;;  %v5839_v31 = vpop.f32.mrf.mxu3 }
 0x46f   : > { %8627 = vmatmul.msk.f32.gmra.mxu0 %vm976_vm1, %v6221_v58  ;;  %v12232_v0 = vadd.f32 %v5839_v31, %v5562_v63 }
 0x471   : > { %8558 = vmatmul.msk.f32.gmra.mxu2 %vm976_vm1, %v6528_v27  ;;  %13595 = vst [vmem:[#allocation102_spill] sm:$0xff] %v12232_v0  ;;  %v12238_v24 = vpop.f32.mrf.mxu0  ;;  %8529 = vmatmul.msk.f32.gmra.mxu1 %vm976_vm1, %v6223_v6  ;;  %v8838_v27 = vld [vmem:[#allocation2 + $0x82] sm:$0xff] }
 0x472   : > { %v12234_v58 = vpop.f32.mrf.mxu1  ;;  %13596 = vst [vmem:[#allocation103_spill] sm:$0xff] %v12238_v24 }
 0x474   : > { %v5564_v29 = vpop.f32.mrf.mxu2 }
 0x475   : > { %v5565_v62 = vadd.f32 %v5564_v29, %v12098_v51  ;;  %v8840_v29 = vld [vmem:[#allocation2 + $0x8a] sm:$0xff] }
 0x476   : > { %8593 = vmatmul.msk.f32.gmra.mxu3 %vm976_vm1, %v6839_v20  ;;  %v5842_v34 = vpop.f32.mrf.mxu3  ;;  %v6224_v20 = vld [vmem:[#allocation2 + $0xa9] sm:$0xff]  ;;  %v6530_v51 = vmul.f32 %v8840_v29, %v13520_v53 }
 0x477   : > { %8628 = vmatmul.msk.f32.gmra.mxu0 %vm976_vm1, %v6222_v38  ;;  %v12243_v44 = vadd.f32 %v5842_v34, %v5565_v62  ;;  %v8841_v34 = vld [vmem:[#allocation2 + $0xa0] sm:$0xff] }
 0x478   : > { %v6841_v24 = vmul.f32 %v8841_v34, %v13521_v9 }
 0x479   : > { %8559 = vmatmul.msk.f32.gmra.mxu2 %vm976_vm1, %v8838_v27  ;;  %13597 = vst [vmem:[#allocation104_spill] sm:$0xff] %v12243_v44  ;;  %8530 = vmatmul.msk.f32.gmra.mxu1 %vm976_vm1, %v6224_v20  ;;  %v12250_v38 = vpop.f32.mrf.mxu0  ;;  %v8842_v44 = vld [vmem:[#allocation2 + $0x92] sm:$0xff] }
 0x47a   : > { %v12245_v31 = vpop.f32.mrf.mxu1  ;;  %13598 = vst [vmem:[#allocation105_spill] sm:$0xff] %v12250_v38  ;;  %v6225_v38 = vld [vmem:[#allocation2 + $0xb1] sm:$0xff] }
 0x47c   : > { %v5567_v63 = vpop.f32.mrf.mxu2 }
 0x47d   : > { %v5568_v27 = vadd.f32 %v5567_v63, %v12114_v23 }
 0x47e   : > { %8594 = vmatmul.msk.f32.gmra.mxu3 %vm976_vm1, %v8839_v5  ;;  %v5845_v62 = vpop.f32.mrf.mxu3 }
 0x47f   : > { %8629 = vmatmul.msk.f32.gmra.mxu0 %vm976_vm1, %v6223_v6  ;;  %v12256_v5 = vadd.f32 %v5845_v62, %v5568_v27  ;;  %v8843_v62 = vld [vmem:[#allocation2 + $0xa8] sm:$0xff] }
 0x481   : > { %8560 = vmatmul.msk.f32.gmra.mxu2 %vm976_vm1, %v6530_v51  ;;  %13599 = vst [vmem:[#allocation106_spill] sm:$0xff] %v12256_v5  ;;  %8531 = vmatmul.msk.f32.gmra.mxu1 %vm976_vm1, %v6225_v38  ;;  %v12264_v63 = vpop.f32.mrf.mxu0 }
 0x482   : > { %v12258_v6 = vpop.f32.mrf.mxu1  ;;  %13600 = vst [vmem:[#allocation107_spill] sm:$0xff] %v12264_v63 }
 0x484   : > { %v5570_v29 = vpop.f32.mrf.mxu2 }
 0x485   : > { %v5571_v23 = vadd.f32 %v5570_v29, %v12128_v12  ;;  %v8844_v12 = vld [vmem:[#allocation2 + $0x9a] sm:$0xff] }
 0x486   : > { %8595 = vmatmul.msk.f32.gmra.mxu3 %vm976_vm1, %v6841_v24  ;;  %v5848_v51 = vpop.f32.mrf.mxu3  ;;  %v6226_v24 = vld [vmem:[#allocation2 + $0xb9] sm:$0xff]  ;;  %v6532_v34 = vmul.f32 %v8844_v12, %v13523_v4 }
 0x487   : > { %8630 = vmatmul.msk.f32.gmra.mxu0 %vm976_vm1, %v6224_v20  ;;  %v12267_v9 = vadd.f32 %v5848_v51, %v5571_v23 }
 0x489   : > { %8561 = vmatmul.msk.f32.gmra.mxu2 %vm976_vm1, %v8842_v44  ;;  %13601 = vst [vmem:[#allocation108_spill] sm:$0xff] %v12267_v9  ;;  %8532 = vmatmul.msk.f32.gmra.mxu1 %vm976_vm1, %v6226_v24  ;;  %v8845_v44 = vld [vmem:[#allocation2 + $0xb0] sm:$0xff]  ;;  %v6227_v9 = vld [vmem:[#allocation2 + $0xc1] sm:$0xff] }
 0x48a   : > { %v12269_v27 = vpop.f32.mrf.mxu1  ;;  %v6843_v23 = vmul.f32 %v8845_v44, %v13524_v48  ;;  %v8848_v44 = vld [vmem:[#allocation2 + $0xc9] sm:$0xff] }
 0x48c   : > { %v5573_v20 = vpop.f32.mrf.mxu2 }
 0x48d   : > { %v5574_v29 = vadd.f32 %v5573_v20, %v12144_v60 }
 0x48e   : > { %8596 = vmatmul.msk.f32.gmra.mxu3 %vm976_vm1, %v8843_v62  ;;  %v5851_v63 = vpop.f32.mrf.mxu3 }
 0x48f   : > { %8631 = vmatmul.msk.f32.gmra.mxu0 %vm976_vm1, %v6225_v38  ;;  %v12278_v51 = vadd.f32 %v5851_v63, %v5574_v29  ;;  %v12282_v38 = vpop.f32.mrf.mxu0  ;;  %v8847_v29 = vld [vmem:[#allocation2 + $0xb8] sm:$0xff] }
 0x490   : > { %13603 = vst [vmem:[#allocation110_spill] sm:$0xff] %v12282_v38 }
 0x491   : > { %8562 = vmatmul.msk.f32.gmra.mxu2 %vm976_vm1, %v6532_v34  ;;  %13602 = vst [vmem:[#allocation109_spill] sm:$0xff] %v12278_v51  ;;  %8533 = vmatmul.msk.f32.gmra.mxu1 %vm976_vm1, %v6227_v9  ;;  %v8846_v34 = vld [vmem:[#allocation2 + $0xa2] sm:$0xff] }
 0x492   : > { %v12280_v62 = vpop.f32.mrf.mxu1  ;;  %v13658_v51 = vld [vmem:[#allocation95_spill] sm:$0xff] }
 0x494   : > { %v5576_v60 = vpop.f32.mrf.mxu2 }
 0x495   : > { %v5577_v20 = vadd.f32 %v5576_v60, %v12158_v13  ;;  %v8849_v13 = vld [vmem:[#allocation2 + $0xaa] sm:$0xff] }
 0x496   : > { %8597 = vmatmul.msk.f32.gmra.mxu3 %vm976_vm1, %v6843_v23  ;;  %v5854_v12 = vpop.f32.mrf.mxu3  ;;  %v6534_v60 = vmul.f32 %v8849_v13, %v13525_v18 }
 0x497   : > { %8632 = vmatmul.msk.f32.gmra.mxu0 %vm976_vm1, %v6226_v24  ;;  %v12289_v48 = vadd.f32 %v5854_v12, %v5577_v20  ;;  %v12295_v24 = vpop.f32.mrf.mxu0  ;;  %v8850_v12 = vld [vmem:[#allocation2 + $0xc0] sm:$0xff] }
 0x498   : > { %13605 = vst [vmem:[#allocation112_spill] sm:$0xff] %v12295_v24  ;;  %v6845_v38 = vmul.f32 %v8850_v12, %v13526_v28  ;;  %v7124_v24 = vld [vmem:[#allocation2 + $0xc9] sm:$0xff]  ;;  %v8853_v12 = vld [vmem:[#allocation2 + $0xba] sm:$0xff] }
 0x499   : > { %8563 = vmatmul.msk.f32.gmra.mxu2 %vm976_vm1, %v8846_v34  ;;  %13604 = vst [vmem:[#allocation111_spill] sm:$0xff] %v12289_v48  ;;  %8534 = vmatmul.msk.f32.gmra.mxu1 %vm976_vm1, %v8848_v44 }
 0x49a   : > { %v12291_v63 = vpop.f32.mrf.mxu1 }
 0x49c   : > { %v5579_v23 = vpop.f32.mrf.mxu2 }
 0x49d   : > { %v5580_v34 = vadd.f32 %v5579_v23, %v12174_v52 }
 0x49e   : > { %8598 = vmatmul.msk.f32.gmra.mxu3 %vm976_vm1, %v8847_v29  ;;  %v5857_v20 = vpop.f32.mrf.mxu3 }
 0x49f   : > { %8633 = vmatmul.msk.f32.gmra.mxu0 %vm976_vm1, %v6227_v9  ;;  %v12302_v29 = vadd.f32 %v5857_v20, %v5580_v34  ;;  %v12310_v44 = vpop.f32.mrf.mxu0  ;;  %v7125_v20 = vld [vmem:[#allocation2 + $0xd1] sm:$0xff] }
 0x4a0   : > { %13607 = vst [vmem:[#allocation114_spill] sm:$0xff] %v12310_v44 }
 0x4a1   : > { %8564 = vmatmul.msk.f32.gmra.mxu2 %vm976_vm1, %v6534_v60  ;;  %13606 = vst [vmem:[#allocation113_spill] sm:$0xff] %v12302_v29  ;;  %8535 = vmatmul.msk.f32.gmra.mxu1 %vm976_vm1, %v11784_v15  ;;  %v8851_v60 = vld [vmem:[#allocation2 + $0xb2] sm:$0xff]  ;;  %v6173_v15 = vadd.f32 %v11719_v46, %v11782_v41 }
 0x4a2   : > { %v12304_v9 = vpop.f32.mrf.mxu1  ;;  %v7126_v41 = vld [vmem:[#allocation2 + $0xd9] sm:$0xff] }
 0x4a4   : > { %v5582_v52 = vpop.f32.mrf.mxu2 }
 0x4a5   : > { %v5583_v23 = vadd.f32 %v5582_v52, %v12188_v1  ;;  %v6451_v1 = vadd.f32 %v12204_v25, %v6173_v15  ;;  %v13609_v52 = vld [vmem:[#allocation75_spill] sm:$0xff] }
 0x4a6   : > { %8599 = vmatmul.msk.f32.gmra.mxu3 %vm976_vm1, %v6845_v38  ;;  %v5860_v13 = vpop.f32.mrf.mxu3  ;;  %v8852_v38 = vld [vmem:[#allocation2 + $0xc8] sm:$0xff] }
 0x4a7   : > { %8634 = vmatmul.msk.f32.gmra.mxu0 %vm976_vm1, %v7124_v24  ;;  %v12314_v28 = vadd.f32 %v5860_v13, %v5583_v23  ;;  %v6536_v23 = vmul.f32 %v8853_v12, %v13609_v52  ;;  %v13612_v25 = vld [vmem:[#allocation71_spill] sm:$0xff] }
 0x4a9   : > { %8565 = vmatmul.msk.f32.gmra.mxu2 %vm976_vm1, %v8851_v60  ;;  %13608 = vst [vmem:[#allocation115_spill] sm:$0xff] %v12314_v28  ;;  %8536 = vmatmul.msk.f32.gmra.mxu1 %vm976_vm1, %v11813_v55  ;;  %v12326_v60 = vpop.f32.mrf.mxu0  ;;  %v13611_v55 = vld [vmem:[#allocation76_spill] sm:$0xff] }
 0x4aa   : > { %v12316_v34 = vpop.f32.mrf.mxu1  ;;  %v6174_v15 = vadd.f32 %v13612_v25, %v13611_v55 }
 0x4ac   : > { %v6665_v24 = vpop.f32.mrf.mxu2 }
 0x4ad   : > { %v6761_v13 = vadd.f32 %v6665_v24, %v6451_v1  ;;  %v6452_v1 = vadd.f32 %v12218_v11, %v6174_v15 }
 0x4ae   : > { %8600 = vmatmul.msk.f32.gmra.mxu3 %vm976_vm1, %v8852_v38  ;;  %v6975_v44 = vpop.f32.mrf.mxu3  ;;  %v8854_v38 = vld [vmem:[#allocation2 + $0xd0] sm:$0xff] }
 0x4af   : > { %8635 = vmatmul.msk.f32.gmra.mxu0 %vm976_vm1, %v7125_v20  ;;  %v13610_v20 = vld [vmem:[#allocation33_spill] sm:$0xff]  ;;  %v12330_v29 = vadd.f32 %v6975_v44, %v6761_v13 }
 0x4b0   : > { %v6847_v28 = vmul.f32 %v8854_v38, %v13610_v20 }
 0x4b1   : > { %8566 = vmatmul.msk.f32.gmra.mxu2 %vm976_vm1, %v6536_v23  ;;  %8537 = vmatmul.msk.f32.gmra.mxu1 %vm976_vm1, %v11845_v2  ;;  %v12347_v38 = vpop.f32.mrf.mxu0  ;;  %v13613_v2 = vld [vmem:[#allocation73_spill] sm:$0xff] }
 0x4b2   : > { %v12332_v46 = vpop.f32.mrf.mxu1  ;;  %v6175_v11 = vadd.f32 %v13613_v2, %v11836_v57  ;;  %v7128_v57 = vld [vmem:[#allocation2 + $0xe9] sm:$0xff] }
 0x4b4   : > { %v6668_v24 = vpop.f32.mrf.mxu2 }
 0x4b5   : > { %v6762_v12 = vadd.f32 %v6668_v24, %v6452_v1 }
 0x4b6   : > { %8601 = vmatmul.msk.f32.gmra.mxu3 %vm976_vm1, %v6847_v28  ;;  %v6978_v23 = vpop.f32.mrf.mxu3  ;;  %v7127_v28 = vld [vmem:[#allocation2 + $0xe1] sm:$0xff] }
 0x4b7   : > { %8636 = vmatmul.msk.f32.gmra.mxu0 %vm976_vm1, %v7126_v41  ;;  %v12343_v44 = vadd.f32 %v6978_v23, %v6762_v12  ;;  %v13614_v41 = vld [vmem:[#allocation77_spill] sm:$0xff] }
 0x4b8   : > { %v6538_v55 = vmul.f32 %v13614_v41, %v11850_v16 }
 0x4b9   : > { %8567 = vmatmul.msk.f32.gmra.mxu2 %vm976_vm1, %v11832_v35  ;;  %8538 = vmatmul.msk.f32.gmra.mxu1 %vm976_vm1, %v11886_v37  ;;  %v6453_v35 = vadd.f32 %v12234_v58, %v6175_v11  ;;  %v13615_v37 = vld [vmem:[#allocation50_spill] sm:$0xff]  ;;  %v13616_v58 = vld [vmem:[#allocation4_spill] sm:$0xff]  ;;  %v12370_v16 = vpop.f32.mrf.mxu0 }
 0x4ba   : > { %v12345_v13 = vpop.f32.mrf.mxu1  ;;  %v6176_v12 = vadd.f32 %v13616_v58, %v13615_v37 }
 0x4bc   : > { %v6671_v20 = vpop.f32.mrf.mxu2  ;;  %v6454_v23 = vadd.f32 %v12245_v31, %v6176_v12 }
 0x4bd   : > { %v6763_v25 = vadd.f32 %v6671_v20, %v6453_v35  ;;  %v7129_v35 = vld [vmem:[#allocation2 + $0xf1] sm:$0xff] }
 0x4be   : > { %8602 = vmatmul.msk.f32.gmra.mxu3 %vm976_vm1, %v11834_v3  ;;  %v6981_v15 = vpop.f32.mrf.mxu3  ;;  %v6849_v3 = vmul.f32 %v9297_v40, %v11857_v49 }
 0x4bf   : > { %8637 = vmatmul.msk.f32.gmra.mxu0 %vm976_vm1, %v7127_v28  ;;  %v12362_v1 = vadd.f32 %v6981_v15, %v6763_v25  ;;  %v13618_v25 = vld [vmem:[#allocation78_spill] sm:$0xff] }
 0x4c0   : > { %v6540_v15 = vmul.f32 %v13618_v25, %v11920_v47  ;;  %v6235_v47 = vld [vmem:[#allocation2 + $0x101] sm:$0xff] }
 0x4c1   : > { %8568 = vmatmul.msk.f32.gmra.mxu2 %vm976_vm1, %v6538_v55  ;;  %8539 = vmatmul.msk.f32.gmra.mxu1 %vm976_vm1, %v11904_v30  ;;  %v13617_v30 = vld [vmem:[#allocation48_spill] sm:$0xff]  ;;  %v12389_v55 = vpop.f32.mrf.mxu0 }
 0x4c2   : > { %v12364_v24 = vpop.f32.mrf.mxu1  ;;  %v6177_v20 = vadd.f32 %v13617_v30, %v11900_v50 }
 0x4c4   : > { %v6674_v40 = vpop.f32.mrf.mxu2  ;;  %v6455_v31 = vadd.f32 %v12258_v6, %v6177_v20  ;;  %v13619_v6 = vld [vmem:[#allocation51_spill] sm:$0xff] }
 0x4c5   : > { %v6764_v49 = vadd.f32 %v6674_v40, %v6454_v23  ;;  %v6178_v58 = vadd.f32 %v13619_v6, %v11933_v7  ;;  %v13620_v7 = vld [vmem:[#allocation53_spill] sm:$0xff] }
 0x4c6   : > { %8603 = vmatmul.msk.f32.gmra.mxu3 %vm976_vm1, %v6849_v3  ;;  %v6984_v28 = vpop.f32.mrf.mxu3 }
 0x4c7   : > { %8638 = vmatmul.msk.f32.gmra.mxu0 %vm976_vm1, %v7128_v57  ;;  %v12377_v2 = vadd.f32 %v6984_v28, %v6764_v49  ;;  %v6456_v12 = vadd.f32 %v12269_v27, %v6178_v58  ;;  %v6179_v27 = vadd.f32 %v13620_v7, %v11952_v59  ;;  %v13622_v58 = vld [vmem:[#allocation27_spill] sm:$0xff]  ;;  %v13627_v7 = vld [vmem:[#allocation66_spill] sm:$0xff] }
 0x4c9   : > { %8569 = vmatmul.msk.f32.gmra.mxu2 %vm976_vm1, %v11906_v39  ;;  %8540 = vmatmul.msk.f32.gmra.mxu1 %vm976_vm1, %v11937_v45  ;;  %v7130_v45 = vld [vmem:[#allocation2 + $0xf9] sm:$0xff]  ;;  %v6457_v30 = vadd.f32 %v12280_v62, %v6179_v27  ;;  %v13628_v27 = vld [vmem:[#allocation81_spill] sm:$0xff] }
 0x4ca   : > { %v12379_v11 = vpop.f32.mrf.mxu1 }
 0x4cc   : > { %v6677_v39 = vpop.f32.mrf.mxu2 }
 0x4cd   : > { %v6765_v3 = vadd.f32 %v6677_v39, %v6455_v31 }
 0x4ce   : > { %8604 = vmatmul.msk.f32.gmra.mxu3 %vm976_vm1, %v11908_v54  ;;  %v6987_v57 = vpop.f32.mrf.mxu3  ;;  %v6851_v54 = vmul.f32 %v9342_v14, %v11922_v26  ;;  %v12406_v14 = vpop.f32.mrf.mxu0 }
 0x4cf   : > { %8639 = vmatmul.msk.f32.gmra.mxu0 %vm976_vm1, %v7129_v35  ;;  %v12396_v37 = vadd.f32 %v6987_v57, %v6765_v3  ;;  %v6236_v35 = vld [vmem:[#allocation2 + $0x109] sm:$0xff] }
 0x4d1   : > { %8570 = vmatmul.msk.f32.gmra.mxu2 %vm976_vm1, %v6540_v15  ;;  %8541 = vmatmul.msk.f32.gmra.mxu1 %vm976_vm1, %v6235_v47 }
 0x4d2   : > { %v12398_v50 = vpop.f32.mrf.mxu1 }
 0x4d4   : > { %v6680_v23 = vpop.f32.mrf.mxu2 }
 0x4d5   : > { %v6766_v40 = vadd.f32 %v6680_v23, %v6456_v12  ;;  %v13624_v23 = vld [vmem:[#allocation60_spill] sm:$0xff] }
 0x4d6   : > { %8605 = vmatmul.msk.f32.gmra.mxu3 %vm976_vm1, %v6851_v54  ;;  %v6990_v26 = vpop.f32.mrf.mxu3  ;;  %v12430_v59 = vpop.f32.mrf.mxu0  ;;  %v13621_v54 = vld [vmem:[#allocation59_spill] sm:$0xff] }
 0x4d7   : > { %8640 = vmatmul.msk.f32.gmra.mxu0 %vm976_vm1, %v7130_v45  ;;  %v12410_v49 = vadd.f32 %v6990_v26, %v6766_v40  ;;  %v6823_v40 = vld [vmem:[#allocation2 + $0x110] sm:$0xff] }
 0x4d9   : > { %8571 = vmatmul.msk.f32.gmra.mxu2 %vm976_vm1, %v11956_v21  ;;  %8542 = vmatmul.msk.f32.gmra.mxu1 %vm976_vm1, %v6236_v35  ;;  %v6542_v21 = vmul.f32 %v9863_v17, %v11968_v10  ;;  %v6180_v10 = vadd.f32 %v11939_v56, %v11980_v42  ;;  %v13625_v56 = vld [vmem:[#allocation57_spill] sm:$0xff]  ;;  %v13626_v42 = vld [vmem:[#allocation54_spill] sm:$0xff] }
 0x4da   : > { %v12412_v28 = vpop.f32.mrf.mxu1 }
 0x4db   : > { %v6458_v62 = vadd.f32 %v12291_v63, %v6180_v10  ;;  %v13630_v10 = vld [vmem:[#allocation43_spill] sm:$0xff] }
 0x4dc   : > { %v6683_v20 = vpop.f32.mrf.mxu2 }
 0x4dd   : > { %v6767_v31 = vadd.f32 %v6683_v20, %v6457_v30 }
 0x4de   : > { %8606 = vmatmul.msk.f32.gmra.mxu3 %vm976_vm1, %v11958_v33  ;;  %v6993_v39 = vpop.f32.mrf.mxu3  ;;  %v6853_v33 = vmul.f32 %v9379_v32, %v11970_v61 }
 0x4df   : > { %8641 = vmatmul.msk.f32.gmra.mxu0 %vm976_vm1, %v6235_v47  ;;  %v12426_v15 = vadd.f32 %v6993_v39, %v6767_v31  ;;  %v13623_v47 = vld [vmem:[#allocation47_spill] sm:$0xff] }
 0x4e0   : > { %v7414_v12 = vmul.f32 %v13623_v47, %v13622_v58  ;;  %v12467_v58 = vld [vmem:[#allocation2 + $0x102] sm:$0xff] }
 0x4e1   : > { %8572 = vmatmul.msk.f32.gmra.mxu2 %vm976_vm1, %v6542_v21  ;;  %8647 = vmatmul.msk.f32.vlgmr.msra.gmra.mxu1 %vm976_vm1, %v12062_v8  ;;  %v6181_v8 = vadd.f32 %v13626_v42, %v13625_v56  ;;  %v13629_v21 = vld [vmem:[#allocation46_spill] sm:$0xff]  ;;  %v13633_v56 = vld [vmem:[#allocation84_spill] sm:$0xff]  ;;  %v13634_v42 = vld [vmem:[#allocation49_spill] sm:$0xff] }
 0x4e2   : > { %v12428_v3 = vpop.f32.mrf.mxu1  ;;  %v6855_v31 = vmul.f32 %v13629_v21, %v6823_v40  ;;  %v13636_v40 = vld [vmem:[#allocation62_spill] sm:$0xff] }
 0x4e3   : > { %v6459_v63 = vadd.f32 %v12304_v9, %v6181_v8  ;;  %v7416_v8 = vmul.f32 %v13634_v42, %v13633_v56 }
 0x4e4   : > { %v6686_v57 = vpop.f32.mrf.mxu2 }
 0x4e5   : > { %v6768_v32 = vadd.f32 %v6686_v57, %v6458_v62  ;;  %v13631_v62 = vld [vmem:[#allocation56_spill] sm:$0xff] }
 0x4e6   : > { %8607 = vmatmul.msk.f32.gmra.mxu3 %vm976_vm1, %v6853_v33  ;;  %v6996_v61 = vpop.f32.mrf.mxu3  ;;  %v6182_v9 = vadd.f32 %v13631_v62, %v13630_v10  ;;  %v13632_v57 = vld [vmem:[#allocation16_spill] sm:$0xff] }
 0x4e7   : > { %8642 = vmatmul.msk.f32.gmra.mxu0 %vm976_vm1, %v6236_v35  ;;  %v12441_v45 = vadd.f32 %v6996_v61, %v6768_v32  ;;  %v6544_v35 = vmul.f32 %v13628_v27, %v13627_v7  ;;  %v12479_v7 = vld [vmem:[#allocation2 + $0x10a] sm:$0xff] }
 0x4e8   : > { %v6460_v32 = vadd.f32 %v12316_v34, %v6182_v9  ;;  %v13638_v9 = vld [vmem:[#allocation69_spill] sm:$0xff] }
 0x4e9   : > { %8573 = vmatmul.msk.f32.gmra.mxu2 %vm976_vm1, %v13621_v54  ;;  %8648 = vmatmul.msk.f32.gmra.mxu1 %vm976_vm1, %v7414_v12 }
 0x4ea   : > { %v12443_v6 = vpop.f32.mrf.mxu1 }
 0x4ec   : > { %v6689_v26 = vpop.f32.mrf.mxu2 }
 0x4ed   : > { %v6769_v30 = vadd.f32 %v6689_v26, %v6459_v63  ;;  %v13635_v63 = vld [vmem:[#allocation67_spill] sm:$0xff] }
 0x4ee   : > { %8608 = vmatmul.msk.f32.gmra.mxu3 %vm976_vm1, %v13624_v23  ;;  %v6999_v20 = vpop.f32.mrf.mxu3  ;;  %v6183_v26 = vadd.f32 %v13636_v40, %v13635_v63 }
 0x4ef   : > { %v12457_v39 = vadd.f32 %v6999_v20, %v6769_v30  ;;  %v13637_v30 = vld [vmem:[#allocation82_spill] sm:$0xff] }
 0x4f0   : > { %v6461_v34 = vadd.f32 %v12332_v46, %v6183_v26  ;;  %v6546_v20 = vmul.f32 %v13637_v30, %v12479_v7  ;;  %v6824_v46 = vld [vmem:[#allocation2 + $0x118] sm:$0xff] }
 0x4f1   : > { %8574 = vmatmul.msk.f32.gmra.mxu2 %vm976_vm1, %v6544_v35  ;;  %8649 = vmatmul.msk.f32.gmra.mxu1 %vm976_vm1, %v13632_v57  ;;  %v13639_v57 = vld [vmem:[#allocation63_spill] sm:$0xff] }
 0x4f2   : > { %v12459_v33 = vpop.f32.mrf.mxu1 }
 0x4f4   : > { %v6692_v61 = vpop.f32.mrf.mxu2 }
 0x4f5   : > { %v6770_v54 = vadd.f32 %v6692_v61, %v6460_v32  ;;  %v6184_v32 = vadd.f32 %v13639_v57, %v13638_v9  ;;  %v12492_v61 = vpop.f32.mrf.mxu0 }
 0x4f6   : > { %8609 = vmatmul.msk.f32.gmra.mxu3 %vm976_vm1, %v6855_v31  ;;  %v7002_v47 = vpop.f32.mrf.mxu3 }
 0x4f7   : > { %v12471_v12 = vadd.f32 %v7002_v47, %v6770_v54  ;;  %v13640_v54 = vld [vmem:[#allocation86_spill] sm:$0xff]  ;;  %v7133_v47 = vld [vmem:[#allocation2 + $0x111] sm:$0xff]  ;;  %v6462_v56 = vadd.f32 %v12345_v13, %v6184_v32 }
 0x4f8   : > { %8643 = vmatmul.msk.f32.gmra.mxu0 %vm976_vm1, %v7133_v47  ;;  %v7134_v13 = vld [vmem:[#allocation2 + $0x119] sm:$0xff] }
 0x4f9   : > { %8575 = vmatmul.msk.f32.gmra.mxu2 %vm976_vm1, %v12467_v58  ;;  %8650 = vmatmul.msk.f32.gmra.mxu1 %vm976_vm1, %v7416_v8 }
 0x4fa   : > { %v12473_v23 = vpop.f32.mrf.mxu1 }
 0x4fc   : > { %v6695_v35 = vpop.f32.mrf.mxu2 }
 0x4fd   : > { %v6771_v21 = vadd.f32 %v6695_v35, %v6461_v34  ;;  %v13642_v34 = vld [vmem:[#allocation89_spill] sm:$0xff]  ;;  %v13643_v35 = vld [vmem:[#allocation52_spill] sm:$0xff]  ;;  %v12509_v32 = vpop.f32.mrf.mxu0 }
 0x4fe   : > { %v7005_v31 = vpop.f32.mrf.mxu3  ;;  %8610 = vmatmul.msk.f32.gmra.mxu3 %vm976_vm1, %v6824_v46  ;;  %13646 = vst [vmem:[#allocation33_spill] sm:$0xff] %v12509_v32 }
 0x4ff   : > { %v12486_v10 = vadd.f32 %v7005_v31, %v6771_v21  ;;  %v13644_v21 = vld [vmem:[#allocation65_spill] sm:$0xff] }
 0x500   : > { %v13645_v31 = vld [vmem:[#allocation45_spill] sm:$0xff]  ;;  %8644 = vmatmul.msk.f32.gmra.mxu0 %vm976_vm1, %v7134_v13 }
 0x501   : > { %8576 = vmatmul.msk.f32.gmra.mxu2 %vm976_vm1, %v6546_v20  ;;  %8651 = vmatmul.msk.f32.gmra.mxu1 %vm976_vm1, %v13640_v54  ;;  %v7418_v20 = vmul.f32 %v13643_v35, %v13642_v34  ;;  %v6185_v9 = vadd.f32 %v13645_v31, %v13644_v21  ;;  %v13650_v35 = vld [vmem:[#allocation91_spill] sm:$0xff] }
 0x502   : > { %v12488_v62 = vpop.f32.mrf.mxu1 }
 0x503   : > { %v6463_v57 = vadd.f32 %v12364_v24, %v6185_v9 }
 0x504   : > { %v6698_v42 = vpop.f32.mrf.mxu2 }
 0x505   : > { %v6772_v8 = vadd.f32 %v6698_v42, %v6462_v56 }
 0x506   : > { %v7008_v63 = vpop.f32.mrf.mxu3 }
 0x507   : > { %v12499_v40 = vadd.f32 %v7008_v63, %v6772_v8  ;;  %v13648_v8 = vld [vmem:[#allocation21_spill] sm:$0xff]  ;;  %v13649_v63 = vld [vmem:[#allocation14_spill] sm:$0xff] }
 0x508   : > { %v6186_v34 = vadd.f32 %v13649_v63, %v13648_v8 }
 0x509   : > { %8652 = vmatmul.msk.f32.gmra.mxu1 %vm976_vm1, %v7418_v20 }
 0x50a   : > { %v12501_v26 = vpop.f32.mrf.mxu1  ;;  %v6464_v20 = vadd.f32 %v12379_v11, %v6186_v34 }
 0x50b   : > { %13641 = vst [vmem:[#allocation75_spill] sm:$0xff] %v12501_v26 }
 0x50c   : > { %v6701_v54 = vpop.f32.mrf.mxu2 }
 0x50d   : > { %v6773_v46 = vadd.f32 %v6701_v54, %v6463_v57  ;;  %v13652_v57 = vld [vmem:[#allocation55_spill] sm:$0xff] }
 0x50e   : > { %v7011_v47 = vpop.f32.mrf.mxu3  ;;  %v7420_v54 = vmul.f32 %v13652_v57, %v12164_v43  ;;  %v12540_v57 = vpop.f32.mrf.mxu0 }
 0x50f   : > { %v12512_v56 = vadd.f32 %v7011_v47, %v6773_v46  ;;  %v13653_v46 = vld [vmem:[#allocation68_spill] sm:$0xff] }
 0x510   : > { %v13654_v47 = vld [vmem:[#allocation72_spill] sm:$0xff] }
 0x511   : > { %8653 = vmatmul.msk.f32.gmra.mxu1 %vm976_vm1, %v13650_v35  ;;  %v6187_v48 = vadd.f32 %v13654_v47, %v13653_v46 }
 0x512   : > { %v12514_v42 = vpop.f32.mrf.mxu1 }
 0x513   : > { %13647 = vst [vmem:[#allocation76_spill] sm:$0xff] %v12514_v42  ;;  %v6465_v8 = vadd.f32 %v12398_v50, %v6187_v48 }
 0x514   : > { %v6704_v24 = vpop.f32.mrf.mxu2 }
 0x515   : > { %v6774_v21 = vadd.f32 %v6704_v24, %v6464_v20  ;;  %v13656_v24 = vld [vmem:[#allocation22_spill] sm:$0xff] }
 0x516   : > { %v7014_v31 = vpop.f32.mrf.mxu3 }
 0x517   : > { %v12521_v9 = vadd.f32 %v7014_v31, %v6774_v21  ;;  %v13657_v21 = vld [vmem:[#allocation74_spill] sm:$0xff] }
 0x518   : > { %v6188_v31 = vadd.f32 %v13657_v21, %v13656_v24 }
 0x519   : > { %8654 = vmatmul.msk.f32.gmra.mxu1 %vm976_vm1, %v7420_v54 }
 0x51a   : > { %v12523_v13 = vpop.f32.mrf.mxu1  ;;  %v6466_v43 = vadd.f32 %v12412_v28, %v6188_v31  ;;  %v12552_v31 = vpop.f32.mrf.mxu0 }
 0x51b   : > { %13651 = vst [vmem:[#allocation71_spill] sm:$0xff] %v12523_v13 }
 0x51c   : > { %v6707_v63 = vpop.f32.mrf.mxu2 }
 0x51d   : > { %v6775_v35 = vadd.f32 %v6707_v63, %v6465_v8  ;;  %v13660_v8 = vld [vmem:[#allocation58_spill] sm:$0xff] }
 0x51e   : > { %v7017_v11 = vpop.f32.mrf.mxu3  ;;  %v7422_v63 = vmul.f32 %v13660_v8, %v12194_v19 }
 0x51f   : > { %v12531_v34 = vadd.f32 %v7017_v11, %v6775_v35  ;;  %v13661_v35 = vld [vmem:[#allocation28_spill] sm:$0xff]  ;;  %v13662_v11 = vld [vmem:[#allocation70_spill] sm:$0xff] }
 0x520   : > { %v6189_v24 = vadd.f32 %v13662_v11, %v13661_v35 }
 0x521   : > { %8655 = vmatmul.msk.f32.gmra.mxu1 %vm976_vm1, %v13658_v51 }
 0x522   : > { %v12533_v20 = vpop.f32.mrf.mxu1  ;;  %v6467_v51 = vadd.f32 %v12428_v3, %v6189_v24  ;;  %v12567_v24 = vpop.f32.mrf.mxu0 }
 0x523   : > { %13655 = vst [vmem:[#allocation73_spill] sm:$0xff] %v12533_v20 }
 0x524   : > { %v6710_v54 = vpop.f32.mrf.mxu2 }
 0x525   : > { %v6776_v46 = vadd.f32 %v6710_v54, %v6466_v43 }
 0x526   : > { %v7020_v48 = vpop.f32.mrf.mxu3 }
 0x527   : > { %v12542_v50 = vadd.f32 %v7020_v48, %v6776_v46  ;;  %v13664_v48 = vld [vmem:[#allocation87_spill] sm:$0xff] }
 0x529   : > { %8656 = vmatmul.msk.f32.gmra.mxu1 %vm976_vm1, %v7422_v63 }
 0x52a   : > { %v12544_v47 = vpop.f32.mrf.mxu1  ;;  %v12581_v20 = vpop.f32.mrf.mxu0 }
 0x52b   : > { %13659 = vst [vmem:[#allocation77_spill] sm:$0xff] %v12544_v47  ;;  %v13665_v47 = vld [vmem:[#allocation83_spill] sm:$0xff] }
 0x52c   : > { %v6713_v28 = vpop.f32.mrf.mxu2  ;;  %v6190_v5 = vadd.f32 %v13665_v47, %v13664_v48 }
 0x52d   : > { %v6777_v21 = vadd.f32 %v6713_v28, %v6467_v51  ;;  %v13667_v51 = vld [vmem:[#allocation61_spill] sm:$0xff] }
 0x52e   : > { %v7023_v43 = vpop.f32.mrf.mxu3  ;;  %v6468_v19 = vadd.f32 %v12443_v6, %v6190_v5  ;;  %v7424_v28 = vmul.f32 %v13667_v51, %v12224_v36 }
 0x52f   : > { %v12554_v54 = vadd.f32 %v7023_v43, %v6777_v21  ;;  %v13668_v21 = vld [vmem:[#allocation34_spill] sm:$0xff]  ;;  %v13669_v43 = vld [vmem:[#allocation85_spill] sm:$0xff] }
 0x530   : > { %v6191_v47 = vadd.f32 %v13669_v43, %v13668_v21 }
 0x531   : > { %8657 = vmatmul.msk.f32.gmra.mxu1 %vm976_vm1, %v12212_v22 }
 0x532   : > { %v12556_v46 = vpop.f32.mrf.mxu1  ;;  %v6469_v22 = vadd.f32 %v12459_v33, %v6191_v47  ;;  %v7394_v33 = vld [vmem:[#allocation2 + $0x8a] sm:$0xff] }
 0x533   : > { %13663 = vst [vmem:[#allocation50_spill] sm:$0xff] %v12556_v46  ;;  %v7393_v46 = vld [vmem:[#allocation2 + $0x82] sm:$0xff] }
 0x534   : > { %v6716_v8 = vpop.f32.mrf.mxu2 }
 0x535   : > { %v6778_v63 = vadd.f32 %v6716_v8, %v6468_v19 }
 0x536   : > { %v7026_v3 = vpop.f32.mrf.mxu3 }
 0x537   : > { %v12563_v35 = vadd.f32 %v7026_v3, %v6778_v63  ;;  %v13671_v63 = vld [vmem:[#allocation92_spill] sm:$0xff] }
 0x538   : > { %v13672_v3 = vld [vmem:[#allocation88_spill] sm:$0xff] }
 0x539   : > { %8658 = vmatmul.msk.f32.gmra.mxu1 %vm976_vm1, %v7424_v28 }
 0x53a   : > { %v12565_v11 = vpop.f32.mrf.mxu1 }
 0x53b   : > { %13666 = vst [vmem:[#allocation4_spill] sm:$0xff] %v12565_v11  ;;  %v6192_v11 = vadd.f32 %v13672_v3, %v13671_v63 }
 0x53c   : > { %v6719_v5 = vpop.f32.mrf.mxu2 }
 0x53d   : > { %v6779_v6 = vadd.f32 %v6719_v5, %v6469_v22  ;;  %v6470_v36 = vadd.f32 %v12473_v23, %v6192_v11  ;;  %v13674_v22 = vld [vmem:[#allocation64_spill] sm:$0xff] }
 0x53e   : > { %v7029_v48 = vpop.f32.mrf.mxu3  ;;  %v7426_v5 = vmul.f32 %v13674_v22, %v7394_v33 }
 0x53f   : > { %v12575_v19 = vadd.f32 %v7029_v48, %v6779_v6  ;;  %v13675_v6 = vld [vmem:[#allocation39_spill] sm:$0xff]  ;;  %v13676_v48 = vld [vmem:[#allocation90_spill] sm:$0xff] }
 0x540   : > { %v6193_v63 = vadd.f32 %v13676_v48, %v13675_v6  ;;  %v7397_v48 = vld [vmem:[#allocation2 + $0xa2] sm:$0xff] }
 0x541   : > { %8659 = vmatmul.msk.f32.gmra.mxu1 %vm976_vm1, %v7393_v46  ;;  %v12594_v46 = vpop.f32.mrf.mxu0 }
 0x542   : > { %v12577_v8 = vpop.f32.mrf.mxu1  ;;  %v6471_v3 = vadd.f32 %v12488_v62, %v6193_v63  ;;  %v7398_v63 = vld [vmem:[#allocation2 + $0xaa] sm:$0xff] }
 0x543   : > { %13670 = vst [vmem:[#allocation48_spill] sm:$0xff] %v12577_v8 }
 0x544   : > { %v6722_v51 = vpop.f32.mrf.mxu2 }
 0x545   : > { %v6780_v28 = vadd.f32 %v6722_v51, %v6470_v36 }
 0x546   : > { %v7032_v21 = vpop.f32.mrf.mxu3 }
 0x547   : > { %v12585_v43 = vadd.f32 %v7032_v21, %v6780_v28  ;;  %v7395_v28 = vld [vmem:[#allocation2 + $0x92] sm:$0xff]  ;;  %v7396_v21 = vld [vmem:[#allocation2 + $0x9a] sm:$0xff] }
 0x549   : > { %8660 = vmatmul.msk.f32.gmra.mxu1 %vm976_vm1, %v7426_v5  ;;  %v12599_v33 = vpop.f32.mrf.mxu0  ;;  %v7428_v5 = vmul.f32 %v13520_v53, %v7396_v21  ;;  %v7399_v53 = vld [vmem:[#allocation2 + $0xb2] sm:$0xff]  ;;  %v7400_v21 = vld [vmem:[#allocation2 + $0xba] sm:$0xff] }
 0x54a   : > { %v12587_v47 = vpop.f32.mrf.mxu1 }
 0x54b   : > { %13673 = vst [vmem:[#allocation78_spill] sm:$0xff] %v12587_v47 }
 0x54c   : > { %v6725_v23 = vpop.f32.mrf.mxu2 }
 0x54d   : > { %v6781_v11 = vadd.f32 %v6725_v23, %v6471_v3  ;;  %v7430_v23 = vmul.f32 %v13523_v4, %v7398_v63  ;;  %v7401_v63 = vld [vmem:[#allocation2 + $0xc2] sm:$0xff] }
 0x54e   : > { %v7035_v36 = vpop.f32.mrf.mxu3 }
 0x54f   : > { %v7091_v51 = vadd.f32 %v7035_v36, %v6781_v11 }
 0x551   : > { %8661 = vmatmul.msk.f32.gmra.mxu1 %vm976_vm1, %v7395_v28  ;;  %v12607_v6 = vpop.f32.mrf.mxu0 }
 0x552   : > { %v12596_v8 = vpop.f32.mrf.mxu1 }
 0x553   : > { %13677 = vst [vmem:[#allocation51_spill] sm:$0xff] %v12596_v8 }
 0x559   : > { %8662 = vmatmul.msk.f32.gmra.mxu1 %vm976_vm1, %v7428_v5  ;;  %v12613_v11 = vpop.f32.mrf.mxu0 }
 0x55a   : > { %v12601_v22 = vpop.f32.mrf.mxu1 }
 0x55b   : > { %13678 = vst [vmem:[#allocation53_spill] sm:$0xff] %v12601_v22 }
 0x561   : > { %8663 = vmatmul.msk.f32.gmra.mxu1 %vm976_vm1, %v7397_v48  ;;  %v12619_v28 = vpop.f32.mrf.mxu0  ;;  %v7432_v48 = vmul.f32 %v13525_v18, %v7400_v21  ;;  %v7403_v18 = vld [vmem:[#allocation2 + $0xd2] sm:$0xff] }
 0x562   : > { %v12605_v62 = vpop.f32.mrf.mxu1 }
 0x569   : > { %8664 = vmatmul.msk.f32.gmra.mxu1 %vm976_vm1, %v7430_v23  ;;  %v12625_v22 = vpop.f32.mrf.mxu0  ;;  %v7402_v23 = vld [vmem:[#allocation2 + $0xca] sm:$0xff] }
 0x56a   : > { %v12610_v3 = vpop.f32.mrf.mxu1  ;;  %v7434_v47 = vmul.f32 %v13609_v52, %v7402_v23  ;;  %v7357_v52 = vadd.f32 %v12540_v57, %v12457_v39  ;;  %v7359_v39 = vadd.f32 %v12567_v24, %v12486_v10  ;;  %v7361_v10 = vadd.f32 %v12594_v46, %v12512_v56 }
 0x56b   : > { %v7363_v56 = vadd.f32 %v12607_v6, %v12531_v34  ;;  %v7366_v6 = vadd.f32 %v12625_v22, %v12563_v35 }
 0x571   : > { %8665 = vmatmul.msk.f32.gmra.mxu1 %vm976_vm1, %v7399_v53  ;;  %v12632_v53 = vpop.f32.mrf.mxu0 }
 0x572   : > { %v12616_v36 = vpop.f32.mrf.mxu1 }
 0x579   : > { %8666 = vmatmul.msk.f32.gmra.mxu1 %vm976_vm1, %v7432_v48  ;;  %v12638_v21 = vpop.f32.mrf.mxu0  ;;  %v7404_v48 = vld [vmem:[#allocation2 + $0xda] sm:$0xff] }
 0x57a   : > { %v12621_v5 = vpop.f32.mrf.mxu1  ;;  %v7368_v35 = vadd.f32 %v12638_v21, %v12585_v43 }
 0x581   : > { %8667 = vmatmul.msk.f32.gmra.mxu1 %vm976_vm1, %v7401_v63  ;;  %v7436_v63 = vmul.f32 %v13614_v41, %v7404_v48  ;;  %v7313_v42 = vpop.f32.mrf.mxu0 }
 0x582   : > { %v12627_v4 = vpop.f32.mrf.mxu1  ;;  %v12645_v26 = vadd.f32 %v7313_v42, %v7091_v51  ;;  %v7407_v51 = vld [vmem:[#allocation2 + $0xf2] sm:$0xff] }
 0x589   : > { %8668 = vmatmul.msk.f32.gmra.mxu1 %vm976_vm1, %v7434_v47 }
 0x58a   : > { %v12630_v8 = vpop.f32.mrf.mxu1 }
 0x591   : > { %8669 = vmatmul.msk.f32.gmra.mxu1 %vm976_vm1, %v7403_v18  ;;  %v7406_v18 = vld [vmem:[#allocation2 + $0xea] sm:$0xff] }
 0x592   : > { %v12636_v13 = vpop.f32.mrf.mxu1  ;;  %v7438_v48 = vmul.f32 %v13618_v25, %v7406_v18 }
 0x593   : > { %13679 = vst [vmem:[#allocation59_spill] sm:$0xff] %v12636_v13  ;;  %v7405_v13 = vld [vmem:[#allocation2 + $0xe2] sm:$0xff] }
 0x599   : > { %8670 = vmatmul.msk.f32.gmra.mxu1 %vm976_vm1, %v7436_v63  ;;  %v7362_v63 = vadd.f32 %v12599_v33, %v12521_v9  ;;  %v7364_v9 = vadd.f32 %v12613_v11, %v12542_v50  ;;  %v7367_v11 = vadd.f32 %v12632_v53, %v12575_v19 }
 0x59a   : > { %v12641_v0 = vpop.f32.mrf.mxu1 }
 0x59b   : > { %13680 = vst [vmem:[#allocation27_spill] sm:$0xff] %v12641_v0  ;;  %v7358_v0 = vadd.f32 %v12552_v31, %v12471_v12  ;;  %v7360_v12 = vadd.f32 %v12581_v20, %v12499_v40 }
 0x5a1   : > { %8671 = vmatmul.msk.f32.gmra.mxu1 %vm976_vm1, %v7405_v13  ;;  %v7408_v13 = vld [vmem:[#allocation2 + $0xfa] sm:$0xff] }
 0x5a2   : > { %v7587_v47 = vpop.f32.mrf.mxu1  ;;  %v7440_v25 = vmul.f32 %v9863_v17, %v7408_v13  ;;  %v7442_v17 = vmul.f32 %v13628_v27, %v12479_v7  ;;  %v7365_v27 = vadd.f32 %v12619_v28, %v12554_v54  ;;  %v12707_v13 = vpop.f32.mrf.mxu0 }
 0x5a3   : > { %v12649_v23 = vadd.f32 %v7587_v47, %v7357_v52  ;;  %v7411_v52 = vld [vmem:[#allocation2 + $0x112] sm:$0xff] }
 0x5a9   : > { %8672 = vmatmul.msk.f32.gmra.mxu1 %vm976_vm1, %v7438_v48 }
 0x5aa   : > { %v7590_v32 = vpop.f32.mrf.mxu1 }
 0x5ab   : > { %v12654_v41 = vadd.f32 %v7590_v32, %v7358_v0 }
 0x5b1   : > { %8673 = vmatmul.msk.f32.gmra.mxu1 %vm976_vm1, %v7407_v51 }
 0x5b2   : > { %v7593_v42 = vpop.f32.mrf.mxu1 }
 0x5b3   : > { %v12660_v57 = vadd.f32 %v7593_v42, %v7359_v39  ;;  %v12699_v39 = vpop.f32.mrf.mxu2 }
 0x5b9   : > { %8674 = vmatmul.msk.f32.gmra.mxu1 %vm976_vm1, %v7440_v25  ;;  %v12719_v25 = vpop.f32.mrf.mxu0 }
 0x5ba   : > { %v7596_v31 = vpop.f32.mrf.mxu1 }
 0x5bb   : > { %v12665_v0 = vadd.f32 %v7596_v31, %v7360_v12  ;;  %v12711_v28 = vpop.f32.mrf.mxu2 }
 0x5c1   : > { %8675 = vmatmul.msk.f32.gmra.mxu1 %vm976_vm1, %v12467_v58  ;;  %v7412_v58 = vld [vmem:[#allocation2 + $0x11a] sm:$0xff] }
 0x5c2   : > { %v7599_v32 = vpop.f32.mrf.mxu1  ;;  %v7444_v33 = vmul.f32 %v13637_v30, %v7412_v58  ;;  %v12703_v30 = vpop.f32.mrf.mxu3  ;;  %v7349_v58 = vadd.f32 %v12326_v60, %v12330_v29  ;;  %v7352_v29 = vadd.f32 %v12389_v55, %v12377_v2  ;;  %v7354_v2 = vadd.f32 %v12430_v59, %v12410_v49 }
 0x5c3   : > { %v12671_v24 = vadd.f32 %v7599_v32, %v7361_v10  ;;  %v12721_v10 = vpop.f32.mrf.mxu2 }
 0x5c9   : > { %8676 = vmatmul.msk.f32.gmra.mxu1 %vm976_vm1, %v7442_v17 }
 0x5ca   : > { %v7602_v40 = vpop.f32.mrf.mxu1  ;;  %v12713_v12 = vpop.f32.mrf.mxu3 }
 0x5cb   : > { %v12677_v20 = vadd.f32 %v7602_v40, %v7362_v63  ;;  %v12728_v63 = vpop.f32.mrf.mxu0  ;;  %v12730_v40 = vpop.f32.mrf.mxu2 }
 0x5d1   : > { %8677 = vmatmul.msk.f32.gmra.mxu1 %vm976_vm1, %v7411_v52 }
 0x5d2   : > { %v7605_v46 = vpop.f32.mrf.mxu1  ;;  %v12723_v19 = vpop.f32.mrf.mxu3 }
 0x5d3   : > { %v12684_v47 = vadd.f32 %v7605_v46, %v7363_v56  ;;  %v12736_v21 = vpop.f32.mrf.mxu0  ;;  %v12738_v56 = vpop.f32.mrf.mxu2 }
 0x5d9   : > { %8678 = vmatmul.msk.f32.gmra.mxu1 %vm976_vm1, %v7444_v33  ;;  %v7351_v33 = vadd.f32 %v12370_v16, %v12362_v1  ;;  %v7662_v1 = vadd.f32 %v12621_v5, %v7352_v29  ;;  %v7353_v16 = vadd.f32 %v12406_v14, %v12396_v37  ;;  %v7664_v37 = vadd.f32 %v12630_v8, %v7354_v2 }
 0x5da   : > { %v7608_v18 = vpop.f32.mrf.mxu1  ;;  %v12734_v43 = vpop.f32.mrf.mxu3  ;;  %v7355_v14 = vadd.f32 %v12492_v61, %v12426_v15  ;;  %v13685_v61 = vld [vmem:[#allocation27_spill] sm:$0xff] }
 0x5db   : > { %v12690_v48 = vadd.f32 %v7608_v18, %v7364_v9  ;;  %v12764_v60 = vpop.f32.mrf.mxu2 }
 0x5e2   : > { %v7611_v7 = vpop.f32.mrf.mxu1  ;;  %v12742_v52 = vpop.f32.mrf.mxu3 }
 0x5e3   : > { %v12695_v34 = vadd.f32 %v7611_v7, %v7365_v27  ;;  %v7659_v27 = vadd.f32 %v12605_v62, %v7349_v58  ;;  %v12757_v7 = vld [vmem:[%s13226_s4] ss:$0 sm:$0xff] }
 0x5e4   : > { %v12786_v5 = vadd.f32 %v12757_v7, %v7662_v1 }
 0x5e5   : > { %v12773_v62 = vadd.f32 %v12757_v7, %v7659_v27 }
 0x5e6   : > { %v7732_v15 = vsel %vm976_vm1, %v12786_v5, 0.0 }
 0x5e7   : > { %v7727_v49 = vsel %vm976_vm1, %v12773_v62, 0.0 }
 0x5ea   : > { %v7614_v42 = vpop.f32.mrf.mxu1  ;;  %v12781_v55 = vpop.f32.mrf.mxu3 }
 0x5eb   : > { %v12701_v50 = vadd.f32 %v7614_v42, %v7366_v6  ;;  %v12759_v6 = vpop.f32.mrf.mxu0 }
 0x5f2   : > { %v7617_v51 = vpop.f32.mrf.mxu1  ;;  %v12823_v2 = vpop.f32.mrf.mxu3 }
 0x5f3   : > { %v12709_v54 = vadd.f32 %v7617_v51, %v7367_v11  ;;  %v13681_v11 = vld [vmem:[#allocation33_spill] sm:$0xff] }
 0x5f4   : > { %v7356_v51 = vadd.f32 %v13681_v11, %v12441_v45  ;;  %v12808_v45 = vadd.f32 %v12757_v7, %v7664_v37 }
 0x5f6   : > { %13684 = vst [vmem:[#allocation60_spill] sm:$0xff] %v12808_v45  ;;  %v7666_v58 = vadd.f32 %v13685_v61, %v7356_v51  ;;  %v7736_v1 = vsel %vm976_vm1, %v12808_v45, 0.0 }
 0x5fa   : > { %v7620_v22 = vpop.f32.mrf.mxu1 }
 0x5fb   : > { %v12717_v31 = vadd.f32 %v7620_v22, %v7368_v35  ;;  %v13683_v22 = vld [vmem:[#allocation59_spill] sm:$0xff] }
 0x602   : > { %v7623_v53 = vpop.f32.mrf.mxu1 }
 0x603   : > { %v12726_v32 = vadd.f32 %v7623_v53, %v12645_v26  ;;  %v7350_v26 = vadd.f32 %v12347_v38, %v12343_v44  ;;  %v7661_v44 = vadd.f32 %v12616_v36, %v7351_v33  ;;  %v7663_v36 = vadd.f32 %v12627_v4, %v7353_v16  ;;  %v12811_v33 = vpop.f32.mrf.mxu2 }
 0x604   : > { %v7665_v53 = vadd.f32 %v13683_v22, %v7355_v14  ;;  %v12821_v16 = vadd.f32 %v12757_v7, %v7666_v58  ;;  %v12831_v14 = vadd.f32 %v12757_v7, %v12649_v23 }
 0x605   : > { %v7660_v9 = vadd.f32 %v12610_v3, %v7350_v26  ;;  %v12776_v3 = vadd.f32 %v12757_v7, %v7661_v44  ;;  %v12800_v35 = vadd.f32 %v12757_v7, %v7663_v36  ;;  %v12803_v26 = vpop.f32.mrf.mxu0 }
 0x606   : > { %v12816_v44 = vadd.f32 %v12757_v7, %v7665_v53  ;;  %13687 = vst [vmem:[#allocation54_spill] sm:$0xff] %v12821_v16  ;;  %v7740_v51 = vsel %vm976_vm1, %v12821_v16, 0.0  ;;  %v7742_v53 = vsel %vm976_vm1, %v12831_v14, 0.0  ;;  %v13701_v16 = vld [vmem:[#allocation76_spill] sm:$0xff] }
 0x607   : > { %v12767_v38 = vadd.f32 %v12757_v7, %v7660_v9  ;;  %v7730_v59 = vsel %vm976_vm1, %v12776_v3, 0.0  ;;  %13682 = vst [vmem:[#allocation47_spill] sm:$0xff] %v12800_v35  ;;  %v7734_v27 = vsel %vm976_vm1, %v12800_v35, 0.0 }
 0x608   : > { %13686 = vst [vmem:[#allocation57_spill] sm:$0xff] %v12816_v44  ;;  %v7738_v37 = vsel %vm976_vm1, %v12816_v44, 0.0 }
 0x609   : > { %v7728_v42 = vsel %vm976_vm1, %v12767_v38, 0.0  ;;  %13688 = vst [vmem:[#allocation66_spill] sm:$0xff] %v12831_v14 }
 0x60a   : > { %v12732_v17 = vpop.f32.mrf.mxu1  ;;  %v7729_v8 = vadd.f32 %v7728_v42, %v7727_v49  ;;  %v12837_v49 = vadd.f32 %v12757_v7, %v12654_v41  ;;  %v12853_v41 = vadd.f32 %v12757_v7, %v12665_v0  ;;  %v13696_v0 = vld [vmem:[#allocation98_spill] sm:$0xff] }
 0x60b   : > { %v12847_v23 = vpop.f32.mrf.mxu2 }
 0x60c   : > { %v7731_v9 = vadd.f32 %v7730_v59, %v7729_v8  ;;  %13689 = vst [vmem:[#allocation81_spill] sm:$0xff] %v12837_v49  ;;  %v12845_v8 = vadd.f32 %v12757_v7, %v12660_v57  ;;  %v7744_v61 = vsel %vm976_vm1, %v12837_v49, 0.0  ;;  %v13697_v49 = vld [vmem:[#allocation94_spill] sm:$0xff] }
 0x60d   : > { %v12839_v22 = vpop.f32.mrf.mxu0  ;;  %13691 = vst [vmem:[#allocation43_spill] sm:$0xff] %v12853_v41 }
 0x60e   : > { %v7733_v29 = vadd.f32 %v7732_v15, %v7731_v9  ;;  %13690 = vst [vmem:[#allocation46_spill] sm:$0xff] %v12845_v8  ;;  %v7746_v57 = vsel %vm976_vm1, %v12845_v8, 0.0  ;;  %v13700_v8 = vld [vmem:[#allocation97_spill] sm:$0xff] }
 0x610   : > { %v7735_v36 = vadd.f32 %v7734_v27, %v7733_v29  ;;  %v13692_v27 = vld [vmem:[#allocation96_spill] sm:$0xff]  ;;  %v13693_v29 = vld [vmem:[#allocation93_spill] sm:$0xff] }
 0x612   : > { %v12740_v46 = vpop.f32.mrf.mxu1  ;;  %v7737_v11 = vadd.f32 %v7736_v1, %v7735_v36  ;;  %v6194_v1 = vadd.f32 %v13693_v29, %v13692_v27  ;;  %v12863_v36 = vadd.f32 %v12757_v7, %v12671_v24  ;;  %v12874_v27 = vadd.f32 %v12757_v7, %v12677_v20  ;;  %v13699_v29 = vld [vmem:[#allocation100_spill] sm:$0xff] }
 0x613   : > { %v6196_v14 = vadd.f32 %v13700_v8, %v13699_v29  ;;  %v13705_v20 = vld [vmem:[#allocation104_spill] sm:$0xff]  ;;  %v13707_v8 = vld [vmem:[#allocation71_spill] sm:$0xff]  ;;  %v13709_v29 = vld [vmem:[#allocation106_spill] sm:$0xff] }
 0x614   : > { %v7739_v59 = vadd.f32 %v7738_v37, %v7737_v11  ;;  %13694 = vst [vmem:[#allocation56_spill] sm:$0xff] %v12863_v36  ;;  %v12865_v37 = vpop.f32.mrf.mxu3 }
 0x615   : > { %13698 = vst [vmem:[#allocation16_spill] sm:$0xff] %v12874_v27 }
 0x616   : > { %v7741_v15 = vadd.f32 %v7740_v51, %v7739_v59  ;;  %v13695_v51 = vld [vmem:[#allocation75_spill] sm:$0xff] }
 0x617   : > { %v6472_v59 = vadd.f32 %v13695_v51, %v6194_v1  ;;  %v13703_v1 = vld [vmem:[#allocation102_spill] sm:$0xff]  ;;  %v13704_v51 = vld [vmem:[#allocation99_spill] sm:$0xff] }
 0x618   : > { %v7743_v58 = vadd.f32 %v7742_v53, %v7741_v15  ;;  %v6195_v53 = vadd.f32 %v13697_v49, %v13696_v0  ;;  %v7748_v15 = vsel %vm976_vm1, %v12853_v41, 0.0  ;;  %v12884_v49 = vadd.f32 %v12757_v7, %v12684_v47  ;;  %v13706_v41 = vld [vmem:[#allocation101_spill] sm:$0xff] }
 0x619   : > { %v6197_v0 = vadd.f32 %v13704_v51, %v13703_v1  ;;  %v6198_v45 = vadd.f32 %v13706_v41, %v13705_v20  ;;  %v12898_v47 = vadd.f32 %v12757_v7, %v12690_v48  ;;  %v13710_v1 = vld [vmem:[#allocation103_spill] sm:$0xff]  ;;  %v13711_v41 = vld [vmem:[#allocation108_spill] sm:$0xff] }
 0x61a   : > { %v12751_v18 = vpop.f32.mrf.mxu1  ;;  %v7745_v11 = vadd.f32 %v7744_v61, %v7743_v58  ;;  %v6473_v44 = vadd.f32 %v13701_v16, %v6195_v53  ;;  %v6782_v61 = vadd.f32 %v12699_v39, %v6472_v59  ;;  %v7750_v58 = vsel %vm976_vm1, %v12863_v36, 0.0  ;;  %13702 = vst [vmem:[#allocation84_spill] sm:$0xff] %v12884_v49  ;;  %v13708_v59 = vld [vmem:[#allocation73_spill] sm:$0xff]  ;;  %v13717_v36 = vld [vmem:[#allocation110_spill] sm:$0xff] }
 0x61b   : > { %v7752_v39 = vsel %vm976_vm1, %v12874_v27, 0.0  ;;  %v6475_v53 = vadd.f32 %v13708_v59, %v6197_v0  ;;  %v6199_v51 = vadd.f32 %v13710_v1, %v13709_v29  ;;  %v7754_v48 = vsel %vm976_vm1, %v12884_v49, 0.0  ;;  %v13713_v59 = vld [vmem:[#allocation77_spill] sm:$0xff]  ;;  %v13715_v27 = vld [vmem:[#allocation107_spill] sm:$0xff]  ;;  %v13720_v49 = vld [vmem:[#allocation112_spill] sm:$0xff] }
 0x61c   : > { %v7747_v24 = vadd.f32 %v7746_v57, %v7745_v11  ;;  %v6474_v57 = vadd.f32 %v13707_v8, %v6196_v14  ;;  %v6783_v16 = vadd.f32 %v12711_v28, %v6473_v44  ;;  %v12892_v11 = vpop.f32.mrf.mxu0  ;;  %v6752_v14 = vpop.f32.mrf.mxu2  ;;  %v7092_v44 = vadd.f32 %v12703_v30, %v6782_v61  ;;  %v13714_v1 = vld [vmem:[#allocation109_spill] sm:$0xff] }
 0x61d   : > { %v12913_v0 = vadd.f32 %v12757_v7, %v12695_v34  ;;  %v6476_v29 = vadd.f32 %v13713_v59, %v6198_v45  ;;  %v7756_v61 = vsel %vm976_vm1, %v12898_v47, 0.0  ;;  %v12926_v34 = vadd.f32 %v12757_v7, %v12701_v50  ;;  %v13719_v59 = vld [vmem:[#allocation113_spill] sm:$0xff] }
 0x61e   : > { %v7749_v35 = vadd.f32 %v7748_v15, %v7747_v24  ;;  %v13712_v15 = vld [vmem:[#allocation105_spill] sm:$0xff]  ;;  %v6784_v8 = vadd.f32 %v12721_v10, %v6474_v57  ;;  %v7093_v10 = vadd.f32 %v12713_v12, %v6783_v16  ;;  %v13718_v57 = vld [vmem:[#allocation50_spill] sm:$0xff]  ;;  %v12937_v16 = vadd.f32 %v12757_v7, %v12709_v54 }
 0x61f   : > { %v6200_v24 = vadd.f32 %v13712_v15, %v13711_v41  ;;  %v6201_v41 = vadd.f32 %v13715_v27, %v13714_v1  ;;  %v13716_v15 = vld [vmem:[#allocation111_spill] sm:$0xff]  ;;  %v6477_v45 = vadd.f32 %v13718_v57, %v6199_v51  ;;  %v6203_v27 = vadd.f32 %v13720_v49, %v13719_v59 }
 0x620   : > { %v7751_v20 = vadd.f32 %v7750_v58, %v7749_v35  ;;  %v6785_v35 = vadd.f32 %v12730_v40, %v6475_v53  ;;  %v6202_v30 = vadd.f32 %v13717_v36, %v13716_v15  ;;  %v6786_v40 = vadd.f32 %v12738_v56, %v6476_v29  ;;  %v13722_v29 = vld [vmem:[#allocation48_spill] sm:$0xff] }
 0x621   : > { %v7094_v36 = vadd.f32 %v12723_v19, %v6784_v8  ;;  %v7758_v12 = vsel %vm976_vm1, %v12913_v0, 0.0  ;;  %v7370_v50 = vadd.f32 %v12707_v13, %v7092_v44  ;;  %v6787_v49 = vadd.f32 %v12764_v60, %v6477_v45 }
 0x622   : > { %v12793_v4 = vpop.f32.mrf.mxu1  ;;  %v7753_v58 = vadd.f32 %v7752_v39, %v7751_v20  ;;  %v7062_v39 = vpop.f32.mrf.mxu3  ;;  %v13721_v20 = vld [vmem:[#allocation4_spill] sm:$0xff]  ;;  %v7095_v1 = vadd.f32 %v12734_v43, %v6785_v35  ;;  %v12947_v19 = vadd.f32 %v12757_v7, %v12717_v31  ;;  %v7371_v54 = vadd.f32 %v12719_v25, %v7093_v10  ;;  %v13723_v25 = vld [vmem:[#allocation78_spill] sm:$0xff] }
 0x623   : > { %v6478_v51 = vadd.f32 %v13721_v20, %v6200_v24  ;;  %v7680_v8 = vadd.f32 %v12732_v17, %v7370_v50  ;;  %v6479_v13 = vadd.f32 %v13722_v29, %v6201_v41  ;;  %v7096_v24 = vadd.f32 %v12742_v52, %v6786_v40 }
 0x624   : > { %v7755_v53 = vadd.f32 %v7754_v48, %v7753_v58  ;;  %v7760_v48 = vsel %vm976_vm1, %v12926_v34, 0.0  ;;  %v7762_v35 = vsel %vm976_vm1, %v12937_v16, 0.0  ;;  %v12958_v58 = vadd.f32 %v12757_v7, %v12726_v32  ;;  %v7340_v52 = vpop.f32.mrf.mxu0  ;;  %v6755_v10 = vpop.f32.mrf.mxu2 }
 0x625   : > { %v6788_v43 = vadd.f32 %v12811_v33, %v6478_v51  ;;  %v7681_v31 = vadd.f32 %v12740_v46, %v7371_v54  ;;  %v7372_v17 = vadd.f32 %v12728_v63, %v7094_v36  ;;  %v6480_v15 = vadd.f32 %v13723_v25, %v6202_v30  ;;  %v13724_v63 = vld [vmem:[#allocation51_spill] sm:$0xff]  ;;  %v13726_v54 = vld [vmem:[#allocation114_spill] sm:$0xff] }
 0x626   : > { %v7757_v56 = vadd.f32 %v7756_v61, %v7755_v53  ;;  %v7097_v41 = vadd.f32 %v12781_v55, %v6787_v49  ;;  %v6789_v33 = vadd.f32 %v12847_v23, %v6479_v13  ;;  %v7764_v57 = vsel %vm976_vm1, %v12947_v19, 0.0 }
 0x627   : > { %v12968_v45 = vadd.f32 %v12757_v7, %v7680_v8  ;;  %v7682_v32 = vadd.f32 %v12751_v18, %v7372_v17  ;;  %v7373_v46 = vadd.f32 %v12736_v21, %v7095_v1  ;;  %v6481_v59 = vadd.f32 %v13724_v63, %v6203_v27  ;;  %v13725_v8 = vld [vmem:[#allocation115_spill] sm:$0xff] }
 0x628   : > { %v7759_v44 = vadd.f32 %v7758_v12, %v7757_v56  ;;  %v7098_v30 = vadd.f32 %v12823_v2, %v6788_v43  ;;  %v6790_v55 = vadd.f32 %v6752_v14, %v6480_v15  ;;  %v7766_v23 = vsel %vm976_vm1, %v12958_v58, 0.0 }
 0x629   : > { %v12977_v53 = vadd.f32 %v12757_v7, %v7681_v31  ;;  %v7683_v36 = vadd.f32 %v12793_v4, %v7373_v46  ;;  %v7374_v12 = vadd.f32 %v12759_v6, %v7096_v24  ;;  %v7099_v18 = vadd.f32 %v12865_v37, %v6789_v33 }
 0x62a   : > { %v12825_v42 = vpop.f32.mrf.mxu1  ;;  %v7761_v61 = vadd.f32 %v7760_v48, %v7759_v44  ;;  %v6791_v50 = vadd.f32 %v6755_v10, %v6481_v59  ;;  %v7065_v21 = vpop.f32.mrf.mxu3  ;;  %v7768_v2 = vsel %vm976_vm1, %v12968_v45, 0.0  ;;  %v12985_v14 = vadd.f32 %v12757_v7, %v7682_v32 }
 0x62b   : > { %v7684_v27 = vadd.f32 %v12825_v42, %v7374_v12  ;;  %v7375_v51 = vadd.f32 %v12803_v26, %v7097_v41  ;;  %v7100_v1 = vadd.f32 %v7062_v39, %v6790_v55  ;;  %v7770_v6 = vsel %vm976_vm1, %v12977_v53, 0.0 }
 0x62c   : > { %v7763_v40 = vadd.f32 %v7762_v35, %v7761_v61  ;;  %v12992_v37 = vadd.f32 %v12757_v7, %v7683_v36  ;;  %v7376_v48 = vadd.f32 %v12839_v22, %v7098_v30  ;;  %v6204_v29 = vadd.f32 %v13726_v54, %v13725_v8  ;;  %v7343_v42 = vpop.f32.mrf.mxu0  ;;  %v13727_v35 = vld [vmem:[#allocation53_spill] sm:$0xff]  ;;  %v6758_v31 = vpop.f32.mrf.mxu2 }
 0x62d   : > { %v7101_v13 = vadd.f32 %v7065_v21, %v6791_v50  ;;  %v7772_v26 = vsel %vm976_vm1, %v12985_v14, 0.0  ;;  %v13001_v39 = vadd.f32 %v12757_v7, %v7684_v27  ;;  %v7377_v44 = vadd.f32 %v12892_v11, %v7099_v18 }
 0x62e   : > { %v7765_v20 = vadd.f32 %v7764_v57, %v7763_v40  ;;  %v7774_v17 = vsel %vm976_vm1, %v12992_v37, 0.0  ;;  %v7378_v41 = vadd.f32 %v7340_v52, %v7100_v1 }
 0x62f   : > { %v7379_v33 = vadd.f32 %v7343_v42, %v7101_v13 }
 0x630   : > { %v7767_v49 = vadd.f32 %v7766_v23, %v7765_v20 }
 0x632   : > { %v12855_v9 = vpop.f32.mrf.mxu1  ;;  %v7769_v24 = vadd.f32 %v7768_v2, %v7767_v49  ;;  %v7068_v32 = vpop.f32.mrf.mxu3 }
 0x633   : > { %v7685_v56 = vadd.f32 %v12855_v9, %v7375_v51  ;;  %v6482_v9 = vadd.f32 %v13727_v35, %v6204_v29 }
 0x634   : > { %v7771_v22 = vadd.f32 %v7770_v6, %v7769_v24  ;;  %v7346_v36 = vpop.f32.mrf.mxu0 }
 0x635   : > { %v13009_v25 = vadd.f32 %v12757_v7, %v7685_v56  ;;  %v6792_v61 = vadd.f32 %v6758_v31, %v6482_v9  ;;  %v8865_v9 = vmov 0   ;;  %v7803_v31 = vld [vmem:[#allocation3] sm:$0x1] }
 0x636   : > { %v7773_v10 = vadd.f32 %v7772_v26, %v7771_v22  ;;  %8696 = vset.pattern.permute.xlu0 %v8865_v9 }
 0x637   : > { %v7778_v59 = vsel %vm976_vm1, %v13009_v25, 0.0  ;;  %v7102_v55 = vadd.f32 %v7068_v32, %v6792_v61 }
 0x638   : > { %v7775_v46 = vadd.f32 %v7774_v17, %v7773_v10 }
 0x639   : > { %v7380_v20 = vadd.f32 %v7346_v36, %v7102_v55 }
 0x63a   : > { %v12905_v28 = vpop.f32.mrf.mxu1 }
 0x63b   : > { %v7686_v43 = vadd.f32 %v12905_v28, %v7376_v48  ;;  %v7776_v28 = vsel %vm976_vm1, %v13001_v39, 0.0 }
 0x63c   : > { %v7777_v52 = vadd.f32 %v7776_v28, %v7775_v46 }
 0x63d   : > { %v13014_v11 = vadd.f32 %v12757_v7, %v7686_v43  ;;  %v7797_v43 = vld [vmem:[%s13227_s5] sm:$0x1] }
 0x63e   : > { %v7779_v12 = vadd.f32 %v7778_v59, %v7777_v52 }
 0x63f   : > { %v7780_v40 = vsel %vm976_vm1, %v13014_v11, 0.0 }
 0x640   : > { %v7781_v21 = vadd.f32 %v7780_v40, %v7779_v12 }
 0x642   : > { %v7647_v60 = vpop.f32.mrf.mxu1 }
 0x643   : > { %v7687_v15 = vadd.f32 %v7647_v60, %v7377_v44 }
 0x645   : > { %v13019_v30 = vadd.f32 %v12757_v7, %v7687_v15 }
 0x647   : > { %v7782_v18 = vsel %vm976_vm1, %v13019_v30, 0.0 }
 0x648   : > { %v7783_v27 = vadd.f32 %v7782_v18, %v7781_v21 }
 0x64a   : > { %v7650_v4 = vpop.f32.mrf.mxu1 }
 0x64b   : > { %v7688_v57 = vadd.f32 %v7650_v4, %v7378_v41 }
 0x64d   : > { %v13024_v23 = vadd.f32 %v12757_v7, %v7688_v57 }
 0x64f   : > { %v7784_v2 = vsel %vm976_vm1, %v13024_v23, 0.0 }
 0x650   : > { %v7785_v4 = vadd.f32 %v7784_v2, %v7783_v27 }
 0x652   : > { %v7653_v63 = vpop.f32.mrf.mxu1 }
 0x653   : > { %v7689_v60 = vadd.f32 %v7653_v63, %v7379_v33 }
 0x655   : > { %v13029_v50 = vadd.f32 %v12757_v7, %v7689_v60 }
 0x657   : > { %v7786_v1 = vsel %vm976_vm1, %v13029_v50, 0.0 }
 0x658   : > { %v7787_v56 = vadd.f32 %v7786_v1, %v7785_v4 }
 0x65a   : > { %v7656_v51 = vpop.f32.mrf.mxu1 }
 0x65b   : > { %v7690_v49 = vadd.f32 %v7656_v51, %v7380_v20 }
 0x65d   : > { %v13036_v6 = vadd.f32 %v12757_v7, %v7690_v49 }
 0x65f   : > { %v7788_v48 = vsel %vm976_vm1, %v13036_v6, 0.0 }
 0x660   : > { %v7789_v8 = vadd.f32 %v7788_v48, %v7787_v56 }
 0x662   : > { %v7790_v54 = vrot.slane %v7789_v8, 4 }
 0x664   : > { %v7791_v29 = vadd.f32 %v7790_v54, %v7789_v8  ;;  %v13728_v54 = vmov -1.0  }
 0x666   : > { %v7792_v13 = vrot.slane %v7791_v29, 2 }
 0x668   : > { %v7793_v42 = vadd.f32 %v7792_v13, %v7791_v29 }
 0x66a   : > { %v7794_v24 = vrot.slane %v7793_v42, 1 }
 0x66c   : > { %v7795_v26 = vadd.f32 %v7794_v24, %v7793_v42 }
 0x66e   : > { %v7796_v44 = vmul.f32 0.00390625, %v7795_v26 }
 0x670   : > { %v7798_v35 = vmul.f32 %v7797_v43, %v7796_v44  ;;  %v7845_v43 = vld [vmem:[%s13229_s7] sm:$0x1] }
 0x671   : > { %v7853_v44 = vld [vmem:[%s13230_s8] sm:$0x1] }
 0x672   : > { %v7800_v7 = vsel %vm7799_vm12, %v7798_v35, 0.0 }
 0x673   : > { %7801 = vadd.xlane.f32.xlu0 %v7800_v7 }
 0x6e6   : > { %v7802_v22 = vpop.xlane.xlu0 %7801 }
 0x6e7   : > { %v7804_v17 = vadd.f32 %v7803_v31, %v7802_v22 }
 0x6e9   : > { %v7806_v15 = vmul.f32 0.70710677, %v7804_v17  ;;  %v7805_v42 = vmul.f32 0.5, %v7804_v17 }
 0x6eb   : > { %v7809_v41 = vand.u32 2147483647, %v7806_v15  ;;  %vm7807_vm3 = vcmp.ge.f32.partialorder %v7806_v15, 0.0 }
 0x6ec   : > { %v7808_v29 = vsel %vm7807_vm3, 1.0, %v13728_v54 }
 0x6ed   : > { %v7810_v33 = vmul.f32 0.3275911, %v7809_v41  ;;  %v7836_v55 = vsub.f32 0.0, %v7809_v41 }
 0x6ef   : > { %v7811_v10 = vadd.f32 1.0, %v7810_v33  ;;  %v7837_v18 = vmul.f32 %v7836_v55, %v7809_v41 }
 0x6f1   : > { %8827 = vrcp.f32 %v7811_v10  ;;  %v7823_v32 = vand.u32 2147483648, %v7811_v10  ;;  %v7821_v63 = vand.u32 2147483647, %v7811_v10  ;;  %vm7817_vm14 = vweird.f32 %v7811_v10 }
 0x6f2   : > { %v7838_v2 = vmul.f32 1.442695, %v7837_v18 }
 0x6f3   : > { %v7824_v60 = vor.u32 1.1754944e-38, %v7823_v32  ;;  %vm7822_vm2 = vcmp.eq.f32.partialorder %v7821_v63, 8.507059e+37 }
 0x6f4   : > { %8829 = vpow2.f32 %v7838_v2  ;;  %v13733_v2 = vld [vmem:[#allocation10_spill] sm:$0xff] }
 0x6f7   : > { %v8828_v61 = vpop.eup %8827 }
 0x6f8   : > { %v7813_v28 = vmul.f32 %v8828_v61, %v7811_v10  ;;  %vm7818_vm13 = vweird.f32 %v8828_v61 }
 0x6f9   : > { %vm7819_vm15 = vmor %vm7817_vm14, %vm7818_vm13 }
 0x6fa   : > { %v7814_v57 = vsub.f32 1.0, %v7813_v28  ;;  %v8830_v56 = vpop.eup %8829 }
 0x6fc   : > { %v7815_v46 = vmul.f32 %v8828_v61, %v7814_v57 }
 0x6fe   : > { %v7816_v59 = vadd.f32 %v8828_v61, %v7815_v46 }
 0x700   : > { %v7820_v52 = vsel %vm7819_vm15, %v8828_v61, %v7816_v59 }
 0x701   : > { %v7825_v40 = vsel %vm7822_vm2, %v7824_v60, %v7820_v52 }
 0x702   : > { %v7827_v36 = vmul.f32 1.0614054, %v7825_v40 }
 0x704   : > { %v7828_v12 = vadd.f32 -1.4531521, %v7827_v36 }
 0x706   : > { %v7829_v21 = vmul.f32 %v7828_v12, %v7825_v40  ;;  %v13729_v12 = vld [vmem:[#allocation47_spill] sm:$0xff] }
 0x708   : > { %v7830_v20 = vadd.f32 1.4214138, %v7829_v21  ;;  %v13730_v21 = vld [vmem:[#allocation60_spill] sm:$0xff] }
 0x70a   : > { %v7831_v27 = vmul.f32 %v7830_v20, %v7825_v40  ;;  %v13732_v20 = vld [vmem:[#allocation8_spill] sm:$0xff] }
 0x70c   : > { %v7832_v51 = vadd.f32 -0.28449672, %v7831_v27 }
 0x70e   : > { %v7833_v1 = vmul.f32 %v7832_v51, %v7825_v40  ;;  %v13734_v51 = vld [vmem:[#allocation12_spill] sm:$0xff] }
 0x710   : > { %v7834_v49 = vadd.f32 0.2548296, %v7833_v1 }
 0x712   : > { %v7835_v4 = vmul.f32 %v7834_v49, %v7825_v40  ;;  %v13735_v49 = vld [vmem:[#allocation54_spill] sm:$0xff] }
 0x714   : > { %v7840_v48 = vmul.f32 %v8830_v56, %v7835_v4  ;;  %v13736_v56 = vld [vmem:[#allocation15_spill] sm:$0xff] }
 0x716   : > { %v7841_v8 = vsub.f32 1.0, %v7840_v48 }
 0x718   : > { %v7842_v13 = vmul.f32 %v7841_v8, %v7808_v29  ;;  %v13737_v8 = vld [vmem:[#allocation66_spill] sm:$0xff] }
 0x719   : > { %v13738_v29 = vld [vmem:[#allocation18_spill] sm:$0xff] }
 0x71a   : > { %v7843_v24 = vadd.f32 1.0, %v7842_v13 }
 0x71c   : > { %v7844_v26 = vmul.f32 %v7843_v24, %v7805_v42  ;;  %v13739_v42 = vld [vmem:[#allocation81_spill] sm:$0xff] }
 0x71e   : > { %7848 = vperm.xlu0 %8696, %v7844_v26   ;;  %v13740_v26 = vld [vmem:[#allocation20_spill] sm:$0xff] }
 0x790   : > { %v7849_v35 = vpop.permute.xlu0 %7848 }
 0x791   : > { %v7851_v7 = vmul.f32 %v7849_v35, %v7845_v43 }
 0x793   : > { %v7854_v9 = vadd.f32 %v7853_v44, %v7851_v7  ;;  %v13741_v44 = vld [vmem:[#allocation46_spill] sm:$0xff]  ;;  %v13742_v7 = vld [vmem:[#allocation24_spill] sm:$0xff] }
 0x795   : > { %v7855_v31 = vsub.f32 0.0, %v7854_v9 }
 0x797   : > { %v7856_v22 = vmul.f32 1.442695, %v7855_v31  ;;  %v13743_v31 = vld [vmem:[#allocation43_spill] sm:$0xff] }
 0x799   : > { %8831 = vpow2.f32 %v7856_v22 }
 0x79f   : > { %v8832_v15 = vpop.eup %8831 }
 0x7a0   : > { %v7858_v41 = vadd.f32 1.0, %v8832_v15  ;;  %v13744_v15 = vld [vmem:[#allocation26_spill] sm:$0xff] }
 0x7a2   : > { %8833 = vrcp.f32 %v7858_v41  ;;  %v7870_v61 = vand.u32 2147483648, %v7858_v41  ;;  %v7868_v57 = vand.u32 2147483647, %v7858_v41  ;;  %vm7864_vm5 = vweird.f32 %v7858_v41 }
 0x7a4   : > { %v7871_v46 = vor.u32 1.1754944e-38, %v7870_v61  ;;  %vm7869_vm7 = vcmp.eq.f32.partialorder %v7868_v57, 8.507059e+37 }
 0x7a8   : > { %v8834_v17 = vpop.eup %8833 }
 0x7a9   : > { %v7860_v33 = vmul.f32 %v8834_v17, %v7858_v41  ;;  %vm7865_vm4 = vweird.f32 %v8834_v17 }
 0x7aa   : > { %vm7866_vm6 = vmor %vm7864_vm5, %vm7865_vm4 }
 0x7ab   : > { %v7861_v10 = vsub.f32 1.0, %v7860_v33 }
 0x7ad   : > { %v7862_v28 = vmul.f32 %v8834_v17, %v7861_v10  ;;  %v13746_v10 = vld [vmem:[#allocation30_spill] sm:$0xff] }
 0x7af   : > { %v7863_v32 = vadd.f32 %v8834_v17, %v7862_v28  ;;  %v13747_v28 = vld [vmem:[#allocation16_spill] sm:$0xff] }
 0x7b1   : > { %v7867_v63 = vsel %vm7866_vm6, %v8834_v17, %v7863_v32  ;;  %v13745_v17 = vld [vmem:[#allocation56_spill] sm:$0xff] }
 0x7b2   : > { %v7872_v59 = vsel %vm7869_vm7, %v7871_v46, %v7867_v63  ;;  %v13748_v32 = vld [vmem:[#allocation32_spill] sm:$0xff] }
 0x7b3   : > { %v13050_v60 = vperm.slane %v7872_v59, 0  ;;  %v13749_v63 = vld [vmem:[#allocation84_spill] sm:$0xff] }
 0x7b5   : > { %v7877_v52 = vmul.f32 %v13050_v60, %v12773_v62  ;;  %v7878_v55 = vmul.f32 %v13050_v60, %v12767_v38  ;;  %v7879_v40 = vmul.f32 %v13050_v60, %v12776_v3  ;;  %v7880_v36 = vmul.f32 %v13050_v60, %v12786_v5  ;;  %v13731_v62 = vld [vmem:[#allocation57_spill] sm:$0xff] }
 0x7b6   : > { %v7881_v18 = vmul.f32 %v13050_v60, %v13729_v12  ;;  %v7882_v38 = vmul.f32 %v13050_v60, %v13730_v21  ;;  %v7883_v3 = vmul.f32 %v13050_v60, %v13731_v62  ;;  %v7884_v4 = vmul.f32 %v13050_v60, %v13735_v49  ;;  %v13752_v21 = vld [vmem:[#allocation41_spill] sm:$0xff] }
 0x7b7   : > { %v7909_v5 = vadd.f32 %v7877_v52, %v13732_v20  ;;  %v7910_v27 = vadd.f32 %v7878_v55, %v13733_v2  ;;  %v7911_v1 = vadd.f32 %v7879_v40, %v13734_v51  ;;  %v7912_v48 = vadd.f32 %v7880_v36, %v13736_v56  ;;  %v13750_v52 = vld [vmem:[#allocation36_spill] sm:$0xff]  ;;  %v13751_v36 = vld [vmem:[#allocation38_spill] sm:$0xff] }
 0x7b8   : > { %v7885_v54 = vmul.f32 %v13050_v60, %v13737_v8  ;;  %v7913_v13 = vadd.f32 %v7881_v18, %v13738_v29  ;;  %v7886_v24 = vmul.f32 %v13050_v60, %v13739_v42  ;;  %v7914_v43 = vadd.f32 %v7882_v38, %v13740_v26 }
 0x7b9   : > { %7941 = vst.msk [vmem:[%s13067_s13] sm:$0xff] %vm976_vm1, %v7909_v5  ;;  %v7887_v35 = vmul.f32 %v13050_v60, %v13741_v44  ;;  %v7915_v9 = vadd.f32 %v7883_v3, %v13742_v7  ;;  %v7888_v22 = vmul.f32 %v13050_v60, %v13743_v31  ;;  %v7916_v41 = vadd.f32 %v7884_v4, %v13744_v15  ;;  %v13753_v3 = vld [vmem:[#allocation6_spill] sm:$0xff]  ;;  %v13754_v5 = vld [vmem:[#allocation5_spill] sm:$0xff]  ;;  %v13757_v4 = vld [vmem:[#allocation11_spill] sm:$0xff] }
 0x7ba   : > { %7942 = vst.msk [vmem:[%s13067_s13 + $0x8] sm:$0xff] %vm976_vm1, %v7910_v27  ;;  %v7889_v33 = vmul.f32 %v13050_v60, %v13745_v17  ;;  %v7917_v61 = vadd.f32 %v7885_v54, %v13746_v10  ;;  %v7890_v57 = vmul.f32 %v13050_v60, %v13747_v28  ;;  %v7918_v46 = vadd.f32 %v7886_v24, %v13748_v32  ;;  %v13755_v27 = vld [vmem:[#allocation7_spill] sm:$0xff]  ;;  %v13759_v54 = vld [vmem:[#allocation17_spill] sm:$0xff]  ;;  %v13768_v10 = vld [vmem:[#allocation42_spill] sm:$0xff] }
 0x7bb   : > { %7943 = vst.msk [vmem:[%s13067_s13 + $0x10] sm:$0xff] %vm976_vm1, %v7911_v1  ;;  %v7891_v59 = vmul.f32 %v13050_v60, %v13749_v63  ;;  %v7919_v55 = vadd.f32 %v7887_v35, %v13750_v52  ;;  %v7892_v40 = vmul.f32 %v13050_v60, %v12898_v47  ;;  %v7920_v12 = vadd.f32 %v7888_v22, %v13751_v36  ;;  %v13756_v1 = vld [vmem:[#allocation9_spill] sm:$0xff]  ;;  %v13761_v24 = vld [vmem:[#allocation23_spill] sm:$0xff]  ;;  %v13769_v28 = vld [vmem:[#allocation44_spill] sm:$0xff] }
 0x7bc   : > { %7944 = vst.msk [vmem:[%s13067_s13 + $0x18] sm:$0xff] %vm976_vm1, %v7912_v48  ;;  %v7893_v18 = vmul.f32 %v13050_v60, %v12913_v0  ;;  %v7921_v38 = vadd.f32 %v7889_v33, %v13752_v21  ;;  %v7894_v62 = vmul.f32 %v13050_v60, %v12926_v34  ;;  %v7922_v20 = vadd.f32 %v7890_v57, %v13753_v3  ;;  %v13758_v48 = vld [vmem:[#allocation13_spill] sm:$0xff]  ;;  %v13765_v22 = vld [vmem:[#allocation35_spill] sm:$0xff] }
 0x7bd   : > { %7945 = vst.msk [vmem:[%s13067_s13 + $0x20] sm:$0xff] %vm976_vm1, %v7913_v13  ;;  %v7895_v47 = vmul.f32 %v13050_v60, %v12937_v16  ;;  %v7923_v2 = vadd.f32 %v7891_v59, %v13754_v5  ;;  %v7896_v0 = vmul.f32 %v13050_v60, %v12947_v19  ;;  %v7924_v51 = vadd.f32 %v7892_v40, %v13755_v27  ;;  %v13760_v13 = vld [vmem:[#allocation19_spill] sm:$0xff]  ;;  %v13763_v35 = vld [vmem:[#allocation29_spill] sm:$0xff] }
 0x7be   : > { %7946 = vst.msk [vmem:[%s13067_s13 + $0x28] sm:$0xff] %vm976_vm1, %v7914_v43  ;;  %v7897_v34 = vmul.f32 %v13050_v60, %v12958_v58  ;;  %v7925_v49 = vadd.f32 %v7893_v18, %v13756_v1  ;;  %v7898_v16 = vmul.f32 %v13050_v60, %v12968_v45  ;;  %v7926_v56 = vadd.f32 %v7894_v62, %v13757_v4  ;;  %v13762_v43 = vld [vmem:[#allocation25_spill] sm:$0xff] }
 0x7bf   : > { %7947 = vst.msk [vmem:[%s13067_s13 + $0x30] sm:$0xff] %vm976_vm1, %v7915_v9  ;;  %v7899_v19 = vmul.f32 %v13050_v60, %v12977_v53  ;;  %v7927_v8 = vadd.f32 %v7895_v47, %v13758_v48  ;;  %v7900_v58 = vmul.f32 %v13050_v60, %v12985_v14  ;;  %v7928_v29 = vadd.f32 %v7896_v0, %v13759_v54  ;;  %v13764_v9 = vld [vmem:[#allocation31_spill] sm:$0xff] }
 0x7c0   : > { %7948 = vst.msk [vmem:[%s13067_s13 + $0x38] sm:$0xff] %vm976_vm1, %v7916_v41  ;;  %v7901_v45 = vmul.f32 %v13050_v60, %v12992_v37  ;;  %v7929_v42 = vadd.f32 %v7897_v34, %v13760_v13  ;;  %v7902_v53 = vmul.f32 %v13050_v60, %v13001_v39  ;;  %v7930_v26 = vadd.f32 %v7898_v16, %v13761_v24  ;;  %v13766_v41 = vld [vmem:[#allocation37_spill] sm:$0xff] }
 0x7c1   : > { %7949 = vst.msk [vmem:[%s13067_s13 + $0x40] sm:$0xff] %vm976_vm1, %v7917_v61  ;;  %v7903_v14 = vmul.f32 %v13050_v60, %v13009_v25  ;;  %v7931_v44 = vadd.f32 %v7899_v19, %v13762_v43  ;;  %v7904_v37 = vmul.f32 %v13050_v60, %v13014_v11  ;;  %v7932_v7 = vadd.f32 %v7900_v58, %v13763_v35 }
 0x7c2   : > { %7950 = vst.msk [vmem:[%s13067_s13 + $0x48] sm:$0xff] %vm976_vm1, %v7918_v46  ;;  %v7905_v39 = vmul.f32 %v13050_v60, %v13019_v30  ;;  %v7933_v31 = vadd.f32 %v7901_v45, %v13764_v9  ;;  %v7906_v25 = vmul.f32 %v13050_v60, %v13024_v23  ;;  %v7934_v11 = vadd.f32 %v7902_v53, %v13765_v22  ;;  %v13767_v23 = vld [vmem:[#allocation40_spill] sm:$0xff] }
 0x7c3   : > { %7951 = vst.msk [vmem:[%s13067_s13 + $0x50] sm:$0xff] %vm976_vm1, %v7919_v55  ;;  %v7907_v15 = vmul.f32 %v13050_v60, %v13029_v50  ;;  %v7935_v30 = vadd.f32 %v7903_v14, %v13766_v41  ;;  %v7908_v17 = vmul.f32 %v13050_v60, %v13036_v6  ;;  %v7936_v33 = vadd.f32 %v7904_v37, %v13767_v23  ;;  %v13770_v50 = vld [vmem:[#allocation79_spill] sm:$0xff]  ;;  %v13771_v46 = vld [vmem:[#allocation80_spill] sm:$0xff] }
 0x7c4   : > { %7952 = vst.msk [vmem:[%s13067_s13 + $0x58] sm:$0xff] %vm976_vm1, %v7920_v12  ;;  %v7937_v61 = vadd.f32 %v7905_v39, %v13768_v10  ;;  %v7938_v57 = vadd.f32 %v7906_v25, %v13769_v28 }
 0x7c5   : > { %7953 = vst.msk [vmem:[%s13067_s13 + $0x60] sm:$0xff] %vm976_vm1, %v7921_v38  ;;  %v7939_v32 = vadd.f32 %v7907_v15, %v13770_v50  ;;  %v7940_v63 = vadd.f32 %v7908_v17, %v13771_v46 }
 0x7c6   : > { %7954 = vst.msk [vmem:[%s13067_s13 + $0x68] sm:$0xff] %vm976_vm1, %v7922_v20 }
 0x7c7   : > { %7955 = vst.msk [vmem:[%s13067_s13 + $0x70] sm:$0xff] %vm976_vm1, %v7923_v2 }
 0x7c8   : > { %7956 = vst.msk [vmem:[%s13067_s13 + $0x78] sm:$0xff] %vm976_vm1, %v7924_v51 }
 0x7c9   : > { %7957 = vst.msk [vmem:[%s13067_s13 + $0x80] sm:$0xff] %vm976_vm1, %v7925_v49 }
 0x7ca   : > { %7958 = vst.msk [vmem:[%s13067_s13 + $0x88] sm:$0xff] %vm976_vm1, %v7926_v56 }
 0x7cb   : > { %7959 = vst.msk [vmem:[%s13067_s13 + $0x90] sm:$0xff] %vm976_vm1, %v7927_v8 }
 0x7cc   : > { %7960 = vst.msk [vmem:[%s13067_s13 + $0x98] sm:$0xff] %vm976_vm1, %v7928_v29 }
 0x7cd   : > { %7961 = vst.msk [vmem:[%s13067_s13 + $0xa0] sm:$0xff] %vm976_vm1, %v7929_v42 }
 0x7ce   : > { %7962 = vst.msk [vmem:[%s13067_s13 + $0xa8] sm:$0xff] %vm976_vm1, %v7930_v26 }
 0x7cf   : > { %7963 = vst.msk [vmem:[%s13067_s13 + $0xb0] sm:$0xff] %vm976_vm1, %v7931_v44 }
 0x7d0   : > { %7964 = vst.msk [vmem:[%s13067_s13 + $0xb8] sm:$0xff] %vm976_vm1, %v7932_v7 }
 0x7d1   : > { %7965 = vst.msk [vmem:[%s13067_s13 + $0xc0] sm:$0xff] %vm976_vm1, %v7933_v31 }
 0x7d2   : > { %7966 = vst.msk [vmem:[%s13067_s13 + $0xc8] sm:$0xff] %vm976_vm1, %v7934_v11 }
 0x7d3   : > { %7967 = vst.msk [vmem:[%s13067_s13 + $0xd0] sm:$0xff] %vm976_vm1, %v7935_v30 }
 0x7d4   : > { %7968 = vst.msk [vmem:[%s13067_s13 + $0xd8] sm:$0xff] %vm976_vm1, %v7936_v33 }
 0x7d5   : > { %7969 = vst.msk [vmem:[%s13067_s13 + $0xe0] sm:$0xff] %vm976_vm1, %v7937_v61 }
 0x7d6   : > { %7970 = vst.msk [vmem:[%s13067_s13 + $0xe8] sm:$0xff] %vm976_vm1, %v7938_v57 }
 0x7d7   : > { %7971 = vst.msk [vmem:[%s13067_s13 + $0xf0] sm:$0xff] %vm976_vm1, %v7939_v32 }
 0x7d8   : > { %7972 = vst.msk [vmem:[%s13067_s13 + $0xf8] sm:$0xff] %vm976_vm1, %v7940_v63 }
 0x7d9 PF: > { %s21_s11 = sadd.s32 1, %s8861_s11  }
 0x7da   : > { %p18_p4 = scmp.ge.s32.totalorder %s21_s11, 4  }
 0x7dc   :  { %20 = sbr.rel (!%p18_p4) target bundleno = 3 (0x3), region = 102 }

</bundles_post_ra>
